<compile_context>
chip_gen: v5e
topology: v5e:2x2
jax: 0.10.0
libtpu: 0.0.40
codegen_flags: <defaults>
</compile_context>

<pallas_src>
import functools

import jax
import jax.numpy as jnp
from jax import lax
from jax.experimental import pallas as pl
from jax.experimental.pallas import tpu as pltpu

EPS = 1e-5                       # nn.BatchNorm2d default eps
LANE = 128                       # TPU lane width / MXU-native N granularity
TM_MAX = 512                     # max M-tile rows (output pixels)
TK_MAX = 2048                    # max K-tile (full K when it fits)
_VMEM_LIMIT = 32 * 1024 * 1024   # explicit scoped-VMEM budget (safe on v5e/v6e/v7x)
ACT_DTYPE = jnp.bfloat16         # inter-kernel activation storage dtype


def _round_up(x, m):
    return (x + m - 1) // m * m


def _choose_tk(kp):
    """Full padded K when it fits comfortably in VMEM, else largest 128-multiple divisor."""
    if kp <= TK_MAX:
        return kp
    for cand in (2048, 1024, 512, 384, 256, 128):
        if kp % cand == 0:
            return cand
    return LANE


def _choose_tm(m):
    """Full (8-rounded) M when small, else the tile <= TM_MAX minimizing padding."""
    if m <= TM_MAX:
        return _round_up(m, 8)
    best_tm, best_pad = 8, None
    for tm in range(TM_MAX, 7, -8):
        pad = (-m) % tm
        if best_pad is None or pad < best_pad:
            best_tm, best_pad = tm, pad
            if pad == 0:
                break
    return best_tm


# ------------------------------------------------------------------ Pallas kernels

def _matmul_kernel(a_ref, b_ref, bias_ref, *rest, nk, compute_stats):
    """Tiled Y = A @ B (+ bias at finalize) with a f32 VMEM accumulator over the K axis.

    Optionally emits per-(M-tile, channel) sum / sum-of-squares of the *bias-free*
    accumulator so BatchNorm batch statistics can be reduced across M tiles in the epilogue
    kernel (zero-padded M rows then contribute exactly nothing).
    """
    if compute_stats:
        o_ref, stats_ref, acc_ref = rest
    else:
        o_ref, acc_ref = rest

    k = pl.program_id(2)

    @pl.when(k == 0)
    def _init():
        acc_ref[...] = jnp.zeros_like(acc_ref)

    acc_ref[...] += jnp.dot(a_ref[...], b_ref[...],
                            preferred_element_type=jnp.float32)

    @pl.when(k == nk - 1)
    def _finalize():
        acc = acc_ref[...]
        o_ref[...] = (acc + bias_ref[...]).astype(o_ref.dtype)
        if compute_stats:
            s = jnp.sum(acc, axis=0, keepdims=True)          # (1, tn)
            ss = jnp.sum(acc * acc, axis=0, keepdims=True)   # (1, tn)
            pad = jnp.zeros((6, s.shape[-1]), jnp.float32)
            stats_ref[0] = jnp.concatenate([s, ss, pad], axis=0)


def _coef_from_stats(stats_ref, bias_ref, m_valid):
    """Per-channel BN (scale, shift) from the per-tile partial stats (training-mode BN)."""
    tot = jnp.sum(stats_ref[...], axis=0)        # (8, Np); row 0 = sum, row 1 = sum-of-sq
    s, ss = tot[0:1, :], tot[1:2, :]
    inv_m = jnp.float32(1.0 / m_valid)
    mean_c = s * inv_m                           # mean of the bias-free conv output
    var = jnp.maximum(ss * inv_m - mean_c * mean_c, 0.0)
    scale = lax.rsqrt(var + EPS)
    shift = -(mean_c + bias_ref[...]) * scale    # stored Y includes the bias -> fold here
    return scale, shift


def _bn_relu_kernel(y_ref, stats_ref, bias_ref, o_ref, *, m_valid):
    scale, shift = _coef_from_stats(stats_ref, bias_ref, m_valid)
    y = y_ref[...].astype(jnp.float32)
    o_ref[...] = jnp.maximum(y * scale + shift, 0.0).astype(o_ref.dtype)


def _bn_relu_res_kernel(y_ref, stats_ref, bias_ref, r_ref, o_ref, *, m_valid):
    # o = relu(residual + relu(BN(y))); residual was already normalized upstream.
    scale, shift = _coef_from_stats(stats_ref, bias_ref, m_valid)
    yhat = jnp.maximum(y_ref[...].astype(jnp.float32) * scale + shift, 0.0)
    o_ref[...] = jnp.maximum(yhat + r_ref[...].astype(jnp.float32),
                             0.0).astype(o_ref.dtype)


def _bn_relu_res_bn_kernel(y_ref, stats_ref, bias_ref, r_ref, rstats_ref, rbias_ref,
                           o_ref, *, m_valid, rm_valid):
    # o = relu(BN_down(residual_raw) + relu(BN(y))) -- fuses the downsample BN too.
    scale, shift = _coef_from_stats(stats_ref, bias_ref, m_valid)
    rscale, rshift = _coef_from_stats(rstats_ref, rbias_ref, rm_valid)
    yhat = jnp.maximum(y_ref[...].astype(jnp.float32) * scale + shift, 0.0)
    rhat = r_ref[...].astype(jnp.float32) * rscale + rshift
    o_ref[...] = jnp.maximum(yhat + rhat, 0.0).astype(o_ref.dtype)


# ------------------------------------------------------------------ kernel wrappers

def _tiled_matmul(A, Bm, bias_p, *, tm, Mp, compute_stats, out_dtype=ACT_DTYPE):
    """A:(M,K) bf16, Bm:(Kp,Np) bf16, bias_p:(Np,) f32 -> (Y:(Mp,Np), stats|None)."""
    M, K = A.shape
    Kp, Np = Bm.shape
    tn = LANE
    tk = _choose_tk(Kp)
    if Mp != M or Kp != K:
        A = jnp.pad(A, ((0, Mp - M), (0, Kp - K)))
    nm, nn, nk = Mp // tm, Np // tn, Kp // tk
    bias2d = bias_p.reshape(1, Np)

    out_shape = [jax.ShapeDtypeStruct((Mp, Np), out_dtype)]
    out_specs = [pl.BlockSpec((tm, tn), lambda i, j, k: (i, j))]
    if compute_stats:
        # (tile, row, channel): row 0 = per-channel sum, row 1 = sum of squares.
        out_shape.append(jax.ShapeDtypeStruct((nm, 8, Np), jnp.float32))
        out_specs.append(pl.BlockSpec((1, 8, tn), lambda i, j, k: (i, 0, j)))

    kernel = functools.partial(_matmul_kernel, nk=nk, compute_stats=compute_stats)
    cost = pl.CostEstimate(
        flops=2 * Mp * Np * Kp,
        transcendentals=0,
        bytes_accessed=Mp * Kp * 2 + Kp * Np * 2
        + Mp * Np * jnp.dtype(out_dtype).itemsize)

    res = pl.pallas_call(
        kernel,
        grid=(nm, nn, nk),
        in_specs=[pl.BlockSpec((tm, tk), lambda i, j, k: (i, k)),
                  pl.BlockSpec((tk, tn), lambda i, j, k: (k, j)),
                  pl.BlockSpec((1, tn), lambda i, j, k: (0, j))],
        out_specs=out_specs,
        out_shape=out_shape,
        scratch_shapes=[pltpu.VMEM((tm, tn), jnp.float32)],
        compiler_params=pltpu.CompilerParams(
            dimension_semantics=("parallel", "parallel", "arbitrary"),
            vmem_limit_bytes=_VMEM_LIMIT),
        cost_estimate=cost,
    )(A, Bm, bias2d)
    if compute_stats:
        return res[0], res[1]
    return res[0], None


def _bn_apply(Y, stats, bias, *, tm, m_valid,
              residual=None, res_stats=None, res_bias=None, rm_valid=None):
    """Tiled BN+ReLU epilogue (BN coefficients reduced in-kernel from the per-tile stats),
    optionally fused with the residual add (+ downsample BN)."""
    Mp, Np = Y.shape
    nm = Mp // tm
    operands = [Y, stats, bias.reshape(1, Np)]
    in_specs = [pl.BlockSpec((tm, Np), lambda i: (i, 0)),
                pl.BlockSpec(stats.shape, lambda i: (0, 0, 0)),
                pl.BlockSpec((1, Np), lambda i: (0, 0))]
    if residual is None:
        kernel = functools.partial(_bn_relu_kernel, m_valid=m_valid)
    else:
        operands.append(residual)
        in_specs.append(pl.BlockSpec((tm, Np), lambda i: (i, 0)))
        if res_stats is None:
            kernel = functools.partial(_bn_relu_res_kernel, m_valid=m_valid)
        else:
            operands += [res_stats, res_bias.reshape(1, Np)]
            in_specs += [pl.BlockSpec(res_stats.shape, lambda i: (0, 0, 0)),
                         pl.BlockSpec((1, Np), lambda i: (0, 0))]
            kernel = functools.partial(_bn_relu_res_bn_kernel,
                                       m_valid=m_valid, rm_valid=rm_valid)
    return pl.pallas_call(
        kernel,
        grid=(nm,),
        in_specs=in_specs,
        out_specs=pl.BlockSpec((tm, Np), lambda i: (i, 0)),
        out_shape=jax.ShapeDtypeStruct((Mp, Np), ACT_DTYPE),
        compiler_params=pltpu.CompilerParams(
            dimension_semantics=("parallel",),
            vmem_limit_bytes=_VMEM_LIMIT),
    )(*operands)


# ------------------------------------------------------------------ conv lowering glue

def _im2col(x, kh, kw, stride, dilation, padding, cin):
    """NHWC -> (N*Ho*Wo, kh*kw*cin) bf16 patch matrix.  1x1 convs are a pure reshape."""
    x = x.astype(ACT_DTYPE)
    N, H, W, C = x.shape
    Ho = (H + 2 * padding - dilation * (kh - 1) - 1) // stride + 1
    Wo = (W + 2 * padding - dilation * (kw - 1) - 1) // stride + 1
    if kh == 1 and kw == 1 and padding == 0:
        xs = x[:, ::stride, ::stride, :] if stride > 1 else x
        return xs.reshape(N * Ho * Wo, C), Ho, Wo
    # TODO(synk): gather the KxK taps inside the matmul kernel (halo index_map / manual
    # DMA) to remove this kh*kw HBM expansion at real RAFT resolutions.
    xp = jnp.pad(x[..., :cin],
                 ((0, 0), (padding, padding), (padding, padding), (0, 0)))
    cols = []
    for i in range(kh):
        for j in range(kw):
            hs, ws = i * dilation, j * dilation
            cols.append(xp[:, hs:hs + (Ho - 1) * stride + 1:stride,
                            ws:ws + (Wo - 1) * stride + 1:stride, :])
    A = jnp.concatenate(cols, axis=-1).reshape(N * Ho * Wo, kh * kw * cin)
    return A, Ho, Wo


def _prep_weights(w, b, cin_store, cout_p):
    """PyTorch OIHW weights -> (Kp, Cout_p) bf16 matmul operand + padded f32 bias."""
    cout, cin, kh, kw = w.shape
    wt = jnp.transpose(w, (2, 3, 1, 0)).astype(jnp.float32)      # KH KW Cin Cout
    wt = jnp.pad(wt, ((0, 0), (0, 0), (0, cin_store - cin), (0, cout_p - cout)))
    K = kh * kw * cin_store
    Kp = _round_up(K, LANE)
    Bm = jnp.pad(wt.reshape(K, cout_p), ((0, Kp - K), (0, 0))).astype(jnp.bfloat16)
    bias_p = jnp.pad(b.astype(jnp.float32), (0, cout_p - cout))
    return Bm, bias_p


def _conv_core(x, w, b, *, stride, dilation, padding, compute_stats,
               out_dtype=ACT_DTYPE):
    N, H, W, C = x.shape
    cout, cin_real, kh, kw = w.shape
    cout_p = _round_up(cout, LANE)
    # KxK convs contract only the real input channels (the lane padding is all-zero);
    # 1x1 convs reuse the already lane-padded storage directly (same K either way).
    cin_use = cin_real if (kh > 1 or kw > 1) else C
    Bm, bias_p = _prep_weights(w, b, cin_store=cin_use, cout_p=cout_p)
    A, Ho, Wo = _im2col(x, kh, kw, stride, dilation, padding, cin_use)
    M = N * Ho * Wo
    tm = _choose_tm(M)
    Mp = _round_up(M, tm)
    Y, stats = _tiled_matmul(A, Bm, bias_p, tm=tm, Mp=Mp,
                             compute_stats=compute_stats, out_dtype=out_dtype)
    return dict(Y=Y, stats=stats, bias=bias_p, M=M, Mp=Mp, tm=tm,
                N=N, Ho=Ho, Wo=Wo, C=cout_p)


def _to_nhwc(mat2d, c):
    return mat2d[:c["M"]].reshape(c["N"], c["Ho"], c["Wo"], c["C"])


def conv_bn_relu(x, cw, *, stride=1, dilation=1, padding=0):
    c = _conv_core(x, cw["w"], cw["b"], stride=stride, dilation=dilation,
                   padding=padding, compute_stats=True)
    out = _bn_apply(c["Y"], c["stats"], c["bias"], tm=c["tm"], m_valid=c["M"])
    return _to_nhwc(out, c)


def conv_plain(x, cw, *, stride=1, padding=0):
    c = _conv_core(x, cw["w"], cw["b"], stride=stride, dilation=1, padding=padding,
                   compute_stats=False, out_dtype=jnp.float32)
    return _to_nhwc(c["Y"], c)


# ------------------------------------------------------------------ parameters

def _kaiming(key, shape):
    # kaiming_normal_(mode='fan_out', nonlinearity='relu') for OIHW conv weights
    fan_out = shape[0] * shape[2] * shape[3]
    return ((2.0 / fan_out) ** 0.5) * jax.random.normal(key, shape, dtype=jnp.float32)


def init_params(key, output_dim=128):
    dims = [64, 96, 128]
    keys = iter(jax.random.split(key, 64))

    def conv_p(cout, cin, k):
        return {"w": _kaiming(next(keys), (cout, cin, k, k)),
                "b": 0.01 * jax.random.normal(next(keys), (cout,), dtype=jnp.float32)}

    def block_p(cin, cout, stride):
        p = {"conv1": conv_p(cout, cin, 3), "conv2": conv_p(cout, cout, 3)}
        if stride != 1 or cin != cout:   # norm_fn='batch' -> downsample on channel change too
            p["down"] = conv_p(cout, cin, 1)
        return p

    return {
        "conv1": conv_p(dims[0], 3, 7),
        "layer1": [block_p(dims[0], dims[0], 1), block_p(dims[0], dims[0], 1)],
        "layer2": [block_p(dims[0], dims[1], 2), block_p(dims[1], dims[1], 1)],
        "layer3": [block_p(dims[1], dims[2], 2), block_p(dims[2], dims[2], 1)],
        "conv2": conv_p(output_dim, dims[2], 1),
    }


# ------------------------------------------------------------------ forward

def residual_block(x, p, stride, dilation=1):
    # conv1 -> BN -> ReLU
    y = conv_bn_relu(x, p["conv1"], stride=stride, dilation=dilation, padding=dilation)
    # conv2 raw matmul + stats; its BN/ReLU is fused with the residual add in kernel B.
    c2 = _conv_core(y, p["conv2"]["w"], p["conv2"]["b"], stride=1, dilation=dilation,
                    padding=dilation, compute_stats=True)
    if "down" in p:
        cd = _conv_core(x, p["down"]["w"], p["down"]["b"], stride=stride, dilation=1,
                        padding=0, compute_stats=True)
        assert cd["Mp"] == c2["Mp"] and cd["tm"] == c2["tm"] and cd["C"] == c2["C"]
        out = _bn_apply(c2["Y"], c2["stats"], c2["bias"], tm=c2["tm"], m_valid=c2["M"],
                        residual=cd["Y"], res_stats=cd["stats"], res_bias=cd["bias"],
                        rm_valid=cd["M"])
    else:
        assert x.shape[-1] == c2["C"]
        res = x.astype(ACT_DTYPE).reshape(c2["M"], c2["C"])
        if c2["Mp"] != c2["M"]:
            res = jnp.pad(res, ((0, c2["Mp"] - c2["M"]), (0, 0)))
        out = _bn_apply(c2["Y"], c2["stats"], c2["bias"], tm=c2["tm"], m_valid=c2["M"],
                        residual=res)
    return _to_nhwc(out, c2)


def contextnet_forward(params, x_nchw):
    x = jnp.transpose(x_nchw, (0, 2, 3, 1)).astype(jnp.float32)   # NCHW -> NHWC
    x = conv_bn_relu(x, params["conv1"], stride=2, padding=3)     # 7x7 /2 + BN + ReLU
    for blk, s in zip(params["layer1"], (1, 1)):
        x = residual_block(x, blk, s)
    for blk, s in zip(params["layer2"], (2, 1)):
        x = residual_block(x, blk, s)
    for blk, s in zip(params["layer3"], (2, 1)):
        x = residual_block(x, blk, s)
    x = conv_plain(x, params["conv2"], stride=1, padding=0)       # 1x1, no BN / ReLU
    x = x[..., : params["conv2"]["w"].shape[0]]                   # drop channel padding
    return jnp.transpose(x, (0, 3, 1, 2))                         # back to NCHW


def contextnet_apply(params, x):
    """Matches ContextNet.forward, including tuple/list input handling."""
    is_list = isinstance(x, (tuple, list))
    if is_list:
        bd = x[0].shape[0]
        x = jnp.concatenate(x, axis=0)
    out = contextnet_forward(params, x)
    if is_list:
        return out[:bd], out[bd:2 * bd]
    return out


# ------------------------------------------------------------------ pure-JAX references

def _conv_ref(x, w, b, stride, dilation, padding, mxu_dtype):
    out = lax.conv_general_dilated(
        x.astype(mxu_dtype), jnp.transpose(w, (2, 3, 1, 0)).astype(mxu_dtype),
        window_strides=(stride, stride),
        padding=[(padding, padding), (padding, padding)],
        rhs_dilation=(dilation, dilation),
        dimension_numbers=("NHWC", "HWIO", "NHWC"),
        preferred_element_type=jnp.float32,
        precision=lax.Precision.HIGHEST)
    return out + b.astype(jnp.float32)


def _q(v, dtype):
    return v.astype(dtype).astype(jnp.float32) if dtype != jnp.float32 else v


def _bn_coef_ref(y):
    mean = jnp.mean(y, axis=(0, 1, 2), keepdims=True)
    var = jnp.maximum(jnp.mean(y * y, axis=(0, 1, 2), keepdims=True) - mean * mean, 0.0)
    scale = lax.rsqrt(var + EPS)
    return scale, -mean * scale


def _cbr_ref(x, p, stride, dilation, padding, mxu, act):
    y = _conv_ref(x, p["w"], p["b"], stride, dilation, padding, mxu)
    scale, shift = _bn_coef_ref(y)
    return _q(jax.nn.relu(_q(y, act) * scale + shift), act)


def _block_ref(x, p, stride, mxu, act, dilation=1):
    y = _cbr_ref(x, p["conv1"], stride, dilation, dilation, mxu, act)
    y2 = _conv_ref(y, p["conv2"]["w"], p["conv2"]["b"], 1, dilation, dilation, mxu)
    s2, b2 = _bn_coef_ref(y2)
    yhat = jax.nn.relu(_q(y2, act) * s2 + b2)
    if "down" in p:
        yd = _conv_ref(x, p["down"]["w"], p["down"]["b"], stride, 1, 0, mxu)
        sd, bd = _bn_coef_ref(yd)
        r = _q(yd, act) * sd + bd
    else:
        r = _q(x, act)
    return _q(jax.nn.relu(yhat + r), act)


def reference_forward(params, x_nchw, mxu_dtype=jnp.float32, act_dtype=jnp.float32):
    """Pure-JAX reference.  With (bf16, bf16) it mirrors the kernel pipeline's precision
    (bf16 MXU operands + bf16 inter-layer storage, f32 accumulation / f32 BN statistics);
    with the f32 defaults it is the full-precision reference."""
    x = jnp.transpose(x_nchw, (0, 2, 3, 1)).astype(jnp.float32)
    x = _cbr_ref(x, params["conv1"], 2, 1, 3, mxu_dtype, act_dtype)
    for blk, s in zip(params["layer1"], (1, 1)):
        x = _block_ref(x, blk, s, mxu_dtype, act_dtype)
    for blk, s in zip(params["layer2"], (2, 1)):
        x = _block_ref(x, blk, s, mxu_dtype, act_dtype)
    for blk, s in zip(params["layer3"], (2, 1)):
        x = _block_ref(x, blk, s, mxu_dtype, act_dtype)
    x = _conv_ref(x, params["conv2"]["w"], params["conv2"]["b"], 1, 1, 0, mxu_dtype)
    return jnp.transpose(x, (0, 3, 1, 2))


# ------------------------------------------------------------------ main

if __name__ == "__main__":
    key = jax.random.PRNGKey(0)
    pkey, xkey = jax.random.split(key)
    params = init_params(pkey, output_dim=128)

    # Small input consistent with the module: N=2, C=3, H=W=24 (3 stride-2 stages -> 3x3).
    # Exercises M-tile padding, nk=1 full-K tiles and both residual-fusion variants.
    x = jax.random.normal(xkey, (2, 3, 24, 24), dtype=jnp.float32)

    fwd = jax.jit(contextnet_apply)
    out = jax.block_until_ready(fwd(params, x))
    assert out.shape == (2, 128, 3, 3), out.shape

    # Precision-matched reference (bf16 MXU operands + bf16 inter-layer storage).
    ref_m = jax.block_until_ready(
        jax.jit(functools.partial(reference_forward,
                                  mxu_dtype=jnp.bfloat16,
                                  act_dtype=jnp.bfloat16))(params, x))
    rel_l2_m = float(jnp.linalg.norm(out - ref_m) / jnp.linalg.norm(ref_m))
    max_err_m = float(jnp.max(jnp.abs(out - ref_m)))
    assert rel_l2_m < 5e-2, f"rel L2 vs precision-matched reference: {rel_l2_m}"
    assert max_err_m < 2e-1, f"max err vs precision-matched reference: {max_err_m}"

    # Full-f32 reference -> loose sanity check (bf16 storage/MXU are intentional changes).
    ref_f32 = jax.block_until_ready(jax.jit(reference_forward)(params, x))
    rel_l2 = float(jnp.linalg.norm(out - ref_f32) / jnp.linalg.norm(ref_f32))
    assert rel_l2 < 0.12, f"relative L2 vs f32 reference too large: {rel_l2}"

    print("KERNEL_OK")
</pallas_src>

<mosaic_0001>
module attributes {stable_mosaic.version = 11 : i64} {
  func.func @_matmul_kernel(%arg0: i32, %arg1: i32, %arg2: i32, %arg3: memref<288x256xbf16, #tpu.memory_space<vmem>>, %arg4: memref<256x128xbf16, #tpu.memory_space<vmem>>, %arg5: memref<1x128xf32, #tpu.memory_space<vmem>>, %arg6: memref<288x128xbf16, #tpu.memory_space<vmem>>, %arg7: memref<1x8x128xf32, #tpu.memory_space<vmem>>, %arg8: memref<288x128xf32, #tpu.memory_space<vmem>>) attributes {dimension_semantics = [#tpu.dimension_semantics<parallel>, #tpu.dimension_semantics<parallel>, #tpu.dimension_semantics<arbitrary>], iteration_bounds = array<i64: 1, 1, 1>, scalar_prefetch = 0 : i64, scratch_operands = 1 : i64, tpu.core_type = #tpu.core_type<tc>, window_params = [{transform_indices = @transform_0, window_bounds = array<i64: 288, 256>}, {transform_indices = @transform_1, window_bounds = array<i64: 256, 128>}, {transform_indices = @transform_2, window_bounds = array<i64: 1, 128>}, {transform_indices = @transform_3, window_bounds = array<i64: 288, 128>}, {transform_indices = @transform_4, window_bounds = array<i64: 1, 8, 128>}]} {
    %c0_i32 = arith.constant 0 : i32
    %0 = arith.cmpi eq, %arg2, %c0_i32 : i32
    %1 = arith.extui %0 : i1 to i32
    %c0_i32_0 = arith.constant 0 : i32
    %2 = arith.cmpi ne, %1, %c0_i32_0 : i32
    scf.if %2 {
      %cst_10 = arith.constant 0.000000e+00 : f32
      %12 = vector.broadcast %cst_10 : f32 to vector<288x128xf32>
      %c0_11 = arith.constant 0 : index
      %c0_12 = arith.constant 0 : index
      %13 = vector.load %arg8[%c0_11, %c0_12] : memref<288x128xf32, #tpu.memory_space<vmem>>, vector<288x128xf32>
      tpu.vector_store %arg8[%c0_11, %c0_12], %12 {strides = array<i32>} : memref<288x128xf32, #tpu.memory_space<vmem>>, vector<288x128xf32>,
    } else {
    }
    %c0 = arith.constant 0 : index
    %c0_1 = arith.constant 0 : index
    %3 = vector.load %arg8[%c0, %c0_1] : memref<288x128xf32, #tpu.memory_space<vmem>>, vector<288x128xf32>
    %c0_2 = arith.constant 0 : index
    %c0_3 = arith.constant 0 : index
    %4 = vector.load %arg3[%c0_2, %c0_3] : memref<288x256xbf16, #tpu.memory_space<vmem>>, vector<288x256xbf16>
    %c0_4 = arith.constant 0 : index
    %c0_5 = arith.constant 0 : index
    %5 = vector.load %arg4[%c0_4, %c0_5] : memref<256x128xbf16, #tpu.memory_space<vmem>>, vector<256x128xbf16>
    %cst = arith.constant dense<0.000000e+00> : vector<288x128xf32>
    %6 = tpu.matmul %4, %5, %cst {dimension_numbers = #tpu.dot_dimension_numbers<[1], [0], [0], [1], [0, 0, 1, 1], [], []>} : vector<288x256xbf16>, vector<256x128xbf16>, vector<288x128xf32> -> vector<288x128xf32>
    %7 = arith.addf %3, %6 : vector<288x128xf32>
    %c0_6 = arith.constant 0 : index
    %c0_7 = arith.constant 0 : index
    %8 = vector.load %arg8[%c0_6, %c0_7] : memref<288x128xf32, #tpu.memory_space<vmem>>, vector<288x128xf32>
    tpu.vector_store %arg8[%c0_6, %c0_7], %7 {strides = array<i32>} : memref<288x128xf32, #tpu.memory_space<vmem>>, vector<288x128xf32>,
    %c0_i32_8 = arith.constant 0 : i32
    %9 = arith.cmpi eq, %arg2, %c0_i32_8 : i32
    %10 = arith.extui %9 : i1 to i32
    %c0_i32_9 = arith.constant 0 : i32
    %11 = arith.cmpi ne, %10, %c0_i32_9 : i32
    scf.if %11 {
      %c0_10 = arith.constant 0 : index
      %c0_11 = arith.constant 0 : index
      %12 = vector.load %arg8[%c0_10, %c0_11] : memref<288x128xf32, #tpu.memory_space<vmem>>, vector<288x128xf32>
      %c0_12 = arith.constant 0 : index
      %c0_13 = arith.constant 0 : index
      %13 = vector.load %arg5[%c0_12, %c0_13] : memref<1x128xf32, #tpu.memory_space<vmem>>, vector<1x128xf32>
      %14 = vector.broadcast %13 : vector<1x128xf32> to vector<288x128xf32>
      %15 = arith.addf %12, %14 : vector<288x128xf32>
      %16 = arith.truncf %15 : vector<288x128xf32> to vector<288x128xbf16>
      %c0_14 = arith.constant 0 : index
      %c0_15 = arith.constant 0 : index
      %17 = vector.load %arg6[%c0_14, %c0_15] : memref<288x128xbf16, #tpu.memory_space<vmem>>, vector<288x128xbf16>
      tpu.vector_store %arg6[%c0_14, %c0_15], %16 {strides = array<i32>} : memref<288x128xbf16, #tpu.memory_space<vmem>>, vector<288x128xbf16>,
      %cst_16 = arith.constant dense<0.000000e+00> : vector<128xf32>
      %18 = vector.multi_reduction <add>, %12, %cst_16 [0] : vector<288x128xf32> to vector<128xf32>
      %19 = vector.shape_cast %18 : vector<128xf32> to vector<1x128xf32>
      %20 = arith.mulf %12, %12 : vector<288x128xf32>
      %cst_17 = arith.constant dense<0.000000e+00> : vector<128xf32>
      %21 = vector.multi_reduction <add>, %20, %cst_17 [0] : vector<288x128xf32> to vector<128xf32>
      %22 = vector.shape_cast %21 : vector<128xf32> to vector<1x128xf32>
      %cst_18 = arith.constant 0.000000e+00 : f32
      %23 = vector.broadcast %cst_18 : f32 to vector<6x128xf32>
      %24 = tpu.concatenate %19, %22, %23 in 0 : vector<1x128xf32>, vector<1x128xf32>, vector<6x128xf32> -> vector<8x128xf32>
      %c0_19 = arith.constant 0 : index
      %c0_20 = arith.constant 0 : index
      %c0_21 = arith.constant 0 : index
      %25 = vector.load %arg7[%c0_19, %c0_20, %c0_21] : memref<1x8x128xf32, #tpu.memory_space<vmem>>, vector<1x8x128xf32>
      %26 = vector.shape_cast %25 : vector<1x8x128xf32> to vector<8x128xf32>
      %27 = vector.shape_cast %24 : vector<8x128xf32> to vector<1x8x128xf32>
      tpu.vector_store %arg7[%c0_19, %c0_20, %c0_21], %27 {strides = array<i32>} : memref<1x8x128xf32, #tpu.memory_space<vmem>>, vector<1x8x128xf32>,
    } else {
    }
    return
  }
  func.func @transform_0(%arg0: i32, %arg1: i32, %arg2: i32) -> (i32, i32) {
    %c0_i32 = arith.constant 0 : i32
    return %arg0, %arg2 : i32, i32
  }
  func.func @transform_1(%arg0: i32, %arg1: i32, %arg2: i32) -> (i32, i32) {
    %c0_i32 = arith.constant 0 : i32
    return %arg2, %arg1 : i32, i32
  }
  func.func @transform_2(%arg0: i32, %arg1: i32, %arg2: i32) -> (i32, i32) {
    %c0_i32 = arith.constant 0 : i32
    %c0_i32_0 = arith.constant 0 : i32
    return %c0_i32, %arg1 : i32, i32
  }
  func.func @transform_3(%arg0: i32, %arg1: i32, %arg2: i32) -> (i32, i32) {
    %c0_i32 = arith.constant 0 : i32
    return %arg0, %arg1 : i32, i32
  }
  func.func @transform_4(%arg0: i32, %arg1: i32, %arg2: i32) -> (i32, i32, i32) {
    %c0_i32 = arith.constant 0 : i32
    %c0_i32_0 = arith.constant 0 : i32
    return %arg0, %c0_i32, %arg1 : i32, i32, i32
  }
}

module attributes {stable_mosaic.version = 11 : i64} {
  func.func @_bn_relu_kernel(%arg0: i32, %arg1: memref<288x128xbf16, #tpu.memory_space<vmem>>, %arg2: memref<1x8x128xf32, #tpu.memory_space<vmem>>, %arg3: memref<1x128xf32, #tpu.memory_space<vmem>>, %arg4: memref<288x128xbf16, #tpu.memory_space<vmem>>) attributes {dimension_semantics = [#tpu.dimension_semantics<parallel>], iteration_bounds = array<i64: 1>, scalar_prefetch = 0 : i64, scratch_operands = 0 : i64, tpu.core_type = #tpu.core_type<tc>, window_params = [{transform_indices = @transform_0, window_bounds = array<i64: 288, 128>}, {pipeline_mode = #tpu.pipeline_mode<synchronous>, transform_indices = @transform_1, window_bounds = array<i64: 1, 8, 128>}, {pipeline_mode = #tpu.pipeline_mode<synchronous>, transform_indices = @transform_2, window_bounds = array<i64: 1, 128>}, {transform_indices = @transform_3, window_bounds = array<i64: 288, 128>}]} {
    %c0 = arith.constant 0 : index
    %c0_0 = arith.constant 0 : index
    %c0_1 = arith.constant 0 : index
    %0 = vector.load %arg2[%c0, %c0_0, %c0_1] : memref<1x8x128xf32, #tpu.memory_space<vmem>>, vector<1x8x128xf32>
    %cst = arith.constant dense<0.000000e+00> : vector<8x128xf32>
    %1 = vector.multi_reduction <add>, %0, %cst [0] : vector<1x8x128xf32> to vector<8x128xf32>
    %2 = vector.extract_strided_slice %1 {offsets = [0, 0], sizes = [1, 128], strides = [1, 1]} : vector<8x128xf32> to vector<1x128xf32>
    %3 = vector.extract_strided_slice %1 {offsets = [1, 0], sizes = [1, 128], strides = [1, 1]} : vector<8x128xf32> to vector<1x128xf32>
    %cst_2 = arith.constant 0.00347222225 : f32
    %4 = vector.broadcast %cst_2 : f32 to vector<1x128xf32>
    %5 = arith.mulf %2, %4 : vector<1x128xf32>
    %cst_3 = arith.constant 0.00347222225 : f32
    %6 = vector.broadcast %cst_3 : f32 to vector<1x128xf32>
    %7 = arith.mulf %3, %6 : vector<1x128xf32>
    %8 = arith.mulf %5, %5 : vector<1x128xf32>
    %9 = arith.subf %7, %8 : vector<1x128xf32>
    %cst_4 = arith.constant 0.000000e+00 : f32
    %10 = vector.broadcast %cst_4 : f32 to vector<1x128xf32>
    %11 = arith.maximumf %9, %10 : vector<1x128xf32>
    %cst_5 = arith.constant 9.99999974E-6 : f32
    %12 = vector.broadcast %cst_5 : f32 to vector<1x128xf32>
    %13 = arith.addf %11, %12 : vector<1x128xf32>
    %14 = math.rsqrt %13 : vector<1x128xf32>
    %c0_6 = arith.constant 0 : index
    %c0_7 = arith.constant 0 : index
    %15 = vector.load %arg3[%c0_6, %c0_7] : memref<1x128xf32, #tpu.memory_space<vmem>>, vector<1x128xf32>
    %16 = arith.addf %5, %15 : vector<1x128xf32>
    %cst_8 = arith.constant 0.000000e+00 : f32
    %17 = vector.broadcast %cst_8 : f32 to vector<1x128xf32>
    %18 = arith.subf %17, %16 : vector<1x128xf32>
    %19 = arith.mulf %18, %14 : vector<1x128xf32>
    %c0_9 = arith.constant 0 : index
    %c0_10 = arith.constant 0 : index
    %20 = vector.load %arg1[%c0_9, %c0_10] : memref<288x128xbf16, #tpu.memory_space<vmem>>, vector<288x128xbf16>
    %21 = arith.extf %20 : vector<288x128xbf16> to vector<288x128xf32>
    %22 = vector.broadcast %14 : vector<1x128xf32> to vector<288x128xf32>
    %23 = arith.mulf %21, %22 : vector<288x128xf32>
    %24 = vector.broadcast %19 : vector<1x128xf32> to vector<288x128xf32>
    %25 = arith.addf %23, %24 : vector<288x128xf32>
    %cst_11 = arith.constant 0.000000e+00 : f32
    %26 = vector.broadcast %cst_11 : f32 to vector<288x128xf32>
    %27 = arith.maximumf %25, %26 : vector<288x128xf32>
    %28 = arith.truncf %27 : vector<288x128xf32> to vector<288x128xbf16>
    %c0_12 = arith.constant 0 : index
    %c0_13 = arith.constant 0 : index
    %29 = vector.load %arg4[%c0_12, %c0_13] : memref<288x128xbf16, #tpu.memory_space<vmem>>, vector<288x128xbf16>
    tpu.vector_store %arg4[%c0_12, %c0_13], %28 {strides = array<i32>} : memref<288x128xbf16, #tpu.memory_space<vmem>>, vector<288x128xbf16>,
    return
  }
  func.func @transform_0(%arg0: i32) -> (i32, i32) {
    %c0_i32 = arith.constant 0 : i32
    %c0_i32_0 = arith.constant 0 : i32
    return %arg0, %c0_i32 : i32, i32
  }
  func.func @transform_1(%arg0: i32) -> (i32, i32, i32) {
    %c0_i32 = arith.constant 0 : i32
    %c0_i32_0 = arith.constant 0 : i32
    %c0_i32_1 = arith.constant 0 : i32
    %c0_i32_2 = arith.constant 0 : i32
    return %c0_i32, %c0_i32_0, %c0_i32_1 : i32, i32, i32
  }
  func.func @transform_2(%arg0: i32) -> (i32, i32) {
    %c0_i32 = arith.constant 0 : i32
    %c0_i32_0 = arith.constant 0 : i32
    %c0_i32_1 = arith.constant 0 : i32
    return %c0_i32, %c0_i32_0 : i32, i32
  }
  func.func @transform_3(%arg0: i32) -> (i32, i32) {
    %c0_i32 = arith.constant 0 : i32
    %c0_i32_0 = arith.constant 0 : i32
    return %arg0, %c0_i32 : i32, i32
  }
}

module attributes {stable_mosaic.version = 11 : i64} {
  func.func @_matmul_kernel(%arg0: i32, %arg1: i32, %arg2: i32, %arg3: memref<288x640xbf16, #tpu.memory_space<vmem>>, %arg4: memref<640x128xbf16, #tpu.memory_space<vmem>>, %arg5: memref<1x128xf32, #tpu.memory_space<vmem>>, %arg6: memref<288x128xbf16, #tpu.memory_space<vmem>>, %arg7: memref<1x8x128xf32, #tpu.memory_space<vmem>>, %arg8: memref<288x128xf32, #tpu.memory_space<vmem>>) attributes {dimension_semantics = [#tpu.dimension_semantics<parallel>, #tpu.dimension_semantics<parallel>, #tpu.dimension_semantics<arbitrary>], iteration_bounds = array<i64: 1, 1, 1>, scalar_prefetch = 0 : i64, scratch_operands = 1 : i64, tpu.core_type = #tpu.core_type<tc>, window_params = [{transform_indices = @transform_0, window_bounds = array<i64: 288, 640>}, {transform_indices = @transform_1, window_bounds = array<i64: 640, 128>}, {transform_indices = @transform_2, window_bounds = array<i64: 1, 128>}, {transform_indices = @transform_3, window_bounds = array<i64: 288, 128>}, {transform_indices = @transform_4, window_bounds = array<i64: 1, 8, 128>}]} {
    %c0_i32 = arith.constant 0 : i32
    %0 = arith.cmpi eq, %arg2, %c0_i32 : i32
    %1 = arith.extui %0 : i1 to i32
    %c0_i32_0 = arith.constant 0 : i32
    %2 = arith.cmpi ne, %1, %c0_i32_0 : i32
    scf.if %2 {
      %cst_10 = arith.constant 0.000000e+00 : f32
      %12 = vector.broadcast %cst_10 : f32 to vector<288x128xf32>
      %c0_11 = arith.constant 0 : index
      %c0_12 = arith.constant 0 : index
      %13 = vector.load %arg8[%c0_11, %c0_12] : memref<288x128xf32, #tpu.memory_space<vmem>>, vector<288x128xf32>
      tpu.vector_store %arg8[%c0_11, %c0_12], %12 {strides = array<i32>} : memref<288x128xf32, #tpu.memory_space<vmem>>, vector<288x128xf32>,
    } else {
    }
    %c0 = arith.constant 0 : index
    %c0_1 = arith.constant 0 : index
    %3 = vector.load %arg8[%c0, %c0_1] : memref<288x128xf32, #tpu.memory_space<vmem>>, vector<288x128xf32>
    %c0_2 = arith.constant 0 : index
    %c0_3 = arith.constant 0 : index
    %4 = vector.load %arg3[%c0_2, %c0_3] : memref<288x640xbf16, #tpu.memory_space<vmem>>, vector<288x640xbf16>
    %c0_4 = arith.constant 0 : index
    %c0_5 = arith.constant 0 : index
    %5 = vector.load %arg4[%c0_4, %c0_5] : memref<640x128xbf16, #tpu.memory_space<vmem>>, vector<640x128xbf16>
    %cst = arith.constant dense<0.000000e+00> : vector<288x128xf32>
    %6 = tpu.matmul %4, %5, %cst {dimension_numbers = #tpu.dot_dimension_numbers<[1], [0], [0], [1], [0, 0, 1, 1], [], []>} : vector<288x640xbf16>, vector<640x128xbf16>, vector<288x128xf32> -> vector<288x128xf32>
    %7 = arith.addf %3, %6 : vector<288x128xf32>
    %c0_6 = arith.constant 0 : index
    %c0_7 = arith.constant 0 : index
    %8 = vector.load %arg8[%c0_6, %c0_7] : memref<288x128xf32, #tpu.memory_space<vmem>>, vector<288x128xf32>
    tpu.vector_store %arg8[%c0_6, %c0_7], %7 {strides = array<i32>} : memref<288x128xf32, #tpu.memory_space<vmem>>, vector<288x128xf32>,
    %c0_i32_8 = arith.constant 0 : i32
    %9 = arith.cmpi eq, %arg2, %c0_i32_8 : i32
    %10 = arith.extui %9 : i1 to i32
    %c0_i32_9 = arith.constant 0 : i32
    %11 = arith.cmpi ne, %10, %c0_i32_9 : i32
    scf.if %11 {
      %c0_10 = arith.constant 0 : index
      %c0_11 = arith.constant 0 : index
      %12 = vector.load %arg8[%c0_10, %c0_11] : memref<288x128xf32, #tpu.memory_space<vmem>>, vector<288x128xf32>
      %c0_12 = arith.constant 0 : index
      %c0_13 = arith.constant 0 : index
      %13 = vector.load %arg5[%c0_12, %c0_13] : memref<1x128xf32, #tpu.memory_space<vmem>>, vector<1x128xf32>
      %14 = vector.broadcast %13 : vector<1x128xf32> to vector<288x128xf32>
      %15 = arith.addf %12, %14 : vector<288x128xf32>
      %16 = arith.truncf %15 : vector<288x128xf32> to vector<288x128xbf16>
      %c0_14 = arith.constant 0 : index
      %c0_15 = arith.constant 0 : index
      %17 = vector.load %arg6[%c0_14, %c0_15] : memref<288x128xbf16, #tpu.memory_space<vmem>>, vector<288x128xbf16>
      tpu.vector_store %arg6[%c0_14, %c0_15], %16 {strides = array<i32>} : memref<288x128xbf16, #tpu.memory_space<vmem>>, vector<288x128xbf16>,
      %cst_16 = arith.constant dense<0.000000e+00> : vector<128xf32>
      %18 = vector.multi_reduction <add>, %12, %cst_16 [0] : vector<288x128xf32> to vector<128xf32>
      %19 = vector.shape_cast %18 : vector<128xf32> to vector<1x128xf32>
      %20 = arith.mulf %12, %12 : vector<288x128xf32>
      %cst_17 = arith.constant dense<0.000000e+00> : vector<128xf32>
      %21 = vector.multi_reduction <add>, %20, %cst_17 [0] : vector<288x128xf32> to vector<128xf32>
      %22 = vector.shape_cast %21 : vector<128xf32> to vector<1x128xf32>
      %cst_18 = arith.constant 0.000000e+00 : f32
      %23 = vector.broadcast %cst_18 : f32 to vector<6x128xf32>
      %24 = tpu.concatenate %19, %22, %23 in 0 : vector<1x128xf32>, vector<1x128xf32>, vector<6x128xf32> -> vector<8x128xf32>
      %c0_19 = arith.constant 0 : index
      %c0_20 = arith.constant 0 : index
      %c0_21 = arith.constant 0 : index
      %25 = vector.load %arg7[%c0_19, %c0_20, %c0_21] : memref<1x8x128xf32, #tpu.memory_space<vmem>>, vector<1x8x128xf32>
      %26 = vector.shape_cast %25 : vector<1x8x128xf32> to vector<8x128xf32>
      %27 = vector.shape_cast %24 : vector<8x128xf32> to vector<1x8x128xf32>
      tpu.vector_store %arg7[%c0_19, %c0_20, %c0_21], %27 {strides = array<i32>} : memref<1x8x128xf32, #tpu.memory_space<vmem>>, vector<1x8x128xf32>,
    } else {
    }
    return
  }
  func.func @transform_0(%arg0: i32, %arg1: i32, %arg2: i32) -> (i32, i32) {
    %c0_i32 = arith.constant 0 : i32
    return %arg0, %arg2 : i32, i32
  }
  func.func @transform_1(%arg0: i32, %arg1: i32, %arg2: i32) -> (i32, i32) {
    %c0_i32 = arith.constant 0 : i32
    return %arg2, %arg1 : i32, i32
  }
  func.func @transform_2(%arg0: i32, %arg1: i32, %arg2: i32) -> (i32, i32) {
    %c0_i32 = arith.constant 0 : i32
    %c0_i32_0 = arith.constant 0 : i32
    return %c0_i32, %arg1 : i32, i32
  }
  func.func @transform_3(%arg0: i32, %arg1: i32, %arg2: i32) -> (i32, i32) {
    %c0_i32 = arith.constant 0 : i32
    return %arg0, %arg1 : i32, i32
  }
  func.func @transform_4(%arg0: i32, %arg1: i32, %arg2: i32) -> (i32, i32, i32) {
    %c0_i32 = arith.constant 0 : i32
    %c0_i32_0 = arith.constant 0 : i32
    return %arg0, %c0_i32, %arg1 : i32, i32, i32
  }
}

module attributes {stable_mosaic.version = 11 : i64} {
  func.func @_bn_relu_res_kernel(%arg0: i32, %arg1: memref<288x128xbf16, #tpu.memory_space<vmem>>, %arg2: memref<1x8x128xf32, #tpu.memory_space<vmem>>, %arg3: memref<1x128xf32, #tpu.memory_space<vmem>>, %arg4: memref<288x128xbf16, #tpu.memory_space<vmem>>, %arg5: memref<288x128xbf16, #tpu.memory_space<vmem>>) attributes {dimension_semantics = [#tpu.dimension_semantics<parallel>], iteration_bounds = array<i64: 1>, scalar_prefetch = 0 : i64, scratch_operands = 0 : i64, tpu.core_type = #tpu.core_type<tc>, window_params = [{transform_indices = @transform_0, window_bounds = array<i64: 288, 128>}, {pipeline_mode = #tpu.pipeline_mode<synchronous>, transform_indices = @transform_1, window_bounds = array<i64: 1, 8, 128>}, {pipeline_mode = #tpu.pipeline_mode<synchronous>, transform_indices = @transform_2, window_bounds = array<i64: 1, 128>}, {transform_indices = @transform_3, window_bounds = array<i64: 288, 128>}, {transform_indices = @transform_4, window_bounds = array<i64: 288, 128>}]} {
    %c0 = arith.constant 0 : index
    %c0_0 = arith.constant 0 : index
    %c0_1 = arith.constant 0 : index
    %0 = vector.load %arg2[%c0, %c0_0, %c0_1] : memref<1x8x128xf32, #tpu.memory_space<vmem>>, vector<1x8x128xf32>
    %cst = arith.constant dense<0.000000e+00> : vector<8x128xf32>
    %1 = vector.multi_reduction <add>, %0, %cst [0] : vector<1x8x128xf32> to vector<8x128xf32>
    %2 = vector.extract_strided_slice %1 {offsets = [0, 0], sizes = [1, 128], strides = [1, 1]} : vector<8x128xf32> to vector<1x128xf32>
    %3 = vector.extract_strided_slice %1 {offsets = [1, 0], sizes = [1, 128], strides = [1, 1]} : vector<8x128xf32> to vector<1x128xf32>
    %cst_2 = arith.constant 0.00347222225 : f32
    %4 = vector.broadcast %cst_2 : f32 to vector<1x128xf32>
    %5 = arith.mulf %2, %4 : vector<1x128xf32>
    %cst_3 = arith.constant 0.00347222225 : f32
    %6 = vector.broadcast %cst_3 : f32 to vector<1x128xf32>
    %7 = arith.mulf %3, %6 : vector<1x128xf32>
    %8 = arith.mulf %5, %5 : vector<1x128xf32>
    %9 = arith.subf %7, %8 : vector<1x128xf32>
    %cst_4 = arith.constant 0.000000e+00 : f32
    %10 = vector.broadcast %cst_4 : f32 to vector<1x128xf32>
    %11 = arith.maximumf %9, %10 : vector<1x128xf32>
    %cst_5 = arith.constant 9.99999974E-6 : f32
    %12 = vector.broadcast %cst_5 : f32 to vector<1x128xf32>
    %13 = arith.addf %11, %12 : vector<1x128xf32>
    %14 = math.rsqrt %13 : vector<1x128xf32>
    %c0_6 = arith.constant 0 : index
    %c0_7 = arith.constant 0 : index
    %15 = vector.load %arg3[%c0_6, %c0_7] : memref<1x128xf32, #tpu.memory_space<vmem>>, vector<1x128xf32>
    %16 = arith.addf %5, %15 : vector<1x128xf32>
    %cst_8 = arith.constant 0.000000e+00 : f32
    %17 = vector.broadcast %cst_8 : f32 to vector<1x128xf32>
    %18 = arith.subf %17, %16 : vector<1x128xf32>
    %19 = arith.mulf %18, %14 : vector<1x128xf32>
    %c0_9 = arith.constant 0 : index
    %c0_10 = arith.constant 0 : index
    %20 = vector.load %arg1[%c0_9, %c0_10] : memref<288x128xbf16, #tpu.memory_space<vmem>>, vector<288x128xbf16>
    %21 = arith.extf %20 : vector<288x128xbf16> to vector<288x128xf32>
    %22 = vector.broadcast %14 : vector<1x128xf32> to vector<288x128xf32>
    %23 = arith.mulf %21, %22 : vector<288x128xf32>
    %24 = vector.broadcast %19 : vector<1x128xf32> to vector<288x128xf32>
    %25 = arith.addf %23, %24 : vector<288x128xf32>
    %cst_11 = arith.constant 0.000000e+00 : f32
    %26 = vector.broadcast %cst_11 : f32 to vector<288x128xf32>
    %27 = arith.maximumf %25, %26 : vector<288x128xf32>
    %c0_12 = arith.constant 0 : index
    %c0_13 = arith.constant 0 : index
    %28 = vector.load %arg4[%c0_12, %c0_13] : memref<288x128xbf16, #tpu.memory_space<vmem>>, vector<288x128xbf16>
    %29 = arith.extf %28 : vector<288x128xbf16> to vector<288x128xf32>
    %30 = arith.addf %27, %29 : vector<288x128xf32>
    %cst_14 = arith.constant 0.000000e+00 : f32
    %31 = vector.broadcast %cst_14 : f32 to vector<288x128xf32>
    %32 = arith.maximumf %30, %31 : vector<288x128xf32>
    %33 = arith.truncf %32 : vector<288x128xf32> to vector<288x128xbf16>
    %c0_15 = arith.constant 0 : index
    %c0_16 = arith.constant 0 : index
    %34 = vector.load %arg5[%c0_15, %c0_16] : memref<288x128xbf16, #tpu.memory_space<vmem>>, vector<288x128xbf16>
    tpu.vector_store %arg5[%c0_15, %c0_16], %33 {strides = array<i32>} : memref<288x128xbf16, #tpu.memory_space<vmem>>, vector<288x128xbf16>,
    return
  }
  func.func @transform_0(%arg0: i32) -> (i32, i32) {
    %c0_i32 = arith.constant 0 : i32
    %c0_i32_0 = arith.constant 0 : i32
    return %arg0, %c0_i32 : i32, i32
  }
  func.func @transform_1(%arg0: i32) -> (i32, i32, i32) {
    %c0_i32 = arith.constant 0 : i32
    %c0_i32_0 = arith.constant 0 : i32
    %c0_i32_1 = arith.constant 0 : i32
    %c0_i32_2 = arith.constant 0 : i32
    return %c0_i32, %c0_i32_0, %c0_i32_1 : i32, i32, i32
  }
  func.func @transform_2(%arg0: i32) -> (i32, i32) {
    %c0_i32 = arith.constant 0 : i32
    %c0_i32_0 = arith.constant 0 : i32
    %c0_i32_1 = arith.constant 0 : i32
    return %c0_i32, %c0_i32_0 : i32, i32
  }
  func.func @transform_3(%arg0: i32) -> (i32, i32) {
    %c0_i32 = arith.constant 0 : i32
    %c0_i32_0 = arith.constant 0 : i32
    return %arg0, %c0_i32 : i32, i32
  }
  func.func @transform_4(%arg0: i32) -> (i32, i32) {
    %c0_i32 = arith.constant 0 : i32
    %c0_i32_0 = arith.constant 0 : i32
    return %arg0, %c0_i32 : i32, i32
  }
}

module attributes {stable_mosaic.version = 11 : i64} {
  func.func @_matmul_kernel(%arg0: i32, %arg1: i32, %arg2: i32, %arg3: memref<72x640xbf16, #tpu.memory_space<vmem>>, %arg4: memref<640x128xbf16, #tpu.memory_space<vmem>>, %arg5: memref<1x128xf32, #tpu.memory_space<vmem>>, %arg6: memref<72x128xbf16, #tpu.memory_space<vmem>>, %arg7: memref<1x8x128xf32, #tpu.memory_space<vmem>>, %arg8: memref<72x128xf32, #tpu.memory_space<vmem>>) attributes {dimension_semantics = [#tpu.dimension_semantics<parallel>, #tpu.dimension_semantics<parallel>, #tpu.dimension_semantics<arbitrary>], iteration_bounds = array<i64: 1, 1, 1>, scalar_prefetch = 0 : i64, scratch_operands = 1 : i64, tpu.core_type = #tpu.core_type<tc>, window_params = [{transform_indices = @transform_0, window_bounds = array<i64: 72, 640>}, {transform_indices = @transform_1, window_bounds = array<i64: 640, 128>}, {transform_indices = @transform_2, window_bounds = array<i64: 1, 128>}, {transform_indices = @transform_3, window_bounds = array<i64: 72, 128>}, {transform_indices = @transform_4, window_bounds = array<i64: 1, 8, 128>}]} {
    %c0_i32 = arith.constant 0 : i32
    %0 = arith.cmpi eq, %arg2, %c0_i32 : i32
    %1 = arith.extui %0 : i1 to i32
    %c0_i32_0 = arith.constant 0 : i32
    %2 = arith.cmpi ne, %1, %c0_i32_0 : i32
    scf.if %2 {
      %cst_10 = arith.constant 0.000000e+00 : f32
      %12 = vector.broadcast %cst_10 : f32 to vector<72x128xf32>
      %c0_11 = arith.constant 0 : index
      %c0_12 = arith.constant 0 : index
      %13 = vector.load %arg8[%c0_11, %c0_12] : memref<72x128xf32, #tpu.memory_space<vmem>>, vector<72x128xf32>
      tpu.vector_store %arg8[%c0_11, %c0_12], %12 {strides = array<i32>} : memref<72x128xf32, #tpu.memory_space<vmem>>, vector<72x128xf32>,
    } else {
    }
    %c0 = arith.constant 0 : index
    %c0_1 = arith.constant 0 : index
    %3 = vector.load %arg8[%c0, %c0_1] : memref<72x128xf32, #tpu.memory_space<vmem>>, vector<72x128xf32>
    %c0_2 = arith.constant 0 : index
    %c0_3 = arith.constant 0 : index
    %4 = vector.load %arg3[%c0_2, %c0_3] : memref<72x640xbf16, #tpu.memory_space<vmem>>, vector<72x640xbf16>
    %c0_4 = arith.constant 0 : index
    %c0_5 = arith.constant 0 : index
    %5 = vector.load %arg4[%c0_4, %c0_5] : memref<640x128xbf16, #tpu.memory_space<vmem>>, vector<640x128xbf16>
    %cst = arith.constant dense<0.000000e+00> : vector<72x128xf32>
    %6 = tpu.matmul %4, %5, %cst {dimension_numbers = #tpu.dot_dimension_numbers<[1], [0], [0], [1], [0, 0, 1, 1], [], []>} : vector<72x640xbf16>, vector<640x128xbf16>, vector<72x128xf32> -> vector<72x128xf32>
    %7 = arith.addf %3, %6 : vector<72x128xf32>
    %c0_6 = arith.constant 0 : index
    %c0_7 = arith.constant 0 : index
    %8 = vector.load %arg8[%c0_6, %c0_7] : memref<72x128xf32, #tpu.memory_space<vmem>>, vector<72x128xf32>
    tpu.vector_store %arg8[%c0_6, %c0_7], %7 {strides = array<i32>} : memref<72x128xf32, #tpu.memory_space<vmem>>, vector<72x128xf32>,
    %c0_i32_8 = arith.constant 0 : i32
    %9 = arith.cmpi eq, %arg2, %c0_i32_8 : i32
    %10 = arith.extui %9 : i1 to i32
    %c0_i32_9 = arith.constant 0 : i32
    %11 = arith.cmpi ne, %10, %c0_i32_9 : i32
    scf.if %11 {
      %c0_10 = arith.constant 0 : index
      %c0_11 = arith.constant 0 : index
      %12 = vector.load %arg8[%c0_10, %c0_11] : memref<72x128xf32, #tpu.memory_space<vmem>>, vector<72x128xf32>
      %c0_12 = arith.constant 0 : index
      %c0_13 = arith.constant 0 : index
      %13 = vector.load %arg5[%c0_12, %c0_13] : memref<1x128xf32, #tpu.memory_space<vmem>>, vector<1x128xf32>
      %14 = vector.broadcast %13 : vector<1x128xf32> to vector<72x128xf32>
      %15 = arith.addf %12, %14 : vector<72x128xf32>
      %16 = arith.truncf %15 : vector<72x128xf32> to vector<72x128xbf16>
      %c0_14 = arith.constant 0 : index
      %c0_15 = arith.constant 0 : index
      %17 = vector.load %arg6[%c0_14, %c0_15] : memref<72x128xbf16, #tpu.memory_space<vmem>>, vector<72x128xbf16>
      tpu.vector_store %arg6[%c0_14, %c0_15], %16 {strides = array<i32>} : memref<72x128xbf16, #tpu.memory_space<vmem>>, vector<72x128xbf16>,
      %cst_16 = arith.constant dense<0.000000e+00> : vector<128xf32>
      %18 = vector.multi_reduction <add>, %12, %cst_16 [0] : vector<72x128xf32> to vector<128xf32>
      %19 = vector.shape_cast %18 : vector<128xf32> to vector<1x128xf32>
      %20 = arith.mulf %12, %12 : vector<72x128xf32>
      %cst_17 = arith.constant dense<0.000000e+00> : vector<128xf32>
      %21 = vector.multi_reduction <add>, %20, %cst_17 [0] : vector<72x128xf32> to vector<128xf32>
      %22 = vector.shape_cast %21 : vector<128xf32> to vector<1x128xf32>
      %cst_18 = arith.constant 0.000000e+00 : f32
      %23 = vector.broadcast %cst_18 : f32 to vector<6x128xf32>
      %24 = tpu.concatenate %19, %22, %23 in 0 : vector<1x128xf32>, vector<1x128xf32>, vector<6x128xf32> -> vector<8x128xf32>
      %c0_19 = arith.constant 0 : index
      %c0_20 = arith.constant 0 : index
      %c0_21 = arith.constant 0 : index
      %25 = vector.load %arg7[%c0_19, %c0_20, %c0_21] : memref<1x8x128xf32, #tpu.memory_space<vmem>>, vector<1x8x128xf32>
      %26 = vector.shape_cast %25 : vector<1x8x128xf32> to vector<8x128xf32>
      %27 = vector.shape_cast %24 : vector<8x128xf32> to vector<1x8x128xf32>
      tpu.vector_store %arg7[%c0_19, %c0_20, %c0_21], %27 {strides = array<i32>} : memref<1x8x128xf32, #tpu.memory_space<vmem>>, vector<1x8x128xf32>,
    } else {
    }
    return
  }
  func.func @transform_0(%arg0: i32, %arg1: i32, %arg2: i32) -> (i32, i32) {
    %c0_i32 = arith.constant 0 : i32
    return %arg0, %arg2 : i32, i32
  }
  func.func @transform_1(%arg0: i32, %arg1: i32, %arg2: i32) -> (i32, i32) {
    %c0_i32 = arith.constant 0 : i32
    return %arg2, %arg1 : i32, i32
  }
  func.func @transform_2(%arg0: i32, %arg1: i32, %arg2: i32) -> (i32, i32) {
    %c0_i32 = arith.constant 0 : i32
    %c0_i32_0 = arith.constant 0 : i32
    return %c0_i32, %arg1 : i32, i32
  }
  func.func @transform_3(%arg0: i32, %arg1: i32, %arg2: i32) -> (i32, i32) {
    %c0_i32 = arith.constant 0 : i32
    return %arg0, %arg1 : i32, i32
  }
  func.func @transform_4(%arg0: i32, %arg1: i32, %arg2: i32) -> (i32, i32, i32) {
    %c0_i32 = arith.constant 0 : i32
    %c0_i32_0 = arith.constant 0 : i32
    return %arg0, %c0_i32, %arg1 : i32, i32, i32
  }
}

module attributes {stable_mosaic.version = 11 : i64} {
  func.func @_bn_relu_kernel(%arg0: i32, %arg1: memref<72x128xbf16, #tpu.memory_space<vmem>>, %arg2: memref<1x8x128xf32, #tpu.memory_space<vmem>>, %arg3: memref<1x128xf32, #tpu.memory_space<vmem>>, %arg4: memref<72x128xbf16, #tpu.memory_space<vmem>>) attributes {dimension_semantics = [#tpu.dimension_semantics<parallel>], iteration_bounds = array<i64: 1>, scalar_prefetch = 0 : i64, scratch_operands = 0 : i64, tpu.core_type = #tpu.core_type<tc>, window_params = [{transform_indices = @transform_0, window_bounds = array<i64: 72, 128>}, {pipeline_mode = #tpu.pipeline_mode<synchronous>, transform_indices = @transform_1, window_bounds = array<i64: 1, 8, 128>}, {pipeline_mode = #tpu.pipeline_mode<synchronous>, transform_indices = @transform_2, window_bounds = array<i64: 1, 128>}, {transform_indices = @transform_3, window_bounds = array<i64: 72, 128>}]} {
    %c0 = arith.constant 0 : index
    %c0_0 = arith.constant 0 : index
    %c0_1 = arith.constant 0 : index
    %0 = vector.load %arg2[%c0, %c0_0, %c0_1] : memref<1x8x128xf32, #tpu.memory_space<vmem>>, vector<1x8x128xf32>
    %cst = arith.constant dense<0.000000e+00> : vector<8x128xf32>
    %1 = vector.multi_reduction <add>, %0, %cst [0] : vector<1x8x128xf32> to vector<8x128xf32>
    %2 = vector.extract_strided_slice %1 {offsets = [0, 0], sizes = [1, 128], strides = [1, 1]} : vector<8x128xf32> to vector<1x128xf32>
    %3 = vector.extract_strided_slice %1 {offsets = [1, 0], sizes = [1, 128], strides = [1, 1]} : vector<8x128xf32> to vector<1x128xf32>
    %cst_2 = arith.constant 0.013888889 : f32
    %4 = vector.broadcast %cst_2 : f32 to vector<1x128xf32>
    %5 = arith.mulf %2, %4 : vector<1x128xf32>
    %cst_3 = arith.constant 0.013888889 : f32
    %6 = vector.broadcast %cst_3 : f32 to vector<1x128xf32>
    %7 = arith.mulf %3, %6 : vector<1x128xf32>
    %8 = arith.mulf %5, %5 : vector<1x128xf32>
    %9 = arith.subf %7, %8 : vector<1x128xf32>
    %cst_4 = arith.constant 0.000000e+00 : f32
    %10 = vector.broadcast %cst_4 : f32 to vector<1x128xf32>
    %11 = arith.maximumf %9, %10 : vector<1x128xf32>
    %cst_5 = arith.constant 9.99999974E-6 : f32
    %12 = vector.broadcast %cst_5 : f32 to vector<1x128xf32>
    %13 = arith.addf %11, %12 : vector<1x128xf32>
    %14 = math.rsqrt %13 : vector<1x128xf32>
    %c0_6 = arith.constant 0 : index
    %c0_7 = arith.constant 0 : index
    %15 = vector.load %arg3[%c0_6, %c0_7] : memref<1x128xf32, #tpu.memory_space<vmem>>, vector<1x128xf32>
    %16 = arith.addf %5, %15 : vector<1x128xf32>
    %cst_8 = arith.constant 0.000000e+00 : f32
    %17 = vector.broadcast %cst_8 : f32 to vector<1x128xf32>
    %18 = arith.subf %17, %16 : vector<1x128xf32>
    %19 = arith.mulf %18, %14 : vector<1x128xf32>
    %c0_9 = arith.constant 0 : index
    %c0_10 = arith.constant 0 : index
    %20 = vector.load %arg1[%c0_9, %c0_10] : memref<72x128xbf16, #tpu.memory_space<vmem>>, vector<72x128xbf16>
    %21 = arith.extf %20 : vector<72x128xbf16> to vector<72x128xf32>
    %22 = vector.broadcast %14 : vector<1x128xf32> to vector<72x128xf32>
    %23 = arith.mulf %21, %22 : vector<72x128xf32>
    %24 = vector.broadcast %19 : vector<1x128xf32> to vector<72x128xf32>
    %25 = arith.addf %23, %24 : vector<72x128xf32>
    %cst_11 = arith.constant 0.000000e+00 : f32
    %26 = vector.broadcast %cst_11 : f32 to vector<72x128xf32>
    %27 = arith.maximumf %25, %26 : vector<72x128xf32>
    %28 = arith.truncf %27 : vector<72x128xf32> to vector<72x128xbf16>
    %c0_12 = arith.constant 0 : index
    %c0_13 = arith.constant 0 : index
    %29 = vector.load %arg4[%c0_12, %c0_13] : memref<72x128xbf16, #tpu.memory_space<vmem>>, vector<72x128xbf16>
    tpu.vector_store %arg4[%c0_12, %c0_13], %28 {strides = array<i32>} : memref<72x128xbf16, #tpu.memory_space<vmem>>, vector<72x128xbf16>,
    return
  }
  func.func @transform_0(%arg0: i32) -> (i32, i32) {
    %c0_i32 = arith.constant 0 : i32
    %c0_i32_0 = arith.constant 0 : i32
    return %arg0, %c0_i32 : i32, i32
  }
  func.func @transform_1(%arg0: i32) -> (i32, i32, i32) {
    %c0_i32 = arith.constant 0 : i32
    %c0_i32_0 = arith.constant 0 : i32
    %c0_i32_1 = arith.constant 0 : i32
    %c0_i32_2 = arith.constant 0 : i32
    return %c0_i32, %c0_i32_0, %c0_i32_1 : i32, i32, i32
  }
  func.func @transform_2(%arg0: i32) -> (i32, i32) {
    %c0_i32 = arith.constant 0 : i32
    %c0_i32_0 = arith.constant 0 : i32
    %c0_i32_1 = arith.constant 0 : i32
    return %c0_i32, %c0_i32_0 : i32, i32
  }
  func.func @transform_3(%arg0: i32) -> (i32, i32) {
    %c0_i32 = arith.constant 0 : i32
    %c0_i32_0 = arith.constant 0 : i32
    return %arg0, %c0_i32 : i32, i32
  }
}

module attributes {stable_mosaic.version = 11 : i64} {
  func.func @_matmul_kernel(%arg0: i32, %arg1: i32, %arg2: i32, %arg3: memref<72x896xbf16, #tpu.memory_space<vmem>>, %arg4: memref<896x128xbf16, #tpu.memory_space<vmem>>, %arg5: memref<1x128xf32, #tpu.memory_space<vmem>>, %arg6: memref<72x128xbf16, #tpu.memory_space<vmem>>, %arg7: memref<1x8x128xf32, #tpu.memory_space<vmem>>, %arg8: memref<72x128xf32, #tpu.memory_space<vmem>>) attributes {dimension_semantics = [#tpu.dimension_semantics<parallel>, #tpu.dimension_semantics<parallel>, #tpu.dimension_semantics<arbitrary>], iteration_bounds = array<i64: 1, 1, 1>, scalar_prefetch = 0 : i64, scratch_operands = 1 : i64, tpu.core_type = #tpu.core_type<tc>, window_params = [{transform_indices = @transform_0, window_bounds = array<i64: 72, 896>}, {transform_indices = @transform_1, window_bounds = array<i64: 896, 128>}, {transform_indices = @transform_2, window_bounds = array<i64: 1, 128>}, {transform_indices = @transform_3, window_bounds = array<i64: 72, 128>}, {transform_indices = @transform_4, window_bounds = array<i64: 1, 8, 128>}]} {
    %c0_i32 = arith.constant 0 : i32
    %0 = arith.cmpi eq, %arg2, %c0_i32 : i32
    %1 = arith.extui %0 : i1 to i32
    %c0_i32_0 = arith.constant 0 : i32
    %2 = arith.cmpi ne, %1, %c0_i32_0 : i32
    scf.if %2 {
      %cst_10 = arith.constant 0.000000e+00 : f32
      %12 = vector.broadcast %cst_10 : f32 to vector<72x128xf32>
      %c0_11 = arith.constant 0 : index
      %c0_12 = arith.constant 0 : index
      %13 = vector.load %arg8[%c0_11, %c0_12] : memref<72x128xf32, #tpu.memory_space<vmem>>, vector<72x128xf32>
      tpu.vector_store %arg8[%c0_11, %c0_12], %12 {strides = array<i32>} : memref<72x128xf32, #tpu.memory_space<vmem>>, vector<72x128xf32>,
    } else {
    }
    %c0 = arith.constant 0 : index
    %c0_1 = arith.constant 0 : index
    %3 = vector.load %arg8[%c0, %c0_1] : memref<72x128xf32, #tpu.memory_space<vmem>>, vector<72x128xf32>
    %c0_2 = arith.constant 0 : index
    %c0_3 = arith.constant 0 : index
    %4 = vector.load %arg3[%c0_2, %c0_3] : memref<72x896xbf16, #tpu.memory_space<vmem>>, vector<72x896xbf16>
    %c0_4 = arith.constant 0 : index
    %c0_5 = arith.constant 0 : index
    %5 = vector.load %arg4[%c0_4, %c0_5] : memref<896x128xbf16, #tpu.memory_space<vmem>>, vector<896x128xbf16>
    %cst = arith.constant dense<0.000000e+00> : vector<72x128xf32>
    %6 = tpu.matmul %4, %5, %cst {dimension_numbers = #tpu.dot_dimension_numbers<[1], [0], [0], [1], [0, 0, 1, 1], [], []>} : vector<72x896xbf16>, vector<896x128xbf16>, vector<72x128xf32> -> vector<72x128xf32>
    %7 = arith.addf %3, %6 : vector<72x128xf32>
    %c0_6 = arith.constant 0 : index
    %c0_7 = arith.constant 0 : index
    %8 = vector.load %arg8[%c0_6, %c0_7] : memref<72x128xf32, #tpu.memory_space<vmem>>, vector<72x128xf32>
    tpu.vector_store %arg8[%c0_6, %c0_7], %7 {strides = array<i32>} : memref<72x128xf32, #tpu.memory_space<vmem>>, vector<72x128xf32>,
    %c0_i32_8 = arith.constant 0 : i32
    %9 = arith.cmpi eq, %arg2, %c0_i32_8 : i32
    %10 = arith.extui %9 : i1 to i32
    %c0_i32_9 = arith.constant 0 : i32
    %11 = arith.cmpi ne, %10, %c0_i32_9 : i32
    scf.if %11 {
      %c0_10 = arith.constant 0 : index
      %c0_11 = arith.constant 0 : index
      %12 = vector.load %arg8[%c0_10, %c0_11] : memref<72x128xf32, #tpu.memory_space<vmem>>, vector<72x128xf32>
      %c0_12 = arith.constant 0 : index
      %c0_13 = arith.constant 0 : index
      %13 = vector.load %arg5[%c0_12, %c0_13] : memref<1x128xf32, #tpu.memory_space<vmem>>, vector<1x128xf32>
      %14 = vector.broadcast %13 : vector<1x128xf32> to vector<72x128xf32>
      %15 = arith.addf %12, %14 : vector<72x128xf32>
      %16 = arith.truncf %15 : vector<72x128xf32> to vector<72x128xbf16>
      %c0_14 = arith.constant 0 : index
      %c0_15 = arith.constant 0 : index
      %17 = vector.load %arg6[%c0_14, %c0_15] : memref<72x128xbf16, #tpu.memory_space<vmem>>, vector<72x128xbf16>
      tpu.vector_store %arg6[%c0_14, %c0_15], %16 {strides = array<i32>} : memref<72x128xbf16, #tpu.memory_space<vmem>>, vector<72x128xbf16>,
      %cst_16 = arith.constant dense<0.000000e+00> : vector<128xf32>
      %18 = vector.multi_reduction <add>, %12, %cst_16 [0] : vector<72x128xf32> to vector<128xf32>
      %19 = vector.shape_cast %18 : vector<128xf32> to vector<1x128xf32>
      %20 = arith.mulf %12, %12 : vector<72x128xf32>
      %cst_17 = arith.constant dense<0.000000e+00> : vector<128xf32>
      %21 = vector.multi_reduction <add>, %20, %cst_17 [0] : vector<72x128xf32> to vector<128xf32>
      %22 = vector.shape_cast %21 : vector<128xf32> to vector<1x128xf32>
      %cst_18 = arith.constant 0.000000e+00 : f32
      %23 = vector.broadcast %cst_18 : f32 to vector<6x128xf32>
      %24 = tpu.concatenate %19, %22, %23 in 0 : vector<1x128xf32>, vector<1x128xf32>, vector<6x128xf32> -> vector<8x128xf32>
      %c0_19 = arith.constant 0 : index
      %c0_20 = arith.constant 0 : index
      %c0_21 = arith.constant 0 : index
      %25 = vector.load %arg7[%c0_19, %c0_20, %c0_21] : memref<1x8x128xf32, #tpu.memory_space<vmem>>, vector<1x8x128xf32>
      %26 = vector.shape_cast %25 : vector<1x8x128xf32> to vector<8x128xf32>
      %27 = vector.shape_cast %24 : vector<8x128xf32> to vector<1x8x128xf32>
      tpu.vector_store %arg7[%c0_19, %c0_20, %c0_21], %27 {strides = array<i32>} : memref<1x8x128xf32, #tpu.memory_space<vmem>>, vector<1x8x128xf32>,
    } else {
    }
    return
  }
  func.func @transform_0(%arg0: i32, %arg1: i32, %arg2: i32) -> (i32, i32) {
    %c0_i32 = arith.constant 0 : i32
    return %arg0, %arg2 : i32, i32
  }
  func.func @transform_1(%arg0: i32, %arg1: i32, %arg2: i32) -> (i32, i32) {
    %c0_i32 = arith.constant 0 : i32
    return %arg2, %arg1 : i32, i32
  }
  func.func @transform_2(%arg0: i32, %arg1: i32, %arg2: i32) -> (i32, i32) {
    %c0_i32 = arith.constant 0 : i32
    %c0_i32_0 = arith.constant 0 : i32
    return %c0_i32, %arg1 : i32, i32
  }
  func.func @transform_3(%arg0: i32, %arg1: i32, %arg2: i32) -> (i32, i32) {
    %c0_i32 = arith.constant 0 : i32
    return %arg0, %arg1 : i32, i32
  }
  func.func @transform_4(%arg0: i32, %arg1: i32, %arg2: i32) -> (i32, i32, i32) {
    %c0_i32 = arith.constant 0 : i32
    %c0_i32_0 = arith.constant 0 : i32
    return %arg0, %c0_i32, %arg1 : i32, i32, i32
  }
}

module attributes {stable_mosaic.version = 11 : i64} {
  func.func @_bn_relu_res_bn_kernel(%arg0: i32, %arg1: memref<72x128xbf16, #tpu.memory_space<vmem>>, %arg2: memref<1x8x128xf32, #tpu.memory_space<vmem>>, %arg3: memref<1x128xf32, #tpu.memory_space<vmem>>, %arg4: memref<72x128xbf16, #tpu.memory_space<vmem>>, %arg5: memref<1x8x128xf32, #tpu.memory_space<vmem>>, %arg6: memref<1x128xf32, #tpu.memory_space<vmem>>, %arg7: memref<72x128xbf16, #tpu.memory_space<vmem>>) attributes {dimension_semantics = [#tpu.dimension_semantics<parallel>], iteration_bounds = array<i64: 1>, scalar_prefetch = 0 : i64, scratch_operands = 0 : i64, tpu.core_type = #tpu.core_type<tc>, window_params = [{transform_indices = @transform_0, window_bounds = array<i64: 72, 128>}, {pipeline_mode = #tpu.pipeline_mode<synchronous>, transform_indices = @transform_1, window_bounds = array<i64: 1, 8, 128>}, {pipeline_mode = #tpu.pipeline_mode<synchronous>, transform_indices = @transform_2, window_bounds = array<i64: 1, 128>}, {transform_indices = @transform_3, window_bounds = array<i64: 72, 128>}, {pipeline_mode = #tpu.pipeline_mode<synchronous>, transform_indices = @transform_4, window_bounds = array<i64: 1, 8, 128>}, {pipeline_mode = #tpu.pipeline_mode<synchronous>, transform_indices = @transform_5, window_bounds = array<i64: 1, 128>}, {transform_indices = @transform_6, window_bounds = array<i64: 72, 128>}]} {
    %c0 = arith.constant 0 : index
    %c0_0 = arith.constant 0 : index
    %c0_1 = arith.constant 0 : index
    %0 = vector.load %arg2[%c0, %c0_0, %c0_1] : memref<1x8x128xf32, #tpu.memory_space<vmem>>, vector<1x8x128xf32>
    %cst = arith.constant dense<0.000000e+00> : vector<8x128xf32>
    %1 = vector.multi_reduction <add>, %0, %cst [0] : vector<1x8x128xf32> to vector<8x128xf32>
    %2 = vector.extract_strided_slice %1 {offsets = [0, 0], sizes = [1, 128], strides = [1, 1]} : vector<8x128xf32> to vector<1x128xf32>
    %3 = vector.extract_strided_slice %1 {offsets = [1, 0], sizes = [1, 128], strides = [1, 1]} : vector<8x128xf32> to vector<1x128xf32>
    %cst_2 = arith.constant 0.013888889 : f32
    %4 = vector.broadcast %cst_2 : f32 to vector<1x128xf32>
    %5 = arith.mulf %2, %4 : vector<1x128xf32>
    %cst_3 = arith.constant 0.013888889 : f32
    %6 = vector.broadcast %cst_3 : f32 to vector<1x128xf32>
    %7 = arith.mulf %3, %6 : vector<1x128xf32>
    %8 = arith.mulf %5, %5 : vector<1x128xf32>
    %9 = arith.subf %7, %8 : vector<1x128xf32>
    %cst_4 = arith.constant 0.000000e+00 : f32
    %10 = vector.broadcast %cst_4 : f32 to vector<1x128xf32>
    %11 = arith.maximumf %9, %10 : vector<1x128xf32>
    %cst_5 = arith.constant 9.99999974E-6 : f32
    %12 = vector.broadcast %cst_5 : f32 to vector<1x128xf32>
    %13 = arith.addf %11, %12 : vector<1x128xf32>
    %14 = math.rsqrt %13 : vector<1x128xf32>
    %c0_6 = arith.constant 0 : index
    %c0_7 = arith.constant 0 : index
    %15 = vector.load %arg3[%c0_6, %c0_7] : memref<1x128xf32, #tpu.memory_space<vmem>>, vector<1x128xf32>
    %16 = arith.addf %5, %15 : vector<1x128xf32>
    %cst_8 = arith.constant 0.000000e+00 : f32
    %17 = vector.broadcast %cst_8 : f32 to vector<1x128xf32>
    %18 = arith.subf %17, %16 : vector<1x128xf32>
    %19 = arith.mulf %18, %14 : vector<1x128xf32>
    %c0_9 = arith.constant 0 : index
    %c0_10 = arith.constant 0 : index
    %c0_11 = arith.constant 0 : index
    %20 = vector.load %arg5[%c0_9, %c0_10, %c0_11] : memref<1x8x128xf32, #tpu.memory_space<vmem>>, vector<1x8x128xf32>
    %cst_12 = arith.constant dense<0.000000e+00> : vector<8x128xf32>
    %21 = vector.multi_reduction <add>, %20, %cst_12 [0] : vector<1x8x128xf32> to vector<8x128xf32>
    %22 = vector.extract_strided_slice %21 {offsets = [0, 0], sizes = [1, 128], strides = [1, 1]} : vector<8x128xf32> to vector<1x128xf32>
    %23 = vector.extract_strided_slice %21 {offsets = [1, 0], sizes = [1, 128], strides = [1, 1]} : vector<8x128xf32> to vector<1x128xf32>
    %cst_13 = arith.constant 0.013888889 : f32
    %24 = vector.broadcast %cst_13 : f32 to vector<1x128xf32>
    %25 = arith.mulf %22, %24 : vector<1x128xf32>
    %cst_14 = arith.constant 0.013888889 : f32
    %26 = vector.broadcast %cst_14 : f32 to vector<1x128xf32>
    %27 = arith.mulf %23, %26 : vector<1x128xf32>
    %28 = arith.mulf %25, %25 : vector<1x128xf32>
    %29 = arith.subf %27, %28 : vector<1x128xf32>
    %cst_15 = arith.constant 0.000000e+00 : f32
    %30 = vector.broadcast %cst_15 : f32 to vector<1x128xf32>
    %31 = arith.maximumf %29, %30 : vector<1x128xf32>
    %cst_16 = arith.constant 9.99999974E-6 : f32
    %32 = vector.broadcast %cst_16 : f32 to vector<1x128xf32>
    %33 = arith.addf %31, %32 : vector<1x128xf32>
    %34 = math.rsqrt %33 : vector<1x128xf32>
    %c0_17 = arith.constant 0 : index
    %c0_18 = arith.constant 0 : index
    %35 = vector.load %arg6[%c0_17, %c0_18] : memref<1x128xf32, #tpu.memory_space<vmem>>, vector<1x128xf32>
    %36 = arith.addf %25, %35 : vector<1x128xf32>
    %cst_19 = arith.constant 0.000000e+00 : f32
    %37 = vector.broadcast %cst_19 : f32 to vector<1x128xf32>
    %38 = arith.subf %37, %36 : vector<1x128xf32>
    %39 = arith.mulf %38, %34 : vector<1x128xf32>
    %c0_20 = arith.constant 0 : index
    %c0_21 = arith.constant 0 : index
    %40 = vector.load %arg1[%c0_20, %c0_21] : memref<72x128xbf16, #tpu.memory_space<vmem>>, vector<72x128xbf16>
    %41 = arith.extf %40 : vector<72x128xbf16> to vector<72x128xf32>
    %42 = vector.broadcast %14 : vector<1x128xf32> to vector<72x128xf32>
    %43 = arith.mulf %41, %42 : vector<72x128xf32>
    %44 = vector.broadcast %19 : vector<1x128xf32> to vector<72x128xf32>
    %45 = arith.addf %43, %44 : vector<72x128xf32>
    %cst_22 = arith.constant 0.000000e+00 : f32
    %46 = vector.broadcast %cst_22 : f32 to vector<72x128xf32>
    %47 = arith.maximumf %45, %46 : vector<72x128xf32>
    %c0_23 = arith.constant 0 : index
    %c0_24 = arith.constant 0 : index
    %48 = vector.load %arg4[%c0_23, %c0_24] : memref<72x128xbf16, #tpu.memory_space<vmem>>, vector<72x128xbf16>
    %49 = arith.extf %48 : vector<72x128xbf16> to vector<72x128xf32>
    %50 = vector.broadcast %34 : vector<1x128xf32> to vector<72x128xf32>
    %51 = arith.mulf %49, %50 : vector<72x128xf32>
    %52 = vector.broadcast %39 : vector<1x128xf32> to vector<72x128xf32>
    %53 = arith.addf %51, %52 : vector<72x128xf32>
    %54 = arith.addf %47, %53 : vector<72x128xf32>
    %cst_25 = arith.constant 0.000000e+00 : f32
    %55 = vector.broadcast %cst_25 : f32 to vector<72x128xf32>
    %56 = arith.maximumf %54, %55 : vector<72x128xf32>
    %57 = arith.truncf %56 : vector<72x128xf32> to vector<72x128xbf16>
    %c0_26 = arith.constant 0 : index
    %c0_27 = arith.constant 0 : index
    %58 = vector.load %arg7[%c0_26, %c0_27] : memref<72x128xbf16, #tpu.memory_space<vmem>>, vector<72x128xbf16>
    tpu.vector_store %arg7[%c0_26, %c0_27], %57 {strides = array<i32>} : memref<72x128xbf16, #tpu.memory_space<vmem>>, vector<72x128xbf16>,
    return
  }
  func.func @transform_0(%arg0: i32) -> (i32, i32) {
    %c0_i32 = arith.constant 0 : i32
    %c0_i32_0 = arith.constant 0 : i32
    return %arg0, %c0_i32 : i32, i32
  }
  func.func @transform_1(%arg0: i32) -> (i32, i32, i32) {
    %c0_i32 = arith.constant 0 : i32
    %c0_i32_0 = arith.constant 0 : i32
    %c0_i32_1 = arith.constant 0 : i32
    %c0_i32_2 = arith.constant 0 : i32
    return %c0_i32, %c0_i32_0, %c0_i32_1 : i32, i32, i32
  }
  func.func @transform_2(%arg0: i32) -> (i32, i32) {
    %c0_i32 = arith.constant 0 : i32
    %c0_i32_0 = arith.constant 0 : i32
    %c0_i32_1 = arith.constant 0 : i32
    return %c0_i32, %c0_i32_0 : i32, i32
  }
  func.func @transform_3(%arg0: i32) -> (i32, i32) {
    %c0_i32 = arith.constant 0 : i32
    %c0_i32_0 = arith.constant 0 : i32
    return %arg0, %c0_i32 : i32, i32
  }
  func.func @transform_4(%arg0: i32) -> (i32, i32, i32) {
    %c0_i32 = arith.constant 0 : i32
    %c0_i32_0 = arith.constant 0 : i32
    %c0_i32_1 = arith.constant 0 : i32
    %c0_i32_2 = arith.constant 0 : i32
    return %c0_i32, %c0_i32_0, %c0_i32_1 : i32, i32, i32
  }
  func.func @transform_5(%arg0: i32) -> (i32, i32) {
    %c0_i32 = arith.constant 0 : i32
    %c0_i32_0 = arith.constant 0 : i32
    %c0_i32_1 = arith.constant 0 : i32
    return %c0_i32, %c0_i32_0 : i32, i32
  }
  func.func @transform_6(%arg0: i32) -> (i32, i32) {
    %c0_i32 = arith.constant 0 : i32
    %c0_i32_0 = arith.constant 0 : i32
    return %arg0, %c0_i32 : i32, i32
  }
}

module attributes {stable_mosaic.version = 11 : i64} {
  func.func @_bn_relu_res_kernel(%arg0: i32, %arg1: memref<72x128xbf16, #tpu.memory_space<vmem>>, %arg2: memref<1x8x128xf32, #tpu.memory_space<vmem>>, %arg3: memref<1x128xf32, #tpu.memory_space<vmem>>, %arg4: memref<72x128xbf16, #tpu.memory_space<vmem>>, %arg5: memref<72x128xbf16, #tpu.memory_space<vmem>>) attributes {dimension_semantics = [#tpu.dimension_semantics<parallel>], iteration_bounds = array<i64: 1>, scalar_prefetch = 0 : i64, scratch_operands = 0 : i64, tpu.core_type = #tpu.core_type<tc>, window_params = [{transform_indices = @transform_0, window_bounds = array<i64: 72, 128>}, {pipeline_mode = #tpu.pipeline_mode<synchronous>, transform_indices = @transform_1, window_bounds = array<i64: 1, 8, 128>}, {pipeline_mode = #tpu.pipeline_mode<synchronous>, transform_indices = @transform_2, window_bounds = array<i64: 1, 128>}, {transform_indices = @transform_3, window_bounds = array<i64: 72, 128>}, {transform_indices = @transform_4, window_bounds = array<i64: 72, 128>}]} {
    %c0 = arith.constant 0 : index
    %c0_0 = arith.constant 0 : index
    %c0_1 = arith.constant 0 : index
    %0 = vector.load %arg2[%c0, %c0_0, %c0_1] : memref<1x8x128xf32, #tpu.memory_space<vmem>>, vector<1x8x128xf32>
    %cst = arith.constant dense<0.000000e+00> : vector<8x128xf32>
    %1 = vector.multi_reduction <add>, %0, %cst [0] : vector<1x8x128xf32> to vector<8x128xf32>
    %2 = vector.extract_strided_slice %1 {offsets = [0, 0], sizes = [1, 128], strides = [1, 1]} : vector<8x128xf32> to vector<1x128xf32>
    %3 = vector.extract_strided_slice %1 {offsets = [1, 0], sizes = [1, 128], strides = [1, 1]} : vector<8x128xf32> to vector<1x128xf32>
    %cst_2 = arith.constant 0.013888889 : f32
    %4 = vector.broadcast %cst_2 : f32 to vector<1x128xf32>
    %5 = arith.mulf %2, %4 : vector<1x128xf32>
    %cst_3 = arith.constant 0.013888889 : f32
    %6 = vector.broadcast %cst_3 : f32 to vector<1x128xf32>
    %7 = arith.mulf %3, %6 : vector<1x128xf32>
    %8 = arith.mulf %5, %5 : vector<1x128xf32>
    %9 = arith.subf %7, %8 : vector<1x128xf32>
    %cst_4 = arith.constant 0.000000e+00 : f32
    %10 = vector.broadcast %cst_4 : f32 to vector<1x128xf32>
    %11 = arith.maximumf %9, %10 : vector<1x128xf32>
    %cst_5 = arith.constant 9.99999974E-6 : f32
    %12 = vector.broadcast %cst_5 : f32 to vector<1x128xf32>
    %13 = arith.addf %11, %12 : vector<1x128xf32>
    %14 = math.rsqrt %13 : vector<1x128xf32>
    %c0_6 = arith.constant 0 : index
    %c0_7 = arith.constant 0 : index
    %15 = vector.load %arg3[%c0_6, %c0_7] : memref<1x128xf32, #tpu.memory_space<vmem>>, vector<1x128xf32>
    %16 = arith.addf %5, %15 : vector<1x128xf32>
    %cst_8 = arith.constant 0.000000e+00 : f32
    %17 = vector.broadcast %cst_8 : f32 to vector<1x128xf32>
    %18 = arith.subf %17, %16 : vector<1x128xf32>
    %19 = arith.mulf %18, %14 : vector<1x128xf32>
    %c0_9 = arith.constant 0 : index
    %c0_10 = arith.constant 0 : index
    %20 = vector.load %arg1[%c0_9, %c0_10] : memref<72x128xbf16, #tpu.memory_space<vmem>>, vector<72x128xbf16>
    %21 = arith.extf %20 : vector<72x128xbf16> to vector<72x128xf32>
    %22 = vector.broadcast %14 : vector<1x128xf32> to vector<72x128xf32>
    %23 = arith.mulf %21, %22 : vector<72x128xf32>
    %24 = vector.broadcast %19 : vector<1x128xf32> to vector<72x128xf32>
    %25 = arith.addf %23, %24 : vector<72x128xf32>
    %cst_11 = arith.constant 0.000000e+00 : f32
    %26 = vector.broadcast %cst_11 : f32 to vector<72x128xf32>
    %27 = arith.maximumf %25, %26 : vector<72x128xf32>
    %c0_12 = arith.constant 0 : index
    %c0_13 = arith.constant 0 : index
    %28 = vector.load %arg4[%c0_12, %c0_13] : memref<72x128xbf16, #tpu.memory_space<vmem>>, vector<72x128xbf16>
    %29 = arith.extf %28 : vector<72x128xbf16> to vector<72x128xf32>
    %30 = arith.addf %27, %29 : vector<72x128xf32>
    %cst_14 = arith.constant 0.000000e+00 : f32
    %31 = vector.broadcast %cst_14 : f32 to vector<72x128xf32>
    %32 = arith.maximumf %30, %31 : vector<72x128xf32>
    %33 = arith.truncf %32 : vector<72x128xf32> to vector<72x128xbf16>
    %c0_15 = arith.constant 0 : index
    %c0_16 = arith.constant 0 : index
    %34 = vector.load %arg5[%c0_15, %c0_16] : memref<72x128xbf16, #tpu.memory_space<vmem>>, vector<72x128xbf16>
    tpu.vector_store %arg5[%c0_15, %c0_16], %33 {strides = array<i32>} : memref<72x128xbf16, #tpu.memory_space<vmem>>, vector<72x128xbf16>,
    return
  }
  func.func @transform_0(%arg0: i32) -> (i32, i32) {
    %c0_i32 = arith.constant 0 : i32
    %c0_i32_0 = arith.constant 0 : i32
    return %arg0, %c0_i32 : i32, i32
  }
  func.func @transform_1(%arg0: i32) -> (i32, i32, i32) {
    %c0_i32 = arith.constant 0 : i32
    %c0_i32_0 = arith.constant 0 : i32
    %c0_i32_1 = arith.constant 0 : i32
    %c0_i32_2 = arith.constant 0 : i32
    return %c0_i32, %c0_i32_0, %c0_i32_1 : i32, i32, i32
  }
  func.func @transform_2(%arg0: i32) -> (i32, i32) {
    %c0_i32 = arith.constant 0 : i32
    %c0_i32_0 = arith.constant 0 : i32
    %c0_i32_1 = arith.constant 0 : i32
    return %c0_i32, %c0_i32_0 : i32, i32
  }
  func.func @transform_3(%arg0: i32) -> (i32, i32) {
    %c0_i32 = arith.constant 0 : i32
    %c0_i32_0 = arith.constant 0 : i32
    return %arg0, %c0_i32 : i32, i32
  }
  func.func @transform_4(%arg0: i32) -> (i32, i32) {
    %c0_i32 = arith.constant 0 : i32
    %c0_i32_0 = arith.constant 0 : i32
    return %arg0, %c0_i32 : i32, i32
  }
}

module attributes {stable_mosaic.version = 11 : i64} {
  func.func @_matmul_kernel(%arg0: i32, %arg1: i32, %arg2: i32, %arg3: memref<72x128xbf16, #tpu.memory_space<vmem>>, %arg4: memref<128x128xbf16, #tpu.memory_space<vmem>>, %arg5: memref<1x128xf32, #tpu.memory_space<vmem>>, %arg6: memref<72x128xbf16, #tpu.memory_space<vmem>>, %arg7: memref<1x8x128xf32, #tpu.memory_space<vmem>>, %arg8: memref<72x128xf32, #tpu.memory_space<vmem>>) attributes {dimension_semantics = [#tpu.dimension_semantics<parallel>, #tpu.dimension_semantics<parallel>, #tpu.dimension_semantics<arbitrary>], iteration_bounds = array<i64: 1, 1, 1>, scalar_prefetch = 0 : i64, scratch_operands = 1 : i64, tpu.core_type = #tpu.core_type<tc>, window_params = [{transform_indices = @transform_0, window_bounds = array<i64: 72, 128>}, {transform_indices = @transform_1, window_bounds = array<i64: 128, 128>}, {transform_indices = @transform_2, window_bounds = array<i64: 1, 128>}, {transform_indices = @transform_3, window_bounds = array<i64: 72, 128>}, {transform_indices = @transform_4, window_bounds = array<i64: 1, 8, 128>}]} {
    %c0_i32 = arith.constant 0 : i32
    %0 = arith.cmpi eq, %arg2, %c0_i32 : i32
    %1 = arith.extui %0 : i1 to i32
    %c0_i32_0 = arith.constant 0 : i32
    %2 = arith.cmpi ne, %1, %c0_i32_0 : i32
    scf.if %2 {
      %cst_10 = arith.constant 0.000000e+00 : f32
      %12 = vector.broadcast %cst_10 : f32 to vector<72x128xf32>
      %c0_11 = arith.constant 0 : index
      %c0_12 = arith.constant 0 : index
      %13 = vector.load %arg8[%c0_11, %c0_12] : memref<72x128xf32, #tpu.memory_space<vmem>>, vector<72x128xf32>
      tpu.vector_store %arg8[%c0_11, %c0_12], %12 {strides = array<i32>} : memref<72x128xf32, #tpu.memory_space<vmem>>, vector<72x128xf32>,
    } else {
    }
    %c0 = arith.constant 0 : index
    %c0_1 = arith.constant 0 : index
    %3 = vector.load %arg8[%c0, %c0_1] : memref<72x128xf32, #tpu.memory_space<vmem>>, vector<72x128xf32>
    %c0_2 = arith.constant 0 : index
    %c0_3 = arith.constant 0 : index
    %4 = vector.load %arg3[%c0_2, %c0_3] : memref<72x128xbf16, #tpu.memory_space<vmem>>, vector<72x128xbf16>
    %c0_4 = arith.constant 0 : index
    %c0_5 = arith.constant 0 : index
    %5 = vector.load %arg4[%c0_4, %c0_5] : memref<128x128xbf16, #tpu.memory_space<vmem>>, vector<128x128xbf16>
    %cst = arith.constant dense<0.000000e+00> : vector<72x128xf32>
    %6 = tpu.matmul %4, %5, %cst {dimension_numbers = #tpu.dot_dimension_numbers<[1], [0], [0], [1], [0, 0, 1, 1], [], []>} : vector<72x128xbf16>, vector<128x128xbf16>, vector<72x128xf32> -> vector<72x128xf32>
    %7 = arith.addf %3, %6 : vector<72x128xf32>
    %c0_6 = arith.constant 0 : index
    %c0_7 = arith.constant 0 : index
    %8 = vector.load %arg8[%c0_6, %c0_7] : memref<72x128xf32, #tpu.memory_space<vmem>>, vector<72x128xf32>
    tpu.vector_store %arg8[%c0_6, %c0_7], %7 {strides = array<i32>} : memref<72x128xf32, #tpu.memory_space<vmem>>, vector<72x128xf32>,
    %c0_i32_8 = arith.constant 0 : i32
    %9 = arith.cmpi eq, %arg2, %c0_i32_8 : i32
    %10 = arith.extui %9 : i1 to i32
    %c0_i32_9 = arith.constant 0 : i32
    %11 = arith.cmpi ne, %10, %c0_i32_9 : i32
    scf.if %11 {
      %c0_10 = arith.constant 0 : index
      %c0_11 = arith.constant 0 : index
      %12 = vector.load %arg8[%c0_10, %c0_11] : memref<72x128xf32, #tpu.memory_space<vmem>>, vector<72x128xf32>
      %c0_12 = arith.constant 0 : index
      %c0_13 = arith.constant 0 : index
      %13 = vector.load %arg5[%c0_12, %c0_13] : memref<1x128xf32, #tpu.memory_space<vmem>>, vector<1x128xf32>
      %14 = vector.broadcast %13 : vector<1x128xf32> to vector<72x128xf32>
      %15 = arith.addf %12, %14 : vector<72x128xf32>
      %16 = arith.truncf %15 : vector<72x128xf32> to vector<72x128xbf16>
      %c0_14 = arith.constant 0 : index
      %c0_15 = arith.constant 0 : index
      %17 = vector.load %arg6[%c0_14, %c0_15] : memref<72x128xbf16, #tpu.memory_space<vmem>>, vector<72x128xbf16>
      tpu.vector_store %arg6[%c0_14, %c0_15], %16 {strides = array<i32>} : memref<72x128xbf16, #tpu.memory_space<vmem>>, vector<72x128xbf16>,
      %cst_16 = arith.constant dense<0.000000e+00> : vector<128xf32>
      %18 = vector.multi_reduction <add>, %12, %cst_16 [0] : vector<72x128xf32> to vector<128xf32>
      %19 = vector.shape_cast %18 : vector<128xf32> to vector<1x128xf32>
      %20 = arith.mulf %12, %12 : vector<72x128xf32>
      %cst_17 = arith.constant dense<0.000000e+00> : vector<128xf32>
      %21 = vector.multi_reduction <add>, %20, %cst_17 [0] : vector<72x128xf32> to vector<128xf32>
      %22 = vector.shape_cast %21 : vector<128xf32> to vector<1x128xf32>
      %cst_18 = arith.constant 0.000000e+00 : f32
      %23 = vector.broadcast %cst_18 : f32 to vector<6x128xf32>
      %24 = tpu.concatenate %19, %22, %23 in 0 : vector<1x128xf32>, vector<1x128xf32>, vector<6x128xf32> -> vector<8x128xf32>
      %c0_19 = arith.constant 0 : index
      %c0_20 = arith.constant 0 : index
      %c0_21 = arith.constant 0 : index
      %25 = vector.load %arg7[%c0_19, %c0_20, %c0_21] : memref<1x8x128xf32, #tpu.memory_space<vmem>>, vector<1x8x128xf32>
      %26 = vector.shape_cast %25 : vector<1x8x128xf32> to vector<8x128xf32>
      %27 = vector.shape_cast %24 : vector<8x128xf32> to vector<1x8x128xf32>
      tpu.vector_store %arg7[%c0_19, %c0_20, %c0_21], %27 {strides = array<i32>} : memref<1x8x128xf32, #tpu.memory_space<vmem>>, vector<1x8x128xf32>,
    } else {
    }
    return
  }
  func.func @transform_0(%arg0: i32, %arg1: i32, %arg2: i32) -> (i32, i32) {
    %c0_i32 = arith.constant 0 : i32
    return %arg0, %arg2 : i32, i32
  }
  func.func @transform_1(%arg0: i32, %arg1: i32, %arg2: i32) -> (i32, i32) {
    %c0_i32 = arith.constant 0 : i32
    return %arg2, %arg1 : i32, i32
  }
  func.func @transform_2(%arg0: i32, %arg1: i32, %arg2: i32) -> (i32, i32) {
    %c0_i32 = arith.constant 0 : i32
    %c0_i32_0 = arith.constant 0 : i32
    return %c0_i32, %arg1 : i32, i32
  }
  func.func @transform_3(%arg0: i32, %arg1: i32, %arg2: i32) -> (i32, i32) {
    %c0_i32 = arith.constant 0 : i32
    return %arg0, %arg1 : i32, i32
  }
  func.func @transform_4(%arg0: i32, %arg1: i32, %arg2: i32) -> (i32, i32, i32) {
    %c0_i32 = arith.constant 0 : i32
    %c0_i32_0 = arith.constant 0 : i32
    return %arg0, %c0_i32, %arg1 : i32, i32, i32
  }
}

module attributes {stable_mosaic.version = 11 : i64} {
  func.func @_matmul_kernel(%arg0: i32, %arg1: i32, %arg2: i32, %arg3: memref<24x896xbf16, #tpu.memory_space<vmem>>, %arg4: memref<896x128xbf16, #tpu.memory_space<vmem>>, %arg5: memref<1x128xf32, #tpu.memory_space<vmem>>, %arg6: memref<24x128xbf16, #tpu.memory_space<vmem>>, %arg7: memref<1x8x128xf32, #tpu.memory_space<vmem>>, %arg8: memref<24x128xf32, #tpu.memory_space<vmem>>) attributes {dimension_semantics = [#tpu.dimension_semantics<parallel>, #tpu.dimension_semantics<parallel>, #tpu.dimension_semantics<arbitrary>], iteration_bounds = array<i64: 1, 1, 1>, scalar_prefetch = 0 : i64, scratch_operands = 1 : i64, tpu.core_type = #tpu.core_type<tc>, window_params = [{transform_indices = @transform_0, window_bounds = array<i64: 24, 896>}, {transform_indices = @transform_1, window_bounds = array<i64: 896, 128>}, {transform_indices = @transform_2, window_bounds = array<i64: 1, 128>}, {transform_indices = @transform_3, window_bounds = array<i64: 24, 128>}, {transform_indices = @transform_4, window_bounds = array<i64: 1, 8, 128>}]} {
    %c0_i32 = arith.constant 0 : i32
    %0 = arith.cmpi eq, %arg2, %c0_i32 : i32
    %1 = arith.extui %0 : i1 to i32
    %c0_i32_0 = arith.constant 0 : i32
    %2 = arith.cmpi ne, %1, %c0_i32_0 : i32
    scf.if %2 {
      %cst_10 = arith.constant 0.000000e+00 : f32
      %12 = vector.broadcast %cst_10 : f32 to vector<24x128xf32>
      %c0_11 = arith.constant 0 : index
      %c0_12 = arith.constant 0 : index
      %13 = vector.load %arg8[%c0_11, %c0_12] : memref<24x128xf32, #tpu.memory_space<vmem>>, vector<24x128xf32>
      tpu.vector_store %arg8[%c0_11, %c0_12], %12 {strides = array<i32>} : memref<24x128xf32, #tpu.memory_space<vmem>>, vector<24x128xf32>,
    } else {
    }
    %c0 = arith.constant 0 : index
    %c0_1 = arith.constant 0 : index
    %3 = vector.load %arg8[%c0, %c0_1] : memref<24x128xf32, #tpu.memory_space<vmem>>, vector<24x128xf32>
    %c0_2 = arith.constant 0 : index
    %c0_3 = arith.constant 0 : index
    %4 = vector.load %arg3[%c0_2, %c0_3] : memref<24x896xbf16, #tpu.memory_space<vmem>>, vector<24x896xbf16>
    %c0_4 = arith.constant 0 : index
    %c0_5 = arith.constant 0 : index
    %5 = vector.load %arg4[%c0_4, %c0_5] : memref<896x128xbf16, #tpu.memory_space<vmem>>, vector<896x128xbf16>
    %cst = arith.constant dense<0.000000e+00> : vector<24x128xf32>
    %6 = tpu.matmul %4, %5, %cst {dimension_numbers = #tpu.dot_dimension_numbers<[1], [0], [0], [1], [0, 0, 1, 1], [], []>} : vector<24x896xbf16>, vector<896x128xbf16>, vector<24x128xf32> -> vector<24x128xf32>
    %7 = arith.addf %3, %6 : vector<24x128xf32>
    %c0_6 = arith.constant 0 : index
    %c0_7 = arith.constant 0 : index
    %8 = vector.load %arg8[%c0_6, %c0_7] : memref<24x128xf32, #tpu.memory_space<vmem>>, vector<24x128xf32>
    tpu.vector_store %arg8[%c0_6, %c0_7], %7 {strides = array<i32>} : memref<24x128xf32, #tpu.memory_space<vmem>>, vector<24x128xf32>,
    %c0_i32_8 = arith.constant 0 : i32
    %9 = arith.cmpi eq, %arg2, %c0_i32_8 : i32
    %10 = arith.extui %9 : i1 to i32
    %c0_i32_9 = arith.constant 0 : i32
    %11 = arith.cmpi ne, %10, %c0_i32_9 : i32
    scf.if %11 {
      %c0_10 = arith.constant 0 : index
      %c0_11 = arith.constant 0 : index
      %12 = vector.load %arg8[%c0_10, %c0_11] : memref<24x128xf32, #tpu.memory_space<vmem>>, vector<24x128xf32>
      %c0_12 = arith.constant 0 : index
      %c0_13 = arith.constant 0 : index
      %13 = vector.load %arg5[%c0_12, %c0_13] : memref<1x128xf32, #tpu.memory_space<vmem>>, vector<1x128xf32>
      %14 = vector.broadcast %13 : vector<1x128xf32> to vector<24x128xf32>
      %15 = arith.addf %12, %14 : vector<24x128xf32>
      %16 = arith.truncf %15 : vector<24x128xf32> to vector<24x128xbf16>
      %c0_14 = arith.constant 0 : index
      %c0_15 = arith.constant 0 : index
      %17 = vector.load %arg6[%c0_14, %c0_15] : memref<24x128xbf16, #tpu.memory_space<vmem>>, vector<24x128xbf16>
      tpu.vector_store %arg6[%c0_14, %c0_15], %16 {strides = array<i32>} : memref<24x128xbf16, #tpu.memory_space<vmem>>, vector<24x128xbf16>,
      %cst_16 = arith.constant dense<0.000000e+00> : vector<128xf32>
      %18 = vector.multi_reduction <add>, %12, %cst_16 [0] : vector<24x128xf32> to vector<128xf32>
      %19 = vector.shape_cast %18 : vector<128xf32> to vector<1x128xf32>
      %20 = arith.mulf %12, %12 : vector<24x128xf32>
      %cst_17 = arith.constant dense<0.000000e+00> : vector<128xf32>
      %21 = vector.multi_reduction <add>, %20, %cst_17 [0] : vector<24x128xf32> to vector<128xf32>
      %22 = vector.shape_cast %21 : vector<128xf32> to vector<1x128xf32>
      %cst_18 = arith.constant 0.000000e+00 : f32
      %23 = vector.broadcast %cst_18 : f32 to vector<6x128xf32>
      %24 = tpu.concatenate %19, %22, %23 in 0 : vector<1x128xf32>, vector<1x128xf32>, vector<6x128xf32> -> vector<8x128xf32>
      %c0_19 = arith.constant 0 : index
      %c0_20 = arith.constant 0 : index
      %c0_21 = arith.constant 0 : index
      %25 = vector.load %arg7[%c0_19, %c0_20, %c0_21] : memref<1x8x128xf32, #tpu.memory_space<vmem>>, vector<1x8x128xf32>
      %26 = vector.shape_cast %25 : vector<1x8x128xf32> to vector<8x128xf32>
      %27 = vector.shape_cast %24 : vector<8x128xf32> to vector<1x8x128xf32>
      tpu.vector_store %arg7[%c0_19, %c0_20, %c0_21], %27 {strides = array<i32>} : memref<1x8x128xf32, #tpu.memory_space<vmem>>, vector<1x8x128xf32>,
    } else {
    }
    return
  }
  func.func @transform_0(%arg0: i32, %arg1: i32, %arg2: i32) -> (i32, i32) {
    %c0_i32 = arith.constant 0 : i32
    return %arg0, %arg2 : i32, i32
  }
  func.func @transform_1(%arg0: i32, %arg1: i32, %arg2: i32) -> (i32, i32) {
    %c0_i32 = arith.constant 0 : i32
    return %arg2, %arg1 : i32, i32
  }
  func.func @transform_2(%arg0: i32, %arg1: i32, %arg2: i32) -> (i32, i32) {
    %c0_i32 = arith.constant 0 : i32
    %c0_i32_0 = arith.constant 0 : i32
    return %c0_i32, %arg1 : i32, i32
  }
  func.func @transform_3(%arg0: i32, %arg1: i32, %arg2: i32) -> (i32, i32) {
    %c0_i32 = arith.constant 0 : i32
    return %arg0, %arg1 : i32, i32
  }
  func.func @transform_4(%arg0: i32, %arg1: i32, %arg2: i32) -> (i32, i32, i32) {
    %c0_i32 = arith.constant 0 : i32
    %c0_i32_0 = arith.constant 0 : i32
    return %arg0, %c0_i32, %arg1 : i32, i32, i32
  }
}

module attributes {stable_mosaic.version = 11 : i64} {
  func.func @_bn_relu_kernel(%arg0: i32, %arg1: memref<24x128xbf16, #tpu.memory_space<vmem>>, %arg2: memref<1x8x128xf32, #tpu.memory_space<vmem>>, %arg3: memref<1x128xf32, #tpu.memory_space<vmem>>, %arg4: memref<24x128xbf16, #tpu.memory_space<vmem>>) attributes {dimension_semantics = [#tpu.dimension_semantics<parallel>], iteration_bounds = array<i64: 1>, scalar_prefetch = 0 : i64, scratch_operands = 0 : i64, tpu.core_type = #tpu.core_type<tc>, window_params = [{transform_indices = @transform_0, window_bounds = array<i64: 24, 128>}, {pipeline_mode = #tpu.pipeline_mode<synchronous>, transform_indices = @transform_1, window_bounds = array<i64: 1, 8, 128>}, {pipeline_mode = #tpu.pipeline_mode<synchronous>, transform_indices = @transform_2, window_bounds = array<i64: 1, 128>}, {transform_indices = @transform_3, window_bounds = array<i64: 24, 128>}]} {
    %c0 = arith.constant 0 : index
    %c0_0 = arith.constant 0 : index
    %c0_1 = arith.constant 0 : index
    %0 = vector.load %arg2[%c0, %c0_0, %c0_1] : memref<1x8x128xf32, #tpu.memory_space<vmem>>, vector<1x8x128xf32>
    %cst = arith.constant dense<0.000000e+00> : vector<8x128xf32>
    %1 = vector.multi_reduction <add>, %0, %cst [0] : vector<1x8x128xf32> to vector<8x128xf32>
    %2 = vector.extract_strided_slice %1 {offsets = [0, 0], sizes = [1, 128], strides = [1, 1]} : vector<8x128xf32> to vector<1x128xf32>
    %3 = vector.extract_strided_slice %1 {offsets = [1, 0], sizes = [1, 128], strides = [1, 1]} : vector<8x128xf32> to vector<1x128xf32>
    %cst_2 = arith.constant 0.055555556 : f32
    %4 = vector.broadcast %cst_2 : f32 to vector<1x128xf32>
    %5 = arith.mulf %2, %4 : vector<1x128xf32>
    %cst_3 = arith.constant 0.055555556 : f32
    %6 = vector.broadcast %cst_3 : f32 to vector<1x128xf32>
    %7 = arith.mulf %3, %6 : vector<1x128xf32>
    %8 = arith.mulf %5, %5 : vector<1x128xf32>
    %9 = arith.subf %7, %8 : vector<1x128xf32>
    %cst_4 = arith.constant 0.000000e+00 : f32
    %10 = vector.broadcast %cst_4 : f32 to vector<1x128xf32>
    %11 = arith.maximumf %9, %10 : vector<1x128xf32>
    %cst_5 = arith.constant 9.99999974E-6 : f32
    %12 = vector.broadcast %cst_5 : f32 to vector<1x128xf32>
    %13 = arith.addf %11, %12 : vector<1x128xf32>
    %14 = math.rsqrt %13 : vector<1x128xf32>
    %c0_6 = arith.constant 0 : index
    %c0_7 = arith.constant 0 : index
    %15 = vector.load %arg3[%c0_6, %c0_7] : memref<1x128xf32, #tpu.memory_space<vmem>>, vector<1x128xf32>
    %16 = arith.addf %5, %15 : vector<1x128xf32>
    %cst_8 = arith.constant 0.000000e+00 : f32
    %17 = vector.broadcast %cst_8 : f32 to vector<1x128xf32>
    %18 = arith.subf %17, %16 : vector<1x128xf32>
    %19 = arith.mulf %18, %14 : vector<1x128xf32>
    %c0_9 = arith.constant 0 : index
    %c0_10 = arith.constant 0 : index
    %20 = vector.load %arg1[%c0_9, %c0_10] : memref<24x128xbf16, #tpu.memory_space<vmem>>, vector<24x128xbf16>
    %21 = arith.extf %20 : vector<24x128xbf16> to vector<24x128xf32>
    %22 = vector.broadcast %14 : vector<1x128xf32> to vector<24x128xf32>
    %23 = arith.mulf %21, %22 : vector<24x128xf32>
    %24 = vector.broadcast %19 : vector<1x128xf32> to vector<24x128xf32>
    %25 = arith.addf %23, %24 : vector<24x128xf32>
    %cst_11 = arith.constant 0.000000e+00 : f32
    %26 = vector.broadcast %cst_11 : f32 to vector<24x128xf32>
    %27 = arith.maximumf %25, %26 : vector<24x128xf32>
    %28 = arith.truncf %27 : vector<24x128xf32> to vector<24x128xbf16>
    %c0_12 = arith.constant 0 : index
    %c0_13 = arith.constant 0 : index
    %29 = vector.load %arg4[%c0_12, %c0_13] : memref<24x128xbf16, #tpu.memory_space<vmem>>, vector<24x128xbf16>
    tpu.vector_store %arg4[%c0_12, %c0_13], %28 {strides = array<i32>} : memref<24x128xbf16, #tpu.memory_space<vmem>>, vector<24x128xbf16>,
    return
  }
  func.func @transform_0(%arg0: i32) -> (i32, i32) {
    %c0_i32 = arith.constant 0 : i32
    %c0_i32_0 = arith.constant 0 : i32
    return %arg0, %c0_i32 : i32, i32
  }
  func.func @transform_1(%arg0: i32) -> (i32, i32, i32) {
    %c0_i32 = arith.constant 0 : i32
    %c0_i32_0 = arith.constant 0 : i32
    %c0_i32_1 = arith.constant 0 : i32
    %c0_i32_2 = arith.constant 0 : i32
    return %c0_i32, %c0_i32_0, %c0_i32_1 : i32, i32, i32
  }
  func.func @transform_2(%arg0: i32) -> (i32, i32) {
    %c0_i32 = arith.constant 0 : i32
    %c0_i32_0 = arith.constant 0 : i32
    %c0_i32_1 = arith.constant 0 : i32
    return %c0_i32, %c0_i32_0 : i32, i32
  }
  func.func @transform_3(%arg0: i32) -> (i32, i32) {
    %c0_i32 = arith.constant 0 : i32
    %c0_i32_0 = arith.constant 0 : i32
    return %arg0, %c0_i32 : i32, i32
  }
}

module attributes {stable_mosaic.version = 11 : i64} {
  func.func @_matmul_kernel(%arg0: i32, %arg1: i32, %arg2: i32, %arg3: memref<24x1152xbf16, #tpu.memory_space<vmem>>, %arg4: memref<1152x128xbf16, #tpu.memory_space<vmem>>, %arg5: memref<1x128xf32, #tpu.memory_space<vmem>>, %arg6: memref<24x128xbf16, #tpu.memory_space<vmem>>, %arg7: memref<1x8x128xf32, #tpu.memory_space<vmem>>, %arg8: memref<24x128xf32, #tpu.memory_space<vmem>>) attributes {dimension_semantics = [#tpu.dimension_semantics<parallel>, #tpu.dimension_semantics<parallel>, #tpu.dimension_semantics<arbitrary>], iteration_bounds = array<i64: 1, 1, 1>, scalar_prefetch = 0 : i64, scratch_operands = 1 : i64, tpu.core_type = #tpu.core_type<tc>, window_params = [{transform_indices = @transform_0, window_bounds = array<i64: 24, 1152>}, {transform_indices = @transform_1, window_bounds = array<i64: 1152, 128>}, {transform_indices = @transform_2, window_bounds = array<i64: 1, 128>}, {transform_indices = @transform_3, window_bounds = array<i64: 24, 128>}, {transform_indices = @transform_4, window_bounds = array<i64: 1, 8, 128>}]} {
    %c0_i32 = arith.constant 0 : i32
    %0 = arith.cmpi eq, %arg2, %c0_i32 : i32
    %1 = arith.extui %0 : i1 to i32
    %c0_i32_0 = arith.constant 0 : i32
    %2 = arith.cmpi ne, %1, %c0_i32_0 : i32
    scf.if %2 {
      %cst_10 = arith.constant 0.000000e+00 : f32
      %12 = vector.broadcast %cst_10 : f32 to vector<24x128xf32>
      %c0_11 = arith.constant 0 : index
      %c0_12 = arith.constant 0 : index
      %13 = vector.load %arg8[%c0_11, %c0_12] : memref<24x128xf32, #tpu.memory_space<vmem>>, vector<24x128xf32>
      tpu.vector_store %arg8[%c0_11, %c0_12], %12 {strides = array<i32>} : memref<24x128xf32, #tpu.memory_space<vmem>>, vector<24x128xf32>,
    } else {
    }
    %c0 = arith.constant 0 : index
    %c0_1 = arith.constant 0 : index
    %3 = vector.load %arg8[%c0, %c0_1] : memref<24x128xf32, #tpu.memory_space<vmem>>, vector<24x128xf32>
    %c0_2 = arith.constant 0 : index
    %c0_3 = arith.constant 0 : index
    %4 = vector.load %arg3[%c0_2, %c0_3] : memref<24x1152xbf16, #tpu.memory_space<vmem>>, vector<24x1152xbf16>
    %c0_4 = arith.constant 0 : index
    %c0_5 = arith.constant 0 : index
    %5 = vector.load %arg4[%c0_4, %c0_5] : memref<1152x128xbf16, #tpu.memory_space<vmem>>, vector<1152x128xbf16>
    %cst = arith.constant dense<0.000000e+00> : vector<24x128xf32>
    %6 = tpu.matmul %4, %5, %cst {dimension_numbers = #tpu.dot_dimension_numbers<[1], [0], [0], [1], [0, 0, 1, 1], [], []>} : vector<24x1152xbf16>, vector<1152x128xbf16>, vector<24x128xf32> -> vector<24x128xf32>
    %7 = arith.addf %3, %6 : vector<24x128xf32>
    %c0_6 = arith.constant 0 : index
    %c0_7 = arith.constant 0 : index
    %8 = vector.load %arg8[%c0_6, %c0_7] : memref<24x128xf32, #tpu.memory_space<vmem>>, vector<24x128xf32>
    tpu.vector_store %arg8[%c0_6, %c0_7], %7 {strides = array<i32>} : memref<24x128xf32, #tpu.memory_space<vmem>>, vector<24x128xf32>,
    %c0_i32_8 = arith.constant 0 : i32
    %9 = arith.cmpi eq, %arg2, %c0_i32_8 : i32
    %10 = arith.extui %9 : i1 to i32
    %c0_i32_9 = arith.constant 0 : i32
    %11 = arith.cmpi ne, %10, %c0_i32_9 : i32
    scf.if %11 {
      %c0_10 = arith.constant 0 : index
      %c0_11 = arith.constant 0 : index
      %12 = vector.load %arg8[%c0_10, %c0_11] : memref<24x128xf32, #tpu.memory_space<vmem>>, vector<24x128xf32>
      %c0_12 = arith.constant 0 : index
      %c0_13 = arith.constant 0 : index
      %13 = vector.load %arg5[%c0_12, %c0_13] : memref<1x128xf32, #tpu.memory_space<vmem>>, vector<1x128xf32>
      %14 = vector.broadcast %13 : vector<1x128xf32> to vector<24x128xf32>
      %15 = arith.addf %12, %14 : vector<24x128xf32>
      %16 = arith.truncf %15 : vector<24x128xf32> to vector<24x128xbf16>
      %c0_14 = arith.constant 0 : index
      %c0_15 = arith.constant 0 : index
      %17 = vector.load %arg6[%c0_14, %c0_15] : memref<24x128xbf16, #tpu.memory_space<vmem>>, vector<24x128xbf16>
      tpu.vector_store %arg6[%c0_14, %c0_15], %16 {strides = array<i32>} : memref<24x128xbf16, #tpu.memory_space<vmem>>, vector<24x128xbf16>,
      %cst_16 = arith.constant dense<0.000000e+00> : vector<128xf32>
      %18 = vector.multi_reduction <add>, %12, %cst_16 [0] : vector<24x128xf32> to vector<128xf32>
      %19 = vector.shape_cast %18 : vector<128xf32> to vector<1x128xf32>
      %20 = arith.mulf %12, %12 : vector<24x128xf32>
      %cst_17 = arith.constant dense<0.000000e+00> : vector<128xf32>
      %21 = vector.multi_reduction <add>, %20, %cst_17 [0] : vector<24x128xf32> to vector<128xf32>
      %22 = vector.shape_cast %21 : vector<128xf32> to vector<1x128xf32>
      %cst_18 = arith.constant 0.000000e+00 : f32
      %23 = vector.broadcast %cst_18 : f32 to vector<6x128xf32>
      %24 = tpu.concatenate %19, %22, %23 in 0 : vector<1x128xf32>, vector<1x128xf32>, vector<6x128xf32> -> vector<8x128xf32>
      %c0_19 = arith.constant 0 : index
      %c0_20 = arith.constant 0 : index
      %c0_21 = arith.constant 0 : index
      %25 = vector.load %arg7[%c0_19, %c0_20, %c0_21] : memref<1x8x128xf32, #tpu.memory_space<vmem>>, vector<1x8x128xf32>
      %26 = vector.shape_cast %25 : vector<1x8x128xf32> to vector<8x128xf32>
      %27 = vector.shape_cast %24 : vector<8x128xf32> to vector<1x8x128xf32>
      tpu.vector_store %arg7[%c0_19, %c0_20, %c0_21], %27 {strides = array<i32>} : memref<1x8x128xf32, #tpu.memory_space<vmem>>, vector<1x8x128xf32>,
    } else {
    }
    return
  }
  func.func @transform_0(%arg0: i32, %arg1: i32, %arg2: i32) -> (i32, i32) {
    %c0_i32 = arith.constant 0 : i32
    return %arg0, %arg2 : i32, i32
  }
  func.func @transform_1(%arg0: i32, %arg1: i32, %arg2: i32) -> (i32, i32) {
    %c0_i32 = arith.constant 0 : i32
    return %arg2, %arg1 : i32, i32
  }
  func.func @transform_2(%arg0: i32, %arg1: i32, %arg2: i32) -> (i32, i32) {
    %c0_i32 = arith.constant 0 : i32
    %c0_i32_0 = arith.constant 0 : i32
    return %c0_i32, %arg1 : i32, i32
  }
  func.func @transform_3(%arg0: i32, %arg1: i32, %arg2: i32) -> (i32, i32) {
    %c0_i32 = arith.constant 0 : i32
    return %arg0, %arg1 : i32, i32
  }
  func.func @transform_4(%arg0: i32, %arg1: i32, %arg2: i32) -> (i32, i32, i32) {
    %c0_i32 = arith.constant 0 : i32
    %c0_i32_0 = arith.constant 0 : i32
    return %arg0, %c0_i32, %arg1 : i32, i32, i32
  }
}

module attributes {stable_mosaic.version = 11 : i64} {
  func.func @_bn_relu_res_bn_kernel(%arg0: i32, %arg1: memref<24x128xbf16, #tpu.memory_space<vmem>>, %arg2: memref<1x8x128xf32, #tpu.memory_space<vmem>>, %arg3: memref<1x128xf32, #tpu.memory_space<vmem>>, %arg4: memref<24x128xbf16, #tpu.memory_space<vmem>>, %arg5: memref<1x8x128xf32, #tpu.memory_space<vmem>>, %arg6: memref<1x128xf32, #tpu.memory_space<vmem>>, %arg7: memref<24x128xbf16, #tpu.memory_space<vmem>>) attributes {dimension_semantics = [#tpu.dimension_semantics<parallel>], iteration_bounds = array<i64: 1>, scalar_prefetch = 0 : i64, scratch_operands = 0 : i64, tpu.core_type = #tpu.core_type<tc>, window_params = [{transform_indices = @transform_0, window_bounds = array<i64: 24, 128>}, {pipeline_mode = #tpu.pipeline_mode<synchronous>, transform_indices = @transform_1, window_bounds = array<i64: 1, 8, 128>}, {pipeline_mode = #tpu.pipeline_mode<synchronous>, transform_indices = @transform_2, window_bounds = array<i64: 1, 128>}, {transform_indices = @transform_3, window_bounds = array<i64: 24, 128>}, {pipeline_mode = #tpu.pipeline_mode<synchronous>, transform_indices = @transform_4, window_bounds = array<i64: 1, 8, 128>}, {pipeline_mode = #tpu.pipeline_mode<synchronous>, transform_indices = @transform_5, window_bounds = array<i64: 1, 128>}, {transform_indices = @transform_6, window_bounds = array<i64: 24, 128>}]} {
    %c0 = arith.constant 0 : index
    %c0_0 = arith.constant 0 : index
    %c0_1 = arith.constant 0 : index
    %0 = vector.load %arg2[%c0, %c0_0, %c0_1] : memref<1x8x128xf32, #tpu.memory_space<vmem>>, vector<1x8x128xf32>
    %cst = arith.constant dense<0.000000e+00> : vector<8x128xf32>
    %1 = vector.multi_reduction <add>, %0, %cst [0] : vector<1x8x128xf32> to vector<8x128xf32>
    %2 = vector.extract_strided_slice %1 {offsets = [0, 0], sizes = [1, 128], strides = [1, 1]} : vector<8x128xf32> to vector<1x128xf32>
    %3 = vector.extract_strided_slice %1 {offsets = [1, 0], sizes = [1, 128], strides = [1, 1]} : vector<8x128xf32> to vector<1x128xf32>
    %cst_2 = arith.constant 0.055555556 : f32
    %4 = vector.broadcast %cst_2 : f32 to vector<1x128xf32>
    %5 = arith.mulf %2, %4 : vector<1x128xf32>
    %cst_3 = arith.constant 0.055555556 : f32
    %6 = vector.broadcast %cst_3 : f32 to vector<1x128xf32>
    %7 = arith.mulf %3, %6 : vector<1x128xf32>
    %8 = arith.mulf %5, %5 : vector<1x128xf32>
    %9 = arith.subf %7, %8 : vector<1x128xf32>
    %cst_4 = arith.constant 0.000000e+00 : f32
    %10 = vector.broadcast %cst_4 : f32 to vector<1x128xf32>
    %11 = arith.maximumf %9, %10 : vector<1x128xf32>
    %cst_5 = arith.constant 9.99999974E-6 : f32
    %12 = vector.broadcast %cst_5 : f32 to vector<1x128xf32>
    %13 = arith.addf %11, %12 : vector<1x128xf32>
    %14 = math.rsqrt %13 : vector<1x128xf32>
    %c0_6 = arith.constant 0 : index
    %c0_7 = arith.constant 0 : index
    %15 = vector.load %arg3[%c0_6, %c0_7] : memref<1x128xf32, #tpu.memory_space<vmem>>, vector<1x128xf32>
    %16 = arith.addf %5, %15 : vector<1x128xf32>
    %cst_8 = arith.constant 0.000000e+00 : f32
    %17 = vector.broadcast %cst_8 : f32 to vector<1x128xf32>
    %18 = arith.subf %17, %16 : vector<1x128xf32>
    %19 = arith.mulf %18, %14 : vector<1x128xf32>
    %c0_9 = arith.constant 0 : index
    %c0_10 = arith.constant 0 : index
    %c0_11 = arith.constant 0 : index
    %20 = vector.load %arg5[%c0_9, %c0_10, %c0_11] : memref<1x8x128xf32, #tpu.memory_space<vmem>>, vector<1x8x128xf32>
    %cst_12 = arith.constant dense<0.000000e+00> : vector<8x128xf32>
    %21 = vector.multi_reduction <add>, %20, %cst_12 [0] : vector<1x8x128xf32> to vector<8x128xf32>
    %22 = vector.extract_strided_slice %21 {offsets = [0, 0], sizes = [1, 128], strides = [1, 1]} : vector<8x128xf32> to vector<1x128xf32>
    %23 = vector.extract_strided_slice %21 {offsets = [1, 0], sizes = [1, 128], strides = [1, 1]} : vector<8x128xf32> to vector<1x128xf32>
    %cst_13 = arith.constant 0.055555556 : f32
    %24 = vector.broadcast %cst_13 : f32 to vector<1x128xf32>
    %25 = arith.mulf %22, %24 : vector<1x128xf32>
    %cst_14 = arith.constant 0.055555556 : f32
    %26 = vector.broadcast %cst_14 : f32 to vector<1x128xf32>
    %27 = arith.mulf %23, %26 : vector<1x128xf32>
    %28 = arith.mulf %25, %25 : vector<1x128xf32>
    %29 = arith.subf %27, %28 : vector<1x128xf32>
    %cst_15 = arith.constant 0.000000e+00 : f32
    %30 = vector.broadcast %cst_15 : f32 to vector<1x128xf32>
    %31 = arith.maximumf %29, %30 : vector<1x128xf32>
    %cst_16 = arith.constant 9.99999974E-6 : f32
    %32 = vector.broadcast %cst_16 : f32 to vector<1x128xf32>
    %33 = arith.addf %31, %32 : vector<1x128xf32>
    %34 = math.rsqrt %33 : vector<1x128xf32>
    %c0_17 = arith.constant 0 : index
    %c0_18 = arith.constant 0 : index
    %35 = vector.load %arg6[%c0_17, %c0_18] : memref<1x128xf32, #tpu.memory_space<vmem>>, vector<1x128xf32>
    %36 = arith.addf %25, %35 : vector<1x128xf32>
    %cst_19 = arith.constant 0.000000e+00 : f32
    %37 = vector.broadcast %cst_19 : f32 to vector<1x128xf32>
    %38 = arith.subf %37, %36 : vector<1x128xf32>
    %39 = arith.mulf %38, %34 : vector<1x128xf32>
    %c0_20 = arith.constant 0 : index
    %c0_21 = arith.constant 0 : index
    %40 = vector.load %arg1[%c0_20, %c0_21] : memref<24x128xbf16, #tpu.memory_space<vmem>>, vector<24x128xbf16>
    %41 = arith.extf %40 : vector<24x128xbf16> to vector<24x128xf32>
    %42 = vector.broadcast %14 : vector<1x128xf32> to vector<24x128xf32>
    %43 = arith.mulf %41, %42 : vector<24x128xf32>
    %44 = vector.broadcast %19 : vector<1x128xf32> to vector<24x128xf32>
    %45 = arith.addf %43, %44 : vector<24x128xf32>
    %cst_22 = arith.constant 0.000000e+00 : f32
    %46 = vector.broadcast %cst_22 : f32 to vector<24x128xf32>
    %47 = arith.maximumf %45, %46 : vector<24x128xf32>
    %c0_23 = arith.constant 0 : index
    %c0_24 = arith.constant 0 : index
    %48 = vector.load %arg4[%c0_23, %c0_24] : memref<24x128xbf16, #tpu.memory_space<vmem>>, vector<24x128xbf16>
    %49 = arith.extf %48 : vector<24x128xbf16> to vector<24x128xf32>
    %50 = vector.broadcast %34 : vector<1x128xf32> to vector<24x128xf32>
    %51 = arith.mulf %49, %50 : vector<24x128xf32>
    %52 = vector.broadcast %39 : vector<1x128xf32> to vector<24x128xf32>
    %53 = arith.addf %51, %52 : vector<24x128xf32>
    %54 = arith.addf %47, %53 : vector<24x128xf32>
    %cst_25 = arith.constant 0.000000e+00 : f32
    %55 = vector.broadcast %cst_25 : f32 to vector<24x128xf32>
    %56 = arith.maximumf %54, %55 : vector<24x128xf32>
    %57 = arith.truncf %56 : vector<24x128xf32> to vector<24x128xbf16>
    %c0_26 = arith.constant 0 : index
    %c0_27 = arith.constant 0 : index
    %58 = vector.load %arg7[%c0_26, %c0_27] : memref<24x128xbf16, #tpu.memory_space<vmem>>, vector<24x128xbf16>
    tpu.vector_store %arg7[%c0_26, %c0_27], %57 {strides = array<i32>} : memref<24x128xbf16, #tpu.memory_space<vmem>>, vector<24x128xbf16>,
    return
  }
  func.func @transform_0(%arg0: i32) -> (i32, i32) {
    %c0_i32 = arith.constant 0 : i32
    %c0_i32_0 = arith.constant 0 : i32
    return %arg0, %c0_i32 : i32, i32
  }
  func.func @transform_1(%arg0: i32) -> (i32, i32, i32) {
    %c0_i32 = arith.constant 0 : i32
    %c0_i32_0 = arith.constant 0 : i32
    %c0_i32_1 = arith.constant 0 : i32
    %c0_i32_2 = arith.constant 0 : i32
    return %c0_i32, %c0_i32_0, %c0_i32_1 : i32, i32, i32
  }
  func.func @transform_2(%arg0: i32) -> (i32, i32) {
    %c0_i32 = arith.constant 0 : i32
    %c0_i32_0 = arith.constant 0 : i32
    %c0_i32_1 = arith.constant 0 : i32
    return %c0_i32, %c0_i32_0 : i32, i32
  }
  func.func @transform_3(%arg0: i32) -> (i32, i32) {
    %c0_i32 = arith.constant 0 : i32
    %c0_i32_0 = arith.constant 0 : i32
    return %arg0, %c0_i32 : i32, i32
  }
  func.func @transform_4(%arg0: i32) -> (i32, i32, i32) {
    %c0_i32 = arith.constant 0 : i32
    %c0_i32_0 = arith.constant 0 : i32
    %c0_i32_1 = arith.constant 0 : i32
    %c0_i32_2 = arith.constant 0 : i32
    return %c0_i32, %c0_i32_0, %c0_i32_1 : i32, i32, i32
  }
  func.func @transform_5(%arg0: i32) -> (i32, i32) {
    %c0_i32 = arith.constant 0 : i32
    %c0_i32_0 = arith.constant 0 : i32
    %c0_i32_1 = arith.constant 0 : i32
    return %c0_i32, %c0_i32_0 : i32, i32
  }
  func.func @transform_6(%arg0: i32) -> (i32, i32) {
    %c0_i32 = arith.constant 0 : i32
    %c0_i32_0 = arith.constant 0 : i32
    return %arg0, %c0_i32 : i32, i32
  }
}

module attributes {stable_mosaic.version = 11 : i64} {
  func.func @_matmul_kernel(%arg0: i32, %arg1: i32, %arg2: i32, %arg3: memref<24x128xbf16, #tpu.memory_space<vmem>>, %arg4: memref<128x128xbf16, #tpu.memory_space<vmem>>, %arg5: memref<1x128xf32, #tpu.memory_space<vmem>>, %arg6: memref<24x128xbf16, #tpu.memory_space<vmem>>, %arg7: memref<1x8x128xf32, #tpu.memory_space<vmem>>, %arg8: memref<24x128xf32, #tpu.memory_space<vmem>>) attributes {dimension_semantics = [#tpu.dimension_semantics<parallel>, #tpu.dimension_semantics<parallel>, #tpu.dimension_semantics<arbitrary>], iteration_bounds = array<i64: 1, 1, 1>, scalar_prefetch = 0 : i64, scratch_operands = 1 : i64, tpu.core_type = #tpu.core_type<tc>, window_params = [{transform_indices = @transform_0, window_bounds = array<i64: 24, 128>}, {transform_indices = @transform_1, window_bounds = array<i64: 128, 128>}, {transform_indices = @transform_2, window_bounds = array<i64: 1, 128>}, {transform_indices = @transform_3, window_bounds = array<i64: 24, 128>}, {transform_indices = @transform_4, window_bounds = array<i64: 1, 8, 128>}]} {
    %c0_i32 = arith.constant 0 : i32
    %0 = arith.cmpi eq, %arg2, %c0_i32 : i32
    %1 = arith.extui %0 : i1 to i32
    %c0_i32_0 = arith.constant 0 : i32
    %2 = arith.cmpi ne, %1, %c0_i32_0 : i32
    scf.if %2 {
      %cst_10 = arith.constant 0.000000e+00 : f32
      %12 = vector.broadcast %cst_10 : f32 to vector<24x128xf32>
      %c0_11 = arith.constant 0 : index
      %c0_12 = arith.constant 0 : index
      %13 = vector.load %arg8[%c0_11, %c0_12] : memref<24x128xf32, #tpu.memory_space<vmem>>, vector<24x128xf32>
      tpu.vector_store %arg8[%c0_11, %c0_12], %12 {strides = array<i32>} : memref<24x128xf32, #tpu.memory_space<vmem>>, vector<24x128xf32>,
    } else {
    }
    %c0 = arith.constant 0 : index
    %c0_1 = arith.constant 0 : index
    %3 = vector.load %arg8[%c0, %c0_1] : memref<24x128xf32, #tpu.memory_space<vmem>>, vector<24x128xf32>
    %c0_2 = arith.constant 0 : index
    %c0_3 = arith.constant 0 : index
    %4 = vector.load %arg3[%c0_2, %c0_3] : memref<24x128xbf16, #tpu.memory_space<vmem>>, vector<24x128xbf16>
    %c0_4 = arith.constant 0 : index
    %c0_5 = arith.constant 0 : index
    %5 = vector.load %arg4[%c0_4, %c0_5] : memref<128x128xbf16, #tpu.memory_space<vmem>>, vector<128x128xbf16>
    %cst = arith.constant dense<0.000000e+00> : vector<24x128xf32>
    %6 = tpu.matmul %4, %5, %cst {dimension_numbers = #tpu.dot_dimension_numbers<[1], [0], [0], [1], [0, 0, 1, 1], [], []>} : vector<24x128xbf16>, vector<128x128xbf16>, vector<24x128xf32> -> vector<24x128xf32>
    %7 = arith.addf %3, %6 : vector<24x128xf32>
    %c0_6 = arith.constant 0 : index
    %c0_7 = arith.constant 0 : index
    %8 = vector.load %arg8[%c0_6, %c0_7] : memref<24x128xf32, #tpu.memory_space<vmem>>, vector<24x128xf32>
    tpu.vector_store %arg8[%c0_6, %c0_7], %7 {strides = array<i32>} : memref<24x128xf32, #tpu.memory_space<vmem>>, vector<24x128xf32>,
    %c0_i32_8 = arith.constant 0 : i32
    %9 = arith.cmpi eq, %arg2, %c0_i32_8 : i32
    %10 = arith.extui %9 : i1 to i32
    %c0_i32_9 = arith.constant 0 : i32
    %11 = arith.cmpi ne, %10, %c0_i32_9 : i32
    scf.if %11 {
      %c0_10 = arith.constant 0 : index
      %c0_11 = arith.constant 0 : index
      %12 = vector.load %arg8[%c0_10, %c0_11] : memref<24x128xf32, #tpu.memory_space<vmem>>, vector<24x128xf32>
      %c0_12 = arith.constant 0 : index
      %c0_13 = arith.constant 0 : index
      %13 = vector.load %arg5[%c0_12, %c0_13] : memref<1x128xf32, #tpu.memory_space<vmem>>, vector<1x128xf32>
      %14 = vector.broadcast %13 : vector<1x128xf32> to vector<24x128xf32>
      %15 = arith.addf %12, %14 : vector<24x128xf32>
      %16 = arith.truncf %15 : vector<24x128xf32> to vector<24x128xbf16>
      %c0_14 = arith.constant 0 : index
      %c0_15 = arith.constant 0 : index
      %17 = vector.load %arg6[%c0_14, %c0_15] : memref<24x128xbf16, #tpu.memory_space<vmem>>, vector<24x128xbf16>
      tpu.vector_store %arg6[%c0_14, %c0_15], %16 {strides = array<i32>} : memref<24x128xbf16, #tpu.memory_space<vmem>>, vector<24x128xbf16>,
      %cst_16 = arith.constant dense<0.000000e+00> : vector<128xf32>
      %18 = vector.multi_reduction <add>, %12, %cst_16 [0] : vector<24x128xf32> to vector<128xf32>
      %19 = vector.shape_cast %18 : vector<128xf32> to vector<1x128xf32>
      %20 = arith.mulf %12, %12 : vector<24x128xf32>
      %cst_17 = arith.constant dense<0.000000e+00> : vector<128xf32>
      %21 = vector.multi_reduction <add>, %20, %cst_17 [0] : vector<24x128xf32> to vector<128xf32>
      %22 = vector.shape_cast %21 : vector<128xf32> to vector<1x128xf32>
      %cst_18 = arith.constant 0.000000e+00 : f32
      %23 = vector.broadcast %cst_18 : f32 to vector<6x128xf32>
      %24 = tpu.concatenate %19, %22, %23 in 0 : vector<1x128xf32>, vector<1x128xf32>, vector<6x128xf32> -> vector<8x128xf32>
      %c0_19 = arith.constant 0 : index
      %c0_20 = arith.constant 0 : index
      %c0_21 = arith.constant 0 : index
      %25 = vector.load %arg7[%c0_19, %c0_20, %c0_21] : memref<1x8x128xf32, #tpu.memory_space<vmem>>, vector<1x8x128xf32>
      %26 = vector.shape_cast %25 : vector<1x8x128xf32> to vector<8x128xf32>
      %27 = vector.shape_cast %24 : vector<8x128xf32> to vector<1x8x128xf32>
      tpu.vector_store %arg7[%c0_19, %c0_20, %c0_21], %27 {strides = array<i32>} : memref<1x8x128xf32, #tpu.memory_space<vmem>>, vector<1x8x128xf32>,
    } else {
    }
    return
  }
  func.func @transform_0(%arg0: i32, %arg1: i32, %arg2: i32) -> (i32, i32) {
    %c0_i32 = arith.constant 0 : i32
    return %arg0, %arg2 : i32, i32
  }
  func.func @transform_1(%arg0: i32, %arg1: i32, %arg2: i32) -> (i32, i32) {
    %c0_i32 = arith.constant 0 : i32
    return %arg2, %arg1 : i32, i32
  }
  func.func @transform_2(%arg0: i32, %arg1: i32, %arg2: i32) -> (i32, i32) {
    %c0_i32 = arith.constant 0 : i32
    %c0_i32_0 = arith.constant 0 : i32
    return %c0_i32, %arg1 : i32, i32
  }
  func.func @transform_3(%arg0: i32, %arg1: i32, %arg2: i32) -> (i32, i32) {
    %c0_i32 = arith.constant 0 : i32
    return %arg0, %arg1 : i32, i32
  }
  func.func @transform_4(%arg0: i32, %arg1: i32, %arg2: i32) -> (i32, i32, i32) {
    %c0_i32 = arith.constant 0 : i32
    %c0_i32_0 = arith.constant 0 : i32
    return %arg0, %c0_i32, %arg1 : i32, i32, i32
  }
}

module attributes {stable_mosaic.version = 11 : i64} {
  func.func @_bn_relu_res_kernel(%arg0: i32, %arg1: memref<24x128xbf16, #tpu.memory_space<vmem>>, %arg2: memref<1x8x128xf32, #tpu.memory_space<vmem>>, %arg3: memref<1x128xf32, #tpu.memory_space<vmem>>, %arg4: memref<24x128xbf16, #tpu.memory_space<vmem>>, %arg5: memref<24x128xbf16, #tpu.memory_space<vmem>>) attributes {dimension_semantics = [#tpu.dimension_semantics<parallel>], iteration_bounds = array<i64: 1>, scalar_prefetch = 0 : i64, scratch_operands = 0 : i64, tpu.core_type = #tpu.core_type<tc>, window_params = [{transform_indices = @transform_0, window_bounds = array<i64: 24, 128>}, {pipeline_mode = #tpu.pipeline_mode<synchronous>, transform_indices = @transform_1, window_bounds = array<i64: 1, 8, 128>}, {pipeline_mode = #tpu.pipeline_mode<synchronous>, transform_indices = @transform_2, window_bounds = array<i64: 1, 128>}, {transform_indices = @transform_3, window_bounds = array<i64: 24, 128>}, {transform_indices = @transform_4, window_bounds = array<i64: 24, 128>}]} {
    %c0 = arith.constant 0 : index
    %c0_0 = arith.constant 0 : index
    %c0_1 = arith.constant 0 : index
    %0 = vector.load %arg2[%c0, %c0_0, %c0_1] : memref<1x8x128xf32, #tpu.memory_space<vmem>>, vector<1x8x128xf32>
    %cst = arith.constant dense<0.000000e+00> : vector<8x128xf32>
    %1 = vector.multi_reduction <add>, %0, %cst [0] : vector<1x8x128xf32> to vector<8x128xf32>
    %2 = vector.extract_strided_slice %1 {offsets = [0, 0], sizes = [1, 128], strides = [1, 1]} : vector<8x128xf32> to vector<1x128xf32>
    %3 = vector.extract_strided_slice %1 {offsets = [1, 0], sizes = [1, 128], strides = [1, 1]} : vector<8x128xf32> to vector<1x128xf32>
    %cst_2 = arith.constant 0.055555556 : f32
    %4 = vector.broadcast %cst_2 : f32 to vector<1x128xf32>
    %5 = arith.mulf %2, %4 : vector<1x128xf32>
    %cst_3 = arith.constant 0.055555556 : f32
    %6 = vector.broadcast %cst_3 : f32 to vector<1x128xf32>
    %7 = arith.mulf %3, %6 : vector<1x128xf32>
    %8 = arith.mulf %5, %5 : vector<1x128xf32>
    %9 = arith.subf %7, %8 : vector<1x128xf32>
    %cst_4 = arith.constant 0.000000e+00 : f32
    %10 = vector.broadcast %cst_4 : f32 to vector<1x128xf32>
    %11 = arith.maximumf %9, %10 : vector<1x128xf32>
    %cst_5 = arith.constant 9.99999974E-6 : f32
    %12 = vector.broadcast %cst_5 : f32 to vector<1x128xf32>
    %13 = arith.addf %11, %12 : vector<1x128xf32>
    %14 = math.rsqrt %13 : vector<1x128xf32>
    %c0_6 = arith.constant 0 : index
    %c0_7 = arith.constant 0 : index
    %15 = vector.load %arg3[%c0_6, %c0_7] : memref<1x128xf32, #tpu.memory_space<vmem>>, vector<1x128xf32>
    %16 = arith.addf %5, %15 : vector<1x128xf32>
    %cst_8 = arith.constant 0.000000e+00 : f32
    %17 = vector.broadcast %cst_8 : f32 to vector<1x128xf32>
    %18 = arith.subf %17, %16 : vector<1x128xf32>
    %19 = arith.mulf %18, %14 : vector<1x128xf32>
    %c0_9 = arith.constant 0 : index
    %c0_10 = arith.constant 0 : index
    %20 = vector.load %arg1[%c0_9, %c0_10] : memref<24x128xbf16, #tpu.memory_space<vmem>>, vector<24x128xbf16>
    %21 = arith.extf %20 : vector<24x128xbf16> to vector<24x128xf32>
    %22 = vector.broadcast %14 : vector<1x128xf32> to vector<24x128xf32>
    %23 = arith.mulf %21, %22 : vector<24x128xf32>
    %24 = vector.broadcast %19 : vector<1x128xf32> to vector<24x128xf32>
    %25 = arith.addf %23, %24 : vector<24x128xf32>
    %cst_11 = arith.constant 0.000000e+00 : f32
    %26 = vector.broadcast %cst_11 : f32 to vector<24x128xf32>
    %27 = arith.maximumf %25, %26 : vector<24x128xf32>
    %c0_12 = arith.constant 0 : index
    %c0_13 = arith.constant 0 : index
    %28 = vector.load %arg4[%c0_12, %c0_13] : memref<24x128xbf16, #tpu.memory_space<vmem>>, vector<24x128xbf16>
    %29 = arith.extf %28 : vector<24x128xbf16> to vector<24x128xf32>
    %30 = arith.addf %27, %29 : vector<24x128xf32>
    %cst_14 = arith.constant 0.000000e+00 : f32
    %31 = vector.broadcast %cst_14 : f32 to vector<24x128xf32>
    %32 = arith.maximumf %30, %31 : vector<24x128xf32>
    %33 = arith.truncf %32 : vector<24x128xf32> to vector<24x128xbf16>
    %c0_15 = arith.constant 0 : index
    %c0_16 = arith.constant 0 : index
    %34 = vector.load %arg5[%c0_15, %c0_16] : memref<24x128xbf16, #tpu.memory_space<vmem>>, vector<24x128xbf16>
    tpu.vector_store %arg5[%c0_15, %c0_16], %33 {strides = array<i32>} : memref<24x128xbf16, #tpu.memory_space<vmem>>, vector<24x128xbf16>,
    return
  }
  func.func @transform_0(%arg0: i32) -> (i32, i32) {
    %c0_i32 = arith.constant 0 : i32
    %c0_i32_0 = arith.constant 0 : i32
    return %arg0, %c0_i32 : i32, i32
  }
  func.func @transform_1(%arg0: i32) -> (i32, i32, i32) {
    %c0_i32 = arith.constant 0 : i32
    %c0_i32_0 = arith.constant 0 : i32
    %c0_i32_1 = arith.constant 0 : i32
    %c0_i32_2 = arith.constant 0 : i32
    return %c0_i32, %c0_i32_0, %c0_i32_1 : i32, i32, i32
  }
  func.func @transform_2(%arg0: i32) -> (i32, i32) {
    %c0_i32 = arith.constant 0 : i32
    %c0_i32_0 = arith.constant 0 : i32
    %c0_i32_1 = arith.constant 0 : i32
    return %c0_i32, %c0_i32_0 : i32, i32
  }
  func.func @transform_3(%arg0: i32) -> (i32, i32) {
    %c0_i32 = arith.constant 0 : i32
    %c0_i32_0 = arith.constant 0 : i32
    return %arg0, %c0_i32 : i32, i32
  }
  func.func @transform_4(%arg0: i32) -> (i32, i32) {
    %c0_i32 = arith.constant 0 : i32
    %c0_i32_0 = arith.constant 0 : i32
    return %arg0, %c0_i32 : i32, i32
  }
}

module attributes {stable_mosaic.version = 11 : i64} {
  func.func @_matmul_kernel(%arg0: i32, %arg1: i32, %arg2: i32, %arg3: memref<24x128xbf16, #tpu.memory_space<vmem>>, %arg4: memref<128x128xbf16, #tpu.memory_space<vmem>>, %arg5: memref<1x128xf32, #tpu.memory_space<vmem>>, %arg6: memref<24x128xf32, #tpu.memory_space<vmem>>, %arg7: memref<24x128xf32, #tpu.memory_space<vmem>>) attributes {dimension_semantics = [#tpu.dimension_semantics<parallel>, #tpu.dimension_semantics<parallel>, #tpu.dimension_semantics<arbitrary>], iteration_bounds = array<i64: 1, 1, 1>, scalar_prefetch = 0 : i64, scratch_operands = 1 : i64, tpu.core_type = #tpu.core_type<tc>, window_params = [{transform_indices = @transform_0, window_bounds = array<i64: 24, 128>}, {transform_indices = @transform_1, window_bounds = array<i64: 128, 128>}, {transform_indices = @transform_2, window_bounds = array<i64: 1, 128>}, {transform_indices = @transform_3, window_bounds = array<i64: 24, 128>}]} {
    %c0_i32 = arith.constant 0 : i32
    %0 = arith.cmpi eq, %arg2, %c0_i32 : i32
    %1 = arith.extui %0 : i1 to i32
    %c0_i32_0 = arith.constant 0 : i32
    %2 = arith.cmpi ne, %1, %c0_i32_0 : i32
    scf.if %2 {
      %cst_10 = arith.constant 0.000000e+00 : f32
      %12 = vector.broadcast %cst_10 : f32 to vector<24x128xf32>
      %c0_11 = arith.constant 0 : index
      %c0_12 = arith.constant 0 : index
      %13 = vector.load %arg7[%c0_11, %c0_12] : memref<24x128xf32, #tpu.memory_space<vmem>>, vector<24x128xf32>
      tpu.vector_store %arg7[%c0_11, %c0_12], %12 {strides = array<i32>} : memref<24x128xf32, #tpu.memory_space<vmem>>, vector<24x128xf32>,
    } else {
    }
    %c0 = arith.constant 0 : index
    %c0_1 = arith.constant 0 : index
    %3 = vector.load %arg7[%c0, %c0_1] : memref<24x128xf32, #tpu.memory_space<vmem>>, vector<24x128xf32>
    %c0_2 = arith.constant 0 : index
    %c0_3 = arith.constant 0 : index
    %4 = vector.load %arg3[%c0_2, %c0_3] : memref<24x128xbf16, #tpu.memory_space<vmem>>, vector<24x128xbf16>
    %c0_4 = arith.constant 0 : index
    %c0_5 = arith.constant 0 : index
    %5 = vector.load %arg4[%c0_4, %c0_5] : memref<128x128xbf16, #tpu.memory_space<vmem>>, vector<128x128xbf16>
    %cst = arith.constant dense<0.000000e+00> : vector<24x128xf32>
    %6 = tpu.matmul %4, %5, %cst {dimension_numbers = #tpu.dot_dimension_numbers<[1], [0], [0], [1], [0, 0, 1, 1], [], []>} : vector<24x128xbf16>, vector<128x128xbf16>, vector<24x128xf32> -> vector<24x128xf32>
    %7 = arith.addf %3, %6 : vector<24x128xf32>
    %c0_6 = arith.constant 0 : index
    %c0_7 = arith.constant 0 : index
    %8 = vector.load %arg7[%c0_6, %c0_7] : memref<24x128xf32, #tpu.memory_space<vmem>>, vector<24x128xf32>
    tpu.vector_store %arg7[%c0_6, %c0_7], %7 {strides = array<i32>} : memref<24x128xf32, #tpu.memory_space<vmem>>, vector<24x128xf32>,
    %c0_i32_8 = arith.constant 0 : i32
    %9 = arith.cmpi eq, %arg2, %c0_i32_8 : i32
    %10 = arith.extui %9 : i1 to i32
    %c0_i32_9 = arith.constant 0 : i32
    %11 = arith.cmpi ne, %10, %c0_i32_9 : i32
    scf.if %11 {
      %c0_10 = arith.constant 0 : index
      %c0_11 = arith.constant 0 : index
      %12 = vector.load %arg7[%c0_10, %c0_11] : memref<24x128xf32, #tpu.memory_space<vmem>>, vector<24x128xf32>
      %c0_12 = arith.constant 0 : index
      %c0_13 = arith.constant 0 : index
      %13 = vector.load %arg5[%c0_12, %c0_13] : memref<1x128xf32, #tpu.memory_space<vmem>>, vector<1x128xf32>
      %14 = vector.broadcast %13 : vector<1x128xf32> to vector<24x128xf32>
      %15 = arith.addf %12, %14 : vector<24x128xf32>
      %c0_14 = arith.constant 0 : index
      %c0_15 = arith.constant 0 : index
      %16 = vector.load %arg6[%c0_14, %c0_15] : memref<24x128xf32, #tpu.memory_space<vmem>>, vector<24x128xf32>
      tpu.vector_store %arg6[%c0_14, %c0_15], %15 {strides = array<i32>} : memref<24x128xf32, #tpu.memory_space<vmem>>, vector<24x128xf32>,
    } else {
    }
    return
  }
  func.func @transform_0(%arg0: i32, %arg1: i32, %arg2: i32) -> (i32, i32) {
    %c0_i32 = arith.constant 0 : i32
    return %arg0, %arg2 : i32, i32
  }
  func.func @transform_1(%arg0: i32, %arg1: i32, %arg2: i32) -> (i32, i32) {
    %c0_i32 = arith.constant 0 : i32
    return %arg2, %arg1 : i32, i32
  }
  func.func @transform_2(%arg0: i32, %arg1: i32, %arg2: i32) -> (i32, i32) {
    %c0_i32 = arith.constant 0 : i32
    %c0_i32_0 = arith.constant 0 : i32
    return %c0_i32, %arg1 : i32, i32
  }
  func.func @transform_3(%arg0: i32, %arg1: i32, %arg2: i32) -> (i32, i32) {
    %c0_i32 = arith.constant 0 : i32
    return %arg0, %arg1 : i32, i32
  }
}

</mosaic_0001>

<bundles_post_ra>
// kernel: contextnet_apply.30
= control target key start
LH: loop header
LB: loop body
LE: loop exit
PB: predicated region body
PF: predicated region fallthrough
CT: control target
= control target key end

     0   :  { %s831_s1 = inlined_call_operand.vmem [shape: f32[1,8,128], index: 1, kind: input, shape index: {}]   ;;  %s832_s0 = inlined_call_operand.vmem [shape: bf16[288,128], index: 0, kind: input, shape index: {}]   ;;  %s833_s2 = inlined_call_operand.vmem [shape: f32[1,128], index: 2, kind: input, shape index: {}]   ;;  %s834_s3 = inlined_call_operand.vmem [shape: bf16[288,128], index: 3, kind: output, shape index: {}]  }
   0x1   :  { %v14_v0 = vld [vmem:[%s831_s1] sm:$0xff]  ;;  %v531_v10 = vld [vmem:[%s832_s0 + $0x8] sm:$0xff]   ;;  %v536_v11 = vld [vmem:[%s832_s0 + $0x10] sm:$0xff]  }
   0x2   :  { %v16_v1 = vmul.f32 0.0034722222, %v14_v0  ;;  %v34_v7 = vld [vmem:[%s833_s2] sm:$0x1]  ;;  %v541_v13 = vld [vmem:[%s832_s0 + $0x18] sm:$0xff]   ;;  %v305_v19 = vunpack.c.l.bf16 %v531_v10  ;;  %v306_v20 = vunpack.c.h.bf16 %v531_v10  ;;  %v309_v21 = vunpack.c.l.bf16 %v536_v11  ;;  %v556_v22 = vld [vmem:[%s832_s0 + $0x28] sm:$0xff]  }
   0x3   :  { %v526_v8 = vld [vmem:[%s832_s0] sm:$0xff]   ;;  %v561_v23 = vld [vmem:[%s832_s0 + $0x30] sm:$0xff]   ;;  %v310_v24 = vunpack.c.h.bf16 %v536_v11  ;;  %v313_v25 = vunpack.c.l.bf16 %v541_v13  ;;  %v314_v26 = vunpack.c.h.bf16 %v541_v13  ;;  %v570_v28 = vld [vmem:[%s832_s0 + $0x38] sm:$0xff]   ;;  %v321_v34 = vunpack.c.l.bf16 %v556_v22 }
   0x4   :  { %v17_v2 = vmul.f32 %v16_v1, %v16_v1  ;;  %v546_v14 = vld [vmem:[%s832_s0 + $0x20] sm:$0xff]   ;;  %v35_v15 = vadd.f32 %v34_v7, %v16_v1  ;;  %v301_v16 = vunpack.c.l.bf16 %v526_v8  ;;  %v302_v17 = vunpack.c.h.bf16 %v526_v8  ;;  %v581_v32 = vld [vmem:[%s832_s0 + $0x48] sm:$0xff]   ;;  %v589_v37 = vld [vmem:[%s832_s0 + $0x50] sm:$0xff]  }
   0x5   :  { %v317_v27 = vunpack.c.l.bf16 %v546_v14  ;;  %v318_v30 = vunpack.c.h.bf16 %v546_v14  ;;  %v576_v31 = vld [vmem:[%s832_s0 + $0x40] sm:$0xff]   ;;  %v322_v35 = vunpack.c.h.bf16 %v556_v22  ;;  %v325_v36 = vunpack.c.l.bf16 %v561_v23  ;;  %v594_v38 = vld [vmem:[%s832_s0 + $0x58] sm:$0xff]   ;;  %v607_v44 = vld [vmem:[%s832_s0 + $0x68] sm:$0xff]  }
   0x6   :  { %v19_v3 = vrot.slane %v17_v2, 7  ;;  %v36_v33 = vsub.f32 0.0, %v35_v15  ;;  %v326_v40 = vunpack.c.h.bf16 %v561_v23  ;;  %v329_v41 = vunpack.c.l.bf16 %v570_v28  ;;  %v602_v43 = vld [vmem:[%s832_s0 + $0x60] sm:$0xff]   ;;  %v622_v50 = vld [vmem:[%s832_s0 + $0x70] sm:$0xff]   ;;  %v630_v55 = vld [vmem:[%s832_s0 + $0x78] sm:$0xff]  }
   0x7   :  { %v330_v42 = vunpack.c.h.bf16 %v570_v28  ;;  %v333_v46 = vunpack.c.l.bf16 %v576_v31  ;;  %v334_v47 = vunpack.c.h.bf16 %v576_v31  ;;  %v337_v48 = vunpack.c.l.bf16 %v581_v32  ;;  %v639_v60 = vld [vmem:[%s832_s0 + $0x80] sm:$0xff]   ;;  %v644_v61 = vld [vmem:[%s832_s0 + $0x88] sm:$0xff]  }
   0x8   :  { %v21_v4 = vsub.f32 %v16_v1, %v19_v3  ;;  %v338_v49 = vunpack.c.h.bf16 %v581_v32  ;;  %v341_v52 = vunpack.c.l.bf16 %v589_v37  ;;  %v342_v53 = vunpack.c.h.bf16 %v589_v37 }
   0x9   :  { %v345_v54 = vunpack.c.l.bf16 %v594_v38  ;;  %v346_v56 = vunpack.c.h.bf16 %v594_v38  ;;  %v349_v57 = vunpack.c.l.bf16 %v602_v43  ;;  %v350_v58 = vunpack.c.h.bf16 %v602_v43 }
   0xa   :  { %v22_v5 = vmax.f32 %v21_v4, 0.0  ;;  %v353_v59 = vunpack.c.l.bf16 %v607_v44  ;;  %v354_v63 = vunpack.c.h.bf16 %v607_v44  ;;  %v357_v0 = vunpack.c.l.bf16 %v622_v50 }
   0xb   :  { %v358_v1 = vunpack.c.h.bf16 %v622_v50  ;;  %v361_v4 = vunpack.c.l.bf16 %v630_v55  ;;  %v366_v7 = vunpack.c.h.bf16 %v639_v60  ;;  %v369_v8 = vunpack.c.l.bf16 %v644_v61 }
   0xc   :  { %v23_v6 = vadd.f32 1e-05, %v22_v5  ;;  %v362_v5 = vunpack.c.h.bf16 %v630_v55 }
   0xe   :  { %495 = vrsqrt.f32 %v23_v6  ;;  %vm30_vm0 = vweird.f32 %v23_v6 }
  0x14   :  { %v496_v9 = vpop.eup %495 }
  0x15   :  { %v25_v12 = vmul.f32 %v496_v9, %v23_v6  ;;  %vm31_vm1 = vweird.f32 %v496_v9  ;;  %v365_v6 = vunpack.c.l.bf16 %v639_v60 }
  0x16   :  { %vm611_vm2 = vmor %vm30_vm0, %vm31_vm1 }
  0x17   :  { %v26_v18 = vmul.f32 %v496_v9, %v25_v12 }
  0x19   :  { %v27_v29 = vmul.f32 0.5, %v26_v18 }
  0x1b   :  { %v28_v39 = vsub.f32 1.5, %v27_v29 }
  0x1d   :  { %v29_v51 = vmul.f32 %v496_v9, %v28_v39 }
  0x1f   :  { %v33_v62 = vsel %vm611_vm2, %v496_v9, %v29_v51 }
  0x20   :  { %v38_v2 = vrot.slane %v33_v62, 1  ;;  %v651_v3 = vperm.slane %v33_v62, 1 }
  0x22   :  { %v40_v10 = vmul.f32 %v38_v2, %v36_v33  ;;  %v114_v11 = vmul.f32 %v301_v16, %v651_v3  ;;  %v115_v12 = vmul.f32 %v302_v17, %v651_v3  ;;  %v116_v13 = vmul.f32 %v305_v19, %v651_v3 }
  0x23   :  { %v117_v14 = vmul.f32 %v306_v20, %v651_v3  ;;  %v118_v15 = vmul.f32 %v309_v21, %v651_v3  ;;  %v119_v18 = vmul.f32 %v310_v24, %v651_v3  ;;  %v120_v22 = vmul.f32 %v313_v25, %v651_v3 }
  0x24   :  { %v666_v23 = vperm.slane %v40_v10, 0  ;;  %v121_v29 = vmul.f32 %v314_v26, %v651_v3  ;;  %v122_v33 = vmul.f32 %v317_v27, %v651_v3  ;;  %v123_v16 = vmul.f32 %v318_v30, %v651_v3 }
  0x25   :  { %v124_v17 = vmul.f32 %v321_v34, %v651_v3  ;;  %v125_v19 = vmul.f32 %v322_v35, %v651_v3  ;;  %v126_v20 = vmul.f32 %v325_v36, %v651_v3  ;;  %v127_v21 = vmul.f32 %v326_v40, %v651_v3 }
  0x26   :  { %v151_v24 = vadd.f32 %v666_v23, %v114_v11  ;;  %v152_v25 = vadd.f32 %v666_v23, %v115_v12  ;;  %v153_v39 = vadd.f32 %v666_v23, %v116_v13  ;;  %v154_v26 = vadd.f32 %v666_v23, %v117_v14 }
  0x27   :  { %v155_v27 = vadd.f32 %v666_v23, %v118_v15  ;;  %v156_v30 = vadd.f32 %v666_v23, %v119_v18  ;;  %v157_v34 = vadd.f32 %v666_v23, %v120_v22  ;;  %v158_v35 = vadd.f32 %v666_v23, %v121_v29 }
  0x28   :  { %v187_v45 = vmax.f32 %v151_v24, 0.0  ;;  %v188_v36 = vmax.f32 %v152_v25, 0.0  ;;  %v189_v51 = vmax.f32 %v153_v39, 0.0  ;;  %v190_v40 = vmax.f32 %v154_v26, 0.0 }
  0x29   :  { %v191_v62 = vmax.f32 %v155_v27, 0.0  ;;  %v192_v2 = vmax.f32 %v156_v30, 0.0  ;;  %v193_v10 = vmax.f32 %v157_v34, 0.0  ;;  %v194_v11 = vmax.f32 %v158_v35, 0.0 }
  0x2a   :  { %v374_v12 = vpack.c.bf16 %v188_v36, %v187_v45  ;;  %v379_v13 = vpack.c.bf16 %v190_v40, %v189_v51  ;;  %v159_v14 = vadd.f32 %v666_v23, %v122_v33  ;;  %v160_v15 = vadd.f32 %v666_v23, %v123_v16 }
  0x2b   :  { %v384_v9 = vpack.c.bf16 %v192_v2, %v191_v62  ;;  %v389_v18 = vpack.c.bf16 %v194_v11, %v193_v10  ;;  %v161_v22 = vadd.f32 %v666_v23, %v124_v17  ;;  %v162_v29 = vadd.f32 %v666_v23, %v125_v19 }
  0x2c   :  { %375 = vst [vmem:[%s834_s3] sm:$0xff] %v374_v12   ;;  %v195_v24 = vmax.f32 %v159_v14, 0.0  ;;  %v196_v25 = vmax.f32 %v160_v15, 0.0  ;;  %v163_v39 = vadd.f32 %v666_v23, %v126_v20  ;;  %v164_v26 = vadd.f32 %v666_v23, %v127_v21 }
  0x2d   :  { %478 = vst [vmem:[%s834_s3 + $0x8] sm:$0xff] %v379_v13   ;;  %v197_v33 = vmax.f32 %v161_v22, 0.0  ;;  %v198_v16 = vmax.f32 %v162_v29, 0.0  ;;  %v128_v17 = vmul.f32 %v329_v41, %v651_v3  ;;  %v129_v19 = vmul.f32 %v330_v42, %v651_v3 }
  0x2e   :  { %479 = vst [vmem:[%s834_s3 + $0x10] sm:$0xff] %v384_v9   ;;  %v394_v20 = vpack.c.bf16 %v196_v25, %v195_v24  ;;  %v199_v21 = vmax.f32 %v163_v39, 0.0  ;;  %v200_v27 = vmax.f32 %v164_v26, 0.0  ;;  %v130_v30 = vmul.f32 %v333_v46, %v651_v3 }
  0x2f   :  { %480 = vst [vmem:[%s834_s3 + $0x18] sm:$0xff] %v389_v18   ;;  %v399_v41 = vpack.c.bf16 %v198_v16, %v197_v33  ;;  %v165_v34 = vadd.f32 %v666_v23, %v128_v17  ;;  %v166_v28 = vadd.f32 %v666_v23, %v129_v19  ;;  %v131_v42 = vmul.f32 %v334_v47, %v651_v3 }
  0x30   :  { %481 = vst [vmem:[%s834_s3 + $0x20] sm:$0xff] %v394_v20   ;;  %v404_v9 = vpack.c.bf16 %v200_v27, %v199_v21  ;;  %v167_v46 = vadd.f32 %v666_v23, %v130_v30  ;;  %v132_v35 = vmul.f32 %v337_v48, %v651_v3  ;;  %v133_v45 = vmul.f32 %v338_v49, %v651_v3 }
  0x31   :  { %482 = vst [vmem:[%s834_s3 + $0x28] sm:$0xff] %v399_v41   ;;  %v201_v31 = vmax.f32 %v165_v34, 0.0  ;;  %v202_v47 = vmax.f32 %v166_v28, 0.0  ;;  %v168_v36 = vadd.f32 %v666_v23, %v131_v42  ;;  %v134_v51 = vmul.f32 %v341_v52, %v651_v3 }
  0x32   :  { %483 = vst [vmem:[%s834_s3 + $0x30] sm:$0xff] %v404_v9   ;;  %v203_v48 = vmax.f32 %v167_v46, 0.0  ;;  %v169_v32 = vadd.f32 %v666_v23, %v132_v35  ;;  %v170_v49 = vadd.f32 %v666_v23, %v133_v45  ;;  %v135_v40 = vmul.f32 %v342_v53, %v651_v3 }
  0x33   :  { %v409_v62 = vpack.c.bf16 %v202_v47, %v201_v31  ;;  %v204_v2 = vmax.f32 %v168_v36, 0.0  ;;  %v171_v10 = vadd.f32 %v666_v23, %v134_v51  ;;  %v136_v52 = vmul.f32 %v345_v54, %v651_v3 }
  0x34   :  { %v205_v11 = vmax.f32 %v169_v32, 0.0  ;;  %v206_v12 = vmax.f32 %v170_v49, 0.0  ;;  %v172_v13 = vadd.f32 %v666_v23, %v135_v40  ;;  %v137_v14 = vmul.f32 %v346_v56, %v651_v3 }
  0x35   :  { %484 = vst [vmem:[%s834_s3 + $0x38] sm:$0xff] %v409_v62   ;;  %v414_v37 = vpack.c.bf16 %v204_v2, %v203_v48  ;;  %v207_v53 = vmax.f32 %v171_v10, 0.0  ;;  %v173_v15 = vadd.f32 %v666_v23, %v136_v52  ;;  %v138_v54 = vmul.f32 %v349_v57, %v651_v3 }
  0x36   :  { %v419_v18 = vpack.c.bf16 %v206_v12, %v205_v11  ;;  %v208_v22 = vmax.f32 %v172_v13, 0.0  ;;  %v174_v29 = vadd.f32 %v666_v23, %v137_v14  ;;  %v139_v38 = vmul.f32 %v350_v58, %v651_v3 }
  0x37   :  { %485 = vst [vmem:[%s834_s3 + $0x40] sm:$0xff] %v414_v37   ;;  %v209_v56 = vmax.f32 %v173_v15, 0.0  ;;  %v175_v24 = vadd.f32 %v666_v23, %v138_v54  ;;  %v140_v25 = vmul.f32 %v353_v59, %v651_v3  ;;  %v141_v57 = vmul.f32 %v354_v63, %v651_v3 }
  0x38   :  { %486 = vst [vmem:[%s834_s3 + $0x48] sm:$0xff] %v419_v18   ;;  %v424_v43 = vpack.c.bf16 %v208_v22, %v207_v53  ;;  %v210_v58 = vmax.f32 %v174_v29, 0.0  ;;  %v176_v39 = vadd.f32 %v666_v23, %v139_v38  ;;  %v142_v26 = vmul.f32 %v357_v0, %v651_v3 }
  0x39   :  { %v211_v33 = vmax.f32 %v175_v24, 0.0  ;;  %v177_v16 = vadd.f32 %v666_v23, %v140_v25  ;;  %v178_v59 = vadd.f32 %v666_v23, %v141_v57  ;;  %v143_v44 = vmul.f32 %v358_v1, %v651_v3 }
  0x3a   :  { %487 = vst [vmem:[%s834_s3 + $0x50] sm:$0xff] %v424_v43   ;;  %v429_v63 = vpack.c.bf16 %v210_v58, %v209_v56  ;;  %v212_v17 = vmax.f32 %v176_v39, 0.0  ;;  %v179_v19 = vadd.f32 %v666_v23, %v142_v26  ;;  %v144_v0 = vmul.f32 %v361_v4, %v651_v3 }
  0x3b   :  { %v213_v20 = vmax.f32 %v177_v16, 0.0  ;;  %v214_v21 = vmax.f32 %v178_v59, 0.0  ;;  %v180_v27 = vadd.f32 %v666_v23, %v143_v44  ;;  %v145_v50 = vmul.f32 %v362_v5, %v651_v3 }
  0x3c   :  { %488 = vst [vmem:[%s834_s3 + $0x58] sm:$0xff] %v429_v63   ;;  %v434_v1 = vpack.c.bf16 %v212_v17, %v211_v33  ;;  %v215_v30 = vmax.f32 %v179_v19, 0.0  ;;  %v181_v41 = vadd.f32 %v666_v23, %v144_v0  ;;  %v146_v4 = vmul.f32 %v365_v6, %v651_v3 }
  0x3d   :  { %v439_v34 = vpack.c.bf16 %v214_v21, %v213_v20  ;;  %v216_v28 = vmax.f32 %v180_v27, 0.0  ;;  %v182_v42 = vadd.f32 %v666_v23, %v145_v50  ;;  %v147_v55 = vmul.f32 %v366_v7, %v651_v3 }
  0x3e   :  { %489 = vst [vmem:[%s834_s3 + $0x60] sm:$0xff] %v434_v1   ;;  %v217_v5 = vmax.f32 %v181_v41, 0.0  ;;  %v183_v9 = vadd.f32 %v666_v23, %v146_v4  ;;  %v148_v46 = vmul.f32 %v369_v8, %v651_v3  ;;  %v837_v6 = vunpack.c.h.bf16 %v644_v61 }
  0x3f   :  { %490 = vst [vmem:[%s834_s3 + $0x68] sm:$0xff] %v439_v34   ;;  %v444_v60 = vpack.c.bf16 %v216_v28, %v215_v30  ;;  %v218_v7 = vmax.f32 %v182_v42, 0.0  ;;  %v184_v45 = vadd.f32 %v666_v23, %v147_v55 }
  0x40   :  { %v149_v35 = vmul.f32 %v837_v6, %v651_v3  ;;  %v219_v31 = vmax.f32 %v183_v9, 0.0  ;;  %v185_v47 = vadd.f32 %v666_v23, %v148_v46 }
  0x41   :  { %491 = vst [vmem:[%s834_s3 + $0x70] sm:$0xff] %v444_v60   ;;  %v449_v8 = vpack.c.bf16 %v218_v7, %v217_v5  ;;  %v220_v61 = vmax.f32 %v184_v45, 0.0 }
  0x42   :  { %v186_v36 = vadd.f32 %v666_v23, %v149_v35  ;;  %v221_v3 = vmax.f32 %v185_v47, 0.0 }
  0x43   :  { %492 = vst [vmem:[%s834_s3 + $0x78] sm:$0xff] %v449_v8   ;;  %v454_v48 = vpack.c.bf16 %v220_v61, %v219_v31 }
  0x44   :  { %v222_v51 = vmax.f32 %v186_v36, 0.0 }
  0x45   :  { %493 = vst [vmem:[%s834_s3 + $0x80] sm:$0xff] %v454_v48  }
  0x46   :  { %v459_v32 = vpack.c.bf16 %v222_v51, %v221_v3 }
  0x48   :  { %494 = vst [vmem:[%s834_s3 + $0x88] sm:$0xff] %v459_v32  }

// kernel: contextnet_apply.29
= control target key start
LH: loop header
LB: loop body
LE: loop exit
PB: predicated region body
PF: predicated region fallthrough
CT: control target
= control target key end

     0   :  { %vm975_vm0 = vcmask 1040384   ;;  %vm977_vm1 = vcmask 1041408   ;;  %s1885_s1 = inlined_call_operand.vmem [shape: bf16[256,128], index: 1, kind: input, shape index: {}]   ;;  %s1886_s0 = inlined_call_operand.vmem [shape: bf16[288,256], index: 0, kind: input, shape index: {}]   ;;  %s1887_s2 = inlined_call_operand.vmem [shape: f32[1,128], index: 2, kind: input, shape index: {}]   ;;  %s1888_s3 = inlined_call_operand.vmem [shape: bf16[288,128], index: 3, kind: output, shape index: {0}]   ;;  %s1889_s4 = inlined_call_operand.vmem [shape: f32[1,8,128], index: 4, kind: output, shape index: {1}]  }
   0x1   :  { %v1239_v0 = vld [vmem:[%s1885_s1 + $0x38] sm:$0xff]  ;;  %v1238_v2 = vld [vmem:[%s1885_s1 + $0x30] sm:$0xff]  ;;  %v1237_v4 = vld [vmem:[%s1885_s1 + $0x28] sm:$0xff] }
   0x2   :  { %v1247_v1 = vld [vmem:[%s1885_s1 + $0x78] sm:$0xff]  ;;  %436 = vmatpush.bf16.msra.mxu0 %v1239_v0  ;;  %v1246_v3 = vld [vmem:[%s1885_s1 + $0x70] sm:$0xff]  ;;  %1355 = vmatpush.bf16.msra.mxu2 %v1239_v0  ;;  %v1245_v5 = vld [vmem:[%s1885_s1 + $0x68] sm:$0xff] }
   0x3   :  { %535 = vmatpush.bf16.msra.mxu1 %v1247_v1  ;;  %1363 = vmatpush.bf16.msra.mxu3 %v1247_v1  ;;  %v1236_v6 = vld [vmem:[%s1885_s1 + $0x20] sm:$0xff]  ;;  %v1235_v8 = vld [vmem:[%s1885_s1 + $0x18] sm:$0xff]  ;;  %v1234_v10 = vld [vmem:[%s1885_s1 + $0x10] sm:$0xff] }
   0x4   :  { %v1244_v7 = vld [vmem:[%s1885_s1 + $0x60] sm:$0xff]  ;;  %v1243_v9 = vld [vmem:[%s1885_s1 + $0x58] sm:$0xff]  ;;  %v1242_v11 = vld [vmem:[%s1885_s1 + $0x50] sm:$0xff] }
   0x5   :  { %v1233_v12 = vld [vmem:[%s1885_s1 + $0x8] sm:$0xff]  ;;  %v1232_v14 = vld [vmem:[%s1885_s1] sm:$0xff]  ;;  %v1062_v20 = vld [vmem:[%s1886_s0 + $0x90] sm:$0xf] }
   0x6   :  { %437 = vmatpush.bf16.msra.mxu0 %v1238_v2  ;;  %1356 = vmatpush.bf16.msra.mxu2 %v1238_v2  ;;  %v1241_v13 = vld [vmem:[%s1885_s1 + $0x48] sm:$0xff]  ;;  %v1240_v15 = vld [vmem:[%s1885_s1 + $0x40] sm:$0xff]  ;;  %v1215_v21 = vld [vmem:[%s1886_s0 + $0x94] sm:$0xf0] }
   0x7   :  { %536 = vmatpush.bf16.msra.mxu1 %v1246_v3  ;;  %1364 = vmatpush.bf16.msra.mxu3 %v1246_v3  ;;  %v990_v16 = vld [vmem:[%s1886_s0] sm:$0xf]  ;;  %v1197_v17 = vld [vmem:[%s1886_s0 + $0x4] sm:$0xf0]  ;;  %v1196_v18 = vld [vmem:[%s1886_s0 + $0x4] sm:$0xf]  ;;  %v1063_v26 = vor.u32 %v1215_v21, %v1062_v20 }
   0x8   :  { %v992_v19 = vld [vmem:[%s1886_s0 + $0x8] sm:$0xf0]  ;;  %v1214_v22 = vld [vmem:[%s1886_s0 + $0x94] sm:$0xf]  ;;  %v1064_v23 = vld [vmem:[%s1886_s0 + $0x98] sm:$0xf0]  ;;  %v991_v24 = vor.u32 %v1197_v17, %v990_v16 }
   0x9   :  { %v995_v25 = vor.u32 %v1196_v18, %v992_v19  ;;  %v1067_v27 = vor.u32 %v1214_v22, %v1064_v23  ;;  %v998_v28 = vld [vmem:[%s1886_s0 + $0x10] sm:$0xf]  ;;  %v1199_v29 = vld [vmem:[%s1886_s0 + $0x14] sm:$0xf0]  ;;  %v1198_v30 = vld [vmem:[%s1886_s0 + $0x14] sm:$0xf] }
   0xa   :  { %438 = vmatpush.bf16.msra.mxu0 %v1237_v4  ;;  %1357 = vmatpush.bf16.msra.mxu2 %v1237_v4  ;;  %v1000_v31 = vld [vmem:[%s1886_s0 + $0x18] sm:$0xf0]  ;;  %v1070_v32 = vld [vmem:[%s1886_s0 + $0xa0] sm:$0xf]  ;;  %v1217_v33 = vld [vmem:[%s1886_s0 + $0xa4] sm:$0xf0]  ;;  %v999_v36 = vor.u32 %v1199_v29, %v998_v28 }
   0xb   :  { %537 = vmatpush.bf16.msra.mxu1 %v1245_v5  ;;  %1365 = vmatpush.bf16.msra.mxu3 %v1245_v5  ;;  %v1216_v34 = vld [vmem:[%s1886_s0 + $0xa4] sm:$0xf]  ;;  %v1072_v35 = vld [vmem:[%s1886_s0 + $0xa8] sm:$0xf0]  ;;  %v1003_v37 = vor.u32 %v1198_v30, %v1000_v31  ;;  %v1071_v38 = vor.u32 %v1217_v33, %v1070_v32  ;;  %v1006_v40 = vld [vmem:[%s1886_s0 + $0x20] sm:$0xf] }
   0xc   :  { %v1075_v39 = vor.u32 %v1216_v34, %v1072_v35  ;;  %v1201_v41 = vld [vmem:[%s1886_s0 + $0x24] sm:$0xf0]  ;;  %v1200_v42 = vld [vmem:[%s1886_s0 + $0x24] sm:$0xf]  ;;  %v1008_v43 = vld [vmem:[%s1886_s0 + $0x28] sm:$0xf0] }
   0xd   :  { %v1078_v44 = vld [vmem:[%s1886_s0 + $0xb0] sm:$0xf]  ;;  %v1219_v45 = vld [vmem:[%s1886_s0 + $0xb4] sm:$0xf0]  ;;  %v1218_v46 = vld [vmem:[%s1886_s0 + $0xb4] sm:$0xf]  ;;  %v1007_v48 = vor.u32 %v1201_v41, %v1006_v40  ;;  %v1011_v49 = vor.u32 %v1200_v42, %v1008_v43 }
   0xe   :  { %439 = vmatpush.bf16.msra.mxu0 %v1236_v6  ;;  %1358 = vmatpush.bf16.msra.mxu2 %v1236_v6  ;;  %v1080_v47 = vld [vmem:[%s1886_s0 + $0xb8] sm:$0xf0]  ;;  %v1079_v50 = vor.u32 %v1219_v45, %v1078_v44  ;;  %v1014_v52 = vld [vmem:[%s1886_s0 + $0x30] sm:$0xf]  ;;  %v1203_v53 = vld [vmem:[%s1886_s0 + $0x34] sm:$0xf0] }
   0xf   :  { %538 = vmatpush.bf16.msra.mxu1 %v1244_v7  ;;  %1366 = vmatpush.bf16.msra.mxu3 %v1244_v7  ;;  %v1083_v51 = vor.u32 %v1218_v46, %v1080_v47  ;;  %v1202_v54 = vld [vmem:[%s1886_s0 + $0x34] sm:$0xf]  ;;  %v1016_v55 = vld [vmem:[%s1886_s0 + $0x38] sm:$0xf0]  ;;  %v1086_v56 = vld [vmem:[%s1886_s0 + $0xc0] sm:$0xf]  ;;  %v1015_v60 = vor.u32 %v1203_v53, %v1014_v52 }
  0x10   :  { %v1221_v57 = vld [vmem:[%s1886_s0 + $0xc4] sm:$0xf0]  ;;  %v1220_v58 = vld [vmem:[%s1886_s0 + $0xc4] sm:$0xf]  ;;  %v1088_v59 = vld [vmem:[%s1886_s0 + $0xc8] sm:$0xf0]  ;;  %v1019_v61 = vor.u32 %v1202_v54, %v1016_v55 }
  0x11   :  { %v1087_v62 = vor.u32 %v1221_v57, %v1086_v56  ;;  %v1091_v63 = vor.u32 %v1220_v58, %v1088_v59  ;;  %v1022_v0 = vld [vmem:[%s1886_s0 + $0x40] sm:$0xf]  ;;  %v1205_v1 = vld [vmem:[%s1886_s0 + $0x44] sm:$0xf0]  ;;  %v1204_v2 = vld [vmem:[%s1886_s0 + $0x44] sm:$0xf] }
  0x12   :  { %440 = vmatpush.bf16.msra.mxu0 %v1235_v8  ;;  %1359 = vmatpush.bf16.msra.mxu2 %v1235_v8  ;;  %v1024_v3 = vld [vmem:[%s1886_s0 + $0x48] sm:$0xf0]  ;;  %v1094_v4 = vld [vmem:[%s1886_s0 + $0xd0] sm:$0xf]  ;;  %v1223_v5 = vld [vmem:[%s1886_s0 + $0xd4] sm:$0xf0]  ;;  %v1023_v8 = vor.u32 %v1205_v1, %v1022_v0 }
  0x13   :  { %539 = vmatpush.bf16.msra.mxu1 %v1243_v9  ;;  %1367 = vmatpush.bf16.msra.mxu3 %v1243_v9  ;;  %v1222_v6 = vld [vmem:[%s1886_s0 + $0xd4] sm:$0xf]  ;;  %v1096_v7 = vld [vmem:[%s1886_s0 + $0xd8] sm:$0xf0]  ;;  %v1027_v9 = vor.u32 %v1204_v2, %v1024_v3  ;;  %v1102_v16 = vld [vmem:[%s1886_s0 + $0xe0] sm:$0xf] }
  0x14   :  { %v1225_v17 = vld [vmem:[%s1886_s0 + $0xe4] sm:$0xf0]  ;;  %v1224_v18 = vld [vmem:[%s1886_s0 + $0xe4] sm:$0xf]  ;;  %v1104_v19 = vld [vmem:[%s1886_s0 + $0xe8] sm:$0xf0] }
  0x15   :  { %v1103_v22 = vor.u32 %v1225_v17, %v1102_v16  ;;  %v1107_v23 = vor.u32 %v1224_v18, %v1104_v19  ;;  %v1110_v28 = vld [vmem:[%s1886_s0 + $0xf0] sm:$0xf]  ;;  %v1227_v29 = vld [vmem:[%s1886_s0 + $0xf4] sm:$0xf0]  ;;  %v1226_v30 = vld [vmem:[%s1886_s0 + $0xf4] sm:$0xf] }
  0x16   :  { %441 = vmatpush.bf16.msra.mxu0 %v1234_v10  ;;  %1360 = vmatpush.bf16.msra.mxu2 %v1234_v10  ;;  %v1095_v10 = vor.u32 %v1223_v5, %v1094_v4  ;;  %v1112_v31 = vld [vmem:[%s1886_s0 + $0xf8] sm:$0xf0]  ;;  %v1111_v34 = vor.u32 %v1227_v29, %v1110_v28  ;;  %v1118_v40 = vld [vmem:[%s1886_s0 + $0x100] sm:$0xf]  ;;  %v1229_v41 = vld [vmem:[%s1886_s0 + $0x104] sm:$0xf0] }
  0x17   :  { %540 = vmatpush.bf16.msra.mxu1 %v1242_v11  ;;  %1368 = vmatpush.bf16.msra.mxu3 %v1242_v11  ;;  %v1099_v11 = vor.u32 %v1222_v6, %v1096_v7  ;;  %v1115_v35 = vor.u32 %v1226_v30, %v1112_v31  ;;  %v1228_v42 = vld [vmem:[%s1886_s0 + $0x104] sm:$0xf]  ;;  %v1120_v43 = vld [vmem:[%s1886_s0 + $0x108] sm:$0xf0]  ;;  %v1119_v46 = vor.u32 %v1229_v41, %v1118_v40  ;;  %v1126_v52 = vld [vmem:[%s1886_s0 + $0x110] sm:$0xf] }
  0x18   :  { %v1123_v47 = vor.u32 %v1228_v42, %v1120_v43  ;;  %v1231_v53 = vld [vmem:[%s1886_s0 + $0x114] sm:$0xf0]  ;;  %v1230_v54 = vld [vmem:[%s1886_s0 + $0x114] sm:$0xf]  ;;  %v1128_v55 = vld [vmem:[%s1886_s0 + $0x118] sm:$0xf0] }
  0x1a   :  { %442 = vmatpush.bf16.msra.mxu0 %v1233_v12  ;;  %1361 = vmatpush.bf16.msra.mxu2 %v1233_v12  ;;  %v1030_v12 = vld [vmem:[%s1886_s0 + $0x50] sm:$0xf] }
  0x1b   :  { %541 = vmatpush.bf16.msra.mxu1 %v1241_v13  ;;  %1369 = vmatpush.bf16.msra.mxu3 %v1241_v13  ;;  %v1207_v13 = vld [vmem:[%s1886_s0 + $0x54] sm:$0xf0] }
  0x1c   :  { %v1031_v20 = vor.u32 %v1207_v13, %v1030_v12 }
  0x1e   :  { %443 = vmatpush.bf16.msra.mxu0 %v1232_v14  ;;  %1362 = vmatpush.bf16.msra.mxu2 %v1232_v14  ;;  %v1206_v14 = vld [vmem:[%s1886_s0 + $0x54] sm:$0xf] }
  0x1f   :  { %542 = vmatpush.bf16.msra.mxu1 %v1240_v15  ;;  %1370 = vmatpush.bf16.msra.mxu3 %v1240_v15  ;;  %v1032_v15 = vld [vmem:[%s1886_s0 + $0x58] sm:$0xf0] }
  0x20   :  { %v1035_v21 = vor.u32 %v1206_v14, %v1032_v15 }
  0x21   :  { %444 = vmatmul.bf16.vlgmr.msra.gmra.mxu0 %v991_v24  ;;  %489 = vmatmul.bf16.vlgmr.msra.gmra.mxu2 %v1063_v26  ;;  %v1038_v24 = vld [vmem:[%s1886_s0 + $0x60] sm:$0xf]  ;;  %v1208_v26 = vld [vmem:[%s1886_s0 + $0x64] sm:$0xf] }
  0x22   :  { %543 = vmatmul.bf16.vlgmr.msra.gmra.mxu1 %v995_v25  ;;  %588 = vmatmul.bf16.vlgmr.msra.gmra.mxu3 %v1067_v27  ;;  %v1209_v25 = vld [vmem:[%s1886_s0 + $0x64] sm:$0xf0]  ;;  %v1040_v27 = vld [vmem:[%s1886_s0 + $0x68] sm:$0xf0] }
  0x23   :  { %v1039_v32 = vor.u32 %v1209_v25, %v1038_v24  ;;  %v1043_v33 = vor.u32 %v1208_v26, %v1040_v27 }
  0x31   :  { %449 = vmatmul.bf16.gmra.mxu0 %v999_v36  ;;  %494 = vmatmul.bf16.gmra.mxu2 %v1071_v38  ;;  %v1046_v36 = vld [vmem:[%s1886_s0 + $0x70] sm:$0xf]  ;;  %v1210_v38 = vld [vmem:[%s1886_s0 + $0x74] sm:$0xf] }
  0x32   :  { %548 = vmatmul.bf16.gmra.mxu1 %v1003_v37  ;;  %593 = vmatmul.bf16.gmra.mxu3 %v1075_v39  ;;  %v1211_v37 = vld [vmem:[%s1886_s0 + $0x74] sm:$0xf0]  ;;  %v1048_v39 = vld [vmem:[%s1886_s0 + $0x78] sm:$0xf0] }
  0x33   :  { %v1047_v44 = vor.u32 %v1211_v37, %v1046_v36  ;;  %v1051_v45 = vor.u32 %v1210_v38, %v1048_v39 }
  0x41   :  { %454 = vmatmul.bf16.gmra.mxu0 %v1007_v48  ;;  %499 = vmatmul.bf16.gmra.mxu2 %v1079_v50  ;;  %v1054_v48 = vld [vmem:[%s1886_s0 + $0x80] sm:$0xf]  ;;  %v1212_v50 = vld [vmem:[%s1886_s0 + $0x84] sm:$0xf] }
  0x42   :  { %553 = vmatmul.bf16.gmra.mxu1 %v1011_v49  ;;  %598 = vmatmul.bf16.gmra.mxu3 %v1083_v51  ;;  %v1213_v49 = vld [vmem:[%s1886_s0 + $0x84] sm:$0xf0]  ;;  %v1056_v51 = vld [vmem:[%s1886_s0 + $0x88] sm:$0xf0] }
  0x43   :  { %v1055_v56 = vor.u32 %v1213_v49, %v1054_v48  ;;  %v1059_v57 = vor.u32 %v1212_v50, %v1056_v51 }
  0x51   :  { %459 = vmatmul.bf16.gmra.mxu0 %v1015_v60  ;;  %504 = vmatmul.bf16.gmra.mxu2 %v1087_v62  ;;  %v1127_v60 = vor.u32 %v1231_v53, %v1126_v52 }
  0x52   :  { %558 = vmatmul.bf16.gmra.mxu1 %v1019_v61  ;;  %603 = vmatmul.bf16.gmra.mxu3 %v1091_v63  ;;  %v1131_v61 = vor.u32 %v1230_v54, %v1128_v55  ;;  %v1664_v63 = vld [vmem:[%s1887_s2] ss:$0 sm:$0xff] }
  0x61   :  { %464 = vmatmul.bf16.gmra.mxu0 %v1023_v8  ;;  %509 = vmatmul.bf16.gmra.mxu2 %v1095_v10 }
  0x62   :  { %563 = vmatmul.bf16.gmra.mxu1 %v1027_v9  ;;  %608 = vmatmul.bf16.gmra.mxu3 %v1099_v11 }
  0x71   :  { %469 = vmatmul.bf16.gmra.mxu0 %v1031_v20  ;;  %514 = vmatmul.bf16.gmra.mxu2 %v1103_v22 }
  0x72   :  { %568 = vmatmul.bf16.gmra.mxu1 %v1035_v21  ;;  %613 = vmatmul.bf16.gmra.mxu3 %v1107_v23 }
  0x81   :  { %474 = vmatmul.bf16.gmra.mxu0 %v1039_v32  ;;  %519 = vmatmul.bf16.gmra.mxu2 %v1111_v34 }
  0x82   :  { %573 = vmatmul.bf16.gmra.mxu1 %v1043_v33  ;;  %618 = vmatmul.bf16.gmra.mxu3 %v1115_v35 }
  0x91   :  { %479 = vmatmul.bf16.gmra.mxu0 %v1047_v44  ;;  %524 = vmatmul.bf16.gmra.mxu2 %v1119_v46 }
  0x92   :  { %578 = vmatmul.bf16.gmra.mxu1 %v1051_v45  ;;  %623 = vmatmul.bf16.gmra.mxu3 %v1123_v47 }
  0x9e   :  { %v445_v58 = vpop.f32.mrf.mxu0 }
  0x9f   :  { %v544_v59 = vpop.f32.mrf.mxu1 }
  0xa0   :  { %v545_v62 = vadd.f32 %v544_v59, %v445_v58 }
  0xa1   :  { %484 = vmatmul.bf16.gmra.mxu0 %v1055_v56  ;;  %529 = vmatmul.bf16.gmra.mxu2 %v1127_v60 }
  0xa2   :  { %583 = vmatmul.bf16.gmra.mxu1 %v1059_v57  ;;  %628 = vmatmul.bf16.gmra.mxu3 %v1131_v61  ;;  %v749_v5 = vadd.f32 %v1664_v63, %v545_v62  ;;  %v898_v6 = vmul.f32 %v545_v62, %v545_v62 }
  0xa4   :  { %v490_v0 = vpop.f32.mrf.mxu2 }
  0xa5   :  { %v589_v1 = vpop.f32.mrf.mxu3 }
  0xa6   :  { %v447_v2 = vpop.f32.mrf.mxu0  ;;  %v1668_v10 = vadd.f32 %v589_v1, %v490_v0 }
  0xa7   :  { %v546_v3 = vpop.f32.mrf.mxu1 }
  0xa8   :  { %v547_v4 = vadd.f32 %v546_v3, %v447_v2  ;;  %v767_v17 = vadd.f32 %v1664_v63, %v1668_v10 }
  0xaa   :  { %v750_v7 = vadd.f32 %v1664_v63, %v547_v4  ;;  %v857_v8 = vadd.f32 %v547_v4, %v545_v62  ;;  %v899_v9 = vmul.f32 %v547_v4, %v547_v4 }
  0xac   :  { %v1251_v11 = vpack.c.bf16 %v750_v7, %v749_v5  ;;  %v934_v12 = vadd.f32 %v899_v9, %v898_v6  ;;  %v492_v13 = vpop.f32.mrf.mxu2 }
  0xad   :  { %v591_v14 = vpop.f32.mrf.mxu3 }
  0xae   :  { %1252 = vst [vmem:[%s1888_s3] sm:$0xff] %v1251_v11   ;;  %v450_v15 = vpop.f32.mrf.mxu0  ;;  %v1675_v18 = vadd.f32 %v591_v14, %v492_v13 }
  0xaf   :  { %v549_v16 = vpop.f32.mrf.mxu1 }
  0xb0   :  { %v550_v19 = vadd.f32 %v549_v16, %v450_v15  ;;  %v768_v20 = vadd.f32 %v1664_v63, %v1675_v18 }
  0xb2   :  { %v858_v21 = vadd.f32 %v857_v8, %v550_v19  ;;  %v900_v22 = vmul.f32 %v550_v19, %v550_v19  ;;  %v1296_v23 = vpack.c.bf16 %v768_v20, %v767_v17  ;;  %v751_v30 = vadd.f32 %v1664_v63, %v550_v19 }
  0xb4   :  { %v935_v24 = vadd.f32 %v934_v12, %v900_v22  ;;  %1346 = vst [vmem:[%s1888_s3 + $0x48] sm:$0xff] %v1296_v23   ;;  %v495_v25 = vpop.f32.mrf.mxu2 }
  0xb5   :  { %v594_v26 = vpop.f32.mrf.mxu3 }
  0xb6   :  { %v452_v27 = vpop.f32.mrf.mxu0  ;;  %v1684_v34 = vadd.f32 %v594_v26, %v495_v25 }
  0xb7   :  { %v551_v28 = vpop.f32.mrf.mxu1 }
  0xb8   :  { %v552_v29 = vadd.f32 %v551_v28, %v452_v27  ;;  %v769_v41 = vadd.f32 %v1664_v63, %v1684_v34 }
  0xba   :  { %v752_v31 = vadd.f32 %v1664_v63, %v552_v29  ;;  %v859_v32 = vadd.f32 %v858_v21, %v552_v29  ;;  %v901_v33 = vmul.f32 %v552_v29, %v552_v29 }
  0xbc   :  { %v1256_v35 = vpack.c.bf16 %v752_v31, %v751_v30  ;;  %v936_v36 = vadd.f32 %v935_v24, %v901_v33  ;;  %v497_v37 = vpop.f32.mrf.mxu2 }
  0xbd   :  { %v596_v38 = vpop.f32.mrf.mxu3 }
  0xbe   :  { %1338 = vst [vmem:[%s1888_s3 + $0x8] sm:$0xff] %v1256_v35   ;;  %v455_v39 = vpop.f32.mrf.mxu0  ;;  %v1691_v42 = vadd.f32 %v596_v38, %v497_v37 }
  0xbf   :  { %v554_v40 = vpop.f32.mrf.mxu1 }
  0xc0   :  { %v555_v43 = vadd.f32 %v554_v40, %v455_v39  ;;  %v770_v44 = vadd.f32 %v1664_v63, %v1691_v42 }
  0xc2   :  { %v860_v45 = vadd.f32 %v859_v32, %v555_v43  ;;  %v902_v46 = vmul.f32 %v555_v43, %v555_v43  ;;  %v1301_v47 = vpack.c.bf16 %v770_v44, %v769_v41  ;;  %v753_v54 = vadd.f32 %v1664_v63, %v555_v43 }
  0xc4   :  { %v937_v48 = vadd.f32 %v936_v36, %v902_v46  ;;  %1347 = vst [vmem:[%s1888_s3 + $0x50] sm:$0xff] %v1301_v47   ;;  %v500_v49 = vpop.f32.mrf.mxu2 }
  0xc5   :  { %v599_v50 = vpop.f32.mrf.mxu3 }
  0xc6   :  { %v457_v51 = vpop.f32.mrf.mxu0  ;;  %v1702_v58 = vadd.f32 %v599_v50, %v500_v49 }
  0xc7   :  { %v556_v52 = vpop.f32.mrf.mxu1 }
  0xc8   :  { %v557_v53 = vadd.f32 %v556_v52, %v457_v51  ;;  %v771_v2 = vadd.f32 %v1664_v63, %v1702_v58 }
  0xca   :  { %v754_v55 = vadd.f32 %v1664_v63, %v557_v53  ;;  %v1700_v56 = vadd.f32 %v860_v45, %v557_v53  ;;  %v903_v57 = vmul.f32 %v557_v53, %v557_v53 }
  0xcc   :  { %v1261_v59 = vpack.c.bf16 %v754_v55, %v753_v54  ;;  %v1704_v60 = vadd.f32 %v937_v48, %v903_v57  ;;  %v502_v61 = vpop.f32.mrf.mxu2 }
  0xcd   :  { %v601_v62 = vpop.f32.mrf.mxu3 }
  0xce   :  { %1339 = vst [vmem:[%s1888_s3 + $0x10] sm:$0xff] %v1261_v59   ;;  %v460_v0 = vpop.f32.mrf.mxu0  ;;  %v1711_v3 = vadd.f32 %v601_v62, %v502_v61 }
  0xcf   :  { %v559_v1 = vpop.f32.mrf.mxu1 }
  0xd0   :  { %v772_v4 = vadd.f32 %v1664_v63, %v1711_v3  ;;  %v1718_v6 = vadd.f32 %v559_v1, %v460_v0 }
  0xd2   :  { %v1306_v5 = vpack.c.bf16 %v772_v4, %v771_v2  ;;  %v755_v13 = vadd.f32 %v1664_v63, %v1718_v6 }
  0xd4   :  { %1348 = vst [vmem:[%s1888_s3 + $0x58] sm:$0xff] %v1306_v5   ;;  %v505_v7 = vpop.f32.mrf.mxu2 }
  0xd5   :  { %v604_v8 = vpop.f32.mrf.mxu3 }
  0xd6   :  { %v462_v9 = vpop.f32.mrf.mxu0  ;;  %v1726_v15 = vadd.f32 %v604_v8, %v505_v7 }
  0xd7   :  { %v561_v11 = vpop.f32.mrf.mxu1 }
  0xd8   :  { %v1720_v12 = vadd.f32 %v561_v11, %v462_v9  ;;  %v773_v22 = vadd.f32 %v1664_v63, %v1726_v15 }
  0xda   :  { %v756_v14 = vadd.f32 %v1664_v63, %v1720_v12 }
  0xdc   :  { %v1266_v16 = vpack.c.bf16 %v756_v14, %v755_v13  ;;  %v507_v17 = vpop.f32.mrf.mxu2 }
  0xdd   :  { %v606_v19 = vpop.f32.mrf.mxu3 }
  0xde   :  { %1340 = vst [vmem:[%s1888_s3 + $0x18] sm:$0xff] %v1266_v16   ;;  %v465_v20 = vpop.f32.mrf.mxu0  ;;  %v1733_v23 = vadd.f32 %v606_v19, %v507_v17 }
  0xdf   :  { %v564_v21 = vpop.f32.mrf.mxu1 }
  0xe0   :  { %v774_v24 = vadd.f32 %v1664_v63, %v1733_v23  ;;  %v1740_v26 = vadd.f32 %v564_v21, %v465_v20 }
  0xe2   :  { %v1311_v25 = vpack.c.bf16 %v774_v24, %v773_v22  ;;  %v757_v32 = vadd.f32 %v1664_v63, %v1740_v26 }
  0xe4   :  { %1349 = vst [vmem:[%s1888_s3 + $0x60] sm:$0xff] %v1311_v25   ;;  %v510_v27 = vpop.f32.mrf.mxu2 }
  0xe5   :  { %v609_v28 = vpop.f32.mrf.mxu3 }
  0xe6   :  { %v467_v29 = vpop.f32.mrf.mxu0  ;;  %v1748_v35 = vadd.f32 %v609_v28, %v510_v27  ;;  %v904_v28 = vmul.f32 %v1718_v6, %v1718_v6 }
  0xe7   :  { %v566_v30 = vpop.f32.mrf.mxu1 }
  0xe8   :  { %v1742_v31 = vadd.f32 %v566_v30, %v467_v29  ;;  %v775_v41 = vadd.f32 %v1664_v63, %v1748_v35  ;;  %v905_v30 = vmul.f32 %v1720_v12, %v1720_v12 }
  0xea   :  { %v758_v33 = vadd.f32 %v1664_v63, %v1742_v31 }
  0xec   :  { %v1271_v36 = vpack.c.bf16 %v758_v33, %v757_v32  ;;  %v512_v37 = vpop.f32.mrf.mxu2  ;;  %v862_v33 = vadd.f32 %v1700_v56, %v1718_v6  ;;  %v907_v56 = vmul.f32 %v1742_v31, %v1742_v31 }
  0xed   :  { %v611_v38 = vpop.f32.mrf.mxu3 }
  0xee   :  { %1341 = vst [vmem:[%s1888_s3 + $0x20] sm:$0xff] %v1271_v36   ;;  %v470_v39 = vpop.f32.mrf.mxu0  ;;  %v1755_v43 = vadd.f32 %v611_v38, %v512_v37  ;;  %v939_v36 = vadd.f32 %v1704_v60, %v904_v28  ;;  %v906_v37 = vmul.f32 %v1740_v26, %v1740_v26  ;;  %v863_v38 = vadd.f32 %v862_v33, %v1720_v12 }
  0xef   :  { %v569_v40 = vpop.f32.mrf.mxu1 }
  0xf0   :  { %v776_v44 = vadd.f32 %v1664_v63, %v1755_v43  ;;  %v570_v46 = vadd.f32 %v569_v40, %v470_v39 }
  0xf2   :  { %v1316_v45 = vpack.c.bf16 %v776_v44, %v775_v41  ;;  %v759_v52 = vadd.f32 %v1664_v63, %v570_v46  ;;  %v940_v44 = vadd.f32 %v939_v36, %v905_v30 }
  0xf4   :  { %1350 = vst [vmem:[%s1888_s3 + $0x68] sm:$0xff] %v1316_v45   ;;  %v515_v47 = vpop.f32.mrf.mxu2  ;;  %v941_v6 = vadd.f32 %v940_v44, %v906_v37 }
  0xf5   :  { %v614_v48 = vpop.f32.mrf.mxu3 }
  0xf6   :  { %v472_v49 = vpop.f32.mrf.mxu0  ;;  %v1764_v54 = vadd.f32 %v614_v48, %v515_v47  ;;  %v864_v48 = vadd.f32 %v863_v38, %v1740_v26 }
  0xf7   :  { %v571_v50 = vpop.f32.mrf.mxu1 }
  0xf8   :  { %v572_v51 = vadd.f32 %v571_v50, %v472_v49  ;;  %v777_v0 = vadd.f32 %v1664_v63, %v1764_v54  ;;  %v865_v49 = vadd.f32 %v864_v48, %v1742_v31  ;;  %v908_v50 = vmul.f32 %v570_v46, %v570_v46 }
  0xfa   :  { %v760_v53 = vadd.f32 %v1664_v63, %v572_v51 }
  0xfc   :  { %v1276_v55 = vpack.c.bf16 %v760_v53, %v759_v52  ;;  %v517_v57 = vpop.f32.mrf.mxu2 }
  0xfd   :  { %v616_v59 = vpop.f32.mrf.mxu3 }
  0xfe   :  { %1342 = vst [vmem:[%s1888_s3 + $0x28] sm:$0xff] %v1276_v55   ;;  %v475_v61 = vpop.f32.mrf.mxu0  ;;  %v1771_v1 = vadd.f32 %v616_v59, %v517_v57  ;;  %v942_v55 = vadd.f32 %v941_v6, %v907_v56  ;;  %v866_v57 = vadd.f32 %v865_v49, %v570_v46  ;;  %v909_v59 = vmul.f32 %v572_v51, %v572_v51 }
  0xff   :  { %v574_v62 = vpop.f32.mrf.mxu1  ;;  %v916_v56 = vmul.f32 %v1668_v10, %v1668_v10 }
 0x100   :  { %v778_v2 = vadd.f32 %v1664_v63, %v1771_v1  ;;  %v575_v5 = vadd.f32 %v574_v62, %v475_v61  ;;  %v943_v62 = vadd.f32 %v942_v55, %v908_v50  ;;  %v867_v26 = vadd.f32 %v866_v57, %v572_v51 }
 0x101   :  { %v917_v50 = vmul.f32 %v1675_v18, %v1675_v18 }
 0x102   :  { %v1321_v4 = vpack.c.bf16 %v778_v2, %v777_v0  ;;  %v761_v14 = vadd.f32 %v1664_v63, %v575_v5  ;;  %v910_v0 = vmul.f32 %v575_v5, %v575_v5  ;;  %v868_v46 = vadd.f32 %v867_v26, %v575_v5 }
 0x104   :  { %1351 = vst [vmem:[%s1888_s3 + $0x70] sm:$0xff] %v1321_v4   ;;  %v520_v7 = vpop.f32.mrf.mxu2 }
 0x105   :  { %v619_v8 = vpop.f32.mrf.mxu3 }
 0x106   :  { %v477_v9 = vpop.f32.mrf.mxu0  ;;  %v1780_v17 = vadd.f32 %v619_v8, %v520_v7 }
 0x107   :  { %v576_v11 = vpop.f32.mrf.mxu1 }
 0x108   :  { %v577_v13 = vadd.f32 %v576_v11, %v477_v9  ;;  %v779_v25 = vadd.f32 %v1664_v63, %v1780_v17  ;;  %v944_v11 = vadd.f32 %v943_v62, %v909_v59  ;;  %v918_v62 = vmul.f32 %v1684_v34, %v1684_v34 }
 0x10a   :  { %v762_v16 = vadd.f32 %v1664_v63, %v577_v13 }
 0x10c   :  { %v1281_v19 = vpack.c.bf16 %v762_v16, %v761_v14  ;;  %v522_v20 = vpop.f32.mrf.mxu2  ;;  %v911_v14 = vmul.f32 %v577_v13, %v577_v13  ;;  %v945_v16 = vadd.f32 %v944_v11, %v910_v0 }
 0x10d   :  { %v621_v21 = vpop.f32.mrf.mxu3 }
 0x10e   :  { %1343 = vst [vmem:[%s1888_s3 + $0x30] sm:$0xff] %v1281_v19   ;;  %v480_v22 = vpop.f32.mrf.mxu0  ;;  %v1787_v27 = vadd.f32 %v621_v21, %v522_v20  ;;  %v869_v19 = vadd.f32 %v868_v46, %v577_v13 }
 0x10f   :  { %v579_v24 = vpop.f32.mrf.mxu1 }
 0x110   :  { %v780_v29 = vadd.f32 %v1664_v63, %v1787_v27  ;;  %v580_v39 = vadd.f32 %v579_v24, %v480_v22  ;;  %v946_v24 = vadd.f32 %v945_v16, %v911_v14 }
 0x112   :  { %v1326_v32 = vpack.c.bf16 %v780_v29, %v779_v25  ;;  %v763_v52 = vadd.f32 %v1664_v63, %v580_v39  ;;  %v912_v20 = vmul.f32 %v580_v39, %v580_v39  ;;  %v870_v25 = vadd.f32 %v869_v19, %v580_v39 }
 0x114   :  { %1352 = vst [vmem:[%s1888_s3 + $0x78] sm:$0xff] %v1326_v32   ;;  %v525_v40 = vpop.f32.mrf.mxu2  ;;  %v947_v29 = vadd.f32 %v946_v24, %v912_v20  ;;  %v924_v20 = vmul.f32 %v1748_v35, %v1748_v35 }
 0x115   :  { %v624_v41 = vpop.f32.mrf.mxu3 }
 0x116   :  { %v482_v45 = vpop.f32.mrf.mxu0  ;;  %v1810_v53 = vadd.f32 %v624_v41, %v525_v40 }
 0x117   :  { %v581_v47 = vpop.f32.mrf.mxu1 }
 0x118   :  { %v582_v60 = vadd.f32 %v581_v47, %v482_v45  ;;  %v781_v8 = vadd.f32 %v1664_v63, %v1810_v53 }
 0x11a   :  { %v764_v12 = vadd.f32 %v1664_v63, %v582_v60  ;;  %v913_v28 = vmul.f32 %v582_v60, %v582_v60  ;;  %v871_v30 = vadd.f32 %v870_v25, %v582_v60 }
 0x11c   :  { %v1286_v61 = vpack.c.bf16 %v764_v12, %v763_v52  ;;  %v527_v2 = vpop.f32.mrf.mxu2  ;;  %v948_v38 = vadd.f32 %v947_v29, %v913_v28 }
 0x11d   :  { %v626_v31 = vpop.f32.mrf.mxu3 }
 0x11e   :  { %1344 = vst [vmem:[%s1888_s3 + $0x38] sm:$0xff] %v1286_v61   ;;  %v485_v4 = vpop.f32.mrf.mxu0  ;;  %v1817_v9 = vadd.f32 %v626_v31, %v527_v2  ;;  %v919_v2 = vmul.f32 %v1691_v42, %v1691_v42 }
 0x11f   :  { %v584_v7 = vpop.f32.mrf.mxu1 }
 0x120   :  { %v782_v51 = vadd.f32 %v1664_v63, %v1817_v9  ;;  %v585_v21 = vadd.f32 %v584_v7, %v485_v4  ;;  %v920_v7 = vmul.f32 %v1702_v58, %v1702_v58 }
 0x122   :  { %v1331_v22 = vpack.c.bf16 %v782_v51, %v781_v8  ;;  %v914_v32 = vmul.f32 %v585_v21, %v585_v21  ;;  %v872_v40 = vadd.f32 %v871_v30, %v585_v21  ;;  %v765_v41 = vadd.f32 %v1664_v63, %v585_v21 }
 0x124   :  { %1353 = vst [vmem:[%s1888_s3 + $0x80] sm:$0xff] %v1331_v22   ;;  %v530_v5 = vpop.f32.mrf.mxu2  ;;  %v949_v44 = vadd.f32 %v948_v38, %v914_v32  ;;  %v930_v38 = vmul.f32 %v1810_v53, %v1810_v53 }
 0x125   :  { %v629_v33 = vpop.f32.mrf.mxu3 }
 0x126   :  { %v487_v36 = vpop.f32.mrf.mxu0  ;;  %v630_v48 = vadd.f32 %v629_v33, %v530_v5 }
 0x127   :  { %v586_v37 = vpop.f32.mrf.mxu1 }
 0x128   :  { %v587_v13 = vadd.f32 %v586_v37, %v487_v36  ;;  %v783_v59 = vadd.f32 %v1664_v63, %v630_v48 }
 0x12a   :  { %v766_v39 = vadd.f32 %v1664_v63, %v587_v13  ;;  %v873_v45 = vadd.f32 %v872_v40, %v587_v13  ;;  %v915_v47 = vmul.f32 %v587_v13, %v587_v13 }
 0x12c   :  { %v1291_v60 = vpack.c.bf16 %v766_v39, %v765_v41  ;;  %v874_v6 = vadd.f32 %v873_v45, %v1668_v10  ;;  %v950_v49 = vadd.f32 %v949_v44, %v915_v47  ;;  %v532_v55 = vpop.f32.mrf.mxu2  ;;  %v931_v41 = vmul.f32 %v1817_v9, %v1817_v9 }
 0x12d   :  { %v631_v57 = vpop.f32.mrf.mxu3  ;;  %v932_v39 = vmul.f32 %v630_v48, %v630_v48 }
 0x12e   :  { %1345 = vst [vmem:[%s1888_s3 + $0x40] sm:$0xff] %v1291_v60   ;;  %v875_v52 = vadd.f32 %v874_v6, %v1675_v18  ;;  %v951_v12 = vadd.f32 %v950_v49, %v916_v56  ;;  %v632_v61 = vadd.f32 %v631_v57, %v532_v55 }
 0x130   :  { %v876_v10 = vadd.f32 %v875_v52, %v1684_v34  ;;  %v952_v26 = vadd.f32 %v951_v12, %v917_v50  ;;  %v784_v0 = vadd.f32 %v1664_v63, %v632_v61  ;;  %v921_v63 = vmul.f32 %v1711_v3, %v1711_v3 }
 0x131   :  { %v933_v56 = vmul.f32 %v632_v61, %v632_v61 }
 0x132   :  { %v877_v31 = vadd.f32 %v876_v10, %v1691_v42  ;;  %v953_v18 = vadd.f32 %v952_v26, %v918_v62  ;;  %v1336_v4 = vpack.c.bf16 %v784_v0, %v783_v59  ;;  %v922_v42 = vmul.f32 %v1726_v15, %v1726_v15 }
 0x134   :  { %v878_v8 = vadd.f32 %v877_v31, %v1702_v58  ;;  %v954_v11 = vadd.f32 %v953_v18, %v919_v2  ;;  %1354 = vst [vmem:[%s1888_s3 + $0x88] sm:$0xff] %v1336_v4   ;;  %v923_v58 = vmul.f32 %v1733_v23, %v1733_v23 }
 0x136   :  { %v879_v34 = vadd.f32 %v878_v8, %v1711_v3  ;;  %v955_v46 = vadd.f32 %v954_v11, %v920_v7  ;;  %v925_v3 = vmul.f32 %v1755_v43, %v1755_v43 }
 0x138   :  { %v880_v14 = vadd.f32 %v879_v34, %v1726_v15  ;;  %v956_v51 = vadd.f32 %v955_v46, %v921_v63  ;;  %v926_v15 = vmul.f32 %v1764_v54, %v1764_v54 }
 0x13a   :  { %v957_v16 = vadd.f32 %v956_v51, %v922_v42  ;;  %v881_v19 = vadd.f32 %v880_v14, %v1733_v23  ;;  %v927_v23 = vmul.f32 %v1771_v1, %v1771_v1 }
 0x13c   :  { %v882_v21 = vadd.f32 %v881_v19, %v1748_v35  ;;  %v958_v22 = vadd.f32 %v957_v16, %v923_v58  ;;  %v928_v35 = vmul.f32 %v1780_v17, %v1780_v17 }
 0x13e   :  { %v883_v24 = vadd.f32 %v882_v21, %v1755_v43  ;;  %v959_v25 = vadd.f32 %v958_v22, %v924_v20  ;;  %v929_v43 = vmul.f32 %v1787_v27, %v1787_v27 }
 0x140   :  { %v884_v28 = vadd.f32 %v883_v24, %v1764_v54  ;;  %v960_v29 = vadd.f32 %v959_v25, %v925_v3 }
 0x142   :  { %v885_v30 = vadd.f32 %v884_v28, %v1771_v1  ;;  %v961_v32 = vadd.f32 %v960_v29, %v926_v15 }
 0x144   :  { %v886_v5 = vadd.f32 %v885_v30, %v1780_v17  ;;  %v962_v33 = vadd.f32 %v961_v32, %v927_v23 }
 0x146   :  { %v887_v36 = vadd.f32 %v886_v5, %v1787_v27  ;;  %v963_v37 = vadd.f32 %v962_v33, %v928_v35 }
 0x148   :  { %v888_v54 = vadd.f32 %v887_v36, %v1810_v53  ;;  %v964_v40 = vadd.f32 %v963_v37, %v929_v43 }
 0x14a   :  { %v965_v1 = vadd.f32 %v964_v40, %v930_v38  ;;  %v889_v13 = vadd.f32 %v888_v54, %v1817_v9 }
 0x14c   :  { %v966_v17 = vadd.f32 %v965_v1, %v931_v41  ;;  %v890_v44 = vadd.f32 %v889_v13, %v630_v48 }
 0x14e   :  { %v967_v45 = vadd.f32 %v966_v17, %v932_v39  ;;  %v891_v47 = vadd.f32 %v890_v44, %v632_v61 }
 0x150   :  { %v892_v27 = vrot.slane %v891_v47, 4  ;;  %v968_v60 = vadd.f32 %v967_v45, %v933_v56 }
 0x152   :  { %v893_v6 = vadd.f32 %v892_v27, %v891_v47  ;;  %v969_v49 = vrot.slane %v968_v60, 4 }
 0x154   :  { %v894_v50 = vrot.slane %v893_v6, 2  ;;  %v970_v52 = vadd.f32 %v969_v49, %v968_v60 }
 0x156   :  { %v895_v53 = vadd.f32 %v894_v50, %v893_v6  ;;  %v971_v12 = vrot.slane %v970_v52, 2 }
 0x158   :  { %v896_v55 = vrot.slane %v895_v53, 1  ;;  %v972_v57 = vadd.f32 %v971_v12, %v970_v52 }
 0x15a   :  { %v973_v59 = vrot.slane %v972_v57, 1  ;;  %v897_v62 = vadd.f32 %v896_v55, %v895_v53 }
 0x15c   :  { %v974_v9 = vadd.f32 %v973_v59, %v972_v57 }
 0x15e   :  { %v976_v10 = vsel %vm975_vm0, %v897_v62, %v974_v9 }
 0x15f   :  { %v978_v48 = vsel %vm977_vm1, %v976_v10, 0.0 }
 0x160   :  { %979 = vst [vmem:[%s1889_s4] sm:$0xff] %v978_v48 }

// kernel: contextnet_apply.34
= control target key start
LH: loop header
LB: loop body
LE: loop exit
PB: predicated region body
PF: predicated region fallthrough
CT: control target
= control target key end

     0   :  { %s1223_s1 = inlined_call_operand.vmem [shape: f32[1,8,128], index: 1, kind: input, shape index: {}]   ;;  %s1224_s2 = inlined_call_operand.vmem [shape: f32[1,128], index: 2, kind: input, shape index: {}]   ;;  %s1225_s0 = inlined_call_operand.vmem [shape: bf16[288,128], index: 0, kind: input, shape index: {}]   ;;  %s1226_s3 = inlined_call_operand.vmem [shape: bf16[288,128], index: 3, kind: input, shape index: {}]   ;;  %s1227_s4 = inlined_call_operand.vmem [shape: bf16[288,128], index: 4, kind: output, shape index: {}]  }
   0x1   :  { %v17_v0 = vld [vmem:[%s1223_s1] sm:$0xff]  ;;  %v775_v9 = vld [vmem:[%s1225_s0 + $0x8] sm:$0xff]   ;;  %v782_v11 = vld [vmem:[%s1225_s0 + $0x10] sm:$0xff]  }
   0x2   :  { %v19_v1 = vmul.f32 0.0034722222, %v17_v0  ;;  %v37_v7 = vld [vmem:[%s1224_s2] sm:$0x1]  ;;  %v787_v12 = vld [vmem:[%s1225_s0 + $0x18] sm:$0xff]   ;;  %v452_v17 = vunpack.c.l.bf16 %v775_v9  ;;  %v805_v18 = vld [vmem:[%s1226_s3 + $0x8] sm:$0xff]   ;;  %v453_v19 = vunpack.c.h.bf16 %v775_v9  ;;  %v456_v20 = vunpack.c.l.bf16 %v782_v11 }
   0x3   :  { %v770_v8 = vld [vmem:[%s1225_s0] sm:$0xff]   ;;  %v457_v21 = vunpack.c.h.bf16 %v782_v11  ;;  %v813_v22 = vld [vmem:[%s1226_s3 + $0x10] sm:$0xff]   ;;  %v460_v23 = vunpack.c.l.bf16 %v787_v12  ;;  %v819_v24 = vld [vmem:[%s1226_s3 + $0x18] sm:$0xff]   ;;  %v461_v27 = vunpack.c.h.bf16 %v787_v12  ;;  %v524_v34 = vunpack.c.l.bf16 %v805_v18 }
   0x4   :  { %v20_v2 = vmul.f32 %v19_v1, %v19_v1  ;;  %v777_v10 = vadd.f32 %v37_v7, %v19_v1  ;;  %v792_v13 = vld [vmem:[%s1225_s0 + $0x20] sm:$0xff]   ;;  %v448_v14 = vunpack.c.l.bf16 %v770_v8  ;;  %v449_v15 = vunpack.c.h.bf16 %v770_v8  ;;  %v828_v30 = vld [vmem:[%s1225_s0 + $0x28] sm:$0xff]   ;;  %v837_v35 = vld [vmem:[%s1225_s0 + $0x30] sm:$0xff]  }
   0x5   :  { %v799_v16 = vld [vmem:[%s1226_s3] sm:$0xff]   ;;  %v464_v28 = vunpack.c.l.bf16 %v792_v13  ;;  %v465_v29 = vunpack.c.h.bf16 %v792_v13  ;;  %v842_v36 = vld [vmem:[%s1225_s0 + $0x38] sm:$0xff]   ;;  %v525_v37 = vunpack.c.h.bf16 %v805_v18  ;;  %v528_v38 = vunpack.c.l.bf16 %v813_v22  ;;  %v864_v47 = vld [vmem:[%s1226_s3 + $0x28] sm:$0xff]  }
   0x6   :  { %v22_v3 = vrot.slane %v20_v2, 7  ;;  %v39_v26 = vsub.f32 0.0, %v777_v10  ;;  %v520_v32 = vunpack.c.l.bf16 %v799_v16  ;;  %v521_v33 = vunpack.c.h.bf16 %v799_v16  ;;  %v851_v41 = vld [vmem:[%s1225_s0 + $0x40] sm:$0xff]   ;;  %v871_v50 = vld [vmem:[%s1226_s3 + $0x30] sm:$0xff]   ;;  %v879_v54 = vld [vmem:[%s1226_s3 + $0x38] sm:$0xff]  }
   0x7   :  { %v529_v39 = vunpack.c.h.bf16 %v813_v22  ;;  %v532_v40 = vunpack.c.l.bf16 %v819_v24  ;;  %v533_v43 = vunpack.c.h.bf16 %v819_v24  ;;  %v857_v44 = vld [vmem:[%s1226_s3 + $0x20] sm:$0xff]   ;;  %v468_v45 = vunpack.c.l.bf16 %v828_v30  ;;  %v885_v56 = vld [vmem:[%s1225_s0 + $0x48] sm:$0xff]   ;;  %v894_v61 = vld [vmem:[%s1225_s0 + $0x50] sm:$0xff]  }
   0x8   :  { %v24_v4 = vsub.f32 %v19_v1, %v22_v3  ;;  %v469_v46 = vunpack.c.h.bf16 %v828_v30  ;;  %v472_v48 = vunpack.c.l.bf16 %v837_v35  ;;  %v473_v49 = vunpack.c.h.bf16 %v837_v35  ;;  %v899_v62 = vld [vmem:[%s1225_s0 + $0x58] sm:$0xff]   ;;  %v907_v3 = vld [vmem:[%s1226_s3 + $0x40] sm:$0xff]   ;;  %v944_v59 = vld [vmem:[%s1225_s0 + $0x68] sm:$0xff]  }
   0x9   :  { %v476_v51 = vunpack.c.l.bf16 %v842_v36  ;;  %v477_v52 = vunpack.c.h.bf16 %v842_v36  ;;  %v536_v57 = vunpack.c.l.bf16 %v857_v44  ;;  %v537_v58 = vunpack.c.h.bf16 %v857_v44 }
   0xa   :  { %v25_v5 = vmax.f32 %v24_v4, 0.0  ;;  %v912_v4 = vld [vmem:[%s1225_s0 + $0x60] sm:$0xff]   ;;  %v501_v2 = vunpack.c.h.bf16 %v944_v59  ;;  %v1230_v44 = vunpack.c.l.bf16 %v871_v50 }
   0xc   :  { %v761_v6 = vadd.f32 1e-05, %v25_v5 }
   0xe   :  { %731 = vrsqrt.f32 %v761_v6  ;;  %vm33_vm0 = vweird.f32 %v761_v6 }
  0x14   :  { %v732_v25 = vpop.eup %731 }
  0x15   :  { %v28_v31 = vmul.f32 %v732_v25, %v761_v6  ;;  %vm34_vm1 = vweird.f32 %v732_v25  ;;  %v931_v6 = vld [vmem:[%s1226_s3 + $0x50] sm:$0xff]  }
  0x16   :  { %vm35_vm2 = vmor %vm33_vm0, %vm34_vm1 }
  0x17   :  { %v29_v42 = vmul.f32 %v732_v25, %v28_v31 }
  0x19   :  { %v30_v53 = vmul.f32 0.5, %v29_v42 }
  0x1b   :  { %v31_v63 = vsub.f32 1.5, %v30_v53  ;;  %v924_v53 = vld [vmem:[%s1226_s3 + $0x48] sm:$0xff]  }
  0x1c   :  { %v556_v55 = vunpack.c.l.bf16 %v924_v53 }
  0x1d   :  { %v32_v60 = vmul.f32 %v732_v25, %v31_v63 }
  0x1f   :  { %v36_v63 = vsel %vm35_vm2, %v732_v25, %v32_v60  ;;  %v953_v25 = vld [vmem:[%s1226_s3 + $0x58] sm:$0xff]  }
  0x20   :  { %v41_v7 = vrot.slane %v36_v63, 1  ;;  %v946_v31 = vperm.slane %v36_v63, 1  ;;  %v565_v0 = vunpack.c.h.bf16 %v953_v25 }
  0x22   :  { %v43_v63 = vmul.f32 %v41_v7, %v39_v26  ;;  %v117_v5 = vmul.f32 %v448_v14, %v946_v31  ;;  %v118_v42 = vmul.f32 %v449_v15, %v946_v31  ;;  %v119_v60 = vmul.f32 %v452_v17, %v946_v31 }
  0x23   :  { %v120_v1 = vmul.f32 %v453_v19, %v946_v31  ;;  %v121_v10 = vmul.f32 %v456_v20, %v946_v31  ;;  %v122_v14 = vmul.f32 %v457_v21, %v946_v31  ;;  %v123_v8 = vmul.f32 %v460_v23, %v946_v31 }
  0x24   :  { %v982_v15 = vperm.slane %v43_v63, 0  ;;  %v124_v17 = vmul.f32 %v461_v27, %v946_v31  ;;  %v125_v9 = vmul.f32 %v464_v28, %v946_v31  ;;  %v126_v19 = vmul.f32 %v465_v29, %v946_v31 }
  0x25   :  { %v127_v11 = vmul.f32 %v468_v45, %v946_v31  ;;  %v128_v20 = vmul.f32 %v469_v46, %v946_v31  ;;  %v129_v12 = vmul.f32 %v472_v48, %v946_v31  ;;  %v130_v21 = vmul.f32 %v473_v49, %v946_v31 }
  0x26   :  { %v154_v23 = vadd.f32 %v982_v15, %v117_v5  ;;  %v155_v13 = vadd.f32 %v982_v15, %v118_v42  ;;  %v156_v26 = vadd.f32 %v982_v15, %v119_v60  ;;  %v157_v27 = vadd.f32 %v982_v15, %v120_v1 }
  0x27   :  { %v158_v28 = vadd.f32 %v982_v15, %v121_v10  ;;  %v159_v29 = vadd.f32 %v982_v15, %v122_v14  ;;  %v160_v30 = vadd.f32 %v982_v15, %v123_v8  ;;  %v161_v45 = vadd.f32 %v982_v15, %v124_v17 }
  0x28   :  { %v190_v46 = vmax.f32 %v154_v23, 0.0  ;;  %v191_v48 = vmax.f32 %v155_v13, 0.0  ;;  %v192_v35 = vmax.f32 %v156_v26, 0.0  ;;  %v193_v49 = vmax.f32 %v157_v27, 0.0 }
  0x29   :  { %v194_v7 = vmax.f32 %v158_v28, 0.0  ;;  %v195_v5 = vmax.f32 %v159_v29, 0.0  ;;  %v196_v63 = vmax.f32 %v160_v30, 0.0  ;;  %v197_v42 = vmax.f32 %v161_v45, 0.0 }
  0x2a   :  { %v298_v60 = vadd.f32 %v520_v32, %v190_v46  ;;  %v299_v1 = vadd.f32 %v521_v33, %v191_v48  ;;  %v300_v10 = vadd.f32 %v524_v34, %v192_v35  ;;  %v301_v14 = vadd.f32 %v525_v37, %v193_v49 }
  0x2b   :  { %v302_v8 = vadd.f32 %v528_v38, %v194_v7  ;;  %v303_v17 = vadd.f32 %v529_v39, %v195_v5  ;;  %v304_v23 = vadd.f32 %v532_v40, %v196_v63  ;;  %v305_v32 = vadd.f32 %v533_v43, %v197_v42 }
  0x2c   :  { %v334_v16 = vmax.f32 %v298_v60, 0.0  ;;  %v335_v33 = vmax.f32 %v299_v1, 0.0  ;;  %v336_v13 = vmax.f32 %v300_v10, 0.0  ;;  %v337_v26 = vmax.f32 %v301_v14, 0.0 }
  0x2d   :  { %v338_v34 = vmax.f32 %v302_v8, 0.0  ;;  %v339_v27 = vmax.f32 %v303_v17, 0.0  ;;  %v340_v18 = vmax.f32 %v304_v23, 0.0  ;;  %v341_v37 = vmax.f32 %v305_v32, 0.0 }
  0x2e   :  { %v593_v28 = vpack.c.bf16 %v335_v33, %v334_v16  ;;  %v598_v29 = vpack.c.bf16 %v337_v26, %v336_v13  ;;  %v162_v38 = vadd.f32 %v982_v15, %v125_v9  ;;  %v163_v22 = vadd.f32 %v982_v15, %v126_v19 }
  0x2f   :  { %v603_v39 = vpack.c.bf16 %v339_v27, %v338_v34  ;;  %v608_v30 = vpack.c.bf16 %v341_v37, %v340_v18  ;;  %v164_v40 = vadd.f32 %v982_v15, %v127_v11  ;;  %v165_v24 = vadd.f32 %v982_v15, %v128_v20 }
  0x30   :  { %594 = vst [vmem:[%s1227_s4] sm:$0xff] %v593_v28   ;;  %v198_v43 = vmax.f32 %v162_v38, 0.0  ;;  %v199_v45 = vmax.f32 %v163_v22, 0.0  ;;  %v166_v46 = vadd.f32 %v982_v15, %v129_v12  ;;  %v167_v48 = vadd.f32 %v982_v15, %v130_v21 }
  0x31   :  { %714 = vst [vmem:[%s1227_s4 + $0x8] sm:$0xff] %v598_v29   ;;  %v200_v9 = vmax.f32 %v164_v40, 0.0  ;;  %v201_v19 = vmax.f32 %v165_v24, 0.0  ;;  %v131_v11 = vmul.f32 %v476_v51, %v946_v31  ;;  %v132_v20 = vmul.f32 %v477_v52, %v946_v31 }
  0x32   :  { %715 = vst [vmem:[%s1227_s4 + $0x10] sm:$0xff] %v603_v39   ;;  %v306_v12 = vadd.f32 %v536_v57, %v198_v43  ;;  %v307_v21 = vadd.f32 %v537_v58, %v199_v45  ;;  %v202_v35 = vmax.f32 %v166_v46, 0.0  ;;  %v203_v49 = vmax.f32 %v167_v48, 0.0 }
  0x33   :  { %716 = vst [vmem:[%s1227_s4 + $0x18] sm:$0xff] %v608_v30   ;;  %v1228_v51 = vunpack.c.l.bf16 %v864_v47  ;;  %v1229_v52 = vunpack.c.h.bf16 %v864_v47  ;;  %v168_v5 = vadd.f32 %v982_v15, %v131_v11  ;;  %v169_v63 = vadd.f32 %v982_v15, %v132_v20 }
  0x34   :  { %v342_v57 = vmax.f32 %v306_v12, 0.0  ;;  %v343_v42 = vmax.f32 %v307_v21, 0.0  ;;  %v310_v58 = vadd.f32 %v1230_v44, %v202_v35  ;;  %v1231_v60 = vunpack.c.h.bf16 %v871_v50 }
  0x35   :  { %v308_v36 = vadd.f32 %v1228_v51, %v200_v9  ;;  %v309_v7 = vadd.f32 %v1229_v52, %v201_v19  ;;  %v204_v8 = vmax.f32 %v168_v5, 0.0  ;;  %v205_v17 = vmax.f32 %v169_v63, 0.0 }
  0x36   :  { %v311_v1 = vadd.f32 %v1231_v60, %v203_v49  ;;  %v613_v23 = vpack.c.bf16 %v343_v42, %v342_v57  ;;  %v346_v32 = vmax.f32 %v310_v58, 0.0  ;;  %v1232_v16 = vunpack.c.l.bf16 %v851_v41 }
  0x37   :  { %v344_v10 = vmax.f32 %v308_v36, 0.0  ;;  %v345_v14 = vmax.f32 %v309_v7, 0.0  ;;  %v1233_v26 = vunpack.c.l.bf16 %v879_v54  ;;  %v1234_v27 = vunpack.c.h.bf16 %v879_v54 }
  0x38   :  { %v347_v47 = vmax.f32 %v311_v1, 0.0  ;;  %v133_v33 = vmul.f32 %v1232_v16, %v946_v31  ;;  %v1235_v50 = vunpack.c.h.bf16 %v851_v41  ;;  %717 = vst [vmem:[%s1227_s4 + $0x20] sm:$0xff] %v613_v23   ;;  %v1236_v38 = vunpack.c.l.bf16 %v885_v56 }
  0x39   :  { %v618_v13 = vpack.c.bf16 %v345_v14, %v344_v10  ;;  %v312_v34 = vadd.f32 %v1233_v26, %v204_v8  ;;  %v313_v18 = vadd.f32 %v1234_v27, %v205_v17  ;;  %v1237_v39 = vunpack.c.h.bf16 %v885_v56 }
  0x3a   :  { %v134_v37 = vmul.f32 %v1235_v50, %v946_v31  ;;  %v623_v28 = vpack.c.bf16 %v347_v47, %v346_v32  ;;  %v170_v29 = vadd.f32 %v982_v15, %v133_v33  ;;  %v135_v22 = vmul.f32 %v1236_v38, %v946_v31  ;;  %v709_v38 = vld [vmem:[%s1226_s3 + $0x68] sm:$0xff]  }
  0x3b   :  { %v136_v54 = vmul.f32 %v1237_v39, %v946_v31  ;;  %718 = vst [vmem:[%s1227_s4 + $0x28] sm:$0xff] %v618_v13   ;;  %v348_v41 = vmax.f32 %v312_v34, 0.0  ;;  %v349_v30 = vmax.f32 %v313_v18, 0.0  ;;  %v1238_v24 = vunpack.c.l.bf16 %v894_v61 }
  0x3c   :  { %v171_v40 = vadd.f32 %v982_v15, %v134_v37  ;;  %719 = vst [vmem:[%s1227_s4 + $0x30] sm:$0xff] %v623_v28   ;;  %v206_v45 = vmax.f32 %v170_v29, 0.0  ;;  %v172_v56 = vadd.f32 %v982_v15, %v135_v22  ;;  %v1239_v48 = vunpack.c.h.bf16 %v894_v61 }
  0x3d   :  { %v137_v43 = vmul.f32 %v1238_v24, %v946_v31  ;;  %v173_v46 = vadd.f32 %v982_v15, %v136_v54  ;;  %v628_v19 = vpack.c.bf16 %v349_v30, %v348_v41  ;;  %v1240_v12 = vunpack.c.l.bf16 %v899_v62 }
  0x3e   :  { %v138_v9 = vmul.f32 %v1239_v48, %v946_v31  ;;  %v207_v11 = vmax.f32 %v171_v40, 0.0  ;;  %v1241_v35 = vunpack.c.l.bf16 %v907_v3  ;;  %v208_v51 = vmax.f32 %v172_v56, 0.0 }
  0x3f   :  { %v174_v20 = vadd.f32 %v982_v15, %v137_v43  ;;  %v139_v21 = vmul.f32 %v1240_v12, %v946_v31  ;;  %v209_v36 = vmax.f32 %v173_v46, 0.0  ;;  %720 = vst [vmem:[%s1227_s4 + $0x38] sm:$0xff] %v628_v19   ;;  %v1242_v61 = vunpack.c.h.bf16 %v907_v3  ;;  %v694_v12 = vld [vmem:[%s1225_s0 + $0x78] sm:$0xff]  }
  0x40   :  { %v314_v49 = vadd.f32 %v1241_v35, %v206_v45  ;;  %v175_v52 = vadd.f32 %v982_v15, %v138_v9  ;;  %v1243_v63 = vunpack.c.h.bf16 %v899_v62  ;;  %v316_v58 = vadd.f32 %v556_v55, %v208_v51 }
  0x41   :  { %v315_v7 = vadd.f32 %v1242_v61, %v207_v11  ;;  %v210_v5 = vmax.f32 %v174_v20, 0.0  ;;  %v176_v42 = vadd.f32 %v982_v15, %v139_v21  ;;  %v1244_v60 = vunpack.c.h.bf16 %v924_v53  ;;  %v708_v53 = vld [vmem:[%s1226_s3 + $0x60] sm:$0xff]   ;;  %v711_v61 = vld [vmem:[%s1226_s3 + $0x78] sm:$0xff]  }
  0x42   :  { %v140_v57 = vmul.f32 %v1243_v63, %v946_v31  ;;  %v350_v44 = vmax.f32 %v314_v49, 0.0  ;;  %v211_v10 = vmax.f32 %v175_v52, 0.0  ;;  %v1245_v8 = vunpack.c.l.bf16 %v931_v6 }
  0x43   :  { %v317_v1 = vadd.f32 %v1244_v60, %v209_v36  ;;  %v351_v14 = vmax.f32 %v315_v7, 0.0  ;;  %v212_v23 = vmax.f32 %v176_v42, 0.0  ;;  %v352_v32 = vmax.f32 %v316_v58, 0.0 }
  0x44   :  { %v318_v3 = vadd.f32 %v1245_v8, %v210_v5  ;;  %v177_v17 = vadd.f32 %v982_v15, %v140_v57  ;;  %v1246_v47 = vunpack.c.h.bf16 %v931_v6  ;;  %v1247_v33 = vunpack.c.l.bf16 %v912_v4 }
  0x45   :  { %v353_v62 = vmax.f32 %v317_v1, 0.0  ;;  %v633_v13 = vpack.c.bf16 %v351_v14, %v350_v44  ;;  %v1248_v27 = vunpack.c.l.bf16 %v953_v25  ;;  %v1249_v6 = vunpack.c.h.bf16 %v912_v4  ;;  %v693_v4 = vld [vmem:[%s1225_s0 + $0x70] sm:$0xff]  }
  0x46   :  { %v319_v16 = vadd.f32 %v1246_v47, %v211_v10  ;;  %v141_v55 = vmul.f32 %v1247_v33, %v946_v31  ;;  %v354_v26 = vmax.f32 %v318_v3, 0.0  ;;  %v213_v34 = vmax.f32 %v177_v17, 0.0  ;;  %v695_v3 = vld [vmem:[%s1225_s0 + $0x80] sm:$0xff]  }
  0x47   :  { %v320_v18 = vadd.f32 %v1248_v27, %v212_v23  ;;  %v638_v50 = vpack.c.bf16 %v353_v62, %v352_v32  ;;  %v142_v28 = vmul.f32 %v1249_v6, %v946_v31  ;;  %721 = vst [vmem:[%s1227_s4 + $0x40] sm:$0xff] %v633_v13   ;;  %v568_v54 = vunpack.c.l.bf16 %v708_v53  ;;  %v712_v47 = vld [vmem:[%s1226_s3 + $0x80] sm:$0xff]  }
  0x48   :  { %v355_v37 = vmax.f32 %v319_v16, 0.0  ;;  %v178_v29 = vadd.f32 %v982_v15, %v141_v55  ;;  %v321_v22 = vadd.f32 %v565_v0, %v213_v34  ;;  %v569_v41 = vunpack.c.h.bf16 %v708_v53  ;;  %v710_v0 = vld [vmem:[%s1226_s3 + $0x70] sm:$0xff]  }
  0x49   :  { %v356_v39 = vmax.f32 %v320_v18, 0.0  ;;  %722 = vst [vmem:[%s1227_s4 + $0x48] sm:$0xff] %v638_v50   ;;  %v179_v40 = vadd.f32 %v982_v15, %v142_v28  ;;  %v1250_v43 = vunpack.c.l.bf16 %v944_v59  ;;  %v144_v56 = vmul.f32 %v501_v2, %v946_v31  ;;  %v696_v18 = vld [vmem:[%s1225_s0 + $0x88] sm:$0xff]  }
  0x4a   :  { %v643_v30 = vpack.c.bf16 %v355_v37, %v354_v26  ;;  %v214_v24 = vmax.f32 %v178_v29, 0.0  ;;  %v357_v45 = vmax.f32 %v321_v22, 0.0  ;;  %v572_v46 = vunpack.c.l.bf16 %v709_v38 }
  0x4b   :  { %v143_v25 = vmul.f32 %v1250_v43, %v946_v31  ;;  %v573_v48 = vunpack.c.h.bf16 %v709_v38  ;;  %v215_v9 = vmax.f32 %v179_v40, 0.0  ;;  %v504_v20 = vunpack.c.l.bf16 %v693_v4 }
  0x4c   :  { %723 = vst [vmem:[%s1227_s4 + $0x50] sm:$0xff] %v643_v30   ;;  %v322_v19 = vadd.f32 %v568_v54, %v214_v24  ;;  %v648_v21 = vpack.c.bf16 %v357_v45, %v356_v39  ;;  %v181_v35 = vadd.f32 %v982_v15, %v144_v56  ;;  %v505_v59 = vunpack.c.h.bf16 %v693_v4 }
  0x4d   :  { %v180_v11 = vadd.f32 %v982_v15, %v143_v25  ;;  %v576_v2 = vunpack.c.l.bf16 %v710_v0  ;;  %v323_v49 = vadd.f32 %v569_v41, %v215_v9  ;;  %v145_v52 = vmul.f32 %v504_v20, %v946_v31 }
  0x4e   :  { %v358_v51 = vmax.f32 %v322_v19, 0.0  ;;  %724 = vst [vmem:[%s1227_s4 + $0x58] sm:$0xff] %v648_v21   ;;  %v217_v7 = vmax.f32 %v181_v35, 0.0  ;;  %v146_v5 = vmul.f32 %v505_v59, %v946_v31  ;;  %v577_v63 = vunpack.c.h.bf16 %v710_v0  ;;  %v713_v0 = vld [vmem:[%s1226_s3 + $0x88] sm:$0xff]  }
  0x4f   :  { %v216_v36 = vmax.f32 %v180_v11, 0.0  ;;  %v508_v57 = vunpack.c.l.bf16 %v694_v12  ;;  %v359_v42 = vmax.f32 %v323_v49, 0.0  ;;  %v182_v58 = vadd.f32 %v982_v15, %v145_v52 }
  0x50   :  { %v509_v60 = vunpack.c.h.bf16 %v694_v12  ;;  %v325_v1 = vadd.f32 %v573_v48, %v217_v7  ;;  %v183_v10 = vadd.f32 %v982_v15, %v146_v5  ;;  %v580_v8 = vunpack.c.l.bf16 %v711_v61 }
  0x51   :  { %v324_v44 = vadd.f32 %v572_v46, %v216_v36  ;;  %v147_v14 = vmul.f32 %v508_v57, %v946_v31  ;;  %v653_v17 = vpack.c.bf16 %v359_v42, %v358_v51  ;;  %v218_v32 = vmax.f32 %v182_v58, 0.0 }
  0x52   :  { %v148_v62 = vmul.f32 %v509_v60, %v946_v31  ;;  %v361_v16 = vmax.f32 %v325_v1, 0.0  ;;  %v219_v33 = vmax.f32 %v183_v10, 0.0  ;;  %v581_v53 = vunpack.c.h.bf16 %v711_v61 }
  0x53   :  { %v360_v23 = vmax.f32 %v324_v44, 0.0  ;;  %v184_v55 = vadd.f32 %v982_v15, %v147_v14  ;;  %725 = vst [vmem:[%s1227_s4 + $0x60] sm:$0xff] %v653_v17   ;;  %v326_v13 = vadd.f32 %v576_v2, %v218_v32  ;;  %v512_v34 = vunpack.c.l.bf16 %v695_v3 }
  0x54   :  { %v185_v26 = vadd.f32 %v982_v15, %v148_v62  ;;  %v513_v27 = vunpack.c.h.bf16 %v695_v3  ;;  %v327_v37 = vadd.f32 %v577_v63, %v219_v33  ;;  %v584_v28 = vunpack.c.l.bf16 %v712_v47 }
  0x55   :  { %v658_v50 = vpack.c.bf16 %v361_v16, %v360_v23  ;;  %v220_v6 = vmax.f32 %v184_v55, 0.0  ;;  %v362_v29 = vmax.f32 %v326_v13, 0.0  ;;  %v149_v22 = vmul.f32 %v512_v34, %v946_v31 }
  0x56   :  { %v221_v38 = vmax.f32 %v185_v26, 0.0  ;;  %v150_v39 = vmul.f32 %v513_v27, %v946_v31  ;;  %v363_v54 = vmax.f32 %v327_v37, 0.0  ;;  %v585_v4 = vunpack.c.h.bf16 %v712_v47 }
  0x57   :  { %726 = vst [vmem:[%s1227_s4 + $0x68] sm:$0xff] %v658_v50   ;;  %v328_v41 = vadd.f32 %v580_v8, %v220_v6  ;;  %v516_v30 = vunpack.c.l.bf16 %v696_v18  ;;  %v186_v24 = vadd.f32 %v982_v15, %v149_v22  ;;  %v517_v25 = vunpack.c.h.bf16 %v696_v18 }
  0x58   :  { %v329_v40 = vadd.f32 %v581_v53, %v221_v38  ;;  %v187_v43 = vadd.f32 %v982_v15, %v150_v39  ;;  %v663_v45 = vpack.c.bf16 %v363_v54, %v362_v29  ;;  %v588_v12 = vunpack.c.l.bf16 %v713_v0 }
  0x59   :  { %v364_v56 = vmax.f32 %v328_v41, 0.0  ;;  %v151_v46 = vmul.f32 %v516_v30, %v946_v31  ;;  %v222_v9 = vmax.f32 %v186_v24, 0.0  ;;  %v152_v11 = vmul.f32 %v517_v25, %v946_v31 }
  0x5a   :  { %v365_v48 = vmax.f32 %v329_v40, 0.0  ;;  %v223_v19 = vmax.f32 %v187_v43, 0.0  ;;  %727 = vst [vmem:[%s1227_s4 + $0x70] sm:$0xff] %v663_v45   ;;  %v589_v21 = vunpack.c.h.bf16 %v713_v0 }
  0x5b   :  { %v188_v20 = vadd.f32 %v982_v15, %v151_v46  ;;  %v330_v59 = vadd.f32 %v584_v28, %v222_v9  ;;  %v189_v49 = vadd.f32 %v982_v15, %v152_v11 }
  0x5c   :  { %v668_v35 = vpack.c.bf16 %v365_v48, %v364_v56  ;;  %v331_v2 = vadd.f32 %v585_v4, %v223_v19 }
  0x5d   :  { %v224_v51 = vmax.f32 %v188_v20, 0.0  ;;  %v366_v36 = vmax.f32 %v330_v59, 0.0  ;;  %v225_v52 = vmax.f32 %v189_v49, 0.0 }
  0x5e   :  { %728 = vst [vmem:[%s1227_s4 + $0x78] sm:$0xff] %v668_v35   ;;  %v367_v31 = vmax.f32 %v331_v2, 0.0 }
  0x5f   :  { %v332_v61 = vadd.f32 %v588_v12, %v224_v51  ;;  %v333_v5 = vadd.f32 %v589_v21, %v225_v52 }
  0x60   :  { %v673_v7 = vpack.c.bf16 %v367_v31, %v366_v36 }
  0x61   :  { %v368_v63 = vmax.f32 %v332_v61, 0.0  ;;  %v369_v57 = vmax.f32 %v333_v5, 0.0 }
  0x62   :  { %729 = vst [vmem:[%s1227_s4 + $0x80] sm:$0xff] %v673_v7  }
  0x63   :  { %v678_v42 = vpack.c.bf16 %v369_v57, %v368_v63 }
  0x65   :  { %730 = vst [vmem:[%s1227_s4 + $0x88] sm:$0xff] %v678_v42  }

// kernel: contextnet_apply.31
= control target key start
LH: loop header
LB: loop body
LE: loop exit
PB: predicated region body
PF: predicated region fallthrough
CT: control target
= control target key end

     0   :  { %vm1824_vm0 = vcmask 1040384   ;;  %vm1826_vm1 = vcmask 1041408   ;;  %s3600_s1 = inlined_call_operand.vmem [shape: bf16[640,128], index: 1, kind: input, shape index: {}]   ;;  %s3601_s0 = inlined_call_operand.vmem [shape: bf16[288,640], index: 0, kind: input, shape index: {}]   ;;  %s3602_s2 = inlined_call_operand.vmem [shape: f32[1,128], index: 2, kind: input, shape index: {}]   ;;  %s3603_s3 = inlined_call_operand.vmem [shape: bf16[288,128], index: 3, kind: output, shape index: {0}]   ;;  %s3604_s4 = inlined_call_operand.vmem [shape: f32[1,8,128], index: 4, kind: output, shape index: {1}]  }
   0x1   :  { %v2454_v0 = vld [vmem:[%s3600_s1 + $0x38] sm:$0xff]  ;;  %v2453_v1 = vld [vmem:[%s3600_s1 + $0x30] sm:$0xff]  ;;  %v2452_v2 = vld [vmem:[%s3600_s1 + $0x28] sm:$0xff] }
   0x2   :  { %2594 = vmatpush.bf16.msra.mxu1 %v2454_v0  ;;  %2595 = vmatpush.bf16.msra.mxu2 %v2454_v0  ;;  %v2451_v3 = vld [vmem:[%s3600_s1 + $0x20] sm:$0xff]  ;;  %v2450_v4 = vld [vmem:[%s3600_s1 + $0x18] sm:$0xff]  ;;  %v2449_v5 = vld [vmem:[%s3600_s1 + $0x10] sm:$0xff] }
   0x3   :  { %988 = vmatpush.bf16.msra.mxu0 %v2454_v0  ;;  %2596 = vmatpush.bf16.msra.mxu3 %v2454_v0  ;;  %v2448_v6 = vld [vmem:[%s3600_s1 + $0x8] sm:$0xff]  ;;  %v2447_v7 = vld [vmem:[%s3600_s1] sm:$0xff]  ;;  %v2384_v9 = vld [vmem:[%s3601_s0 + $0xd8] sm:$0xf0] }
   0x4   :  { %v1939_v8 = vld [vmem:[%s3601_s0 + $0xc8] sm:$0xf]  ;;  %v2039_v10 = vld [vmem:[%s3601_s0 + $0x190] sm:$0xf]  ;;  %v2409_v11 = vld [vmem:[%s3601_s0 + $0x1a0] sm:$0xf0] }
   0x5   :  { %v2470_v12 = vld [vmem:[%s3600_s1 + $0xb8] sm:$0xff]  ;;  %v1839_v13 = vld [vmem:[%s3601_s0] sm:$0xf]  ;;  %v2359_v14 = vld [vmem:[%s3601_s0 + $0x10] sm:$0xf0]  ;;  %v1940_v17 = vor.u32 %v2384_v9, %v1939_v8  ;;  %v2040_v18 = vor.u32 %v2409_v11, %v2039_v10 }
   0x6   :  { %2597 = vmatpush.bf16.msra.mxu1 %v2453_v1  ;;  %2598 = vmatpush.bf16.msra.mxu2 %v2453_v1  ;;  %v2462_v15 = vld [vmem:[%s3600_s1 + $0x78] sm:$0xff]  ;;  %v1840_v19 = vor.u32 %v2359_v14, %v1839_v13  ;;  %v2434_v21 = vld [vmem:[%s3601_s0 + $0x268] sm:$0xf0]  ;;  %v2469_v22 = vld [vmem:[%s3600_s1 + $0xb0] sm:$0xff] }
   0x7   :  { %989 = vmatpush.bf16.msra.mxu0 %v2453_v1  ;;  %2599 = vmatpush.bf16.msra.mxu3 %v2453_v1  ;;  %v2486_v16 = vld [vmem:[%s3600_s1 + $0x138] sm:$0xff]  ;;  %v2461_v23 = vld [vmem:[%s3600_s1 + $0x70] sm:$0xff]  ;;  %v2468_v27 = vld [vmem:[%s3600_s1 + $0xa8] sm:$0xff] }
   0x8   :  { %v2139_v20 = vld [vmem:[%s3601_s0 + $0x258] sm:$0xf]  ;;  %v2485_v24 = vld [vmem:[%s3600_s1 + $0x130] sm:$0xff]  ;;  %v2460_v28 = vld [vmem:[%s3600_s1 + $0x68] sm:$0xff] }
   0x9   :  { %v2140_v25 = vor.u32 %v2434_v21, %v2139_v20  ;;  %v2478_v26 = vld [vmem:[%s3600_s1 + $0xf8] sm:$0xff]  ;;  %v2484_v29 = vld [vmem:[%s3600_s1 + $0x128] sm:$0xff]  ;;  %v2477_v30 = vld [vmem:[%s3600_s1 + $0xf0] sm:$0xff] }
   0xa   :  { %2600 = vmatpush.bf16.msra.mxu1 %v2452_v2  ;;  %2601 = vmatpush.bf16.msra.mxu2 %v2452_v2  ;;  %v2467_v31 = vld [vmem:[%s3600_s1 + $0xa0] sm:$0xff]  ;;  %v1959_v34 = vld [vmem:[%s3601_s0 + $0xf0] sm:$0xf]  ;;  %v2059_v36 = vld [vmem:[%s3601_s0 + $0x1b8] sm:$0xf] }
   0xb   :  { %990 = vmatpush.bf16.msra.mxu0 %v2452_v2  ;;  %2602 = vmatpush.bf16.msra.mxu3 %v2452_v2  ;;  %v2459_v32 = vld [vmem:[%s3600_s1 + $0x60] sm:$0xff]  ;;  %v2414_v37 = vld [vmem:[%s3601_s0 + $0x1c8] sm:$0xf0]  ;;  %v1859_v39 = vld [vmem:[%s3601_s0 + $0x28] sm:$0xf] }
   0xc   :  { %v2483_v33 = vld [vmem:[%s3600_s1 + $0x120] sm:$0xff]  ;;  %v2476_v38 = vld [vmem:[%s3600_s1 + $0xe8] sm:$0xff]  ;;  %v2364_v40 = vld [vmem:[%s3601_s0 + $0x38] sm:$0xf0]  ;;  %v2060_v44 = vor.u32 %v2414_v37, %v2059_v36 }
   0xd   :  { %v2389_v35 = vld [vmem:[%s3601_s0 + $0x100] sm:$0xf0]  ;;  %v2466_v41 = vld [vmem:[%s3600_s1 + $0x98] sm:$0xff]  ;;  %v1860_v45 = vor.u32 %v2364_v40, %v1859_v39  ;;  %v2159_v46 = vld [vmem:[%s3601_s0 + $0x280] sm:$0xf] }
   0xe   :  { %2603 = vmatpush.bf16.msra.mxu1 %v2451_v3  ;;  %2604 = vmatpush.bf16.msra.mxu2 %v2451_v3  ;;  %v2458_v42 = vld [vmem:[%s3600_s1 + $0x58] sm:$0xff]  ;;  %v1960_v43 = vor.u32 %v2389_v35, %v1959_v34  ;;  %v2439_v47 = vld [vmem:[%s3601_s0 + $0x290] sm:$0xf0]  ;;  %v2475_v51 = vld [vmem:[%s3600_s1 + $0xe0] sm:$0xff] }
   0xf   :  { %991 = vmatpush.bf16.msra.mxu0 %v2451_v3  ;;  %2605 = vmatpush.bf16.msra.mxu3 %v2451_v3  ;;  %v2160_v48 = vor.u32 %v2439_v47, %v2159_v46  ;;  %v2465_v49 = vld [vmem:[%s3600_s1 + $0x90] sm:$0xff]  ;;  %v2482_v50 = vld [vmem:[%s3600_s1 + $0x118] sm:$0xff]  ;;  %v2464_v53 = vld [vmem:[%s3600_s1 + $0x88] sm:$0xff] }
  0x10   :  { %v2457_v52 = vld [vmem:[%s3600_s1 + $0x50] sm:$0xff]  ;;  %v2474_v55 = vld [vmem:[%s3600_s1 + $0xd8] sm:$0xff]  ;;  %v2394_v57 = vld [vmem:[%s3601_s0 + $0x128] sm:$0xf0] }
  0x11   :  { %v2481_v54 = vld [vmem:[%s3600_s1 + $0x110] sm:$0xff]  ;;  %v1979_v56 = vld [vmem:[%s3601_s0 + $0x118] sm:$0xf]  ;;  %v2079_v58 = vld [vmem:[%s3601_s0 + $0x1e0] sm:$0xf] }
  0x12   :  { %2606 = vmatpush.bf16.msra.mxu1 %v2450_v4  ;;  %2607 = vmatpush.bf16.msra.mxu2 %v2450_v4  ;;  %v2419_v59 = vld [vmem:[%s3601_s0 + $0x1f0] sm:$0xf0]  ;;  %v1879_v61 = vld [vmem:[%s3601_s0 + $0x50] sm:$0xf]  ;;  %v2369_v62 = vld [vmem:[%s3601_s0 + $0x60] sm:$0xf0]  ;;  %v1980_v63 = vor.u32 %v2394_v57, %v1979_v56 }
  0x13   :  { %992 = vmatpush.bf16.msra.mxu0 %v2450_v4  ;;  %2608 = vmatpush.bf16.msra.mxu3 %v2450_v4  ;;  %v2473_v60 = vld [vmem:[%s3600_s1 + $0xd0] sm:$0xff]  ;;  %v2080_v0 = vor.u32 %v2419_v59, %v2079_v58  ;;  %v1880_v1 = vor.u32 %v2369_v62, %v1879_v61  ;;  %v2179_v2 = vld [vmem:[%s3601_s0 + $0x2a8] sm:$0xf]  ;;  %v2444_v3 = vld [vmem:[%s3601_s0 + $0x2b8] sm:$0xf0] }
  0x14   :  { %v2180_v4 = vor.u32 %v2444_v3, %v2179_v2  ;;  %v2480_v8 = vld [vmem:[%s3600_s1 + $0x108] sm:$0xff]  ;;  %v2455_v9 = vld [vmem:[%s3600_s1 + $0x40] sm:$0xff]  ;;  %v2399_v13 = vld [vmem:[%s3601_s0 + $0x150] sm:$0xf0] }
  0x15   :  { %v2471_v10 = vld [vmem:[%s3600_s1 + $0xc0] sm:$0xff]  ;;  %v2099_v14 = vld [vmem:[%s3601_s0 + $0x208] sm:$0xf]  ;;  %v2358_v21 = vld [vmem:[%s3601_s0 + $0xc] sm:$0xf] }
  0x16   :  { %2609 = vmatpush.bf16.msra.mxu1 %v2449_v5  ;;  %2610 = vmatpush.bf16.msra.mxu2 %v2449_v5  ;;  %v2479_v11 = vld [vmem:[%s3600_s1 + $0x100] sm:$0xff]  ;;  %v1869_v34 = vld [vmem:[%s3601_s0 + $0x44] sm:$0xf0]  ;;  %v1841_v37 = vld [vmem:[%s3601_s0 + $0x14] sm:$0xf0] }
  0x17   :  { %993 = vmatpush.bf16.msra.mxu0 %v2449_v5  ;;  %2611 = vmatpush.bf16.msra.mxu3 %v2449_v5  ;;  %v2456_v5 = vld [vmem:[%s3600_s1 + $0x48] sm:$0xff]  ;;  %v2357_v36 = vld [vmem:[%s3601_s0 + $0x4] sm:$0xf]  ;;  %v2360_v39 = vld [vmem:[%s3601_s0 + $0x18] sm:$0xf0] }
  0x18   :  { %v1855_v40 = vld [vmem:[%s3601_s0 + $0x10] sm:$0xf]  ;;  %v2373_v57 = vld [vmem:[%s3601_s0 + $0x84] sm:$0xf]  ;;  %v1909_v58 = vld [vmem:[%s3601_s0 + $0x94] sm:$0xf0] }
  0x19   :  { %v1889_v46 = vld [vmem:[%s3601_s0 + $0x6c] sm:$0xf0]  ;;  %v1912_v59 = vor.u32 %v2373_v57, %v1909_v58  ;;  %v1881_v61 = vld [vmem:[%s3601_s0 + $0x64] sm:$0xf0]  ;;  %v1887_v62 = vld [vmem:[%s3601_s0 + $0x58] sm:$0xf] }
  0x1a   :  { %2612 = vmatpush.bf16.msra.mxu1 %v2448_v6  ;;  %2613 = vmatpush.bf16.msra.mxu2 %v2448_v6  ;;  %v2393_v57 = vld [vmem:[%s3601_s0 + $0x124] sm:$0xf]  ;;  %v1989_v58 = vld [vmem:[%s3601_s0 + $0x134] sm:$0xf0] }
  0x1b   :  { %994 = vmatpush.bf16.msra.mxu0 %v2448_v6  ;;  %2614 = vmatpush.bf16.msra.mxu3 %v2448_v6  ;;  %v2472_v6 = vld [vmem:[%s3600_s1 + $0xc8] sm:$0xff] }
  0x1e   :  { %2615 = vmatpush.bf16.msra.mxu1 %v2447_v7  ;;  %2616 = vmatpush.bf16.msra.mxu2 %v2447_v7 }
  0x1f   :  { %995 = vmatpush.bf16.msra.mxu0 %v2447_v7  ;;  %2617 = vmatpush.bf16.msra.mxu3 %v2447_v7  ;;  %v2463_v7 = vld [vmem:[%s3600_s1 + $0x80] sm:$0xff] }
  0x21   :  { %1021 = vmatmul.bf16.vlgmr.msra.gmra.mxu1 %v1940_v17  ;;  %1046 = vmatmul.bf16.vlgmr.msra.gmra.mxu2 %v2040_v18  ;;  %v2374_v17 = vld [vmem:[%s3601_s0 + $0x88] sm:$0xf0] }
  0x22   :  { %1186 = vmatpush.bf16.msrb.mxu2 %v2470_v12  ;;  %1087 = vmatpush.bf16.msrb.mxu1 %v2462_v15  ;;  %v1999_v12 = vld [vmem:[%s3601_s0 + $0x140] sm:$0xf]  ;;  %v2424_v15 = vld [vmem:[%s3601_s0 + $0x218] sm:$0xf0] }
  0x23   :  { %1384 = vmatpush.bf16.msrb.mxu0 %v2486_v16  ;;  %1071 = vmatmul.bf16.vlgmr.msra.gmra.mxu3 %v2140_v25  ;;  %v1899_v16 = vld [vmem:[%s3601_s0 + $0x78] sm:$0xf]  ;;  %v2000_v18 = vor.u32 %v2399_v13, %v1999_v12  ;;  %v2404_v25 = vld [vmem:[%s3601_s0 + $0x178] sm:$0xf0]  ;;  %v1915_v12 = vld [vmem:[%s3601_s0 + $0x88] sm:$0xf] }
  0x24   :  { %996 = vmatmul.bf16.vlgmr.msra.gmra.mxu0 %v1840_v19  ;;  %1285 = vmatpush.bf16.msrb.mxu3 %v2478_v26  ;;  %v2100_v19 = vor.u32 %v2424_v15, %v2099_v14  ;;  %v1900_v20 = vor.u32 %v2374_v17, %v1899_v16  ;;  %v2119_v26 = vld [vmem:[%s3601_s0 + $0x230] sm:$0xf]  ;;  %v2376_v13 = vld [vmem:[%s3601_s0 + $0x98] sm:$0xf0] }
  0x25   :  { %v1916_v17 = vor.u32 %v2376_v13, %v1915_v12  ;;  %v2398_v13 = vld [vmem:[%s3601_s0 + $0x14c] sm:$0xf] }
  0x26   :  { %1187 = vmatpush.bf16.msrb.mxu2 %v2469_v22  ;;  %1088 = vmatpush.bf16.msrb.mxu1 %v2461_v23  ;;  %v1849_v22 = vld [vmem:[%s3601_s0 + $0x1c] sm:$0xf0] }
  0x27   :  { %1385 = vmatpush.bf16.msrb.mxu0 %v2485_v24  ;;  %v1852_v23 = vor.u32 %v2358_v21, %v1849_v22  ;;  %v2019_v24 = vld [vmem:[%s3601_s0 + $0x168] sm:$0xf] }
  0x28   :  { %1286 = vmatpush.bf16.msrb.mxu3 %v2477_v30  ;;  %v2020_v30 = vor.u32 %v2404_v25, %v2019_v24 }
  0x2a   :  { %1188 = vmatpush.bf16.msrb.mxu2 %v2468_v27  ;;  %1089 = vmatpush.bf16.msrb.mxu1 %v2460_v28  ;;  %v2429_v27 = vld [vmem:[%s3601_s0 + $0x240] sm:$0xf0]  ;;  %v1919_v28 = vld [vmem:[%s3601_s0 + $0xa0] sm:$0xf] }
  0x2b   :  { %1386 = vmatpush.bf16.msrb.mxu0 %v2484_v29  ;;  %v2379_v29 = vld [vmem:[%s3601_s0 + $0xb0] sm:$0xf0] }
  0x2c   :  { %1287 = vmatpush.bf16.msrb.mxu3 %v2476_v38  ;;  %v1847_v38 = vld [vmem:[%s3601_s0 + $0x8] sm:$0xf] }
  0x2e   :  { %1189 = vmatpush.bf16.msrb.mxu2 %v2467_v31  ;;  %1090 = vmatpush.bf16.msrb.mxu1 %v2459_v32  ;;  %v2120_v31 = vor.u32 %v2429_v27, %v2119_v26  ;;  %v1920_v32 = vor.u32 %v2379_v29, %v1919_v28  ;;  %v2377_v26 = vld [vmem:[%s3601_s0 + $0xa4] sm:$0xf]  ;;  %v1921_v27 = vld [vmem:[%s3601_s0 + $0xb4] sm:$0xf0]  ;;  %v1927_v28 = vld [vmem:[%s3601_s0 + $0xa8] sm:$0xf] }
  0x2f   :  { %1387 = vmatpush.bf16.msrb.mxu0 %v2483_v33  ;;  %v2363_v33 = vld [vmem:[%s3601_s0 + $0x34] sm:$0xf]  ;;  %v2380_v29 = vld [vmem:[%s3601_s0 + $0xb8] sm:$0xf0] }
  0x30   :  { %1288 = vmatpush.bf16.msrb.mxu3 %v2475_v51  ;;  %v1872_v35 = vor.u32 %v2363_v33, %v1869_v34  ;;  %v2365_v51 = vld [vmem:[%s3601_s0 + $0x40] sm:$0xf0]  ;;  %v1924_v33 = vor.u32 %v2377_v26, %v1921_v27  ;;  %v1928_v34 = vor.u32 %v2380_v29, %v1927_v28  ;;  %v2392_v28 = vld [vmem:[%s3601_s0 + $0x11c] sm:$0xf]  ;;  %v1981_v29 = vld [vmem:[%s3601_s0 + $0x12c] sm:$0xf0] }
  0x31   :  { %1026 = vmatmul.bf16.gmra.mxu1 %v1960_v43  ;;  %1051 = vmatmul.bf16.gmra.mxu2 %v2060_v44  ;;  %v1848_v43 = vor.u32 %v2360_v39, %v1847_v38  ;;  %v1969_v38 = vld [vmem:[%s3601_s0 + $0x10c] sm:$0xf0] }
  0x32   :  { %1190 = vmatpush.bf16.msrb.mxu2 %v2466_v41  ;;  %1091 = vmatpush.bf16.msrb.mxu1 %v2458_v42  ;;  %v2361_v41 = vld [vmem:[%s3601_s0 + $0x20] sm:$0xf0]  ;;  %v1844_v42 = vor.u32 %v2357_v36, %v1841_v37  ;;  %v2388_v37 = vld [vmem:[%s3601_s0 + $0xfc] sm:$0xf] }
  0x33   :  { %1388 = vmatpush.bf16.msrb.mxu0 %v2482_v50  ;;  %1076 = vmatmul.bf16.gmra.mxu3 %v2160_v48  ;;  %v1856_v44 = vor.u32 %v2361_v41, %v1855_v40  ;;  %v2362_v48 = vld [vmem:[%s3601_s0 + $0x2c] sm:$0xf]  ;;  %v1867_v50 = vld [vmem:[%s3601_s0 + $0x30] sm:$0xf]  ;;  %v1972_v41 = vor.u32 %v2388_v37, %v1969_v38  ;;  %v1984_v37 = vor.u32 %v2392_v28, %v1981_v29 }
  0x34   :  { %1001 = vmatmul.bf16.gmra.mxu0 %v1860_v45  ;;  %1289 = vmatpush.bf16.msrb.mxu3 %v2474_v55  ;;  %v2368_v45 = vld [vmem:[%s3601_s0 + $0x5c] sm:$0xf]  ;;  %v1868_v55 = vor.u32 %v2365_v51, %v1867_v50  ;;  %v1955_v50 = vld [vmem:[%s3601_s0 + $0xd8] sm:$0xf]  ;;  %v2386_v51 = vld [vmem:[%s3601_s0 + $0xe8] sm:$0xf0] }
  0x35   :  { %v1892_v47 = vor.u32 %v2368_v45, %v1889_v46  ;;  %v2382_v46 = vld [vmem:[%s3601_s0 + $0xcc] sm:$0xf] }
  0x36   :  { %1191 = vmatpush.bf16.msrb.mxu2 %v2465_v49  ;;  %1092 = vmatpush.bf16.msrb.mxu1 %v2457_v52  ;;  %v1861_v49 = vld [vmem:[%s3601_s0 + $0x3c] sm:$0xf0]  ;;  %v1875_v52 = vld [vmem:[%s3601_s0 + $0x38] sm:$0xf] }
  0x37   :  { %1389 = vmatpush.bf16.msrb.mxu0 %v2481_v54  ;;  %v1864_v54 = vor.u32 %v2362_v48, %v1861_v49  ;;  %v1947_v48 = vld [vmem:[%s3601_s0 + $0xd0] sm:$0xf]  ;;  %v2385_v49 = vld [vmem:[%s3601_s0 + $0xe0] sm:$0xf0] }
  0x38   :  { %1290 = vmatpush.bf16.msrb.mxu3 %v2473_v60  ;;  %v2367_v60 = vld [vmem:[%s3601_s0 + $0x54] sm:$0xf] }
  0x39   :  { %v1884_v2 = vor.u32 %v2367_v60, %v1881_v61  ;;  %v1992_v61 = vor.u32 %v2393_v57, %v1989_v58  ;;  %v2397_v58 = vld [vmem:[%s3601_s0 + $0x144] sm:$0xf] }
  0x3a   :  { %1192 = vmatpush.bf16.msrb.mxu2 %v2464_v53  ;;  %1093 = vmatpush.bf16.msrb.mxu1 %v2456_v5  ;;  %v2366_v53 = vld [vmem:[%s3601_s0 + $0x48] sm:$0xf0] }
  0x3b   :  { %1390 = vmatpush.bf16.msrb.mxu0 %v2480_v8  ;;  %v1876_v56 = vor.u32 %v2366_v53, %v1875_v52  ;;  %v2378_v5 = vld [vmem:[%s3601_s0 + $0xac] sm:$0xf]  ;;  %v2372_v8 = vld [vmem:[%s3601_s0 + $0x7c] sm:$0xf] }
  0x3c   :  { %1291 = vmatpush.bf16.msrb.mxu3 %v2472_v6  ;;  %v1929_v6 = vld [vmem:[%s3601_s0 + $0xbc] sm:$0xf0] }
  0x3e   :  { %1193 = vmatpush.bf16.msrb.mxu2 %v2463_v7  ;;  %1094 = vmatpush.bf16.msrb.mxu1 %v2455_v9  ;;  %v1932_v7 = vor.u32 %v2378_v5, %v1929_v6  ;;  %v1901_v9 = vld [vmem:[%s3601_s0 + $0x8c] sm:$0xf0]  ;;  %v2390_v5 = vld [vmem:[%s3601_s0 + $0x108] sm:$0xf0]  ;;  %v1975_v6 = vld [vmem:[%s3601_s0 + $0x100] sm:$0xf] }
  0x3f   :  { %1391 = vmatpush.bf16.msrb.mxu0 %v2479_v11  ;;  %v2375_v11 = vld [vmem:[%s3601_s0 + $0x90] sm:$0xf0]  ;;  %v1904_v14 = vor.u32 %v2372_v8, %v1901_v9 }
  0x40   :  { %1292 = vmatpush.bf16.msrb.mxu3 %v2471_v10  ;;  %v1907_v10 = vld [vmem:[%s3601_s0 + $0x80] sm:$0xf] }
  0x41   :  { %1031 = vmatmul.bf16.gmra.mxu1 %v1980_v63  ;;  %1056 = vmatmul.bf16.gmra.mxu2 %v2080_v0  ;;  %v2370_v63 = vld [vmem:[%s3601_s0 + $0x68] sm:$0xf0]  ;;  %v1895_v0 = vld [vmem:[%s3601_s0 + $0x60] sm:$0xf]  ;;  %v1908_v15 = vor.u32 %v2375_v11, %v1907_v10 }
  0x42   :  { %v1888_v3 = vor.u32 %v2370_v63, %v1887_v62 }
  0x43   :  { %1081 = vmatmul.bf16.gmra.mxu3 %v2180_v4 }
  0x44   :  { %1006 = vmatmul.bf16.gmra.mxu0 %v1880_v1  ;;  %v2371_v1 = vld [vmem:[%s3601_s0 + $0x70] sm:$0xf0] }
  0x45   :  { %v1896_v4 = vor.u32 %v2371_v1, %v1895_v0 }
  0x51   :  { %1036 = vmatmul.bf16.gmra.mxu1 %v2000_v18  ;;  %1061 = vmatmul.bf16.gmra.mxu2 %v2100_v19  ;;  %v2383_v18 = vld [vmem:[%s3601_s0 + $0xd4] sm:$0xf]  ;;  %v1949_v19 = vld [vmem:[%s3601_s0 + $0xe4] sm:$0xf0] }
  0x52   :  { %v1952_v21 = vor.u32 %v2383_v18, %v1949_v19 }
  0x53   :  { %1293 = vmatmul.bf16.vlgmr.msrb.gmra.mxu3 %v1852_v23 }
  0x54   :  { %1011 = vmatmul.bf16.gmra.mxu0 %v1900_v20 }
  0x61   :  { %1041 = vmatmul.bf16.gmra.mxu1 %v2020_v30  ;;  %1066 = vmatmul.bf16.gmra.mxu2 %v2120_v31  ;;  %v1935_v30 = vld [vmem:[%s3601_s0 + $0xb0] sm:$0xf]  ;;  %v2381_v31 = vld [vmem:[%s3601_s0 + $0xc0] sm:$0xf0] }
  0x62   :  { %v1936_v36 = vor.u32 %v2381_v31, %v1935_v30  ;;  %v1987_v30 = vld [vmem:[%s3601_s0 + $0x120] sm:$0xf]  ;;  %v2395_v31 = vld [vmem:[%s3601_s0 + $0x130] sm:$0xf0] }
  0x63   :  { %1298 = vmatmul.bf16.gmra.mxu3 %v1872_v35  ;;  %v1988_v38 = vor.u32 %v2395_v31, %v1987_v30 }
  0x64   :  { %1016 = vmatmul.bf16.gmra.mxu0 %v1920_v32 }
  0x71   :  { %1095 = vmatmul.bf16.vlgmr.msrb.gmra.mxu1 %v1844_v42  ;;  %1194 = vmatmul.bf16.vlgmr.msrb.gmra.mxu2 %v1848_v43 }
  0x73   :  { %1303 = vmatmul.bf16.gmra.mxu3 %v1892_v47  ;;  %v1941_v47 = vld [vmem:[%s3601_s0 + $0xdc] sm:$0xf0] }
  0x74   :  { %1392 = vmatmul.bf16.vlgmr.msrb.gmra.mxu0 %v1856_v44  ;;  %v1944_v53 = vor.u32 %v2382_v46, %v1941_v47  ;;  %v2403_v47 = vld [vmem:[%s3601_s0 + $0x174] sm:$0xf] }
  0x81   :  { %1100 = vmatmul.bf16.gmra.mxu1 %v1864_v54  ;;  %1199 = vmatmul.bf16.gmra.mxu2 %v1868_v55  ;;  %v1948_v54 = vor.u32 %v2385_v49, %v1947_v48  ;;  %v2029_v48 = vld [vmem:[%s3601_s0 + $0x184] sm:$0xf0] }
  0x83   :  { %1308 = vmatmul.bf16.gmra.mxu3 %v1912_v59 }
  0x84   :  { %1397 = vmatmul.bf16.gmra.mxu0 %v1876_v56  ;;  %v1956_v56 = vor.u32 %v2386_v51, %v1955_v50  ;;  %v2032_v51 = vor.u32 %v2403_v47, %v2029_v48  ;;  %v2021_v48 = vld [vmem:[%s3601_s0 + $0x17c] sm:$0xf0] }
  0x91   :  { %1105 = vmatmul.bf16.gmra.mxu1 %v1884_v2  ;;  %1204 = vmatmul.bf16.gmra.mxu2 %v1888_v3  ;;  %v2387_v2 = vld [vmem:[%s3601_s0 + $0xf4] sm:$0xf]  ;;  %v1961_v3 = vld [vmem:[%s3601_s0 + $0x104] sm:$0xf0] }
  0x92   :  { %v1964_v9 = vor.u32 %v2387_v2, %v1961_v3  ;;  %v2007_v2 = vld [vmem:[%s3601_s0 + $0x148] sm:$0xf]  ;;  %v2400_v3 = vld [vmem:[%s3601_s0 + $0x158] sm:$0xf0] }
  0x93   :  { %1313 = vmatmul.bf16.gmra.mxu3 %v1932_v7  ;;  %v2391_v7 = vld [vmem:[%s3601_s0 + $0x110] sm:$0xf0] }
  0x94   :  { %1402 = vmatmul.bf16.gmra.mxu0 %v1896_v4  ;;  %v1967_v4 = vld [vmem:[%s3601_s0 + $0xf8] sm:$0xf]  ;;  %v1976_v12 = vor.u32 %v2391_v7, %v1975_v6 }
  0x95   :  { %v1968_v10 = vor.u32 %v2390_v5, %v1967_v4  ;;  %v2015_v4 = vld [vmem:[%s3601_s0 + $0x150] sm:$0xf]  ;;  %v2401_v5 = vld [vmem:[%s3601_s0 + $0x160] sm:$0xf0] }
  0x9e   :  { %v2975_v16 = vpop.f32.mrf.mxu1 }
  0xa1   :  { %v2983_v20 = vpop.f32.mrf.mxu0  ;;  %1110 = vmatmul.bf16.gmra.mxu1 %v1904_v14  ;;  %1209 = vmatmul.bf16.gmra.mxu2 %v1908_v15  ;;  %v2009_v14 = vld [vmem:[%s3601_s0 + $0x15c] sm:$0xf0] }
  0xa2   :  { %v2012_v18 = vor.u32 %v2398_v13, %v2009_v14  ;;  %v2408_v13 = vld [vmem:[%s3601_s0 + $0x19c] sm:$0xf]  ;;  %v2049_v14 = vld [vmem:[%s3601_s0 + $0x1ac] sm:$0xf0] }
  0xa3   :  { %1318 = vmatmul.bf16.gmra.mxu3 %v1952_v21  ;;  %v2052_v29 = vor.u32 %v2408_v13, %v2049_v14  ;;  %v2069_v13 = vld [vmem:[%s3601_s0 + $0x1d4] sm:$0xf0] }
  0xa4   :  { %1407 = vmatmul.bf16.gmra.mxu0 %v1916_v17  ;;  %v2985_v22 = vpop.f32.mrf.mxu2 }
  0xa6   :  { %v2987_v23 = vpop.f32.mrf.mxu1  ;;  %v2991_v25 = vpop.f32.mrf.mxu3 }
  0xa9   :  { %v2989_v24 = vpop.f32.mrf.mxu0 }
  0xac   :  { %v3011_v32 = vpop.f32.mrf.mxu2 }
  0xae   :  { %v3013_v35 = vpop.f32.mrf.mxu1  ;;  %v3023_v40 = vpop.f32.mrf.mxu3 }
  0xb1   :  { %v3021_v39 = vpop.f32.mrf.mxu0  ;;  %1115 = vmatmul.bf16.gmra.mxu1 %v1924_v33  ;;  %1214 = vmatmul.bf16.gmra.mxu2 %v1928_v34  ;;  %v1995_v33 = vld [vmem:[%s3601_s0 + $0x128] sm:$0xf]  ;;  %v2396_v34 = vld [vmem:[%s3601_s0 + $0x138] sm:$0xf0] }
  0xb2   :  { %v1996_v46 = vor.u32 %v2396_v34, %v1995_v33 }
  0xb3   :  { %1323 = vmatmul.bf16.gmra.mxu3 %v1972_v41 }
  0xb4   :  { %1412 = vmatmul.bf16.gmra.mxu0 %v1936_v36  ;;  %v3025_v42 = vpop.f32.mrf.mxu2 }
  0xb6   :  { %v3027_v43 = vpop.f32.mrf.mxu1  ;;  %v3031_v45 = vpop.f32.mrf.mxu3 }
  0xb9   :  { %v3029_v44 = vpop.f32.mrf.mxu0 }
  0xbc   :  { %v3051_v52 = vpop.f32.mrf.mxu2 }
  0xbe   :  { %v3053_v55 = vpop.f32.mrf.mxu1  ;;  %v3063_v60 = vpop.f32.mrf.mxu3 }
  0xc1   :  { %v3061_v59 = vpop.f32.mrf.mxu0  ;;  %1120 = vmatmul.bf16.gmra.mxu1 %v1944_v53  ;;  %1219 = vmatmul.bf16.gmra.mxu2 %v1948_v54 }
  0xc3   :  { %1328 = vmatmul.bf16.gmra.mxu3 %v1992_v61  ;;  %v2001_v61 = vld [vmem:[%s3601_s0 + $0x154] sm:$0xf0] }
  0xc4   :  { %1417 = vmatmul.bf16.gmra.mxu0 %v1956_v56  ;;  %v3065_v62 = vpop.f32.mrf.mxu2  ;;  %v2004_v7 = vor.u32 %v2397_v58, %v2001_v61  ;;  %v2035_v61 = vld [vmem:[%s3601_s0 + $0x178] sm:$0xf] }
  0xc6   :  { %v3067_v63 = vpop.f32.mrf.mxu1  ;;  %v3071_v1 = vpop.f32.mrf.mxu3 }
  0xc9   :  { %v3069_v0 = vpop.f32.mrf.mxu0 }
  0xcc   :  { %v3091_v8 = vpop.f32.mrf.mxu2 }
  0xce   :  { %v3093_v11 = vpop.f32.mrf.mxu1  ;;  %v3103_v17 = vpop.f32.mrf.mxu3 }
  0xd1   :  { %v3101_v15 = vpop.f32.mrf.mxu0  ;;  %1125 = vmatmul.bf16.gmra.mxu1 %v1964_v9  ;;  %1224 = vmatmul.bf16.gmra.mxu2 %v1968_v10  ;;  %v2008_v9 = vor.u32 %v2400_v3, %v2007_v2 }
  0xd3   :  { %1333 = vmatmul.bf16.gmra.mxu3 %v2012_v18 }
  0xd4   :  { %1422 = vmatmul.bf16.gmra.mxu0 %v1976_v12  ;;  %v3105_v19 = vpop.f32.mrf.mxu2  ;;  %v2016_v12 = vor.u32 %v2401_v5, %v2015_v4 }
  0xd6   :  { %v3107_v21 = vpop.f32.mrf.mxu1  ;;  %v1294_v27 = vpop.f32.mrf.mxu3 }
  0xd9   :  { %v3109_v26 = vpop.f32.mrf.mxu0 }
  0xdc   :  { %v3129_v36 = vpop.f32.mrf.mxu2 }
  0xde   :  { %v3131_v41 = vpop.f32.mrf.mxu1  ;;  %v1296_v50 = vpop.f32.mrf.mxu3 }
  0xe1   :  { %v3139_v49 = vpop.f32.mrf.mxu0  ;;  %1130 = vmatmul.bf16.gmra.mxu1 %v1984_v37  ;;  %1229 = vmatmul.bf16.gmra.mxu2 %v1988_v38 }
  0xe3   :  { %1338 = vmatmul.bf16.gmra.mxu3 %v2032_v51  ;;  %v2405_v51 = vld [vmem:[%s3601_s0 + $0x180] sm:$0xf0] }
  0xe4   :  { %1427 = vmatmul.bf16.gmra.mxu0 %v1996_v46  ;;  %v3141_v53 = vpop.f32.mrf.mxu2  ;;  %v2402_v46 = vld [vmem:[%s3601_s0 + $0x16c] sm:$0xf] }
  0xe5   :  { %v2024_v4 = vor.u32 %v2402_v46, %v2021_v48 }
  0xe6   :  { %v3143_v54 = vpop.f32.mrf.mxu1  ;;  %v3147_v57 = vpop.f32.mrf.mxu3 }
  0xe9   :  { %v3145_v56 = vpop.f32.mrf.mxu0 }
  0xec   :  { %v3167_v6 = vpop.f32.mrf.mxu2 }
  0xee   :  { %v1096_v10 = vpop.f32.mrf.mxu1  ;;  %v3175_v28 = vpop.f32.mrf.mxu3 }
  0xef   :  { %v1097_v30 = vadd.f32 %v1096_v10, %v2983_v20  ;;  %v2027_v20 = vld [vmem:[%s3601_s0 + $0x170] sm:$0xf] }
  0xf0   :  { %v2028_v5 = vor.u32 %v2405_v51, %v2027_v20 }
  0xf1   :  { %v1393_v18 = vpop.f32.mrf.mxu0  ;;  %1135 = vmatmul.bf16.gmra.mxu1 %v2004_v7  ;;  %1234 = vmatmul.bf16.gmra.mxu2 %v2008_v9  ;;  %v3202_v9 = vld [vmem:[%s3602_s2] ss:$0 sm:$0xff] }
  0xf3   :  { %1343 = vmatmul.bf16.gmra.mxu3 %v2052_v29 }
  0xf4   :  { %1432 = vmatmul.bf16.gmra.mxu0 %v2016_v12  ;;  %v1195_v31 = vpop.f32.mrf.mxu2  ;;  %v2413_v12 = vld [vmem:[%s3601_s0 + $0x1c4] sm:$0xf] }
  0xf5   :  { %v1196_v33 = vadd.f32 %v1195_v31, %v1097_v30  ;;  %v2072_v31 = vor.u32 %v2413_v12, %v2069_v13  ;;  %v2055_v13 = vld [vmem:[%s3601_s0 + $0x1a0] sm:$0xf] }
  0xf6   :  { %v1098_v34 = vpop.f32.mrf.mxu1  ;;  %v3178_v38 = vpop.f32.mrf.mxu3 }
  0xf7   :  { %v1295_v47 = vadd.f32 %v1294_v27, %v1196_v33  ;;  %v1099_v58 = vadd.f32 %v1098_v34, %v2989_v24  ;;  %v2406_v27 = vld [vmem:[%s3601_s0 + $0x188] sm:$0xf0] }
  0xf8   :  { %v2036_v24 = vor.u32 %v2406_v27, %v2035_v61 }
  0xf9   :  { %v1395_v37 = vpop.f32.mrf.mxu0  ;;  %v1394_v7 = vadd.f32 %v1393_v18, %v1295_v47 }
  0xfb   :  { %v1598_v33 = vadd.f32 %v3202_v9, %v1394_v7  ;;  %v1747_v34 = vmul.f32 %v1394_v7, %v1394_v7 }
  0xfc   :  { %v1197_v2 = vpop.f32.mrf.mxu2 }
  0xfd   :  { %v1198_v3 = vadd.f32 %v1197_v2, %v1099_v58 }
  0xfe   :  { %v1101_v10 = vpop.f32.mrf.mxu1  ;;  %v3210_v30 = vpop.f32.mrf.mxu3 }
  0xff   :  { %v1297_v14 = vadd.f32 %v1296_v50, %v1198_v3  ;;  %v1102_v20 = vadd.f32 %v1101_v10, %v3021_v39  ;;  %v2407_v39 = vld [vmem:[%s3601_s0 + $0x194] sm:$0xf] }
 0x101   :  { %v1398_v29 = vpop.f32.mrf.mxu0  ;;  %v1396_v18 = vadd.f32 %v1395_v37, %v1297_v14  ;;  %1140 = vmatmul.bf16.gmra.mxu1 %v2024_v4  ;;  %1239 = vmatmul.bf16.gmra.mxu2 %v2028_v5  ;;  %v2041_v5 = vld [vmem:[%s3601_s0 + $0x1a4] sm:$0xf0]  ;;  %v2411_v14 = vld [vmem:[%s3601_s0 + $0x1b0] sm:$0xf0] }
 0x103   :  { %v1599_v46 = vadd.f32 %v3202_v9, %v1396_v18  ;;  %v1706_v47 = vadd.f32 %v1396_v18, %v1394_v7  ;;  %v1748_v48 = vmul.f32 %v1396_v18, %v1396_v18  ;;  %1348 = vmatmul.bf16.gmra.mxu3 %v2072_v31  ;;  %v2047_v7 = vld [vmem:[%s3601_s0 + $0x198] sm:$0xf] }
 0x104   :  { %1437 = vmatmul.bf16.gmra.mxu0 %v2036_v24  ;;  %v1200_v51 = vpop.f32.mrf.mxu2 }
 0x105   :  { %v2490_v58 = vpack.c.bf16 %v1599_v46, %v1598_v33  ;;  %v1783_v50 = vadd.f32 %v1748_v48, %v1747_v34  ;;  %v1201_v61 = vadd.f32 %v1200_v51, %v1102_v20  ;;  %v2044_v33 = vor.u32 %v2407_v39, %v2041_v5 }
 0x106   :  { %v1103_v27 = vpop.f32.mrf.mxu1  ;;  %v3219_v3 = vpop.f32.mrf.mxu3  ;;  %v2056_v48 = vor.u32 %v2411_v14, %v2055_v13 }
 0x107   :  { %2491 = vst [vmem:[%s3603_s3] sm:$0xff] %v2490_v58   ;;  %v1300_v37 = vadd.f32 %v3147_v57, %v1201_v61  ;;  %v2410_v57 = vld [vmem:[%s3601_s0 + $0x1a8] sm:$0xf0]  ;;  %v1104_v12 = vadd.f32 %v1103_v27, %v3029_v44  ;;  %v2089_v44 = vld [vmem:[%s3601_s0 + $0x1fc] sm:$0xf0] }
 0x108   :  { %v2048_v34 = vor.u32 %v2410_v57, %v2047_v7 }
 0x109   :  { %v1400_v2 = vpop.f32.mrf.mxu0  ;;  %v1399_v4 = vadd.f32 %v1398_v29, %v1300_v37 }
 0x10b   :  { %v1707_v10 = vadd.f32 %v1706_v47, %v1399_v4  ;;  %v1749_v24 = vmul.f32 %v1399_v4, %v1399_v4  ;;  %v2418_v47 = vld [vmem:[%s3601_s0 + $0x1ec] sm:$0xf]  ;;  %v1600_v27 = vadd.f32 %v3202_v9, %v1399_v4 }
 0x10c   :  { %v1202_v29 = vpop.f32.mrf.mxu2 }
 0x10d   :  { %v1784_v18 = vadd.f32 %v1783_v50, %v1749_v24  ;;  %v1203_v31 = vadd.f32 %v1202_v29, %v1104_v12  ;;  %v2092_v50 = vor.u32 %v2418_v47, %v2089_v44 }
 0x10e   :  { %v1106_v46 = vpop.f32.mrf.mxu1  ;;  %v3247_v58 = vpop.f32.mrf.mxu3 }
 0x10f   :  { %v1302_v20 = vadd.f32 %v3175_v28, %v1203_v31  ;;  %v1107_v7 = vadd.f32 %v1106_v46, %v3061_v59  ;;  %v2412_v59 = vld [vmem:[%s3601_s0 + $0x1bc] sm:$0xf]  ;;  %v2075_v46 = vld [vmem:[%s3601_s0 + $0x1c8] sm:$0xf] }
 0x111   :  { %v1403_v51 = vpop.f32.mrf.mxu0  ;;  %v1401_v61 = vadd.f32 %v1400_v2, %v1302_v20  ;;  %1145 = vmatmul.bf16.gmra.mxu1 %v2044_v33  ;;  %1244 = vmatmul.bf16.gmra.mxu2 %v2048_v34 }
 0x113   :  { %v1601_v37 = vadd.f32 %v3202_v9, %v1401_v61  ;;  %v1708_v39 = vadd.f32 %v1707_v10, %v1401_v61  ;;  %v1750_v5 = vmul.f32 %v1401_v61, %v1401_v61  ;;  %1353 = vmatmul.bf16.gmra.mxu3 %v2092_v50  ;;  %v2061_v10 = vld [vmem:[%s3601_s0 + $0x1cc] sm:$0xf0] }
 0x114   :  { %1442 = vmatmul.bf16.gmra.mxu0 %v2056_v48  ;;  %v1205_v57 = vpop.f32.mrf.mxu2  ;;  %v2416_v48 = vld [vmem:[%s3601_s0 + $0x1d8] sm:$0xf0] }
 0x115   :  { %v2495_v24 = vpack.c.bf16 %v1601_v37, %v1600_v27  ;;  %v1785_v12 = vadd.f32 %v1784_v18, %v1750_v5  ;;  %v1206_v28 = vadd.f32 %v1205_v57, %v1107_v7  ;;  %v2067_v18 = vld [vmem:[%s3601_s0 + $0x1c0] sm:$0xf]  ;;  %v2076_v27 = vor.u32 %v2416_v48, %v2075_v46  ;;  %v2423_v37 = vld [vmem:[%s3601_s0 + $0x214] sm:$0xf]  ;;  %v2087_v48 = vld [vmem:[%s3601_s0 + $0x1e8] sm:$0xf] }
 0x116   :  { %v1108_v13 = vpop.f32.mrf.mxu1  ;;  %v3256_v14 = vpop.f32.mrf.mxu3 }
 0x117   :  { %2577 = vst [vmem:[%s3603_s3 + $0x8] sm:$0xff] %v2495_v24   ;;  %v1305_v2 = vadd.f32 %v3178_v38, %v1206_v28  ;;  %v2415_v38 = vld [vmem:[%s3601_s0 + $0x1d0] sm:$0xf0]  ;;  %v1109_v34 = vadd.f32 %v1108_v13, %v3069_v0  ;;  %v2109_v0 = vld [vmem:[%s3601_s0 + $0x224] sm:$0xf0] }
 0x118   :  { %v2068_v61 = vor.u32 %v2415_v38, %v2067_v18  ;;  %v2112_v24 = vor.u32 %v2423_v37, %v2109_v0 }
 0x119   :  { %v1405_v4 = vpop.f32.mrf.mxu0  ;;  %v1404_v29 = vadd.f32 %v1403_v51, %v1305_v2  ;;  %v2064_v51 = vor.u32 %v2412_v59, %v2061_v10 }
 0x11b   :  { %v1709_v31 = vadd.f32 %v1708_v39, %v1404_v29  ;;  %v1751_v33 = vmul.f32 %v1404_v29, %v1404_v29 }
 0x11c   :  { %v1207_v47 = vpop.f32.mrf.mxu2 }
 0x11d   :  { %v1786_v44 = vadd.f32 %v1785_v12, %v1751_v33  ;;  %v1208_v20 = vadd.f32 %v1207_v47, %v1109_v34  ;;  %v1602_v12 = vadd.f32 %v3202_v9, %v1404_v29 }
 0x11e   :  { %v1111_v50 = vpop.f32.mrf.mxu1  ;;  %v3284_v7 = vpop.f32.mrf.mxu3 }
 0x11f   :  { %v1307_v39 = vadd.f32 %v3210_v30, %v1208_v20  ;;  %v1112_v59 = vadd.f32 %v1111_v50, %v3101_v15  ;;  %v2417_v15 = vld [vmem:[%s3601_s0 + $0x1e4] sm:$0xf] }
 0x121   :  { %v1408_v5 = vpop.f32.mrf.mxu0  ;;  %v1406_v57 = vadd.f32 %v1405_v4, %v1307_v39  ;;  %1150 = vmatmul.bf16.gmra.mxu1 %v2064_v51  ;;  %1249 = vmatmul.bf16.gmra.mxu2 %v2068_v61  ;;  %v2095_v51 = vld [vmem:[%s3601_s0 + $0x1f0] sm:$0xf]  ;;  %v2421_v61 = vld [vmem:[%s3601_s0 + $0x200] sm:$0xf0] }
 0x123   :  { %v1603_v28 = vadd.f32 %v3202_v9, %v1406_v57  ;;  %v1710_v13 = vadd.f32 %v1709_v31, %v1406_v57  ;;  %v1752_v2 = vmul.f32 %v1406_v57, %v1406_v57  ;;  %1358 = vmatmul.bf16.gmra.mxu3 %v2112_v24  ;;  %v2081_v31 = vld [vmem:[%s3601_s0 + $0x1f4] sm:$0xf0]  ;;  %v2096_v57 = vor.u32 %v2421_v61, %v2095_v51  ;;  %v2428_v24 = vld [vmem:[%s3601_s0 + $0x23c] sm:$0xf] }
 0x124   :  { %1447 = vmatmul.bf16.gmra.mxu0 %v2076_v27  ;;  %v1210_v10 = vpop.f32.mrf.mxu2  ;;  %v2084_v0 = vor.u32 %v2417_v15, %v2081_v31 }
 0x125   :  { %v2500_v18 = vpack.c.bf16 %v1603_v28, %v1602_v12  ;;  %v1787_v38 = vadd.f32 %v1786_v44, %v1752_v2  ;;  %v1211_v30 = vadd.f32 %v1210_v10, %v1112_v59 }
 0x126   :  { %v1113_v33 = vpop.f32.mrf.mxu1  ;;  %v3293_v34 = vpop.f32.mrf.mxu3 }
 0x127   :  { %2578 = vst [vmem:[%s3603_s3 + $0x10] sm:$0xff] %v2500_v18   ;;  %v1310_v4 = vadd.f32 %v3219_v3, %v1211_v30  ;;  %v2420_v3 = vld [vmem:[%s3601_s0 + $0x1f8] sm:$0xf0]  ;;  %v1114_v20 = vadd.f32 %v1113_v33, %v3109_v26  ;;  %v2129_v26 = vld [vmem:[%s3601_s0 + $0x24c] sm:$0xf0] }
 0x128   :  { %v2088_v39 = vor.u32 %v2420_v3, %v2087_v48  ;;  %v2132_v59 = vor.u32 %v2428_v24, %v2129_v26 }
 0x129   :  { %v1410_v29 = vpop.f32.mrf.mxu0  ;;  %v1409_v46 = vadd.f32 %v1408_v5, %v1310_v4 }
 0x12b   :  { %v1711_v47 = vadd.f32 %v1710_v13, %v1409_v46  ;;  %v1753_v44 = vmul.f32 %v1409_v46, %v1409_v46  ;;  %v1604_v10 = vadd.f32 %v3202_v9, %v1409_v46 }
 0x12c   :  { %v1212_v50 = vpop.f32.mrf.mxu2 }
 0x12d   :  { %v1788_v27 = vadd.f32 %v1787_v38, %v1753_v44  ;;  %v1213_v37 = vadd.f32 %v1212_v50, %v1114_v20  ;;  %v2107_v20 = vld [vmem:[%s3601_s0 + $0x210] sm:$0xf] }
 0x12e   :  { %v1116_v5 = vpop.f32.mrf.mxu1  ;;  %v3321_v13 = vpop.f32.mrf.mxu3 }
 0x12f   :  { %v1312_v12 = vadd.f32 %v3247_v58, %v1213_v37  ;;  %v1117_v33 = vadd.f32 %v1116_v5, %v3139_v49  ;;  %v2422_v49 = vld [vmem:[%s3601_s0 + $0x20c] sm:$0xf] }
 0x130   :  { %v2426_v37 = vld [vmem:[%s3601_s0 + $0x228] sm:$0xf0] }
 0x131   :  { %v1413_v28 = vpop.f32.mrf.mxu0  ;;  %v1411_v2 = vadd.f32 %v1410_v29, %v1312_v12  ;;  %1155 = vmatmul.bf16.gmra.mxu1 %v2084_v0  ;;  %1254 = vmatmul.bf16.gmra.mxu2 %v2088_v39 }
 0x133   :  { %v1605_v18 = vadd.f32 %v3202_v9, %v1411_v2  ;;  %v1712_v38 = vadd.f32 %v1711_v47, %v1411_v2  ;;  %v1754_v30 = vmul.f32 %v1411_v2, %v1411_v2  ;;  %1363 = vmatmul.bf16.gmra.mxu3 %v2132_v59  ;;  %v2101_v47 = vld [vmem:[%s3601_s0 + $0x21c] sm:$0xf0] }
 0x134   :  { %1452 = vmatmul.bf16.gmra.mxu0 %v2096_v57  ;;  %v1215_v4 = vpop.f32.mrf.mxu2  ;;  %v2104_v57 = vor.u32 %v2422_v49, %v2101_v47 }
 0x135   :  { %v2505_v15 = vpack.c.bf16 %v1605_v18, %v1604_v10  ;;  %v1789_v31 = vadd.f32 %v1788_v27, %v1754_v30  ;;  %v1216_v58 = vadd.f32 %v1215_v4, %v1117_v33  ;;  %v2115_v27 = vld [vmem:[%s3601_s0 + $0x218] sm:$0xf] }
 0x136   :  { %v1118_v48 = vpop.f32.mrf.mxu1  ;;  %v3330_v3 = vpop.f32.mrf.mxu3  ;;  %v2116_v12 = vor.u32 %v2426_v37, %v2115_v27  ;;  %v2135_v37 = vld [vmem:[%s3601_s0 + $0x240] sm:$0xf] }
 0x137   :  { %2579 = vst [vmem:[%s3603_s3 + $0x18] sm:$0xff] %v2505_v15   ;;  %v1315_v29 = vadd.f32 %v3256_v14, %v1216_v58  ;;  %v2425_v14 = vld [vmem:[%s3601_s0 + $0x220] sm:$0xf0]  ;;  %v1119_v50 = vadd.f32 %v1118_v48, %v3145_v56  ;;  %v2149_v56 = vld [vmem:[%s3601_s0 + $0x274] sm:$0xf0] }
 0x138   :  { %v2108_v24 = vor.u32 %v2425_v14, %v2107_v20  ;;  %v2121_v14 = vld [vmem:[%s3601_s0 + $0x244] sm:$0xf0] }
 0x139   :  { %v1415_v46 = vpop.f32.mrf.mxu0  ;;  %v1414_v44 = vadd.f32 %v1413_v28, %v1315_v29  ;;  %v2433_v28 = vld [vmem:[%s3601_s0 + $0x264] sm:$0xf] }
 0x13b   :  { %v1713_v51 = vadd.f32 %v1712_v38, %v1414_v44  ;;  %v1755_v61 = vmul.f32 %v1414_v44, %v1414_v44  ;;  %v2152_v38 = vor.u32 %v2433_v28, %v2149_v56  ;;  %v1606_v30 = vadd.f32 %v3202_v9, %v1414_v44  ;;  %v2438_v56 = vld [vmem:[%s3601_s0 + $0x28c] sm:$0xf] }
 0x13c   :  { %v1217_v0 = vpop.f32.mrf.mxu2 }
 0x13d   :  { %v1790_v39 = vadd.f32 %v1789_v31, %v1755_v61  ;;  %v1218_v5 = vadd.f32 %v1217_v0, %v1119_v50  ;;  %v2431_v0 = vld [vmem:[%s3601_s0 + $0x250] sm:$0xf0] }
 0x13e   :  { %v1121_v26 = vpop.f32.mrf.mxu1  ;;  %v3358_v10 = vpop.f32.mrf.mxu3  ;;  %v2136_v28 = vor.u32 %v2431_v0, %v2135_v37  ;;  %v2436_v37 = vld [vmem:[%s3601_s0 + $0x278] sm:$0xf0] }
 0x13f   :  { %v1317_v2 = vadd.f32 %v3284_v7, %v1218_v5  ;;  %v1122_v31 = vadd.f32 %v1121_v26, %v2975_v16  ;;  %v2427_v16 = vld [vmem:[%s3601_s0 + $0x234] sm:$0xf] }
 0x141   :  { %v1418_v59 = vpop.f32.mrf.mxu0  ;;  %v1416_v18 = vadd.f32 %v1415_v46, %v1317_v2  ;;  %1160 = vmatmul.bf16.gmra.mxu1 %v2104_v57  ;;  %1259 = vmatmul.bf16.gmra.mxu2 %v2108_v24  ;;  %v2124_v24 = vor.u32 %v2427_v16, %v2121_v14  ;;  %v2141_v14 = vld [vmem:[%s3601_s0 + $0x26c] sm:$0xf0] }
 0x143   :  { %v1607_v33 = vadd.f32 %v3202_v9, %v1416_v18  ;;  %v1714_v4 = vadd.f32 %v1713_v51, %v1416_v18  ;;  %v1756_v15 = vmul.f32 %v1416_v18, %v1416_v18  ;;  %1368 = vmatmul.bf16.gmra.mxu3 %v2152_v38  ;;  %v2127_v51 = vld [vmem:[%s3601_s0 + $0x238] sm:$0xf] }
 0x144   :  { %1457 = vmatmul.bf16.gmra.mxu0 %v2116_v12  ;;  %v1220_v58 = vpop.f32.mrf.mxu2 }
 0x145   :  { %v2510_v48 = vpack.c.bf16 %v1607_v33, %v1606_v30  ;;  %v1791_v29 = vadd.f32 %v1790_v39, %v1756_v15  ;;  %v1221_v7 = vadd.f32 %v1220_v58, %v1122_v31 }
 0x146   :  { %v1123_v49 = vpop.f32.mrf.mxu1  ;;  %v3367_v47 = vpop.f32.mrf.mxu3 }
 0x147   :  { %2580 = vst [vmem:[%s3603_s3 + $0x20] sm:$0xff] %v2510_v48   ;;  %v1320_v46 = vadd.f32 %v3293_v34, %v1221_v7  ;;  %v2430_v34 = vld [vmem:[%s3601_s0 + $0x248] sm:$0xf0]  ;;  %v1124_v27 = vadd.f32 %v1123_v49, %v2987_v23  ;;  %v2169_v23 = vld [vmem:[%s3601_s0 + $0x29c] sm:$0xf0] }
 0x148   :  { %v2128_v26 = vor.u32 %v2430_v34, %v2127_v51  ;;  %v2172_v30 = vor.u32 %v2438_v56, %v2169_v23  ;;  %v2147_v51 = vld [vmem:[%s3601_s0 + $0x260] sm:$0xf] }
 0x149   :  { %v1420_v44 = vpop.f32.mrf.mxu0  ;;  %v1419_v20 = vadd.f32 %v1418_v59, %v1320_v46 }
 0x14b   :  { %v1715_v61 = vadd.f32 %v1714_v4, %v1419_v20  ;;  %v1757_v50 = vmul.f32 %v1419_v20, %v1419_v20  ;;  %v1608_v33 = vadd.f32 %v3202_v9, %v1419_v20 }
 0x14c   :  { %v1222_v39 = vpop.f32.mrf.mxu2 }
 0x14d   :  { %v1792_v5 = vadd.f32 %v1791_v29, %v1757_v50  ;;  %v1223_v57 = vadd.f32 %v1222_v39, %v1124_v27  ;;  %v2155_v27 = vld [vmem:[%s3601_s0 + $0x268] sm:$0xf] }
 0x14e   :  { %v1126_v12 = vpop.f32.mrf.mxu1  ;;  %v3395_v18 = vpop.f32.mrf.mxu3 }
 0x14f   :  { %v1322_v2 = vadd.f32 %v3321_v13, %v1223_v57  ;;  %v1127_v58 = vadd.f32 %v1126_v12, %v3013_v35  ;;  %v2432_v35 = vld [vmem:[%s3601_s0 + $0x25c] sm:$0xf]  ;;  %v2156_v12 = vor.u32 %v2436_v37, %v2155_v27 }
 0x150   :  { %v2144_v57 = vor.u32 %v2432_v35, %v2141_v14  ;;  %v2167_v35 = vld [vmem:[%s3601_s0 + $0x288] sm:$0xf] }
 0x151   :  { %v1423_v59 = vpop.f32.mrf.mxu0  ;;  %v1421_v38 = vadd.f32 %v1420_v44, %v1322_v2  ;;  %1165 = vmatmul.bf16.gmra.mxu1 %v2124_v24  ;;  %1264 = vmatmul.bf16.gmra.mxu2 %v2128_v26 }
 0x153   :  { %v1609_v4 = vadd.f32 %v3202_v9, %v1421_v38  ;;  %v1716_v15 = vadd.f32 %v1715_v61, %v1421_v38  ;;  %v1758_v31 = vmul.f32 %v1421_v38, %v1421_v38  ;;  %1373 = vmatmul.bf16.gmra.mxu3 %v2172_v30 }
 0x154   :  { %1462 = vmatmul.bf16.gmra.mxu0 %v2136_v28  ;;  %v1225_v48 = vpop.f32.mrf.mxu2  ;;  %v2443_v28 = vld [vmem:[%s3601_s0 + $0x2b4] sm:$0xf] }
 0x155   :  { %v2515_v29 = vpack.c.bf16 %v1609_v4, %v1608_v33  ;;  %v1793_v7 = vadd.f32 %v1792_v5, %v1758_v31  ;;  %v1226_v13 = vadd.f32 %v1225_v48, %v1127_v58 }
 0x156   :  { %v1128_v49 = vpop.f32.mrf.mxu1  ;;  %v3404_v20 = vpop.f32.mrf.mxu3 }
 0x157   :  { %2581 = vst [vmem:[%s3603_s3 + $0x28] sm:$0xff] %v2515_v29   ;;  %v1325_v46 = vadd.f32 %v3330_v3, %v1226_v13  ;;  %v2435_v3 = vld [vmem:[%s3601_s0 + $0x270] sm:$0xf0]  ;;  %v1129_v50 = vadd.f32 %v1128_v49, %v3027_v43  ;;  %v2189_v43 = vld [vmem:[%s3601_s0 + $0x2c4] sm:$0xf0] }
 0x158   :  { %v2148_v24 = vor.u32 %v2435_v3, %v2147_v51  ;;  %v2192_v38 = vor.u32 %v2443_v28, %v2189_v43 }
 0x159   :  { %v1425_v44 = vpop.f32.mrf.mxu0  ;;  %v1424_v16 = vadd.f32 %v1423_v59, %v1325_v46 }
 0x15b   :  { %v1717_v34 = vadd.f32 %v1716_v15, %v1424_v16  ;;  %v1759_v61 = vmul.f32 %v1424_v16, %v1424_v16  ;;  %v1610_v30 = vadd.f32 %v3202_v9, %v1424_v16  ;;  %v2161_v16 = vld [vmem:[%s3601_s0 + $0x294] sm:$0xf0] }
 0x15c   :  { %v1227_v0 = vpop.f32.mrf.mxu2 }
 0x15d   :  { %v1794_v39 = vadd.f32 %v1793_v7, %v1759_v61  ;;  %v1228_v5 = vadd.f32 %v1227_v0, %v1129_v50  ;;  %v2441_v61 = vld [vmem:[%s3601_s0 + $0x2a0] sm:$0xf0] }
 0x15e   :  { %v1131_v26 = vpop.f32.mrf.mxu1  ;;  %v3432_v2 = vpop.f32.mrf.mxu3 }
 0x15f   :  { %v1327_v56 = vadd.f32 %v3358_v10, %v1228_v5  ;;  %v1132_v31 = vadd.f32 %v1131_v26, %v3053_v55  ;;  %v2437_v55 = vld [vmem:[%s3601_s0 + $0x284] sm:$0xf] }
 0x160   :  { %v2164_v0 = vor.u32 %v2437_v55, %v2161_v16  ;;  %v2446_v55 = vld [vmem:[%s3601_s0 + $0x2c8] sm:$0xf0] }
 0x161   :  { %v1428_v23 = vpop.f32.mrf.mxu0  ;;  %v1426_v59 = vadd.f32 %v1425_v44, %v1327_v56  ;;  %1170 = vmatmul.bf16.gmra.mxu1 %v2144_v57  ;;  %1269 = vmatmul.bf16.gmra.mxu2 %v2148_v24 }
 0x163   :  { %v1611_v33 = vadd.f32 %v3202_v9, %v1426_v59  ;;  %v1718_v4 = vadd.f32 %v1717_v34, %v1426_v59  ;;  %v1760_v15 = vmul.f32 %v1426_v59, %v1426_v59  ;;  %1378 = vmatmul.bf16.gmra.mxu3 %v2192_v38  ;;  %v2175_v34 = vld [vmem:[%s3601_s0 + $0x290] sm:$0xf] }
 0x164   :  { %1467 = vmatmul.bf16.gmra.mxu0 %v2156_v12  ;;  %v1230_v58 = vpop.f32.mrf.mxu2  ;;  %v2176_v57 = vor.u32 %v2441_v61, %v2175_v34 }
 0x165   :  { %v2520_v48 = vpack.c.bf16 %v1611_v33, %v1610_v30  ;;  %v1795_v29 = vadd.f32 %v1794_v39, %v1760_v15  ;;  %v1231_v10 = vadd.f32 %v1230_v58, %v1132_v31 }
 0x166   :  { %v1133_v7 = vpop.f32.mrf.mxu1  ;;  %v3441_v46 = vpop.f32.mrf.mxu3 }
 0x167   :  { %2582 = vst [vmem:[%s3603_s3 + $0x30] sm:$0xff] %v2520_v48   ;;  %v1330_v13 = vadd.f32 %v3367_v47, %v1231_v10  ;;  %v2440_v47 = vld [vmem:[%s3601_s0 + $0x298] sm:$0xf0]  ;;  %v1134_v3 = vadd.f32 %v1133_v7, %v3067_v63  ;;  %v2187_v10 = vld [vmem:[%s3601_s0 + $0x2b0] sm:$0xf] }
 0x168   :  { %v2168_v39 = vor.u32 %v2440_v47, %v2167_v35  ;;  %v2445_v7 = vld [vmem:[%s3601_s0 + $0x2c0] sm:$0xf0] }
 0x169   :  { %v1430_v49 = vpop.f32.mrf.mxu0  ;;  %v1429_v44 = vadd.f32 %v1428_v23, %v1330_v13 }
 0x16b   :  { %v1719_v14 = vadd.f32 %v1718_v4, %v1429_v44  ;;  %v1761_v51 = vmul.f32 %v1429_v44, %v1429_v44  ;;  %v1612_v28 = vadd.f32 %v3202_v9, %v1429_v44  ;;  %v2195_v44 = vld [vmem:[%s3601_s0 + $0x2b8] sm:$0xf] }
 0x16c   :  { %v1232_v50 = vpop.f32.mrf.mxu2  ;;  %v2196_v34 = vor.u32 %v2446_v55, %v2195_v44 }
 0x16d   :  { %v1796_v27 = vadd.f32 %v1795_v29, %v1761_v51  ;;  %v1233_v37 = vadd.f32 %v1232_v50, %v1134_v3  ;;  %v2442_v29 = vld [vmem:[%s3601_s0 + $0x2ac] sm:$0xf]  ;;  %v2188_v51 = vor.u32 %v2445_v7, %v2187_v10 }
 0x16e   :  { %v1136_v5 = vpop.f32.mrf.mxu1  ;;  %v3463_v12 = vpop.f32.mrf.mxu3 }
 0x16f   :  { %v1332_v24 = vadd.f32 %v3395_v18, %v1233_v37  ;;  %v1137_v59 = vadd.f32 %v1136_v5, %v3093_v11  ;;  %v2181_v11 = vld [vmem:[%s3601_s0 + $0x2bc] sm:$0xf0] }
 0x171   :  { %v1433_v26 = vpop.f32.mrf.mxu0  ;;  %v1431_v63 = vadd.f32 %v1430_v49, %v1332_v24  ;;  %1175 = vmatmul.bf16.gmra.mxu1 %v2164_v0  ;;  %1274 = vmatmul.bf16.gmra.mxu2 %v2168_v39 }
 0x173   :  { %v1613_v43 = vadd.f32 %v3202_v9, %v1431_v63  ;;  %v1720_v56 = vadd.f32 %v1719_v14, %v1431_v63  ;;  %v1762_v23 = vmul.f32 %v1431_v63, %v1431_v63  ;;  %v2184_v14 = vor.u32 %v2442_v29, %v2181_v11 }
 0x174   :  { %1472 = vmatmul.bf16.gmra.mxu0 %v2176_v57  ;;  %v1235_v38 = vpop.f32.mrf.mxu2 }
 0x175   :  { %v2525_v30 = vpack.c.bf16 %v1613_v43, %v1612_v28  ;;  %v1797_v33 = vadd.f32 %v1796_v27, %v1762_v23  ;;  %v1236_v4 = vadd.f32 %v1235_v38, %v1137_v59 }
 0x176   :  { %v1138_v18 = vpop.f32.mrf.mxu1  ;;  %v1344_v58 = vpop.f32.mrf.mxu3 }
 0x177   :  { %2583 = vst [vmem:[%s3603_s3 + $0x38] sm:$0xff] %v2525_v30   ;;  %v1335_v15 = vadd.f32 %v3404_v20, %v1236_v4  ;;  %v1139_v49 = vadd.f32 %v1138_v18, %v3107_v21 }
 0x179   :  { %v1435_v31 = vpop.f32.mrf.mxu0  ;;  %v1434_v48 = vadd.f32 %v1433_v26, %v1335_v15 }
 0x17b   :  { %v1721_v20 = vadd.f32 %v1720_v56, %v1434_v48  ;;  %v1763_v13 = vmul.f32 %v1434_v48, %v1434_v48  ;;  %v1614_v21 = vadd.f32 %v3202_v9, %v1434_v48 }
 0x17c   :  { %v1237_v16 = vpop.f32.mrf.mxu2 }
 0x17d   :  { %v1798_v35 = vadd.f32 %v1797_v33, %v1763_v13  ;;  %v1238_v47 = vadd.f32 %v1237_v16, %v1139_v49 }
 0x17e   :  { %v1141_v3 = vpop.f32.mrf.mxu1  ;;  %v1346_v37 = vpop.f32.mrf.mxu3 }
 0x17f   :  { %v1337_v61 = vadd.f32 %v3432_v2, %v1238_v47  ;;  %v1142_v57 = vadd.f32 %v1141_v3, %v3131_v41 }
 0x181   :  { %v1438_v50 = vpop.f32.mrf.mxu0  ;;  %v1436_v27 = vadd.f32 %v1435_v31, %v1337_v61  ;;  %1180 = vmatmul.bf16.gmra.mxu1 %v2184_v14  ;;  %1279 = vmatmul.bf16.gmra.mxu2 %v2188_v51 }
 0x183   :  { %v1615_v0 = vadd.f32 %v3202_v9, %v1436_v27  ;;  %v1722_v39 = vadd.f32 %v1721_v20, %v1436_v27  ;;  %v1764_v5 = vmul.f32 %v1436_v27, %v1436_v27 }
 0x184   :  { %1477 = vmatmul.bf16.gmra.mxu0 %v2196_v34  ;;  %v1240_v24 = vpop.f32.mrf.mxu2 }
 0x185   :  { %v2530_v26 = vpack.c.bf16 %v1615_v0, %v1614_v21  ;;  %v1799_v63 = vadd.f32 %v1798_v35, %v1764_v5  ;;  %v1241_v28 = vadd.f32 %v1240_v24, %v1142_v57 }
 0x186   :  { %v1143_v43 = vpop.f32.mrf.mxu1  ;;  %v1349_v4 = vpop.f32.mrf.mxu3 }
 0x187   :  { %2584 = vst [vmem:[%s3603_s3 + $0x40] sm:$0xff] %v2530_v26   ;;  %v1340_v2 = vadd.f32 %v3441_v46, %v1241_v28  ;;  %v1144_v30 = vadd.f32 %v1143_v43, %v3143_v54 }
 0x189   :  { %v1440_v56 = vpop.f32.mrf.mxu0  ;;  %v1439_v23 = vadd.f32 %v1438_v50, %v1340_v2 }
 0x18b   :  { %v1723_v59 = vadd.f32 %v1722_v39, %v1439_v23  ;;  %v1765_v38 = vmul.f32 %v1439_v23, %v1439_v23  ;;  %v1616_v11 = vadd.f32 %v3202_v9, %v1439_v23 }
 0x18c   :  { %v1242_v33 = vpop.f32.mrf.mxu2 }
 0x18d   :  { %v1800_v41 = vadd.f32 %v1799_v63, %v1765_v38  ;;  %v1243_v18 = vadd.f32 %v1242_v33, %v1144_v30 }
 0x18e   :  { %v1146_v15 = vpop.f32.mrf.mxu1  ;;  %v1351_v16 = vpop.f32.mrf.mxu3 }
 0x18f   :  { %v1342_v31 = vadd.f32 %v3463_v12, %v1243_v18  ;;  %v1147_v20 = vadd.f32 %v1146_v15, %v2985_v22 }
 0x191   :  { %v1443_v48 = vpop.f32.mrf.mxu0  ;;  %v1441_v29 = vadd.f32 %v1440_v56, %v1342_v31 }
 0x193   :  { %v1617_v10 = vadd.f32 %v3202_v9, %v1441_v29  ;;  %v1724_v46 = vadd.f32 %v1723_v59, %v1441_v29  ;;  %v1766_v7 = vmul.f32 %v1441_v29, %v1441_v29 }
 0x194   :  { %v1245_v13 = vpop.f32.mrf.mxu2 }
 0x195   :  { %v2535_v49 = vpack.c.bf16 %v1617_v10, %v1616_v11  ;;  %v1801_v54 = vadd.f32 %v1800_v41, %v1766_v7  ;;  %v1246_v44 = vadd.f32 %v1245_v13, %v1147_v20 }
 0x196   :  { %v1148_v55 = vpop.f32.mrf.mxu1  ;;  %v1354_v0 = vpop.f32.mrf.mxu3 }
 0x197   :  { %2585 = vst [vmem:[%s3603_s3 + $0x48] sm:$0xff] %v2535_v49   ;;  %v1345_v12 = vadd.f32 %v1344_v58, %v1246_v44  ;;  %v1149_v3 = vadd.f32 %v1148_v55, %v3011_v32 }
 0x199   :  { %v1445_v35 = vpop.f32.mrf.mxu0  ;;  %v1444_v47 = vadd.f32 %v1443_v48, %v1345_v12 }
 0x19b   :  { %v1725_v14 = vadd.f32 %v1724_v46, %v1444_v47  ;;  %v1767_v51 = vmul.f32 %v1444_v47, %v1444_v47  ;;  %v1618_v5 = vadd.f32 %v3202_v9, %v1444_v47 }
 0x19c   :  { %v1247_v34 = vpop.f32.mrf.mxu2 }
 0x19d   :  { %v1802_v61 = vadd.f32 %v1801_v54, %v1767_v51  ;;  %v1248_v22 = vadd.f32 %v1247_v34, %v1149_v3 }
 0x19e   :  { %v1151_v50 = vpop.f32.mrf.mxu1  ;;  %v1356_v59 = vpop.f32.mrf.mxu3 }
 0x19f   :  { %v1347_v27 = vadd.f32 %v1346_v37, %v1248_v22  ;;  %v1152_v26 = vadd.f32 %v1151_v50, %v3025_v42 }
 0x1a1   :  { %v1448_v21 = vpop.f32.mrf.mxu0  ;;  %v1446_v39 = vadd.f32 %v1445_v35, %v1347_v27 }
 0x1a3   :  { %v1619_v57 = vadd.f32 %v3202_v9, %v1446_v39  ;;  %v1726_v24 = vadd.f32 %v1725_v14, %v1446_v39  ;;  %v1768_v58 = vmul.f32 %v1446_v39, %v1446_v39 }
 0x1a4   :  { %v1250_v63 = vpop.f32.mrf.mxu2 }
 0x1a5   :  { %v2540_v28 = vpack.c.bf16 %v1619_v57, %v1618_v5  ;;  %v1803_v43 = vadd.f32 %v1802_v61, %v1768_v58  ;;  %v1251_v32 = vadd.f32 %v1250_v63, %v1152_v26 }
 0x1a6   :  { %v1153_v2 = vpop.f32.mrf.mxu1  ;;  %v1359_v20 = vpop.f32.mrf.mxu3 }
 0x1a7   :  { %2586 = vst [vmem:[%s3603_s3 + $0x50] sm:$0xff] %v2540_v28   ;;  %v1350_v37 = vadd.f32 %v1349_v4, %v1251_v32  ;;  %v1154_v33 = vadd.f32 %v1153_v2, %v3051_v52 }
 0x1a9   :  { %v1450_v56 = vpop.f32.mrf.mxu0  ;;  %v1449_v23 = vadd.f32 %v1448_v21, %v1350_v37 }
 0x1ab   :  { %v1727_v38 = vadd.f32 %v1726_v24, %v1449_v23  ;;  %v1769_v30 = vmul.f32 %v1449_v23, %v1449_v23  ;;  %v1620_v11 = vadd.f32 %v3202_v9, %v1449_v23 }
 0x1ac   :  { %v1252_v41 = vpop.f32.mrf.mxu2 }
 0x1ad   :  { %v1804_v18 = vadd.f32 %v1803_v43, %v1769_v30  ;;  %v1253_v42 = vadd.f32 %v1252_v41, %v1154_v33 }
 0x1ae   :  { %v1156_v15 = vpop.f32.mrf.mxu1  ;;  %v1361_v51 = vpop.f32.mrf.mxu3 }
 0x1af   :  { %v1352_v31 = vadd.f32 %v1351_v16, %v1253_v42  ;;  %v1157_v52 = vadd.f32 %v1156_v15, %v3065_v62 }
 0x1b1   :  { %v1453_v48 = vpop.f32.mrf.mxu0  ;;  %v1451_v29 = vadd.f32 %v1450_v56, %v1352_v31 }
 0x1b3   :  { %v1621_v10 = vadd.f32 %v3202_v9, %v1451_v29  ;;  %v3517_v46 = vadd.f32 %v1727_v38, %v1451_v29  ;;  %v1770_v4 = vmul.f32 %v1451_v29, %v1451_v29 }
 0x1b4   :  { %v1255_v7 = vpop.f32.mrf.mxu2 }
 0x1b5   :  { %v2545_v13 = vpack.c.bf16 %v1621_v10, %v1620_v11  ;;  %v3519_v49 = vadd.f32 %v1804_v18, %v1770_v4  ;;  %v1256_v44 = vadd.f32 %v1255_v7, %v1157_v52 }
 0x1b6   :  { %v1158_v54 = vpop.f32.mrf.mxu1  ;;  %v1364_v57 = vpop.f32.mrf.mxu3 }
 0x1b7   :  { %2587 = vst [vmem:[%s3603_s3 + $0x58] sm:$0xff] %v2545_v13   ;;  %v1355_v16 = vadd.f32 %v1354_v0, %v1256_v44  ;;  %v1159_v12 = vadd.f32 %v1158_v54, %v3091_v8 }
 0x1b9   :  { %v1455_v55 = vpop.f32.mrf.mxu0  ;;  %v3526_v3 = vadd.f32 %v1453_v48, %v1355_v16 }
 0x1bb   :  { %v1622_v62 = vadd.f32 %v3202_v9, %v3526_v3 }
 0x1bc   :  { %v1257_v35 = vpop.f32.mrf.mxu2 }
 0x1bd   :  { %v1258_v47 = vadd.f32 %v1257_v35, %v1159_v12 }
 0x1be   :  { %v1161_v14 = vpop.f32.mrf.mxu1 }
 0x1bf   :  { %v1357_v34 = vadd.f32 %v1356_v59, %v1258_v47  ;;  %v1162_v8 = vadd.f32 %v1161_v14, %v3105_v19  ;;  %v1366_v19 = vpop.f32.mrf.mxu3 }
 0x1c1   :  { %v1458_v61 = vpop.f32.mrf.mxu0  ;;  %v3528_v22 = vadd.f32 %v1455_v55, %v1357_v34 }
 0x1c3   :  { %v1623_v50 = vadd.f32 %v3202_v9, %v3528_v22 }
 0x1c4   :  { %v1260_v27 = vpop.f32.mrf.mxu2 }
 0x1c5   :  { %v2550_v21 = vpack.c.bf16 %v1623_v50, %v1622_v62  ;;  %v1261_v39 = vadd.f32 %v1260_v27, %v1162_v8 }
 0x1c6   :  { %v1163_v0 = vpop.f32.mrf.mxu1 }
 0x1c7   :  { %2588 = vst [vmem:[%s3603_s3 + $0x60] sm:$0xff] %v2550_v21   ;;  %v1360_v24 = vadd.f32 %v1359_v20, %v1261_v39  ;;  %v1164_v58 = vadd.f32 %v1163_v0, %v3129_v36  ;;  %v1369_v31 = vpop.f32.mrf.mxu3 }
 0x1c9   :  { %v1460_v5 = vpop.f32.mrf.mxu0  ;;  %v3539_v43 = vadd.f32 %v1458_v61, %v1360_v24 }
 0x1cb   :  { %v1624_v56 = vadd.f32 %v3202_v9, %v3539_v43 }
 0x1cc   :  { %v1262_v26 = vpop.f32.mrf.mxu2 }
 0x1cd   :  { %v1263_v63 = vadd.f32 %v1262_v26, %v1164_v58 }
 0x1ce   :  { %v1166_v28 = vpop.f32.mrf.mxu1 }
 0x1cf   :  { %v1362_v32 = vadd.f32 %v1361_v51, %v1263_v63  ;;  %v1167_v36 = vadd.f32 %v1166_v28, %v3141_v53 }
 0x1d1   :  { %v1463_v2 = vpop.f32.mrf.mxu0  ;;  %v3541_v37 = vadd.f32 %v1460_v5, %v1362_v32 }
 0x1d3   :  { %v1625_v23 = vadd.f32 %v3202_v9, %v3541_v37 }
 0x1d4   :  { %v1265_v59 = vpop.f32.mrf.mxu2 }
 0x1d5   :  { %v2555_v38 = vpack.c.bf16 %v1625_v23, %v1624_v56  ;;  %v1266_v33 = vadd.f32 %v1265_v59, %v1167_v36  ;;  %v1774_v36 = vmul.f32 %v3541_v37, %v3541_v37 }
 0x1d6   :  { %v1168_v30 = vpop.f32.mrf.mxu1 }
 0x1d7   :  { %2589 = vst [vmem:[%s3603_s3 + $0x68] sm:$0xff] %v2555_v38   ;;  %v1365_v18 = vadd.f32 %v1364_v57, %v1266_v33  ;;  %v1169_v42 = vadd.f32 %v1168_v30, %v3167_v6  ;;  %v1371_v6 = vpop.f32.mrf.mxu3  ;;  %v1771_v57 = vmul.f32 %v3526_v3, %v3526_v3 }
 0x1d9   :  { %v1465_v41 = vpop.f32.mrf.mxu0  ;;  %v1464_v11 = vadd.f32 %v1463_v2, %v1365_v18  ;;  %v1806_v2 = vadd.f32 %v3519_v49, %v1771_v57  ;;  %v2619_v49 = vld [vmem:[%s3602_s2] ss:$0 sm:$0xff] }
 0x1db   :  { %v1626_v53 = vadd.f32 %v3202_v9, %v1464_v11 }
 0x1dc   :  { %v1267_v15 = vpop.f32.mrf.mxu2 }
 0x1dd   :  { %v1268_v48 = vadd.f32 %v1267_v15, %v1169_v42 }
 0x1de   :  { %v1171_v29 = vpop.f32.mrf.mxu1 }
 0x1df   :  { %v1367_v10 = vadd.f32 %v1366_v19, %v1268_v48  ;;  %v1172_v54 = vadd.f32 %v1171_v29, %v2991_v25  ;;  %v1374_v62 = vpop.f32.mrf.mxu3  ;;  %v1773_v19 = vmul.f32 %v3539_v43, %v3539_v43 }
 0x1e1   :  { %v1468_v4 = vpop.f32.mrf.mxu0  ;;  %v3552_v7 = vadd.f32 %v1465_v41, %v1367_v10 }
 0x1e3   :  { %v1627_v20 = vadd.f32 %v3202_v9, %v3552_v7 }
 0x1e4   :  { %v1270_v13 = vpop.f32.mrf.mxu2 }
 0x1e5   :  { %v2560_v52 = vpack.c.bf16 %v1627_v20, %v1626_v53  ;;  %v1271_v55 = vadd.f32 %v1270_v13, %v1172_v54 }
 0x1e6   :  { %v1173_v44 = vpop.f32.mrf.mxu1 }
 0x1e7   :  { %2590 = vst [vmem:[%s3603_s3 + $0x70] sm:$0xff] %v2560_v52   ;;  %v1370_v12 = vadd.f32 %v1369_v31, %v1271_v55  ;;  %v1174_v35 = vadd.f32 %v1173_v44, %v3023_v40  ;;  %v1376_v24 = vpop.f32.mrf.mxu3  ;;  %v1776_v31 = vmul.f32 %v3552_v7, %v3552_v7 }
 0x1e9   :  { %v1470_v16 = vpop.f32.mrf.mxu0  ;;  %v1469_v34 = vadd.f32 %v1468_v4, %v1370_v12 }
 0x1eb   :  { %v1628_v25 = vadd.f32 %v3202_v9, %v1469_v34  ;;  %v1777_v20 = vmul.f32 %v1469_v34, %v1469_v34 }
 0x1ec   :  { %v1272_v47 = vpop.f32.mrf.mxu2 }
 0x1ed   :  { %v1273_v14 = vadd.f32 %v1272_v47, %v1174_v35 }
 0x1ee   :  { %v1176_v51 = vpop.f32.mrf.mxu1 }
 0x1ef   :  { %v1372_v61 = vadd.f32 %v1371_v6, %v1273_v14  ;;  %v1177_v39 = vadd.f32 %v1176_v51, %v3031_v45  ;;  %v1729_v45 = vadd.f32 %v3517_v46, %v3526_v3  ;;  %v1775_v46 = vmul.f32 %v1464_v11, %v1464_v11  ;;  %v1379_v48 = vpop.f32.mrf.mxu3 }
 0x1f1   :  { %v1471_v50 = vadd.f32 %v1470_v16, %v1372_v61  ;;  %v1473_v27 = vpop.f32.mrf.mxu0  ;;  %v1730_v23 = vadd.f32 %v1729_v45, %v3528_v22 }
 0x1f3   :  { %v1629_v21 = vadd.f32 %v3202_v9, %v1471_v50  ;;  %v1772_v9 = vmul.f32 %v3528_v22, %v3528_v22  ;;  %v1731_v30 = vadd.f32 %v1730_v23, %v3539_v43  ;;  %v1778_v6 = vmul.f32 %v1471_v50, %v1471_v50 }
 0x1f4   :  { %v1275_v8 = vpop.f32.mrf.mxu2 }
 0x1f5   :  { %v2565_v0 = vpack.c.bf16 %v1629_v21, %v1628_v25  ;;  %v1276_v40 = vadd.f32 %v1275_v8, %v1177_v39  ;;  %v1732_v3 = vadd.f32 %v1731_v30, %v3541_v37 }
 0x1f6   :  { %v1178_v5 = vpop.f32.mrf.mxu1 }
 0x1f7   :  { %2591 = vst [vmem:[%s3603_s3 + $0x78] sm:$0xff] %v2565_v0   ;;  %v1375_v58 = vadd.f32 %v1374_v62, %v1276_v40  ;;  %v1179_v26 = vadd.f32 %v1178_v5, %v3063_v60  ;;  %v1807_v60 = vadd.f32 %v1806_v2, %v1772_v9  ;;  %v1733_v43 = vadd.f32 %v1732_v3, %v1464_v11  ;;  %v1381_v62 = vpop.f32.mrf.mxu3 }
 0x1f9   :  { %v1475_v63 = vpop.f32.mrf.mxu0  ;;  %v1474_v59 = vadd.f32 %v1473_v27, %v1375_v58  ;;  %v1808_v41 = vadd.f32 %v1807_v60, %v1773_v19  ;;  %v1734_v13 = vadd.f32 %v1733_v43, %v3552_v7 }
 0x1fb   :  { %v1630_v18 = vadd.f32 %v2619_v49, %v1474_v59  ;;  %v1809_v15 = vadd.f32 %v1808_v41, %v1774_v36  ;;  %v1735_v44 = vadd.f32 %v1734_v13, %v1469_v34  ;;  %v1779_v12 = vmul.f32 %v1474_v59, %v1474_v59 }
 0x1fc   :  { %v1277_v28 = vpop.f32.mrf.mxu2 }
 0x1fd   :  { %v1278_v32 = vadd.f32 %v1277_v28, %v1179_v26  ;;  %v1810_v53 = vadd.f32 %v1809_v15, %v1775_v46  ;;  %v1736_v16 = vadd.f32 %v1735_v44, %v1471_v50 }
 0x1fe   :  { %v1181_v56 = vpop.f32.mrf.mxu1 }
 0x1ff   :  { %v1377_v38 = vadd.f32 %v1376_v24, %v1278_v32  ;;  %v1182_v22 = vadd.f32 %v1181_v56, %v3071_v1  ;;  %v1811_v1 = vadd.f32 %v1810_v53, %v1776_v31  ;;  %v1737_v51 = vadd.f32 %v1736_v16, %v1474_v59 }
 0x201   :  { %v1476_v33 = vadd.f32 %v1475_v63, %v1377_v38  ;;  %v1478_v37 = vpop.f32.mrf.mxu0  ;;  %v1812_v55 = vadd.f32 %v1811_v1, %v1777_v20 }
 0x203   :  { %v1631_v42 = vadd.f32 %v2619_v49, %v1476_v33  ;;  %v1813_v14 = vadd.f32 %v1812_v55, %v1778_v6  ;;  %v1780_v61 = vmul.f32 %v1476_v33, %v1476_v33  ;;  %v1738_v25 = vadd.f32 %v1737_v51, %v1476_v33 }
 0x204   :  { %v1280_v29 = vpop.f32.mrf.mxu2 }
 0x205   :  { %v2570_v10 = vpack.c.bf16 %v1631_v42, %v1630_v18  ;;  %v1281_v4 = vadd.f32 %v1280_v29, %v1182_v22  ;;  %v1814_v27 = vadd.f32 %v1813_v14, %v1779_v12 }
 0x206   :  { %v1183_v54 = vpop.f32.mrf.mxu1 }
 0x207   :  { %2592 = vst [vmem:[%s3603_s3 + $0x80] sm:$0xff] %v2570_v10   ;;  %v1380_v52 = vadd.f32 %v1379_v48, %v1281_v4  ;;  %v1184_v35 = vadd.f32 %v1183_v54, %v3103_v17  ;;  %v1815_v39 = vadd.f32 %v1814_v27, %v1780_v61 }
 0x209   :  { %v1479_v11 = vadd.f32 %v1478_v37, %v1380_v52  ;;  %v1480_v0 = vpop.f32.mrf.mxu0 }
 0x20b   :  { %v1781_v21 = vmul.f32 %v1479_v11, %v1479_v11  ;;  %v1739_v34 = vadd.f32 %v1738_v25, %v1479_v11  ;;  %v1632_v40 = vadd.f32 %v2619_v49, %v1479_v11 }
 0x20c   :  { %v1282_v47 = vpop.f32.mrf.mxu2 }
 0x20d   :  { %v1283_v7 = vadd.f32 %v1282_v47, %v1184_v35  ;;  %v1816_v50 = vadd.f32 %v1815_v39, %v1781_v21 }
 0x20f   :  { %v1382_v8 = vadd.f32 %v1381_v62, %v1283_v7 }
 0x211   :  { %v1481_v5 = vadd.f32 %v1480_v0, %v1382_v8 }
 0x213   :  { %v1633_v57 = vadd.f32 %v2619_v49, %v1481_v5  ;;  %v1740_v24 = vadd.f32 %v1739_v34, %v1481_v5  ;;  %v1782_v58 = vmul.f32 %v1481_v5, %v1481_v5 }
 0x215   :  { %v2575_v17 = vpack.c.bf16 %v1633_v57, %v1632_v40  ;;  %v1741_v26 = vrot.slane %v1740_v24, 4  ;;  %v1817_v9 = vadd.f32 %v1816_v50, %v1782_v58 }
 0x217   :  { %2593 = vst [vmem:[%s3603_s3 + $0x88] sm:$0xff] %v2575_v17   ;;  %v1742_v63 = vadd.f32 %v1741_v26, %v1740_v24  ;;  %v1818_v28 = vrot.slane %v1817_v9, 4 }
 0x219   :  { %v1743_v45 = vrot.slane %v1742_v63, 2  ;;  %v1819_v32 = vadd.f32 %v1818_v28, %v1817_v9 }
 0x21b   :  { %v1744_v2 = vadd.f32 %v1743_v45, %v1742_v63  ;;  %v1820_v19 = vrot.slane %v1819_v32, 2 }
 0x21d   :  { %v1745_v56 = vrot.slane %v1744_v2, 1  ;;  %v1821_v23 = vadd.f32 %v1820_v19, %v1819_v32 }
 0x21f   :  { %v1822_v59 = vrot.slane %v1821_v23, 1  ;;  %v1746_v38 = vadd.f32 %v1745_v56, %v1744_v2 }
 0x221   :  { %v1823_v60 = vadd.f32 %v1822_v59, %v1821_v23 }
 0x223   :  { %v1825_v36 = vsel %vm1824_vm0, %v1746_v38, %v1823_v60 }
 0x224   :  { %v1827_v30 = vsel %vm1826_vm1, %v1825_v36, 0.0 }
 0x225   :  { %1828 = vst [vmem:[%s3604_s4] sm:$0xff] %v1827_v30 }

// kernel: contextnet_apply.40
= control target key start
LH: loop header
LB: loop body
LE: loop exit
PB: predicated region body
PF: predicated region fallthrough
CT: control target
= control target key end

     0   :  { %s210_s1 = inlined_call_operand.vmem [shape: f32[1,8,128], index: 1, kind: input, shape index: {}]   ;;  %s211_s2 = inlined_call_operand.vmem [shape: f32[1,128], index: 2, kind: input, shape index: {}]   ;;  %s212_s0 = inlined_call_operand.vmem [shape: bf16[72,128], index: 0, kind: input, shape index: {}]   ;;  %s213_s3 = inlined_call_operand.vmem [shape: bf16[72,128], index: 3, kind: output, shape index: {}]  }
   0x1   :  { %v14_v0 = vld [vmem:[%s210_s1] sm:$0xff]  ;;  %v146_v15 = vld [vmem:[%s212_s0 + $0x8] sm:$0xff]   ;;  %v147_v16 = vld [vmem:[%s212_s0 + $0x10] sm:$0xff]  }
   0x2   :  { %v16_v1 = vmul.f32 0.013888889, %v14_v0  ;;  %v34_v10 = vld [vmem:[%s211_s2] sm:$0x1]  ;;  %v148_v17 = vld [vmem:[%s212_s0 + $0x18] sm:$0xff]   ;;  %v116_v22 = vunpack.c.l.bf16 %v146_v15  ;;  %v117_v23 = vunpack.c.h.bf16 %v146_v15  ;;  %v120_v26 = vunpack.c.l.bf16 %v147_v16 }
   0x3   :  { %v111_v13 = vld [vmem:[%s212_s0] sm:$0xff]   ;;  %v121_v27 = vunpack.c.h.bf16 %v147_v16  ;;  %v124_v28 = vunpack.c.l.bf16 %v148_v17  ;;  %v125_v31 = vunpack.c.h.bf16 %v148_v17 }
   0x4   :  { %v17_v2 = vmul.f32 %v16_v1, %v16_v1  ;;  %v35_v12 = vadd.f32 %v34_v10, %v16_v1  ;;  %v112_v19 = vunpack.c.l.bf16 %v111_v13  ;;  %v113_v21 = vunpack.c.h.bf16 %v111_v13  ;;  %v49_v24 = vld [vmem:[%s212_s0 + $0x20] sm:$0xf] }
   0x5   :  { %v58_v32 = vunpack.c.l.bf16 %v49_v24 }
   0x6   :  { %v19_v3 = vrot.slane %v17_v2, 7  ;;  %v36_v20 = vsub.f32 0.0, %v35_v12 }
   0x8   :  { %v21_v4 = vsub.f32 %v16_v1, %v19_v3 }
   0xa   :  { %v22_v5 = vmax.f32 %v21_v4, 0.0 }
   0xc   :  { %v23_v6 = vadd.f32 1e-05, %v22_v5 }
   0xe   :  { %152 = vrsqrt.f32 %v23_v6  ;;  %vm30_vm0 = vweird.f32 %v23_v6 }
  0x14   :  { %v153_v7 = vpop.eup %152 }
  0x15   :  { %v25_v8 = vmul.f32 %v153_v7, %v23_v6  ;;  %vm31_vm1 = vweird.f32 %v153_v7 }
  0x16   :  { %vm32_vm2 = vmor %vm30_vm0, %vm31_vm1 }
  0x17   :  { %v26_v9 = vmul.f32 %v153_v7, %v25_v8 }
  0x19   :  { %v27_v11 = vmul.f32 0.5, %v26_v9 }
  0x1b   :  { %v28_v14 = vsub.f32 1.5, %v27_v11 }
  0x1d   :  { %v29_v18 = vmul.f32 %v153_v7, %v28_v14 }
  0x1f   :  { %v33_v25 = vsel %vm32_vm2, %v153_v7, %v29_v18 }
  0x20   :  { %v38_v29 = vrot.slane %v33_v25, 1  ;;  %v59_v30 = vperm.slane %v33_v25, 1 }
  0x22   :  { %v40_v33 = vmul.f32 %v38_v29, %v36_v20  ;;  %v60_v34 = vmul.f32 %v112_v19, %v59_v30  ;;  %v61_v35 = vmul.f32 %v113_v21, %v59_v30  ;;  %v62_v36 = vmul.f32 %v116_v22, %v59_v30 }
  0x23   :  { %v63_v37 = vmul.f32 %v117_v23, %v59_v30  ;;  %v64_v38 = vmul.f32 %v120_v26, %v59_v30  ;;  %v65_v39 = vmul.f32 %v121_v27, %v59_v30  ;;  %v66_v40 = vmul.f32 %v124_v28, %v59_v30 }
  0x24   :  { %v69_v41 = vperm.slane %v40_v33, 0  ;;  %v67_v42 = vmul.f32 %v125_v31, %v59_v30  ;;  %v68_v43 = vmul.f32 %v59_v30, %v58_v32 }
  0x26   :  { %v70_v44 = vadd.f32 %v69_v41, %v60_v34  ;;  %v71_v45 = vadd.f32 %v69_v41, %v61_v35  ;;  %v72_v46 = vadd.f32 %v69_v41, %v62_v36  ;;  %v73_v47 = vadd.f32 %v69_v41, %v63_v37 }
  0x27   :  { %v74_v48 = vadd.f32 %v69_v41, %v64_v38  ;;  %v75_v49 = vadd.f32 %v69_v41, %v65_v39  ;;  %v76_v50 = vadd.f32 %v69_v41, %v66_v40  ;;  %v77_v51 = vadd.f32 %v69_v41, %v67_v42 }
  0x28   :  { %v79_v52 = vmax.f32 %v70_v44, 0.0  ;;  %v80_v53 = vmax.f32 %v71_v45, 0.0  ;;  %v81_v54 = vmax.f32 %v72_v46, 0.0  ;;  %v82_v55 = vmax.f32 %v73_v47, 0.0 }
  0x29   :  { %v83_v56 = vmax.f32 %v74_v48, 0.0  ;;  %v84_v57 = vmax.f32 %v75_v49, 0.0  ;;  %v85_v58 = vmax.f32 %v76_v50, 0.0  ;;  %v86_v59 = vmax.f32 %v77_v51, 0.0 }
  0x2a   :  { %v129_v60 = vpack.c.bf16 %v80_v53, %v79_v52  ;;  %v134_v61 = vpack.c.bf16 %v82_v55, %v81_v54  ;;  %v78_v62 = vadd.f32 %v69_v41, %v68_v43 }
  0x2b   :  { %v139_v63 = vpack.c.bf16 %v84_v57, %v83_v56  ;;  %v144_v0 = vpack.c.bf16 %v86_v59, %v85_v58 }
  0x2c   :  { %130 = vst [vmem:[%s213_s3] sm:$0xff] %v129_v60   ;;  %v87_v1 = vmax.f32 %v78_v62, 0.0 }
  0x2d   :  { %149 = vst [vmem:[%s213_s3 + $0x8] sm:$0xff] %v134_v61  }
  0x2e   :  { %150 = vst [vmem:[%s213_s3 + $0x10] sm:$0xff] %v139_v63   ;;  %v96_v2 = vpack.c.bf16 %v87_v1, %v87_v1 }
  0x2f   :  { %151 = vst [vmem:[%s213_s3 + $0x18] sm:$0xff] %v144_v0  }
  0x30   :  { %105 = vst [vmem:[%s213_s3 + $0x20] sm:$0xf] %v96_v2 }

// kernel: contextnet_apply.39
= control target key start
LH: loop header
LB: loop body
LE: loop exit
PB: predicated region body
PF: predicated region fallthrough
CT: control target
= control target key end

     0   :  { %vm770_vm0 = vcmask 1040384   ;;  %vm772_vm1 = vcmask 1041408   ;;  %s1442_s1 = inlined_call_operand.vmem [shape: bf16[640,128], index: 1, kind: input, shape index: {}]   ;;  %s1443_s0 = inlined_call_operand.vmem [shape: bf16[72,640], index: 0, kind: input, shape index: {}]   ;;  %s1444_s2 = inlined_call_operand.vmem [shape: f32[1,128], index: 2, kind: input, shape index: {}]   ;;  %s1445_s3 = inlined_call_operand.vmem [shape: bf16[72,128], index: 3, kind: output, shape index: {0}]   ;;  %s1446_s4 = inlined_call_operand.vmem [shape: f32[1,8,128], index: 4, kind: output, shape index: {1}]  }
   0x1   :  { %v1050_v0 = vld [vmem:[%s1442_s1 + $0x38] sm:$0xff]  ;;  %v1049_v1 = vld [vmem:[%s1442_s1 + $0x30] sm:$0xff]  ;;  %v1048_v4 = vld [vmem:[%s1442_s1 + $0x28] sm:$0xff] }
   0x2   :  { %507 = vmatpush.bf16.msra.mxu0 %v1050_v0  ;;  %1106 = vmatpush.bf16.msra.mxu1 %v1050_v0  ;;  %v1074_v2 = vld [vmem:[%s1442_s1 + $0xf8] sm:$0xff]  ;;  %v1073_v3 = vld [vmem:[%s1442_s1 + $0xf0] sm:$0xff]  ;;  %v1072_v5 = vld [vmem:[%s1442_s1 + $0xe8] sm:$0xff] }
   0x3   :  { %1107 = vmatpush.bf16.msra.mxu2 %v1050_v0  ;;  %606 = vmatpush.bf16.msra.mxu3 %v1074_v2  ;;  %v1047_v6 = vld [vmem:[%s1442_s1 + $0x20] sm:$0xff]  ;;  %v1046_v8 = vld [vmem:[%s1442_s1 + $0x18] sm:$0xff]  ;;  %v1045_v10 = vld [vmem:[%s1442_s1 + $0x10] sm:$0xff] }
   0x4   :  { %v1071_v7 = vld [vmem:[%s1442_s1 + $0xe0] sm:$0xff]  ;;  %v1070_v9 = vld [vmem:[%s1442_s1 + $0xd8] sm:$0xff]  ;;  %v1069_v11 = vld [vmem:[%s1442_s1 + $0xd0] sm:$0xff] }
   0x5   :  { %v1044_v12 = vld [vmem:[%s1442_s1 + $0x8] sm:$0xff]  ;;  %v1190_v13 = vld [vmem:[%s1443_s0 + $0xa0] sm:$0xff]  ;;  %v1025_v17 = vld [vmem:[%s1443_s0 + $0x10] sm:$0xf0] }
   0x6   :  { %508 = vmatpush.bf16.msra.mxu0 %v1049_v1  ;;  %1108 = vmatpush.bf16.msra.mxu1 %v1049_v1  ;;  %v1068_v14 = vld [vmem:[%s1442_s1 + $0xc8] sm:$0xff]  ;;  %v1043_v15 = vld [vmem:[%s1442_s1] sm:$0xff]  ;;  %v825_v18 = vld [vmem:[%s1443_s0 + $0x50] sm:$0xf]  ;;  %v212_v20 = vunpack.c.l.b16 %v1190_v13 }
   0x7   :  { %1109 = vmatpush.bf16.msra.mxu2 %v1049_v1  ;;  %607 = vmatpush.bf16.msra.mxu3 %v1073_v3  ;;  %v785_v16 = vld [vmem:[%s1443_s0] sm:$0xf]  ;;  %v1035_v19 = vld [vmem:[%s1443_s0 + $0x60] sm:$0xf0]  ;;  %v1058_v21 = vld [vmem:[%s1442_s1 + $0x78] sm:$0xff] }
   0x8   :  { %v1066_v22 = vld [vmem:[%s1442_s1 + $0xb8] sm:$0xff]  ;;  %v786_v24 = vor.u32 %v1025_v17, %v785_v16  ;;  %v826_v25 = vor.u32 %v1035_v19, %v825_v18  ;;  %v237_v26 = vpack.c.b16 %v212_v20, %v212_v20  ;;  %v1067_v27 = vld [vmem:[%s1442_s1 + $0xc0] sm:$0xff]  ;;  %v1024_v28 = vld [vmem:[%s1443_s0 + $0xc] sm:$0xf] }
   0x9   :  { %v1082_v23 = vld [vmem:[%s1442_s1 + $0x138] sm:$0xff]  ;;  %v795_v29 = vld [vmem:[%s1443_s0 + $0x1c] sm:$0xf0]  ;;  %v1057_v30 = vld [vmem:[%s1442_s1 + $0x70] sm:$0xff] }
   0xa   :  { %509 = vmatpush.bf16.msra.mxu0 %v1048_v4  ;;  %1110 = vmatpush.bf16.msra.mxu1 %v1048_v4  ;;  %v1065_v31 = vld [vmem:[%s1442_s1 + $0xb0] sm:$0xff]  ;;  %v798_v33 = vor.u32 %v1024_v28, %v795_v29  ;;  %v1056_v34 = vld [vmem:[%s1442_s1 + $0x68] sm:$0xff]  ;;  %v1055_v37 = vld [vmem:[%s1442_s1 + $0x60] sm:$0xff] }
   0xb   :  { %1111 = vmatpush.bf16.msra.mxu2 %v1048_v4  ;;  %608 = vmatpush.bf16.msra.mxu3 %v1072_v5  ;;  %v1081_v32 = vld [vmem:[%s1442_s1 + $0x130] sm:$0xff]  ;;  %v1064_v35 = vld [vmem:[%s1442_s1 + $0xa8] sm:$0xff]  ;;  %v1063_v38 = vld [vmem:[%s1442_s1 + $0xa0] sm:$0xff] }
   0xc   :  { %v1080_v36 = vld [vmem:[%s1442_s1 + $0x128] sm:$0xff]  ;;  %v1079_v39 = vld [vmem:[%s1442_s1 + $0x120] sm:$0xff]  ;;  %v1030_v41 = vld [vmem:[%s1443_s0 + $0x38] sm:$0xf0] }
   0xd   :  { %v805_v40 = vld [vmem:[%s1443_s0 + $0x28] sm:$0xf]  ;;  %v845_v42 = vld [vmem:[%s1443_s0 + $0x78] sm:$0xf]  ;;  %v1040_v43 = vld [vmem:[%s1443_s0 + $0x88] sm:$0xf0] }
   0xe   :  { %510 = vmatpush.bf16.msra.mxu0 %v1047_v6  ;;  %1112 = vmatpush.bf16.msra.mxu1 %v1047_v6  ;;  %v1054_v44 = vld [vmem:[%s1442_s1 + $0x58] sm:$0xff]  ;;  %v806_v47 = vor.u32 %v1030_v41, %v805_v40  ;;  %v846_v48 = vor.u32 %v1040_v43, %v845_v42  ;;  %v1029_v49 = vld [vmem:[%s1443_s0 + $0x34] sm:$0xf]  ;;  %v815_v50 = vld [vmem:[%s1443_s0 + $0x44] sm:$0xf0] }
   0xf   :  { %1113 = vmatpush.bf16.msra.mxu2 %v1047_v6  ;;  %609 = vmatpush.bf16.msra.mxu3 %v1071_v7  ;;  %v1062_v45 = vld [vmem:[%s1442_s1 + $0x98] sm:$0xff]  ;;  %v1053_v51 = vld [vmem:[%s1442_s1 + $0x50] sm:$0xff]  ;;  %v818_v54 = vor.u32 %v1029_v49, %v815_v50  ;;  %v1052_v55 = vld [vmem:[%s1442_s1 + $0x48] sm:$0xff] }
  0x10   :  { %v1078_v46 = vld [vmem:[%s1442_s1 + $0x118] sm:$0xff]  ;;  %v1061_v52 = vld [vmem:[%s1442_s1 + $0x90] sm:$0xff]  ;;  %v1060_v56 = vld [vmem:[%s1442_s1 + $0x88] sm:$0xff] }
  0x11   :  { %v1077_v53 = vld [vmem:[%s1442_s1 + $0x110] sm:$0xff]  ;;  %v1076_v57 = vld [vmem:[%s1442_s1 + $0x108] sm:$0xff]  ;;  %v1059_v58 = vld [vmem:[%s1442_s1 + $0x80] sm:$0xff] }
  0x12   :  { %511 = vmatpush.bf16.msra.mxu0 %v1046_v8  ;;  %1114 = vmatpush.bf16.msra.mxu1 %v1046_v8  ;;  %v1051_v59 = vld [vmem:[%s1442_s1 + $0x40] sm:$0xff]  ;;  %v793_v60 = vld [vmem:[%s1443_s0 + $0x8] sm:$0xf]  ;;  %v1026_v61 = vld [vmem:[%s1443_s0 + $0x18] sm:$0xf0] }
  0x13   :  { %1115 = vmatpush.bf16.msra.mxu2 %v1046_v8  ;;  %610 = vmatpush.bf16.msra.mxu3 %v1070_v9  ;;  %v1075_v62 = vld [vmem:[%s1442_s1 + $0x100] sm:$0xff]  ;;  %v787_v0 = vld [vmem:[%s1443_s0 + $0x14] sm:$0xf0]  ;;  %v801_v1 = vld [vmem:[%s1443_s0 + $0x10] sm:$0xf]  ;;  %v794_v3 = vor.u32 %v1026_v61, %v793_v60 }
  0x14   :  { %v1023_v63 = vld [vmem:[%s1443_s0 + $0x4] sm:$0xf]  ;;  %v1034_v6 = vld [vmem:[%s1443_s0 + $0x5c] sm:$0xf]  ;;  %v835_v7 = vld [vmem:[%s1443_s0 + $0x6c] sm:$0xf0] }
  0x15   :  { %v1027_v2 = vld [vmem:[%s1443_s0 + $0x20] sm:$0xf0]  ;;  %v790_v4 = vor.u32 %v1023_v63, %v787_v0  ;;  %v838_v8 = vor.u32 %v1034_v6, %v835_v7  ;;  %v813_v9 = vld [vmem:[%s1443_s0 + $0x30] sm:$0xf]  ;;  %v855_v20 = vld [vmem:[%s1443_s0 + $0x94] sm:$0xf0] }
  0x16   :  { %512 = vmatpush.bf16.msra.mxu0 %v1045_v10  ;;  %1116 = vmatpush.bf16.msra.mxu1 %v1045_v10  ;;  %v802_v5 = vor.u32 %v1027_v2, %v801_v1  ;;  %v1039_v19 = vld [vmem:[%s1443_s0 + $0x84] sm:$0xf]  ;;  %v63_v28 = vld [vmem:[%s1443_s0 + $0xa8] sm:$0xff]  ;;  %v64_v43 = vld [vmem:[%s1443_s0 + $0xb0] sm:$0xf] }
  0x17   :  { %1117 = vmatpush.bf16.msra.mxu2 %v1045_v10  ;;  %611 = vmatpush.bf16.msra.mxu3 %v1069_v11  ;;  %v1031_v10 = vld [vmem:[%s1443_s0 + $0x40] sm:$0xf0]  ;;  %v1028_v11 = vld [vmem:[%s1443_s0 + $0x2c] sm:$0xf] }
  0x18   :  { %v814_v16 = vor.u32 %v1031_v10, %v813_v9 }
  0x1a   :  { %513 = vmatpush.bf16.msra.mxu0 %v1044_v12  ;;  %1118 = vmatpush.bf16.msra.mxu1 %v1044_v12 }
  0x1b   :  { %1119 = vmatpush.bf16.msra.mxu2 %v1044_v12  ;;  %612 = vmatpush.bf16.msra.mxu3 %v1068_v14  ;;  %v807_v12 = vld [vmem:[%s1443_s0 + $0x3c] sm:$0xf0]  ;;  %v821_v14 = vld [vmem:[%s1443_s0 + $0x38] sm:$0xf] }
  0x1c   :  { %v810_v17 = vor.u32 %v1028_v11, %v807_v12  ;;  %v1410_v12 = vld [vmem:[%s1444_s2] ss:$0 sm:$0xff] }
  0x1e   :  { %514 = vmatpush.bf16.msra.mxu0 %v1043_v15  ;;  %1120 = vmatpush.bf16.msra.mxu1 %v1043_v15 }
  0x1f   :  { %1121 = vmatpush.bf16.msra.mxu2 %v1043_v15  ;;  %613 = vmatpush.bf16.msra.mxu3 %v1067_v27  ;;  %v1032_v15 = vld [vmem:[%s1443_s0 + $0x48] sm:$0xf0]  ;;  %v1037_v27 = vld [vmem:[%s1443_s0 + $0x70] sm:$0xf0] }
  0x20   :  { %v822_v18 = vor.u32 %v1032_v15, %v821_v14 }
  0x21   :  { %515 = vmatmul.bf16.vlgmr.msra.gmra.mxu0 %v786_v24  ;;  %525 = vmatmul.bf16.vlgmr.msra.gmra.mxu1 %v826_v25  ;;  %v1033_v24 = vld [vmem:[%s1443_s0 + $0x54] sm:$0xf]  ;;  %v827_v25 = vld [vmem:[%s1443_s0 + $0x64] sm:$0xf0] }
  0x22   :  { %540 = vmatpush.bf16.msrb.mxu1 %v1058_v21  ;;  %639 = vmatpush.bf16.msrb.mxu0 %v1082_v23  ;;  %v858_v21 = vor.u32 %v1039_v19, %v855_v20  ;;  %v1036_v23 = vld [vmem:[%s1443_s0 + $0x68] sm:$0xf0] }
  0x23   :  { %573 = vmatpush.bf16.msrb.mxu2 %v1066_v22  ;;  %614 = vmatmul.bf16.vlgmr.msra.gmra.mxu3 %v798_v33  ;;  %v833_v22 = vld [vmem:[%s1443_s0 + $0x58] sm:$0xf] }
  0x24   :  { %535 = vmatmul.bf16.vlgmr.msra.gmra.mxu2 %v237_v26  ;;  %v841_v26 = vld [vmem:[%s1443_s0 + $0x60] sm:$0xf]  ;;  %v834_v29 = vor.u32 %v1036_v23, %v833_v22 }
  0x26   :  { %541 = vmatpush.bf16.msrb.mxu1 %v1057_v30  ;;  %640 = vmatpush.bf16.msrb.mxu0 %v1081_v32  ;;  %v830_v30 = vor.u32 %v1033_v24, %v827_v25  ;;  %v215_v32 = vunpack.c.h.b16 %v63_v28 }
  0x27   :  { %574 = vmatpush.bf16.msrb.mxu2 %v1065_v31  ;;  %v842_v31 = vor.u32 %v1037_v27, %v841_v26 }
  0x28   :  { %v240_v33 = vpack.c.b16 %v215_v32, %v215_v32 }
  0x2a   :  { %542 = vmatpush.bf16.msrb.mxu1 %v1056_v34  ;;  %641 = vmatpush.bf16.msrb.mxu0 %v1080_v36  ;;  %v853_v34 = vld [vmem:[%s1443_s0 + $0x80] sm:$0xf]  ;;  %v1038_v36 = vld [vmem:[%s1443_s0 + $0x7c] sm:$0xf] }
  0x2b   :  { %575 = vmatpush.bf16.msrb.mxu2 %v1064_v35  ;;  %v1041_v35 = vld [vmem:[%s1443_s0 + $0x90] sm:$0xf0] }
  0x2c   :  { %v854_v40 = vor.u32 %v1041_v35, %v853_v34 }
  0x2e   :  { %543 = vmatpush.bf16.msrb.mxu1 %v1055_v37  ;;  %642 = vmatpush.bf16.msrb.mxu0 %v1079_v39  ;;  %v847_v37 = vld [vmem:[%s1443_s0 + $0x8c] sm:$0xf0]  ;;  %v1042_v39 = vld [vmem:[%s1443_s0 + $0x98] sm:$0xf0] }
  0x2f   :  { %576 = vmatpush.bf16.msrb.mxu2 %v1063_v38  ;;  %v861_v38 = vld [vmem:[%s1443_s0 + $0x88] sm:$0xf]  ;;  %v850_v41 = vor.u32 %v1038_v36, %v847_v37 }
  0x30   :  { %v862_v42 = vor.u32 %v1042_v39, %v861_v38 }
  0x31   :  { %520 = vmatmul.bf16.gmra.mxu0 %v806_v47  ;;  %530 = vmatmul.bf16.gmra.mxu1 %v846_v48 }
  0x32   :  { %544 = vmatpush.bf16.msrb.mxu1 %v1054_v44  ;;  %643 = vmatpush.bf16.msrb.mxu0 %v1078_v46  ;;  %v214_v44 = vunpack.c.l.b16 %v63_v28  ;;  %v216_v46 = vunpack.c.l.b16 %v64_v43 }
  0x33   :  { %577 = vmatpush.bf16.msrb.mxu2 %v1062_v45  ;;  %619 = vmatmul.bf16.gmra.mxu3 %v818_v54  ;;  %v213_v45 = vunpack.c.h.b16 %v1190_v13 }
  0x34   :  { %v239_v47 = vpack.c.b16 %v214_v44, %v214_v44  ;;  %v241_v49 = vpack.c.b16 %v216_v46, %v216_v46 }
  0x35   :  { %v238_v48 = vpack.c.b16 %v213_v45, %v213_v45 }
  0x36   :  { %545 = vmatpush.bf16.msrb.mxu1 %v1053_v51  ;;  %644 = vmatpush.bf16.msrb.mxu0 %v1077_v53 }
  0x37   :  { %578 = vmatpush.bf16.msrb.mxu2 %v1061_v52 }
  0x3a   :  { %546 = vmatpush.bf16.msrb.mxu1 %v1052_v55  ;;  %645 = vmatpush.bf16.msrb.mxu0 %v1076_v57 }
  0x3b   :  { %579 = vmatpush.bf16.msrb.mxu2 %v1060_v56 }
  0x3e   :  { %547 = vmatpush.bf16.msrb.mxu1 %v1051_v59  ;;  %646 = vmatpush.bf16.msrb.mxu0 %v1075_v62 }
  0x3f   :  { %580 = vmatpush.bf16.msrb.mxu2 %v1059_v58 }
  0x41   :  { %548 = vmatmul.bf16.vlgmr.msrb.gmra.mxu1 %v790_v4  ;;  %647 = vmatmul.bf16.vlgmr.msrb.gmra.mxu0 %v802_v5 }
  0x42   :  { %581 = vmatmul.bf16.vlgmr.msrb.gmra.mxu2 %v794_v3 }
  0x43   :  { %624 = vmatmul.bf16.gmra.mxu3 %v838_v8 }
  0x51   :  { %553 = vmatmul.bf16.gmra.mxu1 %v810_v17  ;;  %652 = vmatmul.bf16.gmra.mxu0 %v822_v18 }
  0x52   :  { %586 = vmatmul.bf16.gmra.mxu2 %v814_v16 }
  0x53   :  { %629 = vmatmul.bf16.gmra.mxu3 %v858_v21 }
  0x61   :  { %558 = vmatmul.bf16.gmra.mxu1 %v830_v30  ;;  %657 = vmatmul.bf16.gmra.mxu0 %v842_v31 }
  0x62   :  { %591 = vmatmul.bf16.gmra.mxu2 %v834_v29 }
  0x63   :  { %634 = vmatmul.bf16.gmra.mxu3 %v240_v33 }
  0x71   :  { %563 = vmatmul.bf16.gmra.mxu1 %v850_v41  ;;  %662 = vmatmul.bf16.gmra.mxu0 %v862_v42 }
  0x72   :  { %596 = vmatmul.bf16.gmra.mxu2 %v854_v40 }
  0x81   :  { %568 = vmatmul.bf16.gmra.mxu1 %v238_v48  ;;  %667 = vmatmul.bf16.gmra.mxu0 %v241_v49 }
  0x82   :  { %601 = vmatmul.bf16.gmra.mxu2 %v239_v47 }
  0x9e   :  { %v516_v50 = vpop.f32.mrf.mxu0  ;;  %v526_v51 = vpop.f32.mrf.mxu1 }
  0xa6   :  { %v518_v53 = vpop.f32.mrf.mxu0  ;;  %v528_v54 = vpop.f32.mrf.mxu1 }
  0xa7   :  { %v1401_v52 = vpop.f32.mrf.mxu2  ;;  %v615_v55 = vpop.f32.mrf.mxu3 }
  0xae   :  { %v521_v57 = vpop.f32.mrf.mxu0  ;;  %v1403_v58 = vpop.f32.mrf.mxu1 }
  0xaf   :  { %v538_v56 = vpop.f32.mrf.mxu2  ;;  %v617_v59 = vpop.f32.mrf.mxu3 }
  0xb6   :  { %v523_v13 = vpop.f32.mrf.mxu0  ;;  %v1405_v60 = vpop.f32.mrf.mxu1 }
  0xb7   :  { %v620_v61 = vpop.f32.mrf.mxu3 }
  0xbe   :  { %v549_v62 = vpop.f32.mrf.mxu1  ;;  %v648_v63 = vpop.f32.mrf.mxu0 }
  0xbf   :  { %v622_v0 = vpop.f32.mrf.mxu3  ;;  %v550_v1 = vadd.f32 %v549_v62, %v516_v50 }
  0xc5   :  { %v582_v2 = vpop.f32.mrf.mxu2 }
  0xc6   :  { %v583_v3 = vadd.f32 %v582_v2, %v550_v1  ;;  %v551_v4 = vpop.f32.mrf.mxu1  ;;  %v650_v5 = vpop.f32.mrf.mxu0 }
  0xc7   :  { %v552_v6 = vadd.f32 %v551_v4, %v518_v53  ;;  %v625_v7 = vpop.f32.mrf.mxu3 }
  0xc8   :  { %v616_v8 = vadd.f32 %v615_v55, %v583_v3 }
  0xca   :  { %v649_v11 = vadd.f32 %v648_v63, %v616_v8 }
  0xcc   :  { %v706_v19 = vadd.f32 %v1410_v12, %v649_v11  ;;  %v747_v50 = vmul.f32 %v649_v11, %v649_v11 }
  0xcd   :  { %v584_v9 = vpop.f32.mrf.mxu2 }
  0xce   :  { %v585_v10 = vadd.f32 %v584_v9, %v552_v6  ;;  %v554_v15 = vpop.f32.mrf.mxu1  ;;  %v653_v16 = vpop.f32.mrf.mxu0 }
  0xcf   :  { %v627_v18 = vpop.f32.mrf.mxu3  ;;  %v555_v21 = vadd.f32 %v554_v15, %v521_v57 }
  0xd0   :  { %v618_v14 = vadd.f32 %v617_v59, %v585_v10 }
  0xd2   :  { %v651_v17 = vadd.f32 %v650_v5, %v618_v14 }
  0xd4   :  { %v707_v20 = vadd.f32 %v1410_v12, %v651_v17  ;;  %v748_v47 = vmul.f32 %v651_v17, %v651_v17 }
  0xd5   :  { %v587_v22 = vpop.f32.mrf.mxu2 }
  0xd6   :  { %v1086_v23 = vpack.c.bf16 %v707_v20, %v706_v19  ;;  %v588_v24 = vadd.f32 %v587_v22, %v555_v21  ;;  %v556_v25 = vpop.f32.mrf.mxu1  ;;  %v655_v26 = vpop.f32.mrf.mxu0  ;;  %v756_v57 = vadd.f32 %v748_v47, %v747_v50 }
  0xd7   :  { %v557_v27 = vadd.f32 %v556_v25, %v523_v13  ;;  %v630_v28 = vpop.f32.mrf.mxu3 }
  0xd8   :  { %1087 = vst [vmem:[%s1445_s3] sm:$0xff] %v1086_v23   ;;  %v621_v29 = vadd.f32 %v620_v61, %v588_v24 }
  0xda   :  { %v654_v32 = vadd.f32 %v653_v16, %v621_v29 }
  0xdc   :  { %v708_v39 = vadd.f32 %v1410_v12, %v654_v32  ;;  %v749_v53 = vmul.f32 %v654_v32, %v654_v32 }
  0xdd   :  { %v589_v30 = vpop.f32.mrf.mxu2 }
  0xde   :  { %v590_v31 = vadd.f32 %v589_v30, %v557_v27  ;;  %v559_v34 = vpop.f32.mrf.mxu1  ;;  %v658_v35 = vpop.f32.mrf.mxu0  ;;  %v757_v62 = vadd.f32 %v756_v57, %v749_v53 }
  0xdf   :  { %v560_v37 = vadd.f32 %v559_v34, %v526_v51  ;;  %v632_v38 = vpop.f32.mrf.mxu3  ;;  %v733_v51 = vadd.f32 %v651_v17, %v649_v11 }
  0xe0   :  { %v623_v33 = vadd.f32 %v622_v0, %v590_v31 }
  0xe1   :  { %v734_v59 = vadd.f32 %v733_v51, %v654_v32 }
  0xe2   :  { %v656_v36 = vadd.f32 %v655_v26, %v623_v33 }
  0xe4   :  { %v709_v40 = vadd.f32 %v1410_v12, %v656_v36  ;;  %v750_v13 = vmul.f32 %v656_v36, %v656_v36  ;;  %v735_v63 = vadd.f32 %v734_v59, %v656_v36 }
  0xe5   :  { %v592_v41 = vpop.f32.mrf.mxu2 }
  0xe6   :  { %v1091_v42 = vpack.c.bf16 %v709_v40, %v708_v39  ;;  %v593_v43 = vadd.f32 %v592_v41, %v560_v37  ;;  %v561_v45 = vpop.f32.mrf.mxu1  ;;  %v660_v46 = vpop.f32.mrf.mxu0  ;;  %v758_v4 = vadd.f32 %v757_v62, %v750_v13 }
  0xe7   :  { %v562_v48 = vadd.f32 %v561_v45, %v528_v54  ;;  %v635_v49 = vpop.f32.mrf.mxu3 }
  0xe8   :  { %1103 = vst [vmem:[%s1445_s3 + $0x8] sm:$0xff] %v1091_v42   ;;  %v626_v44 = vadd.f32 %v625_v7, %v593_v43 }
  0xea   :  { %v659_v55 = vadd.f32 %v658_v35, %v626_v44 }
  0xec   :  { %v751_v0 = vmul.f32 %v659_v55, %v659_v55  ;;  %v736_v5 = vadd.f32 %v735_v63, %v659_v55  ;;  %v710_v7 = vadd.f32 %v1410_v12, %v659_v55 }
  0xed   :  { %v594_v56 = vpop.f32.mrf.mxu2 }
  0xee   :  { %v595_v61 = vadd.f32 %v594_v56, %v562_v48  ;;  %v564_v2 = vpop.f32.mrf.mxu1  ;;  %v663_v3 = vpop.f32.mrf.mxu0  ;;  %v759_v9 = vadd.f32 %v758_v4, %v751_v0 }
  0xef   :  { %v565_v54 = vadd.f32 %v564_v2, %v1403_v58  ;;  %v637_v8 = vpop.f32.mrf.mxu3 }
  0xf0   :  { %v628_v1 = vadd.f32 %v627_v18, %v595_v61 }
  0xf2   :  { %v661_v6 = vadd.f32 %v660_v46, %v628_v1 }
  0xf4   :  { %v711_v10 = vadd.f32 %v1410_v12, %v661_v6  ;;  %v737_v11 = vadd.f32 %v736_v5, %v661_v6  ;;  %v752_v14 = vmul.f32 %v661_v6, %v661_v6 }
  0xf5   :  { %v597_v15 = vpop.f32.mrf.mxu2 }
  0xf6   :  { %v1096_v16 = vpack.c.bf16 %v711_v10, %v710_v7  ;;  %v760_v17 = vadd.f32 %v759_v9, %v752_v14  ;;  %v598_v19 = vadd.f32 %v597_v15, %v565_v54  ;;  %v566_v20 = vpop.f32.mrf.mxu1  ;;  %v665_v21 = vpop.f32.mrf.mxu0 }
  0xf7   :  { %v567_v22 = vadd.f32 %v566_v20, %v1405_v60 }
  0xf8   :  { %1104 = vst [vmem:[%s1445_s3 + $0x10] sm:$0xff] %v1096_v16   ;;  %v631_v18 = vadd.f32 %v630_v28, %v598_v19 }
  0xfa   :  { %v664_v58 = vadd.f32 %v663_v3, %v631_v18 }
  0xfc   :  { %v738_v23 = vadd.f32 %v737_v11, %v664_v58  ;;  %v753_v24 = vmul.f32 %v664_v58, %v664_v58  ;;  %v712_v34 = vadd.f32 %v1410_v12, %v664_v58 }
  0xfd   :  { %v599_v25 = vpop.f32.mrf.mxu2 }
  0xfe   :  { %v761_v26 = vadd.f32 %v760_v17, %v753_v24  ;;  %v600_v27 = vadd.f32 %v599_v25, %v567_v22  ;;  %v569_v30 = vpop.f32.mrf.mxu1  ;;  %v668_v31 = vpop.f32.mrf.mxu0 }
  0xff   :  { %v570_v33 = vadd.f32 %v569_v30, %v1401_v52 }
 0x100   :  { %v633_v29 = vadd.f32 %v632_v38, %v600_v27 }
 0x102   :  { %v666_v32 = vadd.f32 %v665_v21, %v633_v29 }
 0x104   :  { %v713_v28 = vadd.f32 %v1410_v12, %v666_v32  ;;  %v739_v35 = vadd.f32 %v738_v23, %v666_v32  ;;  %v754_v36 = vmul.f32 %v666_v32, %v666_v32 }
 0x105   :  { %v602_v37 = vpop.f32.mrf.mxu2 }
 0x106   :  { %v1101_v39 = vpack.c.bf16 %v713_v28, %v712_v34  ;;  %v762_v60 = vadd.f32 %v761_v26, %v754_v36  ;;  %v603_v40 = vadd.f32 %v602_v37, %v570_v33  ;;  %v571_v41 = vpop.f32.mrf.mxu1  ;;  %v670_v42 = vpop.f32.mrf.mxu0 }
 0x108   :  { %1105 = vst [vmem:[%s1445_s3 + $0x18] sm:$0xff] %v1101_v39   ;;  %v636_v38 = vadd.f32 %v635_v49, %v603_v40 }
 0x10a   :  { %v669_v43 = vadd.f32 %v668_v31, %v636_v38 }
 0x10c   :  { %v714_v52 = vadd.f32 %v1410_v12, %v669_v43  ;;  %v740_v44 = vadd.f32 %v739_v35, %v669_v43  ;;  %v755_v45 = vmul.f32 %v669_v43, %v669_v43 }
 0x10d   :  { %v604_v46 = vpop.f32.mrf.mxu2 }
 0x10e   :  { %v723_v47 = vpack.c.bf16 %v714_v52, %v714_v52  ;;  %v741_v48 = vrot.slane %v740_v44, 4  ;;  %v763_v50 = vadd.f32 %v762_v60, %v755_v45 }
 0x110   :  { %732 = vst [vmem:[%s1445_s3 + $0x20] sm:$0xf] %v723_v47  ;;  %v742_v51 = vadd.f32 %v741_v48, %v740_v44  ;;  %v764_v53 = vrot.slane %v763_v50, 4 }
 0x112   :  { %v743_v55 = vrot.slane %v742_v51, 2  ;;  %v765_v56 = vadd.f32 %v764_v53, %v763_v50 }
 0x114   :  { %v744_v49 = vadd.f32 %v743_v55, %v742_v51  ;;  %v766_v57 = vrot.slane %v765_v56, 2 }
 0x116   :  { %v745_v59 = vrot.slane %v744_v49, 1  ;;  %v767_v13 = vadd.f32 %v766_v57, %v765_v56 }
 0x118   :  { %v768_v61 = vrot.slane %v767_v13, 1  ;;  %v746_v12 = vadd.f32 %v745_v59, %v744_v49 }
 0x11a   :  { %v769_v62 = vadd.f32 %v768_v61, %v767_v13 }
 0x11c   :  { %v771_v63 = vsel %vm770_vm0, %v746_v12, %v769_v62 }
 0x11d   :  { %v773_v0 = vsel %vm772_vm1, %v771_v63, 0.0 }
 0x11e   :  { %774 = vst [vmem:[%s1446_s4] sm:$0xff] %v773_v0 }

// kernel: contextnet_apply.43
= control target key start
LH: loop header
LB: loop body
LE: loop exit
PB: predicated region body
PF: predicated region fallthrough
CT: control target
= control target key end

     0   :  { %s406_s1 = inlined_call_operand.vmem [shape: f32[1,8,128], index: 1, kind: input, shape index: {}]   ;;  %s407_s4 = inlined_call_operand.vmem [shape: f32[1,8,128], index: 4, kind: input, shape index: {}]   ;;  %s408_s2 = inlined_call_operand.vmem [shape: f32[1,128], index: 2, kind: input, shape index: {}]   ;;  %s409_s5 = inlined_call_operand.vmem [shape: f32[1,128], index: 5, kind: input, shape index: {}]   ;;  %s410_s0 = inlined_call_operand.vmem [shape: bf16[72,128], index: 0, kind: input, shape index: {}]   ;;  %s411_s3 = inlined_call_operand.vmem [shape: bf16[72,128], index: 3, kind: input, shape index: {}]   ;;  %s412_s6 = inlined_call_operand.vmem [shape: bf16[72,128], index: 6, kind: output, shape index: {}]  }
   0x1   :  { %v23_v0 = vld [vmem:[%s406_s1] sm:$0xff]  ;;  %v254_v28 = vld [vmem:[%s410_s0 + $0x8] sm:$0xff]   ;;  %v255_v32 = vld [vmem:[%s410_s0 + $0x10] sm:$0xff]  }
   0x2   :  { %v50_v1 = vld [vmem:[%s407_s4] sm:$0xff]  ;;  %v25_v2 = vmul.f32 0.013888889, %v23_v0  ;;  %v257_v31 = vld [vmem:[%s411_s3 + $0x8] sm:$0xff]   ;;  %v258_v37 = vld [vmem:[%s411_s3 + $0x10] sm:$0xff]   ;;  %v208_v41 = vunpack.c.l.bf16 %v254_v28  ;;  %v209_v42 = vunpack.c.h.bf16 %v254_v28  ;;  %v212_v48 = vunpack.c.l.bf16 %v255_v32 }
   0x3   :  { %v52_v3 = vmul.f32 0.013888889, %v50_v1  ;;  %v43_v15 = vld [vmem:[%s408_s2] sm:$0x1]  ;;  %v340_v43 = vld [vmem:[%s410_s0 + $0x18] sm:$0xff]   ;;  %v224_v46 = vunpack.c.l.bf16 %v257_v31  ;;  %v225_v47 = vunpack.c.h.bf16 %v257_v31  ;;  %v213_v51 = vunpack.c.h.bf16 %v255_v32 }
   0x4   :  { %v26_v4 = vmul.f32 %v25_v2, %v25_v2  ;;  %v70_v18 = vld [vmem:[%s409_s5] sm:$0x1]  ;;  %v44_v22 = vadd.f32 %v43_v15, %v25_v2  ;;  %v352_v49 = vld [vmem:[%s411_s3 + $0x18] sm:$0xff]   ;;  %v228_v52 = vunpack.c.l.bf16 %v258_v37  ;;  %v229_v53 = vunpack.c.h.bf16 %v258_v37 }
   0x5   :  { %v53_v5 = vmul.f32 %v52_v3, %v52_v3  ;;  %v203_v20 = vld [vmem:[%s410_s0] sm:$0xff]   ;;  %v71_v24 = vadd.f32 %v70_v18, %v52_v3  ;;  %v216_v56 = vunpack.c.l.bf16 %v340_v43  ;;  %v217_v57 = vunpack.c.h.bf16 %v340_v43 }
   0x6   :  { %v28_v6 = vrot.slane %v26_v4, 7  ;;  %v219_v25 = vld [vmem:[%s411_s3] sm:$0xff]   ;;  %v204_v27 = vunpack.c.l.bf16 %v203_v20  ;;  %v205_v30 = vunpack.c.h.bf16 %v203_v20  ;;  %v45_v34 = vsub.f32 0.0, %v44_v22 }
   0x7   :  { %v55_v7 = vrot.slane %v53_v5, 7  ;;  %v220_v35 = vunpack.c.l.bf16 %v219_v25  ;;  %v221_v36 = vunpack.c.h.bf16 %v219_v25  ;;  %v72_v40 = vsub.f32 0.0, %v71_v24  ;;  %v345_v44 = vld [vmem:[%s410_s0 + $0x20] sm:$0xf] }
   0x8   :  { %v30_v8 = vsub.f32 %v25_v2, %v28_v6  ;;  %v357_v54 = vld [vmem:[%s411_s3 + $0x20] sm:$0xf]  ;;  %v94_v58 = vunpack.c.l.bf16 %v345_v44  ;;  %v232_v62 = vunpack.c.l.bf16 %v352_v49  ;;  %v233_v1 = vunpack.c.h.bf16 %v352_v49 }
   0x9   :  { %v57_v9 = vsub.f32 %v52_v3, %v55_v7  ;;  %v141_v2 = vunpack.c.l.bf16 %v357_v54 }
   0xa   :  { %v31_v10 = vmax.f32 %v30_v8, 0.0 }
   0xb   :  { %v58_v11 = vmax.f32 %v57_v9, 0.0 }
   0xc   :  { %v32_v12 = vadd.f32 1e-05, %v31_v10 }
   0xd   :  { %v59_v13 = vadd.f32 1e-05, %v58_v11 }
   0xe   :  { %263 = vrsqrt.f32 %v32_v12  ;;  %vm39_vm0 = vweird.f32 %v32_v12 }
   0xf   :  { %265 = vrsqrt.f32 %v59_v13  ;;  %vm66_vm2 = vweird.f32 %v59_v13 }
  0x14   :  { %v264_v14 = vpop.eup %263 }
  0x15   :  { %v266_v16 = vpop.eup %265  ;;  %v34_v17 = vmul.f32 %v264_v14, %v32_v12  ;;  %vm40_vm1 = vweird.f32 %v264_v14 }
  0x16   :  { %v61_v19 = vmul.f32 %v266_v16, %v59_v13  ;;  %vm67_vm3 = vweird.f32 %v266_v16  ;;  %vm333_vm4 = vmor %vm39_vm0, %vm40_vm1 }
  0x17   :  { %v35_v21 = vmul.f32 %v264_v14, %v34_v17  ;;  %vm68_vm5 = vmor %vm66_vm2, %vm67_vm3 }
  0x18   :  { %v62_v23 = vmul.f32 %v266_v16, %v61_v19 }
  0x19   :  { %v36_v26 = vmul.f32 0.5, %v35_v21 }
  0x1a   :  { %v63_v29 = vmul.f32 0.5, %v62_v23 }
  0x1b   :  { %v37_v33 = vsub.f32 1.5, %v36_v26 }
  0x1c   :  { %v64_v39 = vsub.f32 1.5, %v63_v29 }
  0x1d   :  { %v38_v45 = vmul.f32 %v264_v14, %v37_v33 }
  0x1e   :  { %v65_v50 = vmul.f32 %v266_v16, %v64_v39 }
  0x1f   :  { %v42_v55 = vsel %vm333_vm4, %v264_v14, %v38_v45 }
  0x20   :  { %v47_v59 = vrot.slane %v42_v55, 1  ;;  %v69_v60 = vsel %vm68_vm5, %v266_v16, %v65_v50  ;;  %v364_v61 = vperm.slane %v42_v55, 1 }
  0x21   :  { %v74_v63 = vrot.slane %v69_v60, 1  ;;  %v367_v0 = vperm.slane %v69_v60, 1 }
  0x22   :  { %v49_v3 = vmul.f32 %v47_v59, %v45_v34  ;;  %v96_v4 = vmul.f32 %v204_v27, %v364_v61  ;;  %v97_v5 = vmul.f32 %v205_v30, %v364_v61  ;;  %v98_v6 = vmul.f32 %v208_v41, %v364_v61 }
  0x23   :  { %v76_v7 = vmul.f32 %v74_v63, %v72_v40  ;;  %v143_v8 = vmul.f32 %v220_v35, %v367_v0  ;;  %v144_v9 = vmul.f32 %v221_v36, %v367_v0  ;;  %v99_v10 = vmul.f32 %v209_v42, %v364_v61 }
  0x24   :  { %v105_v11 = vperm.slane %v49_v3, 0  ;;  %v145_v12 = vmul.f32 %v224_v46, %v367_v0  ;;  %v146_v13 = vmul.f32 %v225_v47, %v367_v0  ;;  %v100_v14 = vmul.f32 %v212_v48, %v364_v61 }
  0x25   :  { %v152_v15 = vperm.slane %v76_v7, 0  ;;  %v101_v16 = vmul.f32 %v213_v51, %v364_v61  ;;  %v147_v17 = vmul.f32 %v228_v52, %v367_v0  ;;  %v148_v18 = vmul.f32 %v229_v53, %v367_v0 }
  0x26   :  { %v106_v19 = vadd.f32 %v105_v11, %v96_v4  ;;  %v107_v20 = vadd.f32 %v105_v11, %v97_v5  ;;  %v108_v21 = vadd.f32 %v105_v11, %v98_v6  ;;  %v109_v22 = vadd.f32 %v105_v11, %v99_v10 }
  0x27   :  { %v153_v23 = vadd.f32 %v152_v15, %v143_v8  ;;  %v154_v24 = vadd.f32 %v152_v15, %v144_v9  ;;  %v155_v25 = vadd.f32 %v152_v15, %v145_v12  ;;  %v156_v26 = vadd.f32 %v152_v15, %v146_v13 }
  0x28   :  { %v115_v27 = vmax.f32 %v106_v19, 0.0  ;;  %v116_v28 = vmax.f32 %v107_v20, 0.0  ;;  %v117_v29 = vmax.f32 %v108_v21, 0.0  ;;  %v118_v30 = vmax.f32 %v109_v22, 0.0 }
  0x29   :  { %v110_v31 = vadd.f32 %v105_v11, %v100_v14  ;;  %v111_v32 = vadd.f32 %v105_v11, %v101_v16  ;;  %v157_v33 = vadd.f32 %v152_v15, %v147_v17  ;;  %v158_v34 = vadd.f32 %v152_v15, %v148_v18 }
  0x2a   :  { %v162_v35 = vadd.f32 %v153_v23, %v115_v27  ;;  %v163_v36 = vadd.f32 %v154_v24, %v116_v28  ;;  %v164_v37 = vadd.f32 %v155_v25, %v117_v29  ;;  %v165_v38 = vadd.f32 %v156_v26, %v118_v30 }
  0x2b   :  { %v119_v39 = vmax.f32 %v110_v31, 0.0  ;;  %v120_v40 = vmax.f32 %v111_v32, 0.0  ;;  %v102_v41 = vmul.f32 %v216_v56, %v364_v61  ;;  %v103_v42 = vmul.f32 %v217_v57, %v364_v61 }
  0x2c   :  { %v171_v43 = vmax.f32 %v162_v35, 0.0  ;;  %v172_v45 = vmax.f32 %v163_v36, 0.0  ;;  %v173_v46 = vmax.f32 %v164_v37, 0.0  ;;  %v174_v47 = vmax.f32 %v165_v38, 0.0 }
  0x2d   :  { %v166_v48 = vadd.f32 %v157_v33, %v119_v39  ;;  %v167_v49 = vadd.f32 %v158_v34, %v120_v40  ;;  %v112_v50 = vadd.f32 %v105_v11, %v102_v41  ;;  %v113_v51 = vadd.f32 %v105_v11, %v103_v42 }
  0x2e   :  { %v237_v52 = vpack.c.bf16 %v172_v45, %v171_v43  ;;  %v242_v53 = vpack.c.bf16 %v174_v47, %v173_v46  ;;  %v149_v54 = vmul.f32 %v232_v62, %v367_v0  ;;  %v150_v55 = vmul.f32 %v233_v1, %v367_v0 }
  0x2f   :  { %v175_v59 = vmax.f32 %v166_v48, 0.0  ;;  %v176_v60 = vmax.f32 %v167_v49, 0.0  ;;  %v121_v63 = vmax.f32 %v112_v50, 0.0  ;;  %v122_v56 = vmax.f32 %v113_v51, 0.0 }
  0x30   :  { %238 = vst [vmem:[%s412_s6] sm:$0xff] %v237_v52   ;;  %v159_v57 = vadd.f32 %v152_v15, %v149_v54  ;;  %v160_v3 = vadd.f32 %v152_v15, %v150_v55  ;;  %v104_v4 = vmul.f32 %v364_v61, %v94_v58  ;;  %v151_v5 = vmul.f32 %v367_v0, %v141_v2 }
  0x31   :  { %260 = vst [vmem:[%s412_s6 + $0x8] sm:$0xff] %v242_v53   ;;  %v247_v62 = vpack.c.bf16 %v176_v60, %v175_v59 }
  0x32   :  { %v168_v1 = vadd.f32 %v159_v57, %v121_v63  ;;  %v169_v6 = vadd.f32 %v160_v3, %v122_v56  ;;  %v114_v7 = vadd.f32 %v105_v11, %v104_v4  ;;  %v161_v8 = vadd.f32 %v152_v15, %v151_v5 }
  0x33   :  { %261 = vst [vmem:[%s412_s6 + $0x10] sm:$0xff] %v247_v62  }
  0x34   :  { %v177_v9 = vmax.f32 %v168_v1, 0.0  ;;  %v178_v10 = vmax.f32 %v169_v6, 0.0  ;;  %v123_v44 = vmax.f32 %v114_v7, 0.0 }
  0x36   :  { %v252_v12 = vpack.c.bf16 %v178_v10, %v177_v9  ;;  %v170_v58 = vadd.f32 %v161_v8, %v123_v44 }
  0x38   :  { %262 = vst [vmem:[%s412_s6 + $0x18] sm:$0xff] %v252_v12   ;;  %v179_v61 = vmax.f32 %v170_v58, 0.0 }
  0x3a   :  { %v188_v0 = vpack.c.bf16 %v179_v61, %v179_v61 }
  0x3c   :  { %197 = vst [vmem:[%s412_s6 + $0x20] sm:$0xf] %v188_v0 }

// kernel: contextnet_apply.41
= control target key start
LH: loop header
LB: loop body
LE: loop exit
PB: predicated region body
PF: predicated region fallthrough
CT: control target
= control target key end

     0   :  { %vm1020_vm0 = vcmask 1040384   ;;  %vm1022_vm1 = vcmask 1041408   ;;  %s1938_s1 = inlined_call_operand.vmem [shape: bf16[896,128], index: 1, kind: input, shape index: {}]   ;;  %s1939_s0 = inlined_call_operand.vmem [shape: bf16[72,896], index: 0, kind: input, shape index: {}]   ;;  %s1940_s2 = inlined_call_operand.vmem [shape: f32[1,128], index: 2, kind: input, shape index: {}]   ;;  %s1941_s3 = inlined_call_operand.vmem [shape: bf16[72,128], index: 3, kind: output, shape index: {0}]   ;;  %s1942_s4 = inlined_call_operand.vmem [shape: f32[1,8,128], index: 4, kind: output, shape index: {1}]  }
   0x1   :  { %v1404_v0 = vld [vmem:[%s1938_s1 + $0x38] sm:$0xff]  ;;  %v1403_v3 = vld [vmem:[%s1938_s1 + $0x30] sm:$0xff]  ;;  %v1402_v6 = vld [vmem:[%s1938_s1 + $0x28] sm:$0xff] }
   0x2   :  { %v1412_v1 = vld [vmem:[%s1938_s1 + $0x78] sm:$0xff]  ;;  %691 = vmatpush.bf16.msra.mxu0 %v1404_v0  ;;  %1476 = vmatpush.bf16.msra.mxu3 %v1404_v0  ;;  %v1411_v4 = vld [vmem:[%s1938_s1 + $0x70] sm:$0xff]  ;;  %v1410_v7 = vld [vmem:[%s1938_s1 + $0x68] sm:$0xff] }
   0x3   :  { %v1420_v2 = vld [vmem:[%s1938_s1 + $0xb8] sm:$0xff]  ;;  %724 = vmatpush.bf16.msra.mxu1 %v1412_v1  ;;  %v1419_v5 = vld [vmem:[%s1938_s1 + $0xb0] sm:$0xff]  ;;  %v1418_v8 = vld [vmem:[%s1938_s1 + $0xa8] sm:$0xff] }
   0x4   :  { %757 = vmatpush.bf16.msra.mxu2 %v1420_v2  ;;  %v1401_v9 = vld [vmem:[%s1938_s1 + $0x20] sm:$0xff]  ;;  %v1400_v12 = vld [vmem:[%s1938_s1 + $0x18] sm:$0xff]  ;;  %v1399_v15 = vld [vmem:[%s1938_s1 + $0x10] sm:$0xff] }
   0x5   :  { %v1409_v10 = vld [vmem:[%s1938_s1 + $0x60] sm:$0xff]  ;;  %v1408_v13 = vld [vmem:[%s1938_s1 + $0x58] sm:$0xff]  ;;  %v1407_v16 = vld [vmem:[%s1938_s1 + $0x50] sm:$0xff] }
   0x6   :  { %692 = vmatpush.bf16.msra.mxu0 %v1403_v3  ;;  %1477 = vmatpush.bf16.msra.mxu3 %v1403_v3  ;;  %v1417_v11 = vld [vmem:[%s1938_s1 + $0xa0] sm:$0xff]  ;;  %v1416_v14 = vld [vmem:[%s1938_s1 + $0x98] sm:$0xff]  ;;  %v1415_v17 = vld [vmem:[%s1938_s1 + $0x90] sm:$0xff] }
   0x7   :  { %725 = vmatpush.bf16.msra.mxu1 %v1411_v4  ;;  %v1398_v18 = vld [vmem:[%s1938_s1 + $0x8] sm:$0xff]  ;;  %v1397_v21 = vld [vmem:[%s1938_s1] sm:$0xff]  ;;  %v1372_v25 = vld [vmem:[%s1939_s0 + $0x18] sm:$0xf0] }
   0x8   :  { %758 = vmatpush.bf16.msra.mxu2 %v1419_v5  ;;  %v1406_v19 = vld [vmem:[%s1938_s1 + $0x48] sm:$0xff]  ;;  %v1405_v22 = vld [vmem:[%s1938_s1 + $0x40] sm:$0xff]  ;;  %v1091_v26 = vld [vmem:[%s1939_s0 + $0x70] sm:$0xf] }
   0x9   :  { %v1414_v20 = vld [vmem:[%s1938_s1 + $0x88] sm:$0xff]  ;;  %v1413_v23 = vld [vmem:[%s1938_s1 + $0x80] sm:$0xff]  ;;  %v1452_v32 = vld [vmem:[%s1938_s1 + $0x1b8] sm:$0xff] }
   0xa   :  { %693 = vmatpush.bf16.msra.mxu0 %v1402_v6  ;;  %1478 = vmatpush.bf16.msra.mxu3 %v1402_v6  ;;  %v1035_v24 = vld [vmem:[%s1939_s0] sm:$0xf]  ;;  %v1386_v27 = vld [vmem:[%s1939_s0 + $0x88] sm:$0xf0]  ;;  %v1369_v28 = vld [vmem:[%s1939_s0 + $0x4] sm:$0xf] }
   0xb   :  { %726 = vmatpush.bf16.msra.mxu1 %v1410_v7  ;;  %v1037_v29 = vld [vmem:[%s1939_s0 + $0x1c] sm:$0xf0]  ;;  %v1043_v30 = vld [vmem:[%s1939_s0 + $0x8] sm:$0xf]  ;;  %v1373_v31 = vld [vmem:[%s1939_s0 + $0x20] sm:$0xf0]  ;;  %v1036_v34 = vor.u32 %v1372_v25, %v1035_v24  ;;  %v1092_v35 = vor.u32 %v1386_v27, %v1091_v26 }
   0xc   :  { %759 = vmatpush.bf16.msra.mxu2 %v1418_v8  ;;  %v1436_v33 = vld [vmem:[%s1938_s1 + $0x138] sm:$0xff]  ;;  %v1040_v36 = vor.u32 %v1369_v28, %v1037_v29  ;;  %v1044_v37 = vor.u32 %v1373_v31, %v1043_v30  ;;  %v1435_v40 = vld [vmem:[%s1938_s1 + $0x130] sm:$0xff]  ;;  %v1434_v44 = vld [vmem:[%s1938_s1 + $0x128] sm:$0xff] }
   0xd   :  { %v1428_v38 = vld [vmem:[%s1938_s1 + $0xf8] sm:$0xff]  ;;  %v1451_v41 = vld [vmem:[%s1938_s1 + $0x1b0] sm:$0xff]  ;;  %v1450_v45 = vld [vmem:[%s1938_s1 + $0x1a8] sm:$0xff] }
   0xe   :  { %694 = vmatpush.bf16.msra.mxu0 %v1401_v9  ;;  %1479 = vmatpush.bf16.msra.mxu3 %v1401_v9  ;;  %v1626_v39 = vld [vmem:[%s1938_s1 + $0x178] sm:$0xff]  ;;  %v1427_v42 = vld [vmem:[%s1938_s1 + $0xf0] sm:$0xff]  ;;  %v1426_v46 = vld [vmem:[%s1938_s1 + $0xe8] sm:$0xff] }
   0xf   :  { %727 = vmatpush.bf16.msra.mxu1 %v1409_v10  ;;  %v1641_v43 = vld [vmem:[%s1938_s1 + $0x170] sm:$0xff]  ;;  %v1656_v47 = vld [vmem:[%s1938_s1 + $0x168] sm:$0xff]  ;;  %v1433_v48 = vld [vmem:[%s1938_s1 + $0x120] sm:$0xff] }
  0x10   :  { %760 = vmatpush.bf16.msra.mxu2 %v1417_v11  ;;  %v1449_v49 = vld [vmem:[%s1938_s1 + $0x1a0] sm:$0xff]  ;;  %v1063_v50 = vld [vmem:[%s1939_s0 + $0x38] sm:$0xf]  ;;  %v1379_v51 = vld [vmem:[%s1939_s0 + $0x50] sm:$0xf0] }
  0x11   :  { %v1119_v52 = vld [vmem:[%s1939_s0 + $0xa8] sm:$0xf]  ;;  %v1393_v53 = vld [vmem:[%s1939_s0 + $0xc0] sm:$0xf0]  ;;  %v1376_v54 = vld [vmem:[%s1939_s0 + $0x3c] sm:$0xf]  ;;  %v1064_v61 = vor.u32 %v1379_v51, %v1063_v50 }
  0x12   :  { %695 = vmatpush.bf16.msra.mxu0 %v1400_v12  ;;  %1480 = vmatpush.bf16.msra.mxu3 %v1400_v12  ;;  %v1065_v55 = vld [vmem:[%s1939_s0 + $0x54] sm:$0xf0]  ;;  %v1071_v56 = vld [vmem:[%s1939_s0 + $0x40] sm:$0xf]  ;;  %v1380_v57 = vld [vmem:[%s1939_s0 + $0x58] sm:$0xf0]  ;;  %v1120_v62 = vor.u32 %v1393_v53, %v1119_v52 }
  0x13   :  { %728 = vmatpush.bf16.msra.mxu1 %v1408_v13  ;;  %v1425_v58 = vld [vmem:[%s1938_s1 + $0xe0] sm:$0xff]  ;;  %v1432_v59 = vld [vmem:[%s1938_s1 + $0x118] sm:$0xff]  ;;  %v1068_v63 = vor.u32 %v1376_v54, %v1065_v55  ;;  %v1072_v0 = vor.u32 %v1380_v57, %v1071_v56  ;;  %v1431_v2 = vld [vmem:[%s1938_s1 + $0x110] sm:$0xff] }
  0x14   :  { %761 = vmatpush.bf16.msra.mxu2 %v1416_v14  ;;  %v1448_v60 = vld [vmem:[%s1938_s1 + $0x198] sm:$0xff]  ;;  %v1441_v3 = vld [vmem:[%s1938_s1 + $0x160] sm:$0xff]  ;;  %v1447_v4 = vld [vmem:[%s1938_s1 + $0x190] sm:$0xff] }
  0x15   :  { %v1424_v1 = vld [vmem:[%s1938_s1 + $0xd8] sm:$0xff]  ;;  %v1423_v5 = vld [vmem:[%s1938_s1 + $0xd0] sm:$0xff]  ;;  %v1430_v6 = vld [vmem:[%s1938_s1 + $0x108] sm:$0xff] }
  0x16   :  { %696 = vmatpush.bf16.msra.mxu0 %v1399_v15  ;;  %1481 = vmatpush.bf16.msra.mxu3 %v1399_v15  ;;  %v1440_v7 = vld [vmem:[%s1938_s1 + $0x158] sm:$0xff]  ;;  %v1446_v8 = vld [vmem:[%s1938_s1 + $0x188] sm:$0xff]  ;;  %v1725_v9 = vld [vmem:[%s1939_s0 + $0xe0] sm:$0xff] }
  0x17   :  { %729 = vmatpush.bf16.msra.mxu1 %v1407_v16  ;;  %v1422_v10 = vld [vmem:[%s1938_s1 + $0xc8] sm:$0xff]  ;;  %v1429_v11 = vld [vmem:[%s1938_s1 + $0x100] sm:$0xff]  ;;  %v278_v12 = vunpack.c.l.b16 %v1725_v9  ;;  %v1383_v13 = vld [vmem:[%s1939_s0 + $0x74] sm:$0xf] }
  0x18   :  { %762 = vmatpush.bf16.msra.mxu2 %v1415_v17  ;;  %v1093_v14 = vld [vmem:[%s1939_s0 + $0x8c] sm:$0xf0]  ;;  %v1374_v16 = vld [vmem:[%s1939_s0 + $0x28] sm:$0xf0]  ;;  %v1099_v17 = vld [vmem:[%s1939_s0 + $0x78] sm:$0xf] }
  0x19   :  { %v1051_v15 = vld [vmem:[%s1939_s0 + $0x10] sm:$0xf]  ;;  %v1445_v25 = vld [vmem:[%s1938_s1 + $0x180] sm:$0xff]  ;;  %v1438_v26 = vld [vmem:[%s1938_s1 + $0x148] sm:$0xff] }
  0x1a   :  { %697 = vmatpush.bf16.msra.mxu0 %v1398_v18  ;;  %1482 = vmatpush.bf16.msra.mxu3 %v1398_v18  ;;  %v1387_v18 = vld [vmem:[%s1939_s0 + $0x90] sm:$0xf0]  ;;  %v1437_v27 = vld [vmem:[%s1938_s1 + $0x140] sm:$0xff]  ;;  %v1390_v28 = vld [vmem:[%s1939_s0 + $0xac] sm:$0xf] }
  0x1b   :  { %730 = vmatpush.bf16.msra.mxu1 %v1406_v19  ;;  %v1421_v19 = vld [vmem:[%s1938_s1 + $0xc0] sm:$0xff]  ;;  %v1439_v24 = vld [vmem:[%s1938_s1 + $0x150] sm:$0xff]  ;;  %v1370_v29 = vld [vmem:[%s1939_s0 + $0xc] sm:$0xf] }
  0x1c   :  { %763 = vmatpush.bf16.msra.mxu2 %v1414_v20  ;;  %v313_v20 = vpack.c.b16 %v278_v12, %v278_v12  ;;  %v1045_v30 = vld [vmem:[%s1939_s0 + $0x24] sm:$0xf0]  ;;  %v1384_v51 = vld [vmem:[%s1939_s0 + $0x7c] sm:$0xf]  ;;  %v1101_v52 = vld [vmem:[%s1939_s0 + $0x94] sm:$0xf0] }
  0x1d   :  { %v1079_v31 = vld [vmem:[%s1939_s0 + $0x48] sm:$0xf]  ;;  %v1135_v53 = vld [vmem:[%s1939_s0 + $0xb8] sm:$0xf]  ;;  %v1395_v54 = vld [vmem:[%s1939_s0 + $0xd0] sm:$0xf0] }
  0x1e   :  { %698 = vmatpush.bf16.msra.mxu0 %v1397_v21  ;;  %1483 = vmatpush.bf16.msra.mxu3 %v1397_v21  ;;  %v1052_v21 = vor.u32 %v1374_v16, %v1051_v15  ;;  %v1378_v55 = vld [vmem:[%s1939_s0 + $0x4c] sm:$0xf]  ;;  %v1081_v56 = vld [vmem:[%s1939_s0 + $0x64] sm:$0xf0]  ;;  %v1059_v57 = vld [vmem:[%s1939_s0 + $0x18] sm:$0xf] }
  0x1f   :  { %731 = vmatpush.bf16.msra.mxu1 %v1405_v22  ;;  %v1096_v22 = vor.u32 %v1383_v13, %v1093_v14  ;;  %v1371_v12 = vld [vmem:[%s1939_s0 + $0x14] sm:$0xf]  ;;  %v1053_v13 = vld [vmem:[%s1939_s0 + $0x2c] sm:$0xf0]  ;;  %v1392_v14 = vld [vmem:[%s1939_s0 + $0xbc] sm:$0xf] }
  0x20   :  { %764 = vmatpush.bf16.msra.mxu2 %v1413_v23  ;;  %v1100_v23 = vor.u32 %v1387_v18, %v1099_v17  ;;  %v1137_v15 = vld [vmem:[%s1939_s0 + $0xd4] sm:$0xf0]  ;;  %v1115_v16 = vld [vmem:[%s1939_s0 + $0x88] sm:$0xf]  ;;  %v1389_v17 = vld [vmem:[%s1939_s0 + $0xa0] sm:$0xf0] }
  0x21   :  { %699 = vmatmul.bf16.vlgmr.msra.gmra.mxu0 %v1036_v34  ;;  %709 = vmatmul.bf16.vlgmr.msra.gmra.mxu3 %v1092_v35  ;;  %v1127_v34 = vld [vmem:[%s1939_s0 + $0xb0] sm:$0xf]  ;;  %v1394_v35 = vld [vmem:[%s1939_s0 + $0xc8] sm:$0xf0] }
  0x22   :  { %823 = vmatpush.bf16.msrb.mxu0 %v1436_v33  ;;  %732 = vmatmul.bf16.vlgmr.msra.gmra.mxu1 %v1040_v36  ;;  %v1121_v33 = vld [vmem:[%s1939_s0 + $0xc4] sm:$0xf0]  ;;  %v1048_v36 = vor.u32 %v1370_v29, %v1045_v30 }
  0x23   :  { %765 = vmatmul.bf16.vlgmr.msra.gmra.mxu2 %v1044_v37  ;;  %790 = vmatpush.bf16.msrb.mxu3 %v1428_v38  ;;  %v1124_v38 = vor.u32 %v1390_v28, %v1121_v33 }
  0x24   :  { %889 = vmatpush.bf16.msrb.mxu2 %v1452_v32  ;;  %1484 = vmatpush.bf16.msrb.mxu1 %v1626_v39  ;;  %v1381_v32 = vld [vmem:[%s1939_s0 + $0x60] sm:$0xf0] }
  0x25   :  { %v1080_v37 = vor.u32 %v1381_v32, %v1079_v31 }
  0x26   :  { %824 = vmatpush.bf16.msrb.mxu0 %v1435_v40  ;;  %v71_v40 = vld [vmem:[%s1939_s0 + $0xe8] sm:$0xff] }
  0x27   :  { %791 = vmatpush.bf16.msrb.mxu3 %v1427_v42  ;;  %v279_v42 = vunpack.c.h.b16 %v1725_v9 }
  0x28   :  { %890 = vmatpush.bf16.msrb.mxu2 %v1451_v41  ;;  %1485 = vmatpush.bf16.msrb.mxu1 %v1641_v43  ;;  %v1377_v41 = vld [vmem:[%s1939_s0 + $0x44] sm:$0xf] }
  0x2a   :  { %825 = vmatpush.bf16.msrb.mxu0 %v1434_v44  ;;  %v1073_v44 = vld [vmem:[%s1939_s0 + $0x5c] sm:$0xf0] }
  0x2b   :  { %792 = vmatpush.bf16.msrb.mxu3 %v1426_v46  ;;  %v1388_v46 = vld [vmem:[%s1939_s0 + $0x98] sm:$0xf0] }
  0x2c   :  { %891 = vmatpush.bf16.msrb.mxu2 %v1450_v45  ;;  %1486 = vmatpush.bf16.msrb.mxu1 %v1656_v47  ;;  %v1107_v45 = vld [vmem:[%s1939_s0 + $0x80] sm:$0xf] }
  0x2e   :  { %826 = vmatpush.bf16.msrb.mxu0 %v1433_v48  ;;  %v1108_v48 = vor.u32 %v1388_v46, %v1107_v45 }
  0x2f   :  { %793 = vmatpush.bf16.msrb.mxu3 %v1425_v58  ;;  %v1375_v58 = vld [vmem:[%s1939_s0 + $0x30] sm:$0xf0] }
  0x30   :  { %892 = vmatpush.bf16.msrb.mxu2 %v1449_v49  ;;  %1487 = vmatpush.bf16.msrb.mxu1 %v1441_v3  ;;  %v314_v49 = vpack.c.b16 %v279_v42, %v279_v42 }
  0x31   :  { %704 = vmatmul.bf16.gmra.mxu0 %v1064_v61  ;;  %714 = vmatmul.bf16.gmra.mxu3 %v1120_v62  ;;  %v1084_v61 = vor.u32 %v1378_v55, %v1081_v56  ;;  %v1060_v62 = vor.u32 %v1375_v58, %v1059_v57 }
  0x32   :  { %827 = vmatpush.bf16.msrb.mxu0 %v1432_v59  ;;  %737 = vmatmul.bf16.gmra.mxu1 %v1068_v63  ;;  %v1104_v59 = vor.u32 %v1384_v51, %v1101_v52  ;;  %v72_v63 = vld [vmem:[%s1939_s0 + $0xf0] sm:$0xff] }
  0x33   :  { %770 = vmatmul.bf16.gmra.mxu2 %v1072_v0  ;;  %794 = vmatpush.bf16.msrb.mxu3 %v1424_v1  ;;  %v282_v0 = vunpack.c.l.b16 %v72_v63  ;;  %v1391_v1 = vld [vmem:[%s1939_s0 + $0xb4] sm:$0xf] }
  0x34   :  { %893 = vmatpush.bf16.msrb.mxu2 %v1448_v60  ;;  %1488 = vmatpush.bf16.msrb.mxu1 %v1440_v7  ;;  %v1136_v60 = vor.u32 %v1395_v54, %v1135_v53 }
  0x36   :  { %828 = vmatpush.bf16.msrb.mxu0 %v1431_v2  ;;  %v1129_v2 = vld [vmem:[%s1939_s0 + $0xcc] sm:$0xf0] }
  0x37   :  { %795 = vmatpush.bf16.msrb.mxu3 %v1423_v5  ;;  %v1087_v5 = vld [vmem:[%s1939_s0 + $0x50] sm:$0xf] }
  0x38   :  { %894 = vmatpush.bf16.msrb.mxu2 %v1447_v4  ;;  %1489 = vmatpush.bf16.msrb.mxu1 %v1439_v24  ;;  %v1109_v4 = vld [vmem:[%s1939_s0 + $0x9c] sm:$0xf0] }
  0x3a   :  { %829 = vmatpush.bf16.msrb.mxu0 %v1430_v6  ;;  %v1382_v6 = vld [vmem:[%s1939_s0 + $0x68] sm:$0xf0] }
  0x3b   :  { %796 = vmatpush.bf16.msrb.mxu3 %v1422_v10  ;;  %v1088_v10 = vor.u32 %v1382_v6, %v1087_v5 }
  0x3c   :  { %895 = vmatpush.bf16.msrb.mxu2 %v1446_v8  ;;  %1490 = vmatpush.bf16.msrb.mxu1 %v1438_v26  ;;  %v317_v8 = vpack.c.b16 %v282_v0, %v282_v0 }
  0x3e   :  { %830 = vmatpush.bf16.msrb.mxu0 %v1429_v11  ;;  %v281_v11 = vunpack.c.h.b16 %v71_v40 }
  0x3f   :  { %797 = vmatpush.bf16.msrb.mxu3 %v1421_v19  ;;  %v1056_v19 = vor.u32 %v1371_v12, %v1053_v13 }
  0x40   :  { %896 = vmatpush.bf16.msrb.mxu2 %v1445_v25  ;;  %1491 = vmatpush.bf16.msrb.mxu1 %v1437_v27  ;;  %v316_v18 = vpack.c.b16 %v281_v11, %v281_v11 }
  0x41   :  { %719 = vmatmul.bf16.gmra.mxu3 %v313_v20  ;;  %831 = vmatmul.bf16.vlgmr.msrb.gmra.mxu0 %v1052_v21  ;;  %v1140_v20 = vor.u32 %v1392_v14, %v1137_v15  ;;  %v1116_v21 = vor.u32 %v1389_v17, %v1115_v16 }
  0x42   :  { %856 = vmatpush.bf16.msra.mxu0 %v1626_v39  ;;  %742 = vmatmul.bf16.gmra.mxu1 %v1096_v22  ;;  %v1128_v39 = vor.u32 %v1394_v35, %v1127_v34  ;;  %v283_v22 = vunpack.c.h.b16 %v72_v63  ;;  %v73_v35 = vld [vmem:[%s1939_s0 + $0xf8] sm:$0xf] }
  0x43   :  { %775 = vmatmul.bf16.gmra.mxu2 %v1100_v23  ;;  %v1143_v23 = vld [vmem:[%s1939_s0 + $0xc0] sm:$0xf] }
  0x46   :  { %857 = vmatpush.bf16.msra.mxu0 %v1641_v43  ;;  %v280_v43 = vunpack.c.l.b16 %v71_v40 }
  0x48   :  { %v315_v50 = vpack.c.b16 %v280_v43, %v280_v43 }
  0x4a   :  { %858 = vmatpush.bf16.msra.mxu0 %v1656_v47  ;;  %v1076_v47 = vor.u32 %v1377_v41, %v1073_v44 }
  0x4e   :  { %859 = vmatpush.bf16.msra.mxu0 %v1441_v3  ;;  %v1385_v3 = vld [vmem:[%s1939_s0 + $0x84] sm:$0xf] }
  0x4f   :  { %v1112_v9 = vor.u32 %v1385_v3, %v1109_v4 }
  0x51   :  { %798 = vmatmul.bf16.vlgmr.msrb.gmra.mxu3 %v1048_v36  ;;  %836 = vmatmul.bf16.gmra.mxu0 %v1080_v37  ;;  %v284_v37 = vunpack.c.l.b16 %v73_v35 }
  0x52   :  { %860 = vmatpush.bf16.msra.mxu0 %v1440_v7  ;;  %747 = vmatmul.bf16.gmra.mxu1 %v1124_v38  ;;  %v1132_v7 = vor.u32 %v1391_v1, %v1129_v2 }
  0x53   :  { %780 = vmatmul.bf16.gmra.mxu2 %v1128_v39  ;;  %v319_v42 = vpack.c.b16 %v284_v37, %v284_v37 }
  0x56   :  { %861 = vmatpush.bf16.msra.mxu0 %v1439_v24  ;;  %v1396_v24 = vld [vmem:[%s1939_s0 + $0xd8] sm:$0xf0] }
  0x5a   :  { %862 = vmatpush.bf16.msra.mxu0 %v1438_v26  ;;  %v318_v26 = vpack.c.b16 %v283_v22, %v283_v22 }
  0x5e   :  { %863 = vmatpush.bf16.msra.mxu0 %v1437_v27  ;;  %v1144_v27 = vor.u32 %v1396_v24, %v1143_v23 }
  0x61   :  { %803 = vmatmul.bf16.gmra.mxu3 %v1076_v47  ;;  %841 = vmatmul.bf16.gmra.mxu0 %v1108_v48 }
  0x62   :  { %752 = vmatmul.bf16.gmra.mxu1 %v314_v49 }
  0x63   :  { %785 = vmatmul.bf16.gmra.mxu2 %v315_v50 }
  0x71   :  { %808 = vmatmul.bf16.gmra.mxu3 %v1104_v59  ;;  %846 = vmatmul.bf16.gmra.mxu0 %v1136_v60 }
  0x72   :  { %869 = vmatmul.bf16.vlgmr.msrb.gmra.mxu1 %v1084_v61 }
  0x73   :  { %897 = vmatmul.bf16.vlgmr.msrb.gmra.mxu2 %v1060_v62 }
  0x81   :  { %813 = vmatmul.bf16.gmra.mxu3 %v1132_v7  ;;  %851 = vmatmul.bf16.gmra.mxu0 %v317_v8 }
  0x82   :  { %874 = vmatmul.bf16.gmra.mxu1 %v1112_v9 }
  0x83   :  { %902 = vmatmul.bf16.gmra.mxu2 %v1088_v10 }
  0x91   :  { %818 = vmatmul.bf16.gmra.mxu3 %v316_v18  ;;  %864 = vmatmul.bf16.vlgmr.msra.gmra.mxu0 %v1056_v19 }
  0x92   :  { %879 = vmatmul.bf16.gmra.mxu1 %v1140_v20 }
  0x93   :  { %907 = vmatmul.bf16.gmra.mxu2 %v1116_v21 }
  0x9e   :  { %v700_v25 = vpop.f32.mrf.mxu0 }
  0x9f   :  { %v733_v28 = vpop.f32.mrf.mxu1 }
  0xa0   :  { %v734_v29 = vadd.f32 %v733_v28, %v700_v25 }
  0xa2   :  { %884 = vmatmul.bf16.gmra.mxu1 %v318_v26 }
  0xa3   :  { %912 = vmatmul.bf16.gmra.mxu2 %v1144_v27 }
  0xa4   :  { %v710_v30 = vpop.f32.mrf.mxu3 }
  0xa6   :  { %v766_v31 = vpop.f32.mrf.mxu2  ;;  %v702_v33 = vpop.f32.mrf.mxu0 }
  0xa7   :  { %v767_v32 = vadd.f32 %v766_v31, %v734_v29  ;;  %v735_v34 = vpop.f32.mrf.mxu1 }
  0xa8   :  { %v736_v36 = vadd.f32 %v735_v34, %v702_v33 }
  0xac   :  { %v712_v38 = vpop.f32.mrf.mxu3 }
  0xae   :  { %v768_v39 = vpop.f32.mrf.mxu2  ;;  %v705_v41 = vpop.f32.mrf.mxu0 }
  0xaf   :  { %v769_v40 = vadd.f32 %v768_v39, %v736_v36  ;;  %v738_v43 = vpop.f32.mrf.mxu1 }
  0xb0   :  { %v739_v44 = vadd.f32 %v738_v43, %v705_v41 }
  0xb3   :  { %917 = vmatmul.bf16.gmra.mxu2 %v319_v42 }
  0xb4   :  { %v715_v45 = vpop.f32.mrf.mxu3 }
  0xb6   :  { %v771_v46 = vpop.f32.mrf.mxu2  ;;  %v707_v48 = vpop.f32.mrf.mxu0 }
  0xb7   :  { %v772_v47 = vadd.f32 %v771_v46, %v739_v44  ;;  %v740_v49 = vpop.f32.mrf.mxu1 }
  0xb8   :  { %v741_v50 = vadd.f32 %v740_v49, %v707_v48 }
  0xbc   :  { %v717_v51 = vpop.f32.mrf.mxu3 }
  0xbe   :  { %v773_v52 = vpop.f32.mrf.mxu2  ;;  %v832_v54 = vpop.f32.mrf.mxu0 }
  0xbf   :  { %v774_v53 = vadd.f32 %v773_v52, %v741_v50  ;;  %v743_v55 = vpop.f32.mrf.mxu1  ;;  %v1901_v50 = vld [vmem:[%s1940_s2] ss:$0 sm:$0xff] }
  0xc0   :  { %v744_v56 = vadd.f32 %v743_v55, %v710_v30 }
  0xc4   :  { %v720_v57 = vpop.f32.mrf.mxu3 }
  0xc6   :  { %v776_v58 = vpop.f32.mrf.mxu2  ;;  %v834_v60 = vpop.f32.mrf.mxu0 }
  0xc7   :  { %v1882_v59 = vadd.f32 %v776_v58, %v744_v56  ;;  %v745_v61 = vpop.f32.mrf.mxu1 }
  0xc8   :  { %v746_v62 = vadd.f32 %v745_v61, %v712_v38 }
  0xcc   :  { %v722_v63 = vpop.f32.mrf.mxu3 }
  0xce   :  { %v778_v0 = vpop.f32.mrf.mxu2  ;;  %v837_v2 = vpop.f32.mrf.mxu0 }
  0xcf   :  { %v1884_v1 = vadd.f32 %v778_v0, %v746_v62  ;;  %v748_v3 = vpop.f32.mrf.mxu1 }
  0xd0   :  { %v749_v4 = vadd.f32 %v748_v3, %v715_v45 }
  0xd4   :  { %v799_v5 = vpop.f32.mrf.mxu3 }
  0xd5   :  { %v800_v7 = vadd.f32 %v799_v5, %v767_v32 }
  0xd6   :  { %v781_v6 = vpop.f32.mrf.mxu2  ;;  %v839_v9 = vpop.f32.mrf.mxu0 }
  0xd7   :  { %v1886_v8 = vadd.f32 %v781_v6, %v749_v4  ;;  %v750_v10 = vpop.f32.mrf.mxu1  ;;  %v833_v11 = vadd.f32 %v832_v54, %v800_v7 }
  0xd8   :  { %v751_v12 = vadd.f32 %v750_v10, %v717_v51 }
  0xdc   :  { %v801_v13 = vpop.f32.mrf.mxu3 }
  0xdd   :  { %v802_v15 = vadd.f32 %v801_v13, %v769_v40 }
  0xde   :  { %v783_v14 = vpop.f32.mrf.mxu2  ;;  %v842_v17 = vpop.f32.mrf.mxu0 }
  0xdf   :  { %v1888_v16 = vadd.f32 %v783_v14, %v751_v12  ;;  %v753_v18 = vpop.f32.mrf.mxu1  ;;  %v835_v19 = vadd.f32 %v834_v60, %v802_v15 }
  0xe0   :  { %v754_v20 = vadd.f32 %v753_v18, %v720_v57 }
  0xe4   :  { %v804_v21 = vpop.f32.mrf.mxu3 }
  0xe5   :  { %v805_v38 = vadd.f32 %v804_v21, %v772_v47 }
  0xe6   :  { %v786_v22 = vpop.f32.mrf.mxu2  ;;  %v844_v24 = vpop.f32.mrf.mxu0 }
  0xe7   :  { %v1890_v23 = vadd.f32 %v786_v22, %v754_v20  ;;  %v755_v25 = vpop.f32.mrf.mxu1  ;;  %v838_v44 = vadd.f32 %v837_v2, %v805_v38 }
  0xec   :  { %v806_v26 = vpop.f32.mrf.mxu3 }
  0xed   :  { %v807_v41 = vadd.f32 %v806_v26, %v774_v53 }
  0xee   :  { %v788_v27 = vpop.f32.mrf.mxu2  ;;  %v1892_v28 = vpop.f32.mrf.mxu0 }
  0xef   :  { %v870_v29 = vpop.f32.mrf.mxu1  ;;  %v840_v46 = vadd.f32 %v839_v9, %v807_v41 }
  0xf0   :  { %v871_v45 = vadd.f32 %v870_v29, %v838_v44 }
  0xf4   :  { %v809_v30 = vpop.f32.mrf.mxu3 }
  0xf5   :  { %v810_v60 = vadd.f32 %v809_v30, %v1882_v59 }
  0xf6   :  { %v898_v31 = vpop.f32.mrf.mxu2  ;;  %v1894_v32 = vpop.f32.mrf.mxu0 }
  0xf7   :  { %v872_v33 = vpop.f32.mrf.mxu1  ;;  %v843_v5 = vadd.f32 %v842_v17, %v810_v60 }
  0xf8   :  { %v873_v48 = vadd.f32 %v872_v33, %v840_v46 }
  0xfc   :  { %v811_v34 = vpop.f32.mrf.mxu3 }
  0xfd   :  { %v812_v63 = vadd.f32 %v811_v34, %v1884_v1 }
  0xfe   :  { %v900_v35 = vpop.f32.mrf.mxu2  ;;  %v1896_v36 = vpop.f32.mrf.mxu0 }
  0xff   :  { %v875_v37 = vpop.f32.mrf.mxu1  ;;  %v845_v9 = vadd.f32 %v844_v24, %v812_v63 }
 0x100   :  { %v876_v7 = vadd.f32 %v875_v37, %v843_v5 }
 0x104   :  { %v814_v39 = vpop.f32.mrf.mxu3 }
 0x105   :  { %v815_v17 = vadd.f32 %v814_v39, %v1886_v8 }
 0x106   :  { %v903_v40 = vpop.f32.mrf.mxu2  ;;  %v854_v42 = vpop.f32.mrf.mxu0 }
 0x107   :  { %v877_v43 = vpop.f32.mrf.mxu1  ;;  %v904_v49 = vadd.f32 %v903_v40, %v871_v45  ;;  %v848_v37 = vadd.f32 %v1892_v28, %v815_v17 }
 0x108   :  { %v878_v14 = vadd.f32 %v877_v43, %v845_v9 }
 0x109   :  { %v958_v56 = vadd.f32 %v1901_v50, %v904_v49  ;;  %v999_v20 = vmul.f32 %v904_v49, %v904_v49 }
 0x10c   :  { %v816_v51 = vpop.f32.mrf.mxu3 }
 0x10d   :  { %v817_v44 = vadd.f32 %v816_v51, %v1888_v16 }
 0x10e   :  { %v905_v52 = vpop.f32.mrf.mxu2  ;;  %v865_v55 = vpop.f32.mrf.mxu0 }
 0x10f   :  { %v906_v54 = vadd.f32 %v905_v52, %v873_v48  ;;  %v880_v47 = vpop.f32.mrf.mxu1  ;;  %v866_v58 = vadd.f32 %v865_v55, %v833_v11  ;;  %v850_v52 = vadd.f32 %v1894_v32, %v817_v44 }
 0x110   :  { %v881_v41 = vadd.f32 %v880_v47, %v848_v37 }
 0x111   :  { %v959_v53 = vadd.f32 %v1901_v50, %v906_v54  ;;  %v899_v0 = vadd.f32 %v898_v31, %v866_v58  ;;  %v1000_v26 = vmul.f32 %v906_v54, %v906_v54 }
 0x113   :  { %v1461_v57 = vpack.c.bf16 %v959_v53, %v958_v56  ;;  %v956_v10 = vadd.f32 %v1901_v50, %v899_v0  ;;  %v997_v11 = vmul.f32 %v899_v0, %v899_v0 }
 0x114   :  { %v819_v61 = vpop.f32.mrf.mxu3 }
 0x115   :  { %1473 = vst [vmem:[%s1941_s3 + $0x8] sm:$0xff] %v1461_v57   ;;  %v820_v56 = vadd.f32 %v819_v61, %v1890_v23 }
 0x116   :  { %v908_v62 = vpop.f32.mrf.mxu2  ;;  %v867_v2 = vpop.f32.mrf.mxu0 }
 0x117   :  { %v868_v3 = vadd.f32 %v867_v2, %v835_v19  ;;  %v882_v4 = vpop.f32.mrf.mxu1  ;;  %v909_v15 = vadd.f32 %v908_v62, %v876_v7  ;;  %v853_v16 = vadd.f32 %v1896_v36, %v820_v56 }
 0x119   :  { %v901_v6 = vadd.f32 %v900_v35, %v868_v3  ;;  %v960_v30 = vadd.f32 %v1901_v50, %v909_v15  ;;  %v1001_v33 = vmul.f32 %v909_v15, %v909_v15 }
 0x11b   :  { %v957_v59 = vadd.f32 %v1901_v50, %v901_v6  ;;  %v983_v12 = vadd.f32 %v901_v6, %v899_v0  ;;  %v998_v13 = vmul.f32 %v901_v6, %v901_v6 }
 0x11c   :  { %v821_v18 = vpop.f32.mrf.mxu3 }
 0x11d   :  { %v1456_v1 = vpack.c.bf16 %v957_v59, %v956_v10  ;;  %v984_v21 = vadd.f32 %v983_v12, %v904_v49  ;;  %v1006_v22 = vadd.f32 %v998_v13, %v997_v11 }
 0x11e   :  { %v910_v19 = vpop.f32.mrf.mxu2 }
 0x11f   :  { %v911_v25 = vadd.f32 %v910_v19, %v878_v14  ;;  %1457 = vst [vmem:[%s1941_s3] sm:$0xff] %v1456_v1   ;;  %v1007_v24 = vadd.f32 %v1006_v22, %v999_v20  ;;  %v985_v27 = vadd.f32 %v984_v21, %v906_v54  ;;  %v885_v29 = vpop.f32.mrf.mxu1  ;;  %v883_v54 = vadd.f32 %v882_v4, %v850_v52 }
 0x120   :  { %v886_v63 = vadd.f32 %v885_v29, %v853_v16 }
 0x121   :  { %v961_v31 = vadd.f32 %v1901_v50, %v911_v25  ;;  %v986_v34 = vadd.f32 %v985_v27, %v909_v15  ;;  %v1008_v35 = vadd.f32 %v1007_v24, %v1000_v26  ;;  %v1002_v39 = vmul.f32 %v911_v25, %v911_v25 }
 0x123   :  { %v1466_v38 = vpack.c.bf16 %v961_v31, %v960_v30  ;;  %v987_v8 = vadd.f32 %v986_v34, %v911_v25  ;;  %v1009_v40 = vadd.f32 %v1008_v35, %v1001_v33 }
 0x125   :  { %1474 = vst [vmem:[%s1941_s3 + $0x10] sm:$0xff] %v1466_v38   ;;  %v1010_v42 = vadd.f32 %v1009_v40, %v1002_v39 }
 0x126   :  { %v913_v43 = vpop.f32.mrf.mxu2 }
 0x127   :  { %v914_v45 = vadd.f32 %v913_v43, %v881_v41  ;;  %v887_v46 = vpop.f32.mrf.mxu1 }
 0x129   :  { %v988_v48 = vadd.f32 %v987_v8, %v914_v45  ;;  %v1003_v49 = vmul.f32 %v914_v45, %v914_v45  ;;  %v962_v53 = vadd.f32 %v1901_v50, %v914_v45 }
 0x12b   :  { %v1011_v28 = vadd.f32 %v1010_v42, %v1003_v49 }
 0x12e   :  { %v915_v55 = vpop.f32.mrf.mxu2 }
 0x12f   :  { %v916_v47 = vadd.f32 %v915_v55, %v883_v54 }
 0x131   :  { %v963_v57 = vadd.f32 %v1901_v50, %v916_v47  ;;  %v989_v58 = vadd.f32 %v988_v48, %v916_v47  ;;  %v1004_v60 = vmul.f32 %v916_v47, %v916_v47 }
 0x133   :  { %v1471_v51 = vpack.c.bf16 %v963_v57, %v962_v53  ;;  %v1012_v62 = vadd.f32 %v1011_v28, %v1004_v60 }
 0x135   :  { %1475 = vst [vmem:[%s1941_s3 + $0x18] sm:$0xff] %v1471_v51  }
 0x136   :  { %v918_v32 = vpop.f32.mrf.mxu2 }
 0x137   :  { %v919_v0 = vadd.f32 %v918_v32, %v886_v63 }
 0x139   :  { %v964_v23 = vadd.f32 %v1901_v50, %v919_v0  ;;  %v990_v61 = vadd.f32 %v989_v58, %v919_v0  ;;  %v1005_v2 = vmul.f32 %v919_v0, %v919_v0 }
 0x13b   :  { %v973_v3 = vpack.c.bf16 %v964_v23, %v964_v23  ;;  %v991_v4 = vrot.slane %v990_v61, 4  ;;  %v1013_v5 = vadd.f32 %v1012_v62, %v1005_v2 }
 0x13d   :  { %982 = vst [vmem:[%s1941_s3 + $0x20] sm:$0xf] %v973_v3  ;;  %v992_v36 = vadd.f32 %v991_v4, %v990_v61  ;;  %v1014_v6 = vrot.slane %v1013_v5, 4 }
 0x13e   :  { %v920_v7 = vpop.f32.mrf.mxu2 }
 0x13f   :  { %v993_v9 = vrot.slane %v992_v36, 2  ;;  %v1015_v10 = vadd.f32 %v1014_v6, %v1013_v5 }
 0x141   :  { %v994_v11 = vadd.f32 %v993_v9, %v992_v36  ;;  %v1016_v59 = vrot.slane %v1015_v10, 2 }
 0x143   :  { %v995_v12 = vrot.slane %v994_v11, 1  ;;  %v1017_v13 = vadd.f32 %v1016_v59, %v1015_v10 }
 0x145   :  { %v1018_v14 = vrot.slane %v1017_v13, 1  ;;  %v996_v50 = vadd.f32 %v995_v12, %v994_v11 }
 0x147   :  { %v1019_v15 = vadd.f32 %v1018_v14, %v1017_v13 }
 0x149   :  { %v1021_v18 = vsel %vm1020_vm0, %v996_v50, %v1019_v15 }
 0x14a   :  { %v1023_v20 = vsel %vm1022_vm1, %v1021_v18, 0.0 }
 0x14b   :  { %1024 = vst [vmem:[%s1942_s4] sm:$0xff] %v1023_v20 }

// kernel: contextnet_apply.47
= control target key start
LH: loop header
LB: loop body
LE: loop exit
PB: predicated region body
PF: predicated region fallthrough
CT: control target
= control target key end

     0   :  { %s288_s1 = inlined_call_operand.vmem [shape: f32[1,8,128], index: 1, kind: input, shape index: {}]   ;;  %s289_s2 = inlined_call_operand.vmem [shape: f32[1,128], index: 2, kind: input, shape index: {}]   ;;  %s290_s0 = inlined_call_operand.vmem [shape: bf16[72,128], index: 0, kind: input, shape index: {}]   ;;  %s291_s3 = inlined_call_operand.vmem [shape: bf16[72,128], index: 3, kind: input, shape index: {}]   ;;  %s292_s4 = inlined_call_operand.vmem [shape: bf16[72,128], index: 4, kind: output, shape index: {}]  }
   0x1   :  { %v17_v0 = vld [vmem:[%s288_s1] sm:$0xff]  ;;  %v201_v15 = vld [vmem:[%s290_s0 + $0x8] sm:$0xff]   ;;  %v202_v16 = vld [vmem:[%s290_s0 + $0x10] sm:$0xff]  }
   0x2   :  { %v19_v1 = vmul.f32 0.013888889, %v17_v0  ;;  %v37_v10 = vld [vmem:[%s289_s2] sm:$0x1]  ;;  %v203_v17 = vld [vmem:[%s290_s0 + $0x18] sm:$0xff]   ;;  %v155_v23 = vunpack.c.l.bf16 %v201_v15  ;;  %v156_v24 = vunpack.c.h.bf16 %v201_v15  ;;  %v204_v25 = vld [vmem:[%s291_s3 + $0x8] sm:$0xff]   ;;  %v159_v28 = vunpack.c.l.bf16 %v202_v16 }
   0x3   :  { %v150_v13 = vld [vmem:[%s290_s0] sm:$0xff]   ;;  %v160_v29 = vunpack.c.h.bf16 %v202_v16  ;;  %v163_v30 = vunpack.c.l.bf16 %v203_v17  ;;  %v164_v33 = vunpack.c.h.bf16 %v203_v17  ;;  %v171_v36 = vunpack.c.l.bf16 %v204_v25  ;;  %v205_v37 = vld [vmem:[%s291_s3 + $0x10] sm:$0xff]   ;;  %v206_v43 = vld [vmem:[%s291_s3 + $0x18] sm:$0xff]  }
   0x4   :  { %v20_v2 = vmul.f32 %v19_v1, %v19_v1  ;;  %v38_v12 = vadd.f32 %v37_v10, %v19_v1  ;;  %v151_v19 = vunpack.c.l.bf16 %v150_v13  ;;  %v152_v21 = vunpack.c.h.bf16 %v150_v13  ;;  %v166_v22 = vld [vmem:[%s291_s3] sm:$0xff]  }
   0x5   :  { %v52_v26 = vld [vmem:[%s290_s0 + $0x20] sm:$0xf]  ;;  %v167_v34 = vunpack.c.l.bf16 %v166_v22  ;;  %v168_v35 = vunpack.c.h.bf16 %v166_v22  ;;  %v172_v49 = vunpack.c.h.bf16 %v204_v25  ;;  %v175_v50 = vunpack.c.l.bf16 %v205_v37 }
   0x6   :  { %v22_v3 = vrot.slane %v20_v2, 7  ;;  %v39_v20 = vsub.f32 0.0, %v38_v12  ;;  %v61_v38 = vunpack.c.l.bf16 %v52_v26  ;;  %v176_v52 = vunpack.c.h.bf16 %v205_v37  ;;  %v99_v16 = vld [vmem:[%s291_s3 + $0x20] sm:$0xf] }
   0x7   :  { %v179_v53 = vunpack.c.l.bf16 %v206_v43  ;;  %v180_v54 = vunpack.c.h.bf16 %v206_v43 }
   0x8   :  { %v24_v4 = vsub.f32 %v19_v1, %v22_v3 }
   0xa   :  { %v25_v5 = vmax.f32 %v24_v4, 0.0 }
   0xc   :  { %v26_v6 = vadd.f32 1e-05, %v25_v5 }
   0xe   :  { %210 = vrsqrt.f32 %v26_v6  ;;  %vm33_vm0 = vweird.f32 %v26_v6 }
  0x14   :  { %v211_v7 = vpop.eup %210 }
  0x15   :  { %v28_v8 = vmul.f32 %v211_v7, %v26_v6  ;;  %vm34_vm1 = vweird.f32 %v211_v7 }
  0x16   :  { %vm35_vm2 = vmor %vm33_vm0, %vm34_vm1 }
  0x17   :  { %v29_v9 = vmul.f32 %v211_v7, %v28_v8 }
  0x19   :  { %v30_v11 = vmul.f32 0.5, %v29_v9 }
  0x1b   :  { %v31_v14 = vsub.f32 1.5, %v30_v11 }
  0x1d   :  { %v32_v18 = vmul.f32 %v211_v7, %v31_v14 }
  0x1f   :  { %v36_v27 = vsel %vm35_vm2, %v211_v7, %v32_v18 }
  0x20   :  { %v41_v31 = vrot.slane %v36_v27, 1  ;;  %v62_v32 = vperm.slane %v36_v27, 1 }
  0x22   :  { %v43_v39 = vmul.f32 %v41_v31, %v39_v20  ;;  %v63_v40 = vmul.f32 %v151_v19, %v62_v32  ;;  %v64_v41 = vmul.f32 %v152_v21, %v62_v32  ;;  %v65_v42 = vmul.f32 %v155_v23, %v62_v32 }
  0x23   :  { %v66_v44 = vmul.f32 %v156_v24, %v62_v32  ;;  %v67_v45 = vmul.f32 %v159_v28, %v62_v32  ;;  %v68_v46 = vmul.f32 %v160_v29, %v62_v32  ;;  %v69_v47 = vmul.f32 %v163_v30, %v62_v32 }
  0x24   :  { %v72_v48 = vperm.slane %v43_v39, 0  ;;  %v70_v51 = vmul.f32 %v164_v33, %v62_v32  ;;  %v71_v55 = vmul.f32 %v62_v32, %v61_v38  ;;  %v108_v28 = vunpack.c.l.bf16 %v99_v16 }
  0x26   :  { %v73_v56 = vadd.f32 %v72_v48, %v63_v40  ;;  %v74_v57 = vadd.f32 %v72_v48, %v64_v41  ;;  %v75_v58 = vadd.f32 %v72_v48, %v65_v42  ;;  %v76_v59 = vadd.f32 %v72_v48, %v66_v44 }
  0x27   :  { %v77_v60 = vadd.f32 %v72_v48, %v67_v45  ;;  %v78_v61 = vadd.f32 %v72_v48, %v68_v46  ;;  %v79_v62 = vadd.f32 %v72_v48, %v69_v47  ;;  %v80_v63 = vadd.f32 %v72_v48, %v70_v51 }
  0x28   :  { %v82_v0 = vmax.f32 %v73_v56, 0.0  ;;  %v83_v1 = vmax.f32 %v74_v57, 0.0  ;;  %v84_v2 = vmax.f32 %v75_v58, 0.0  ;;  %v85_v3 = vmax.f32 %v76_v59, 0.0 }
  0x29   :  { %v86_v4 = vmax.f32 %v77_v60, 0.0  ;;  %v87_v5 = vmax.f32 %v78_v61, 0.0  ;;  %v88_v6 = vmax.f32 %v79_v62, 0.0  ;;  %v89_v7 = vmax.f32 %v80_v63, 0.0 }
  0x2a   :  { %v109_v8 = vadd.f32 %v167_v34, %v82_v0  ;;  %v110_v9 = vadd.f32 %v168_v35, %v83_v1  ;;  %v111_v10 = vadd.f32 %v171_v36, %v84_v2  ;;  %v112_v11 = vadd.f32 %v172_v49, %v85_v3 }
  0x2b   :  { %v113_v12 = vadd.f32 %v175_v50, %v86_v4  ;;  %v114_v13 = vadd.f32 %v176_v52, %v87_v5  ;;  %v115_v14 = vadd.f32 %v179_v53, %v88_v6  ;;  %v116_v15 = vadd.f32 %v180_v54, %v89_v7 }
  0x2c   :  { %v118_v17 = vmax.f32 %v109_v8, 0.0  ;;  %v119_v18 = vmax.f32 %v110_v9, 0.0  ;;  %v120_v19 = vmax.f32 %v111_v10, 0.0  ;;  %v121_v20 = vmax.f32 %v112_v11, 0.0 }
  0x2d   :  { %v122_v21 = vmax.f32 %v113_v12, 0.0  ;;  %v123_v22 = vmax.f32 %v114_v13, 0.0  ;;  %v124_v23 = vmax.f32 %v115_v14, 0.0  ;;  %v125_v24 = vmax.f32 %v116_v15, 0.0 }
  0x2e   :  { %v184_v25 = vpack.c.bf16 %v119_v18, %v118_v17  ;;  %v189_v26 = vpack.c.bf16 %v121_v20, %v120_v19  ;;  %v81_v27 = vadd.f32 %v72_v48, %v71_v55 }
  0x2f   :  { %v194_v29 = vpack.c.bf16 %v123_v22, %v122_v21  ;;  %v199_v30 = vpack.c.bf16 %v125_v24, %v124_v23 }
  0x30   :  { %185 = vst [vmem:[%s292_s4] sm:$0xff] %v184_v25   ;;  %v90_v31 = vmax.f32 %v81_v27, 0.0 }
  0x31   :  { %207 = vst [vmem:[%s292_s4 + $0x8] sm:$0xff] %v189_v26  }
  0x32   :  { %208 = vst [vmem:[%s292_s4 + $0x10] sm:$0xff] %v194_v29   ;;  %v117_v32 = vadd.f32 %v108_v28, %v90_v31 }
  0x33   :  { %209 = vst [vmem:[%s292_s4 + $0x18] sm:$0xff] %v199_v30  }
  0x34   :  { %v126_v33 = vmax.f32 %v117_v32, 0.0 }
  0x36   :  { %v135_v34 = vpack.c.bf16 %v126_v33, %v126_v33 }
  0x38   :  { %144 = vst [vmem:[%s292_s4 + $0x20] sm:$0xf] %v135_v34 }

// kernel: contextnet_apply.42
= control target key start
LH: loop header
LB: loop body
LE: loop exit
PB: predicated region body
PF: predicated region fallthrough
CT: control target
= control target key end

     0   :  { %vm270_vm0 = vcmask 1040384   ;;  %vm272_vm1 = vcmask 1041408   ;;  %s476_s1 = inlined_call_operand.vmem [shape: bf16[128,128], index: 1, kind: input, shape index: {}]   ;;  %s477_s2 = inlined_call_operand.vmem [shape: f32[1,128], index: 2, kind: input, shape index: {}]   ;;  %s478_s0 = inlined_call_operand.vmem [shape: bf16[72,128], index: 0, kind: input, shape index: {}]   ;;  %s479_s3 = inlined_call_operand.vmem [shape: bf16[72,128], index: 3, kind: output, shape index: {0}]   ;;  %s480_s4 = inlined_call_operand.vmem [shape: f32[1,8,128], index: 4, kind: output, shape index: {1}]  }
   0x1   :  { %v342_v0 = vld [vmem:[%s476_s1 + $0x38] sm:$0xff]  ;;  %v341_v1 = vld [vmem:[%s476_s1 + $0x30] sm:$0xff]  ;;  %v340_v2 = vld [vmem:[%s476_s1 + $0x28] sm:$0xff] }
   0x2   :  { %139 = vmatpush.bf16.msra.mxu0 %v342_v0  ;;  %366 = vmatpush.bf16.msra.mxu1 %v342_v0  ;;  %v339_v3 = vld [vmem:[%s476_s1 + $0x20] sm:$0xff]  ;;  %v338_v4 = vld [vmem:[%s476_s1 + $0x18] sm:$0xff]  ;;  %v337_v5 = vld [vmem:[%s476_s1 + $0x10] sm:$0xff] }
   0x3   :  { %367 = vmatpush.bf16.msra.mxu2 %v342_v0  ;;  %368 = vmatpush.bf16.msra.mxu3 %v342_v0  ;;  %v336_v6 = vld [vmem:[%s476_s1 + $0x8] sm:$0xff]  ;;  %v335_v7 = vld [vmem:[%s476_s1] sm:$0xff]  ;;  %v333_v10 = vld [vmem:[%s478_s0 + $0x10] sm:$0xff] }
   0x4   :  { %v331_v8 = vld [vmem:[%s478_s0] sm:$0xff]  ;;  %v332_v9 = vld [vmem:[%s478_s0 + $0x8] sm:$0xff]  ;;  %v334_v11 = vld [vmem:[%s478_s0 + $0x18] sm:$0xff] }
   0x5   :  { %v46_v12 = vld [vmem:[%s478_s0 + $0x20] sm:$0xf] }
   0x6   :  { %140 = vmatpush.bf16.msra.mxu0 %v341_v1  ;;  %369 = vmatpush.bf16.msra.mxu1 %v341_v1  ;;  %v80_v13 = vunpack.c.l.b16 %v46_v12  ;;  %v390_v17 = vld [vmem:[%s477_s2] ss:$0 sm:$0xff] }
   0x7   :  { %370 = vmatpush.bf16.msra.mxu2 %v341_v1  ;;  %371 = vmatpush.bf16.msra.mxu3 %v341_v1 }
   0x8   :  { %v85_v14 = vpack.c.b16 %v80_v13, %v80_v13 }
   0xa   :  { %141 = vmatpush.bf16.msra.mxu0 %v340_v2  ;;  %372 = vmatpush.bf16.msra.mxu1 %v340_v2 }
   0xb   :  { %373 = vmatpush.bf16.msra.mxu2 %v340_v2  ;;  %374 = vmatpush.bf16.msra.mxu3 %v340_v2 }
   0xe   :  { %142 = vmatpush.bf16.msra.mxu0 %v339_v3  ;;  %375 = vmatpush.bf16.msra.mxu1 %v339_v3 }
   0xf   :  { %376 = vmatpush.bf16.msra.mxu2 %v339_v3  ;;  %377 = vmatpush.bf16.msra.mxu3 %v339_v3 }
  0x12   :  { %143 = vmatpush.bf16.msra.mxu0 %v338_v4  ;;  %378 = vmatpush.bf16.msra.mxu1 %v338_v4 }
  0x13   :  { %379 = vmatpush.bf16.msra.mxu2 %v338_v4  ;;  %380 = vmatpush.bf16.msra.mxu3 %v338_v4 }
  0x16   :  { %144 = vmatpush.bf16.msra.mxu0 %v337_v5  ;;  %381 = vmatpush.bf16.msra.mxu1 %v337_v5 }
  0x17   :  { %382 = vmatpush.bf16.msra.mxu2 %v337_v5  ;;  %383 = vmatpush.bf16.msra.mxu3 %v337_v5 }
  0x1a   :  { %145 = vmatpush.bf16.msra.mxu0 %v336_v6  ;;  %384 = vmatpush.bf16.msra.mxu1 %v336_v6 }
  0x1b   :  { %385 = vmatpush.bf16.msra.mxu2 %v336_v6  ;;  %386 = vmatpush.bf16.msra.mxu3 %v336_v6 }
  0x1e   :  { %146 = vmatpush.bf16.msra.mxu0 %v335_v7  ;;  %387 = vmatpush.bf16.msra.mxu1 %v335_v7 }
  0x1f   :  { %388 = vmatpush.bf16.msra.mxu2 %v335_v7  ;;  %389 = vmatpush.bf16.msra.mxu3 %v335_v7 }
  0x21   :  { %147 = vmatmul.bf16.vlgmr.msra.gmra.mxu0 %v331_v8  ;;  %152 = vmatmul.bf16.vlgmr.msra.gmra.mxu1 %v332_v9 }
  0x22   :  { %157 = vmatmul.bf16.vlgmr.msra.gmra.mxu2 %v333_v10  ;;  %162 = vmatmul.bf16.vlgmr.msra.gmra.mxu3 %v334_v11 }
  0x32   :  { %167 = vmatmul.bf16.gmra.mxu3 %v85_v14 }
  0x9e   :  { %v148_v15 = vpop.f32.mrf.mxu0  ;;  %v153_v16 = vpop.f32.mrf.mxu1 }
  0x9f   :  { %v206_v20 = vadd.f32 %v390_v17, %v148_v15  ;;  %v247_v21 = vmul.f32 %v148_v15, %v148_v15  ;;  %v208_v22 = vadd.f32 %v390_v17, %v153_v16  ;;  %v249_v29 = vmul.f32 %v153_v16, %v153_v16 }
  0xa5   :  { %v158_v18 = vpop.f32.mrf.mxu2  ;;  %v163_v19 = vpop.f32.mrf.mxu3 }
  0xa6   :  { %v150_v23 = vpop.f32.mrf.mxu0  ;;  %v155_v24 = vpop.f32.mrf.mxu1  ;;  %v251_v37 = vmul.f32 %v158_v18, %v158_v18  ;;  %v210_v42 = vadd.f32 %v390_v17, %v158_v18  ;;  %v212_v43 = vadd.f32 %v390_v17, %v163_v19  ;;  %v253_v51 = vmul.f32 %v163_v19, %v163_v19 }
  0xa7   :  { %v207_v25 = vadd.f32 %v390_v17, %v150_v23  ;;  %v233_v26 = vadd.f32 %v150_v23, %v148_v15  ;;  %v248_v27 = vmul.f32 %v150_v23, %v150_v23  ;;  %v209_v28 = vadd.f32 %v390_v17, %v155_v24 }
  0xa8   :  { %v250_v35 = vmul.f32 %v155_v24, %v155_v24 }
  0xa9   :  { %v346_v30 = vpack.c.bf16 %v207_v25, %v206_v20  ;;  %v256_v31 = vadd.f32 %v248_v27, %v247_v21  ;;  %v351_v32 = vpack.c.bf16 %v209_v28, %v208_v22  ;;  %v234_v33 = vadd.f32 %v233_v26, %v153_v16 }
  0xab   :  { %347 = vst [vmem:[%s479_s3] sm:$0xff] %v346_v30   ;;  %v235_v34 = vadd.f32 %v234_v33, %v155_v24  ;;  %v257_v36 = vadd.f32 %v256_v31, %v249_v29 }
  0xac   :  { %363 = vst [vmem:[%s479_s3 + $0x8] sm:$0xff] %v351_v32  }
  0xad   :  { %v258_v38 = vadd.f32 %v257_v36, %v250_v35  ;;  %v160_v39 = vpop.f32.mrf.mxu2  ;;  %v236_v40 = vadd.f32 %v235_v34, %v158_v18  ;;  %v165_v41 = vpop.f32.mrf.mxu3 }
  0xae   :  { %v211_v44 = vadd.f32 %v390_v17, %v160_v39  ;;  %v213_v45 = vadd.f32 %v390_v17, %v165_v41  ;;  %v252_v47 = vmul.f32 %v160_v39, %v160_v39  ;;  %v254_v56 = vmul.f32 %v165_v41, %v165_v41 }
  0xaf   :  { %v237_v46 = vadd.f32 %v236_v40, %v160_v39  ;;  %v259_v48 = vadd.f32 %v258_v38, %v251_v37 }
  0xb0   :  { %v356_v49 = vpack.c.bf16 %v211_v44, %v210_v42  ;;  %v361_v50 = vpack.c.bf16 %v213_v45, %v212_v43 }
  0xb1   :  { %v238_v52 = vadd.f32 %v237_v46, %v163_v19  ;;  %v260_v53 = vadd.f32 %v259_v48, %v252_v47 }
  0xb2   :  { %364 = vst [vmem:[%s479_s3 + $0x10] sm:$0xff] %v356_v49  }
  0xb3   :  { %v261_v54 = vadd.f32 %v260_v53, %v253_v51  ;;  %365 = vst [vmem:[%s479_s3 + $0x18] sm:$0xff] %v361_v50   ;;  %v239_v55 = vadd.f32 %v238_v52, %v165_v41 }
  0xb5   :  { %v262_v57 = vadd.f32 %v261_v54, %v254_v56  ;;  %v168_v58 = vpop.f32.mrf.mxu3 }
  0xb6   :  { %v214_v59 = vadd.f32 %v390_v17, %v168_v58  ;;  %v240_v60 = vadd.f32 %v239_v55, %v168_v58  ;;  %v255_v61 = vmul.f32 %v168_v58, %v168_v58 }
  0xb8   :  { %v223_v62 = vpack.c.bf16 %v214_v59, %v214_v59  ;;  %v241_v63 = vrot.slane %v240_v60, 4  ;;  %v263_v0 = vadd.f32 %v262_v57, %v255_v61 }
  0xba   :  { %232 = vst [vmem:[%s479_s3 + $0x20] sm:$0xf] %v223_v62  ;;  %v242_v1 = vadd.f32 %v241_v63, %v240_v60  ;;  %v264_v2 = vrot.slane %v263_v0, 4 }
  0xbc   :  { %v243_v3 = vrot.slane %v242_v1, 2  ;;  %v265_v4 = vadd.f32 %v264_v2, %v263_v0 }
  0xbd   :  { %v170_v5 = vpop.f32.mrf.mxu3 }
  0xbe   :  { %v244_v6 = vadd.f32 %v243_v3, %v242_v1  ;;  %v266_v7 = vrot.slane %v265_v4, 2 }
  0xc0   :  { %v245_v8 = vrot.slane %v244_v6, 1  ;;  %v267_v9 = vadd.f32 %v266_v7, %v265_v4 }
  0xc2   :  { %v268_v10 = vrot.slane %v267_v9, 1  ;;  %v246_v11 = vadd.f32 %v245_v8, %v244_v6 }
  0xc4   :  { %v269_v12 = vadd.f32 %v268_v10, %v267_v9 }
  0xc6   :  { %v271_v13 = vsel %vm270_vm0, %v246_v11, %v269_v12 }
  0xc7   :  { %v273_v14 = vsel %vm272_vm1, %v271_v13, 0.0 }
  0xc8   :  { %274 = vst [vmem:[%s480_s4] sm:$0xff] %v273_v14 }

// kernel: contextnet_apply.49
= control target key start
LH: loop header
LB: loop body
LE: loop exit
PB: predicated region body
PF: predicated region fallthrough
CT: control target
= control target key end

     0   :  { %s117_s1 = inlined_call_operand.vmem [shape: f32[1,8,128], index: 1, kind: input, shape index: {}]   ;;  %s118_s2 = inlined_call_operand.vmem [shape: f32[1,128], index: 2, kind: input, shape index: {}]   ;;  %s119_s0 = inlined_call_operand.vmem [shape: bf16[24,128], index: 0, kind: input, shape index: {}]   ;;  %s120_s3 = inlined_call_operand.vmem [shape: bf16[24,128], index: 3, kind: output, shape index: {}]  }
   0x1   :  { %v14_v0 = vld [vmem:[%s117_s1] sm:$0xff]  ;;  %v43_v15 = vld [vmem:[%s119_s0 + $0x8] sm:$0xf] }
   0x2   :  { %v16_v1 = vmul.f32 0.055555556, %v14_v0  ;;  %v34_v10 = vld [vmem:[%s118_s2] sm:$0x1]  ;;  %v46_v20 = vunpack.c.l.bf16 %v43_v15 }
   0x3   :  { %v69_v14 = vld [vmem:[%s119_s0] sm:$0xff]  }
   0x4   :  { %v17_v2 = vmul.f32 %v16_v1, %v16_v1  ;;  %v35_v12 = vadd.f32 %v34_v10, %v16_v1  ;;  %v70_v18 = vunpack.c.l.bf16 %v69_v14  ;;  %v71_v19 = vunpack.c.h.bf16 %v69_v14 }
   0x6   :  { %v19_v3 = vrot.slane %v17_v2, 7  ;;  %v36_v17 = vsub.f32 0.0, %v35_v12 }
   0x8   :  { %v21_v4 = vsub.f32 %v16_v1, %v19_v3 }
   0xa   :  { %v22_v5 = vmax.f32 %v21_v4, 0.0 }
   0xc   :  { %v23_v6 = vadd.f32 1e-05, %v22_v5 }
   0xe   :  { %77 = vrsqrt.f32 %v23_v6  ;;  %vm30_vm0 = vweird.f32 %v23_v6 }
  0x14   :  { %v78_v7 = vpop.eup %77 }
  0x15   :  { %v25_v8 = vmul.f32 %v78_v7, %v23_v6  ;;  %vm31_vm1 = vweird.f32 %v78_v7 }
  0x16   :  { %vm32_vm2 = vmor %vm30_vm0, %vm31_vm1 }
  0x17   :  { %v26_v9 = vmul.f32 %v78_v7, %v25_v8 }
  0x19   :  { %v27_v11 = vmul.f32 0.5, %v26_v9 }
  0x1b   :  { %v28_v13 = vsub.f32 1.5, %v27_v11 }
  0x1d   :  { %v29_v16 = vmul.f32 %v78_v7, %v28_v13 }
  0x1f   :  { %v33_v21 = vsel %vm32_vm2, %v78_v7, %v29_v16 }
  0x20   :  { %v38_v22 = vrot.slane %v33_v21, 1  ;;  %v47_v23 = vperm.slane %v33_v21, 1 }
  0x22   :  { %v40_v24 = vmul.f32 %v38_v22, %v36_v17  ;;  %v48_v25 = vmul.f32 %v70_v18, %v47_v23  ;;  %v49_v26 = vmul.f32 %v71_v19, %v47_v23  ;;  %v50_v27 = vmul.f32 %v47_v23, %v46_v20 }
  0x24   :  { %v51_v28 = vperm.slane %v40_v24, 0 }
  0x26   :  { %v52_v29 = vadd.f32 %v51_v28, %v48_v25  ;;  %v53_v30 = vadd.f32 %v51_v28, %v49_v26  ;;  %v54_v31 = vadd.f32 %v51_v28, %v50_v27 }
  0x28   :  { %v55_v32 = vmax.f32 %v52_v29, 0.0  ;;  %v56_v33 = vmax.f32 %v53_v30, 0.0  ;;  %v57_v34 = vmax.f32 %v54_v31, 0.0 }
  0x2a   :  { %v75_v35 = vpack.c.bf16 %v56_v33, %v55_v32  ;;  %v60_v36 = vpack.c.bf16 %v57_v34, %v57_v34 }
  0x2c   :  { %76 = vst [vmem:[%s120_s3] sm:$0xff] %v75_v35  }
  0x2d   :  { %63 = vst [vmem:[%s120_s3 + $0x8] sm:$0xf] %v60_v36 }

// kernel: contextnet_apply.48
= control target key start
LH: loop header
LB: loop body
LE: loop exit
PB: predicated region body
PF: predicated region fallthrough
CT: control target
= control target key end

     0   :  { %vm717_vm0 = vcmask 1040384   ;;  %vm719_vm1 = vcmask 1041408   ;;  %s1318_s1 = inlined_call_operand.vmem [shape: bf16[896,128], index: 1, kind: input, shape index: {}]   ;;  %s1319_s0 = inlined_call_operand.vmem [shape: bf16[24,896], index: 0, kind: input, shape index: {}]   ;;  %s1320_s2 = inlined_call_operand.vmem [shape: f32[1,128], index: 2, kind: input, shape index: {}]   ;;  %s1321_s3 = inlined_call_operand.vmem [shape: bf16[24,128], index: 3, kind: output, shape index: {0}]   ;;  %s1322_s4 = inlined_call_operand.vmem [shape: f32[1,8,128], index: 4, kind: output, shape index: {1}]  }
   0x1   :  { %v996_v0 = vld [vmem:[%s1318_s1 + $0x38] sm:$0xff]  ;;  %v995_v4 = vld [vmem:[%s1318_s1 + $0x30] sm:$0xff]  ;;  %v994_v8 = vld [vmem:[%s1318_s1 + $0x28] sm:$0xff] }
   0x2   :  { %v1004_v1 = vld [vmem:[%s1318_s1 + $0x78] sm:$0xff]  ;;  %547 = vmatpush.bf16.msra.mxu0 %v996_v0  ;;  %v1003_v5 = vld [vmem:[%s1318_s1 + $0x70] sm:$0xff]  ;;  %v1002_v9 = vld [vmem:[%s1318_s1 + $0x68] sm:$0xff] }
   0x3   :  { %v1012_v2 = vld [vmem:[%s1318_s1 + $0xb8] sm:$0xff]  ;;  %565 = vmatpush.bf16.msra.mxu1 %v1004_v1  ;;  %v1011_v6 = vld [vmem:[%s1318_s1 + $0xb0] sm:$0xff]  ;;  %v1010_v10 = vld [vmem:[%s1318_s1 + $0xa8] sm:$0xff] }
   0x4   :  { %v1020_v3 = vld [vmem:[%s1318_s1 + $0xf8] sm:$0xff]  ;;  %583 = vmatpush.bf16.msra.mxu2 %v1012_v2  ;;  %v1019_v7 = vld [vmem:[%s1318_s1 + $0xf0] sm:$0xff]  ;;  %v1018_v11 = vld [vmem:[%s1318_s1 + $0xe8] sm:$0xff] }
   0x5   :  { %601 = vmatpush.bf16.msra.mxu3 %v1020_v3  ;;  %v993_v12 = vld [vmem:[%s1318_s1 + $0x20] sm:$0xff]  ;;  %v992_v16 = vld [vmem:[%s1318_s1 + $0x18] sm:$0xff]  ;;  %v991_v20 = vld [vmem:[%s1318_s1 + $0x10] sm:$0xff] }
   0x6   :  { %548 = vmatpush.bf16.msra.mxu0 %v995_v4  ;;  %v1001_v13 = vld [vmem:[%s1318_s1 + $0x60] sm:$0xff]  ;;  %v1000_v17 = vld [vmem:[%s1318_s1 + $0x58] sm:$0xff]  ;;  %v999_v21 = vld [vmem:[%s1318_s1 + $0x50] sm:$0xff] }
   0x7   :  { %566 = vmatpush.bf16.msra.mxu1 %v1003_v5  ;;  %v1009_v14 = vld [vmem:[%s1318_s1 + $0xa0] sm:$0xff]  ;;  %v1008_v18 = vld [vmem:[%s1318_s1 + $0x98] sm:$0xff]  ;;  %v1007_v22 = vld [vmem:[%s1318_s1 + $0x90] sm:$0xff] }
   0x8   :  { %584 = vmatpush.bf16.msra.mxu2 %v1011_v6  ;;  %v1017_v15 = vld [vmem:[%s1318_s1 + $0xe0] sm:$0xff]  ;;  %v1016_v19 = vld [vmem:[%s1318_s1 + $0xd8] sm:$0xff]  ;;  %v1015_v23 = vld [vmem:[%s1318_s1 + $0xd0] sm:$0xff] }
   0x9   :  { %602 = vmatpush.bf16.msra.mxu3 %v1019_v7  ;;  %v990_v24 = vld [vmem:[%s1318_s1 + $0x8] sm:$0xff]  ;;  %v989_v28 = vld [vmem:[%s1318_s1] sm:$0xff]  ;;  %v985_v33 = vld [vmem:[%s1319_s0 + $0x18] sm:$0xf0] }
   0xa   :  { %549 = vmatpush.bf16.msra.mxu0 %v994_v8  ;;  %v998_v25 = vld [vmem:[%s1318_s1 + $0x48] sm:$0xff]  ;;  %v997_v29 = vld [vmem:[%s1318_s1 + $0x40] sm:$0xff]  ;;  %v1044_v40 = vld [vmem:[%s1318_s1 + $0x1b8] sm:$0xff] }
   0xb   :  { %567 = vmatpush.bf16.msra.mxu1 %v1002_v9  ;;  %v1006_v26 = vld [vmem:[%s1318_s1 + $0x88] sm:$0xff]  ;;  %v1005_v30 = vld [vmem:[%s1318_s1 + $0x80] sm:$0xff]  ;;  %v1028_v41 = vld [vmem:[%s1318_s1 + $0x138] sm:$0xff] }
   0xc   :  { %585 = vmatpush.bf16.msra.mxu2 %v1010_v10  ;;  %v1014_v27 = vld [vmem:[%s1318_s1 + $0xc8] sm:$0xff]  ;;  %v1013_v31 = vld [vmem:[%s1318_s1 + $0xc0] sm:$0xff]  ;;  %v1036_v46 = vld [vmem:[%s1318_s1 + $0x178] sm:$0xff] }
   0xd   :  { %603 = vmatpush.bf16.msra.mxu3 %v1018_v11  ;;  %v732_v32 = vld [vmem:[%s1319_s0] sm:$0xf]  ;;  %v982_v34 = vld [vmem:[%s1319_s0 + $0x4] sm:$0xf]  ;;  %v740_v36 = vld [vmem:[%s1319_s0 + $0x8] sm:$0xf] }
   0xe   :  { %550 = vmatpush.bf16.msra.mxu0 %v993_v12  ;;  %v734_v35 = vld [vmem:[%s1319_s0 + $0x1c] sm:$0xf0]  ;;  %v986_v37 = vld [vmem:[%s1319_s0 + $0x20] sm:$0xf0]  ;;  %v983_v38 = vld [vmem:[%s1319_s0 + $0xc] sm:$0xf]  ;;  %v733_v42 = vor.u32 %v985_v33, %v732_v32 }
   0xf   :  { %568 = vmatpush.bf16.msra.mxu1 %v1001_v13  ;;  %v742_v39 = vld [vmem:[%s1319_s0 + $0x24] sm:$0xf0]  ;;  %v737_v43 = vor.u32 %v982_v34, %v734_v35  ;;  %v741_v44 = vor.u32 %v986_v37, %v740_v36  ;;  %v1043_v47 = vld [vmem:[%s1318_s1 + $0x1b0] sm:$0xff]  ;;  %v34_v52 = vld [vmem:[%s1319_s0 + $0x38] sm:$0xff] }
  0x10   :  { %586 = vmatpush.bf16.msra.mxu2 %v1009_v14  ;;  %v745_v45 = vor.u32 %v983_v38, %v742_v39  ;;  %v1027_v48 = vld [vmem:[%s1318_s1 + $0x130] sm:$0xff]  ;;  %v1042_v50 = vld [vmem:[%s1318_s1 + $0x1a8] sm:$0xff]  ;;  %v35_v54 = vld [vmem:[%s1319_s0 + $0x40] sm:$0xff]  ;;  %v176_v57 = vunpack.c.l.b16 %v34_v52  ;;  %v177_v58 = vunpack.c.h.b16 %v34_v52 }
  0x11   :  { %604 = vmatpush.bf16.msra.mxu3 %v1017_v15  ;;  %v1035_v49 = vld [vmem:[%s1318_s1 + $0x170] sm:$0xff]  ;;  %v1026_v51 = vld [vmem:[%s1318_s1 + $0x128] sm:$0xff]  ;;  %v1041_v55 = vld [vmem:[%s1318_s1 + $0x1a0] sm:$0xff]  ;;  %v178_v59 = vunpack.c.l.b16 %v35_v54  ;;  %v179_v60 = vunpack.c.h.b16 %v35_v54 }
  0x12   :  { %551 = vmatpush.bf16.msra.mxu0 %v992_v16  ;;  %v1034_v53 = vld [vmem:[%s1318_s1 + $0x168] sm:$0xff]  ;;  %v1025_v56 = vld [vmem:[%s1318_s1 + $0x120] sm:$0xff]  ;;  %v1040_v62 = vld [vmem:[%s1318_s1 + $0x198] sm:$0xff]  ;;  %v190_v0 = vpack.c.b16 %v176_v57, %v176_v57  ;;  %v191_v1 = vpack.c.b16 %v177_v58, %v177_v58 }
  0x13   :  { %569 = vmatpush.bf16.msra.mxu1 %v1000_v17  ;;  %v1033_v61 = vld [vmem:[%s1318_s1 + $0x160] sm:$0xff]  ;;  %v1024_v63 = vld [vmem:[%s1318_s1 + $0x118] sm:$0xff]  ;;  %v192_v2 = vpack.c.b16 %v178_v59, %v178_v59  ;;  %v193_v3 = vpack.c.b16 %v179_v60, %v179_v60  ;;  %v1039_v5 = vld [vmem:[%s1318_s1 + $0x190] sm:$0xff] }
  0x14   :  { %587 = vmatpush.bf16.msra.mxu2 %v1008_v18  ;;  %v1032_v4 = vld [vmem:[%s1318_s1 + $0x158] sm:$0xff]  ;;  %v1023_v6 = vld [vmem:[%s1318_s1 + $0x110] sm:$0xff]  ;;  %v1038_v8 = vld [vmem:[%s1318_s1 + $0x188] sm:$0xff] }
  0x15   :  { %605 = vmatpush.bf16.msra.mxu3 %v1016_v19  ;;  %v1031_v7 = vld [vmem:[%s1318_s1 + $0x150] sm:$0xff]  ;;  %v1022_v9 = vld [vmem:[%s1318_s1 + $0x108] sm:$0xff]  ;;  %v1037_v12 = vld [vmem:[%s1318_s1 + $0x180] sm:$0xff] }
  0x16   :  { %552 = vmatpush.bf16.msra.mxu0 %v991_v20  ;;  %v1030_v10 = vld [vmem:[%s1318_s1 + $0x148] sm:$0xff]  ;;  %v1021_v13 = vld [vmem:[%s1318_s1 + $0x100] sm:$0xff]  ;;  %v748_v14 = vld [vmem:[%s1319_s0 + $0x10] sm:$0xf] }
  0x17   :  { %570 = vmatpush.bf16.msra.mxu1 %v999_v21  ;;  %v36_v11 = vld [vmem:[%s1319_s0 + $0x48] sm:$0xff]  ;;  %v1029_v17 = vld [vmem:[%s1318_s1 + $0x140] sm:$0xff]  ;;  %v984_v18 = vld [vmem:[%s1319_s0 + $0x14] sm:$0xf] }
  0x18   :  { %588 = vmatpush.bf16.msra.mxu2 %v1007_v22  ;;  %v987_v15 = vld [vmem:[%s1319_s0 + $0x28] sm:$0xf0]  ;;  %v180_v16 = vunpack.c.l.b16 %v36_v11  ;;  %v750_v19 = vld [vmem:[%s1319_s0 + $0x2c] sm:$0xf0]  ;;  %v756_v20 = vld [vmem:[%s1319_s0 + $0x18] sm:$0xf] }
  0x19   :  { %606 = vmatpush.bf16.msra.mxu3 %v1015_v23  ;;  %v988_v21 = vld [vmem:[%s1319_s0 + $0x30] sm:$0xf0]  ;;  %v749_v22 = vor.u32 %v987_v15, %v748_v14 }
  0x1a   :  { %553 = vmatpush.bf16.msra.mxu0 %v990_v24  ;;  %v194_v23 = vpack.c.b16 %v180_v16, %v180_v16  ;;  %v753_v24 = vor.u32 %v984_v18, %v750_v19 }
  0x1b   :  { %571 = vmatpush.bf16.msra.mxu1 %v998_v25  ;;  %v757_v25 = vor.u32 %v988_v21, %v756_v20 }
  0x1c   :  { %589 = vmatpush.bf16.msra.mxu2 %v1006_v26  ;;  %v37_v26 = vld [vmem:[%s1319_s0 + $0x50] sm:$0xf] }
  0x1d   :  { %607 = vmatpush.bf16.msra.mxu3 %v1014_v27  ;;  %v181_v27 = vunpack.c.h.b16 %v36_v11 }
  0x1e   :  { %554 = vmatpush.bf16.msra.mxu0 %v989_v28  ;;  %v182_v28 = vunpack.c.l.b16 %v37_v26 }
  0x1f   :  { %572 = vmatpush.bf16.msra.mxu1 %v997_v29  ;;  %v195_v29 = vpack.c.b16 %v181_v27, %v181_v27 }
  0x20   :  { %590 = vmatpush.bf16.msra.mxu2 %v1005_v30  ;;  %v196_v30 = vpack.c.b16 %v182_v28, %v182_v28 }
  0x21   :  { %608 = vmatpush.bf16.msra.mxu3 %v1013_v31  ;;  %555 = vmatmul.bf16.vlgmr.msra.gmra.mxu0 %v733_v42 }
  0x22   :  { %619 = vmatpush.bf16.msrb.mxu0 %v1028_v41  ;;  %573 = vmatmul.bf16.vlgmr.msra.gmra.mxu1 %v737_v43 }
  0x23   :  { %591 = vmatmul.bf16.vlgmr.msra.gmra.mxu2 %v741_v44  ;;  %637 = vmatpush.bf16.msrb.mxu1 %v1036_v46 }
  0x24   :  { %655 = vmatpush.bf16.msrb.mxu2 %v1044_v40  ;;  %609 = vmatmul.bf16.vlgmr.msra.gmra.mxu3 %v745_v45 }
  0x25   :  { %1050 = vmatpush.bf16.msrb.mxu3 %v1028_v41 }
  0x26   :  { %620 = vmatpush.bf16.msrb.mxu0 %v1027_v48 }
  0x27   :  { %638 = vmatpush.bf16.msrb.mxu1 %v1035_v49 }
  0x28   :  { %656 = vmatpush.bf16.msrb.mxu2 %v1043_v47 }
  0x29   :  { %1051 = vmatpush.bf16.msrb.mxu3 %v1027_v48 }
  0x2a   :  { %621 = vmatpush.bf16.msrb.mxu0 %v1026_v51 }
  0x2b   :  { %639 = vmatpush.bf16.msrb.mxu1 %v1034_v53 }
  0x2c   :  { %657 = vmatpush.bf16.msrb.mxu2 %v1042_v50 }
  0x2d   :  { %1052 = vmatpush.bf16.msrb.mxu3 %v1026_v51 }
  0x2e   :  { %622 = vmatpush.bf16.msrb.mxu0 %v1025_v56 }
  0x2f   :  { %640 = vmatpush.bf16.msrb.mxu1 %v1033_v61 }
  0x30   :  { %658 = vmatpush.bf16.msrb.mxu2 %v1041_v55 }
  0x31   :  { %1053 = vmatpush.bf16.msrb.mxu3 %v1025_v56  ;;  %560 = vmatmul.bf16.gmra.mxu0 %v190_v0 }
  0x32   :  { %623 = vmatpush.bf16.msrb.mxu0 %v1024_v63  ;;  %578 = vmatmul.bf16.gmra.mxu1 %v191_v1  ;;  %v1058_v1 = vld [vmem:[%s1320_s2] ss:$0 sm:$0xff] }
  0x33   :  { %596 = vmatmul.bf16.gmra.mxu2 %v192_v2  ;;  %641 = vmatpush.bf16.msrb.mxu1 %v1032_v4 }
  0x34   :  { %659 = vmatpush.bf16.msrb.mxu2 %v1040_v62  ;;  %614 = vmatmul.bf16.gmra.mxu3 %v193_v3 }
  0x35   :  { %1054 = vmatpush.bf16.msrb.mxu3 %v1024_v63 }
  0x36   :  { %624 = vmatpush.bf16.msrb.mxu0 %v1023_v6 }
  0x37   :  { %642 = vmatpush.bf16.msrb.mxu1 %v1031_v7 }
  0x38   :  { %660 = vmatpush.bf16.msrb.mxu2 %v1039_v5 }
  0x39   :  { %1055 = vmatpush.bf16.msrb.mxu3 %v1023_v6 }
  0x3a   :  { %625 = vmatpush.bf16.msrb.mxu0 %v1022_v9 }
  0x3b   :  { %643 = vmatpush.bf16.msrb.mxu1 %v1030_v10 }
  0x3c   :  { %661 = vmatpush.bf16.msrb.mxu2 %v1038_v8 }
  0x3d   :  { %1056 = vmatpush.bf16.msrb.mxu3 %v1022_v9 }
  0x3e   :  { %626 = vmatpush.bf16.msrb.mxu0 %v1021_v13 }
  0x3f   :  { %644 = vmatpush.bf16.msrb.mxu1 %v1029_v17 }
  0x40   :  { %662 = vmatpush.bf16.msrb.mxu2 %v1037_v12 }
  0x41   :  { %1057 = vmatpush.bf16.msrb.mxu3 %v1021_v13  ;;  %627 = vmatmul.bf16.vlgmr.msrb.gmra.mxu0 %v749_v22 }
  0x42   :  { %645 = vmatmul.bf16.vlgmr.msrb.gmra.mxu1 %v753_v24 }
  0x43   :  { %663 = vmatmul.bf16.vlgmr.msrb.gmra.mxu2 %v757_v25 }
  0x44   :  { %632 = vmatmul.bf16.vlgmr.msrb.gmra.mxu3 %v194_v23 }
  0x52   :  { %650 = vmatmul.bf16.gmra.mxu1 %v195_v29 }
  0x53   :  { %668 = vmatmul.bf16.gmra.mxu2 %v196_v30 }
  0x9e   :  { %v556_v31 = vpop.f32.mrf.mxu0 }
  0x9f   :  { %v574_v32 = vpop.f32.mrf.mxu1 }
  0xa0   :  { %v575_v45 = vadd.f32 %v574_v32, %v556_v31 }
  0xa6   :  { %v592_v33 = vpop.f32.mrf.mxu2  ;;  %v558_v35 = vpop.f32.mrf.mxu0 }
  0xa7   :  { %v610_v34 = vpop.f32.mrf.mxu3  ;;  %v576_v36 = vpop.f32.mrf.mxu1  ;;  %v593_v50 = vadd.f32 %v592_v33, %v575_v45 }
  0xa8   :  { %v577_v51 = vadd.f32 %v576_v36, %v558_v35 }
  0xa9   :  { %v611_v53 = vadd.f32 %v610_v34, %v593_v50 }
  0xae   :  { %v594_v37 = vpop.f32.mrf.mxu2  ;;  %v561_v39 = vpop.f32.mrf.mxu0 }
  0xaf   :  { %v612_v38 = vpop.f32.mrf.mxu3  ;;  %v579_v40 = vpop.f32.mrf.mxu1  ;;  %v595_v52 = vadd.f32 %v594_v37, %v577_v51 }
  0xb0   :  { %v580_v60 = vadd.f32 %v579_v40, %v561_v39 }
  0xb1   :  { %v613_v57 = vadd.f32 %v612_v38, %v595_v52 }
  0xb6   :  { %v597_v41 = vpop.f32.mrf.mxu2  ;;  %v563_v43 = vpop.f32.mrf.mxu0 }
  0xb7   :  { %v615_v42 = vpop.f32.mrf.mxu3  ;;  %v581_v44 = vpop.f32.mrf.mxu1  ;;  %v598_v63 = vadd.f32 %v597_v41, %v580_v60 }
  0xb9   :  { %v616_v7 = vadd.f32 %v615_v42, %v598_v63 }
  0xbe   :  { %v599_v46 = vpop.f32.mrf.mxu2  ;;  %v628_v48 = vpop.f32.mrf.mxu0 }
  0xbf   :  { %v617_v47 = vpop.f32.mrf.mxu3  ;;  %v646_v49 = vpop.f32.mrf.mxu1  ;;  %v629_v58 = vadd.f32 %v628_v48, %v611_v53 }
  0xc1   :  { %v647_v62 = vadd.f32 %v646_v49, %v629_v58 }
  0xc6   :  { %v664_v55 = vpop.f32.mrf.mxu2  ;;  %v630_v56 = vpop.f32.mrf.mxu0 }
  0xc7   :  { %v633_v54 = vpop.f32.mrf.mxu3  ;;  %v648_v59 = vpop.f32.mrf.mxu1  ;;  %v631_v61 = vadd.f32 %v630_v56, %v613_v57  ;;  %v665_v0 = vadd.f32 %v664_v55, %v647_v62 }
  0xc8   :  { %v634_v10 = vadd.f32 %v633_v54, %v616_v7 }
  0xc9   :  { %v649_v2 = vadd.f32 %v648_v59, %v631_v61  ;;  %v689_v8 = vadd.f32 %v1058_v1, %v665_v0  ;;  %v706_v15 = vmul.f32 %v665_v0, %v665_v0 }
  0xce   :  { %v666_v4 = vpop.f32.mrf.mxu2 }
  0xcf   :  { %v635_v3 = vpop.f32.mrf.mxu3  ;;  %v667_v5 = vadd.f32 %v666_v4, %v649_v2  ;;  %v651_v6 = vpop.f32.mrf.mxu1 }
  0xd0   :  { %v652_v13 = vadd.f32 %v651_v6, %v634_v10 }
  0xd1   :  { %v690_v9 = vadd.f32 %v1058_v1, %v667_v5  ;;  %v707_v12 = vmul.f32 %v667_v5, %v667_v5  ;;  %v698_v16 = vadd.f32 %v667_v5, %v665_v0 }
  0xd3   :  { %v1048_v11 = vpack.c.bf16 %v690_v9, %v689_v8  ;;  %v709_v19 = vadd.f32 %v707_v12, %v706_v15 }
  0xd5   :  { %1049 = vst [vmem:[%s1321_s3] sm:$0xff] %v1048_v11  }
  0xd6   :  { %v669_v14 = vpop.f32.mrf.mxu2 }
  0xd7   :  { %v670_v17 = vadd.f32 %v669_v14, %v652_v13  ;;  %v653_v18 = vpop.f32.mrf.mxu1 }
  0xd9   :  { %v691_v20 = vadd.f32 %v1058_v1, %v670_v17  ;;  %v699_v21 = vadd.f32 %v698_v16, %v670_v17  ;;  %v708_v22 = vmul.f32 %v670_v17, %v670_v17 }
  0xdb   :  { %v694_v23 = vpack.c.bf16 %v691_v20, %v691_v20  ;;  %v700_v24 = vrot.slane %v699_v21, 4  ;;  %v710_v25 = vadd.f32 %v709_v19, %v708_v22 }
  0xdd   :  { %697 = vst [vmem:[%s1321_s3 + $0x8] sm:$0xf] %v694_v23  ;;  %v701_v26 = vadd.f32 %v700_v24, %v699_v21  ;;  %v711_v27 = vrot.slane %v710_v25, 4 }
  0xde   :  { %v671_v28 = vpop.f32.mrf.mxu2 }
  0xdf   :  { %v702_v29 = vrot.slane %v701_v26, 2  ;;  %v712_v30 = vadd.f32 %v711_v27, %v710_v25 }
  0xe1   :  { %v703_v31 = vadd.f32 %v702_v29, %v701_v26  ;;  %v713_v32 = vrot.slane %v712_v30, 2 }
  0xe3   :  { %v704_v33 = vrot.slane %v703_v31, 1  ;;  %v714_v34 = vadd.f32 %v713_v32, %v712_v30 }
  0xe5   :  { %v715_v35 = vrot.slane %v714_v34, 1  ;;  %v705_v36 = vadd.f32 %v704_v33, %v703_v31 }
  0xe7   :  { %v716_v37 = vadd.f32 %v715_v35, %v714_v34 }
  0xe9   :  { %v718_v38 = vsel %vm717_vm0, %v705_v36, %v716_v37 }
  0xea   :  { %v720_v39 = vsel %vm719_vm1, %v718_v38, 0.0 }
  0xeb   :  { %721 = vst [vmem:[%s1322_s4] sm:$0xff] %v720_v39 }

// kernel: contextnet_apply.50
= control target key start
LH: loop header
LB: loop body
LE: loop exit
PB: predicated region body
PF: predicated region fallthrough
CT: control target
= control target key end

     0   :  { %vm901_vm0 = vcmask 1040384   ;;  %vm903_vm1 = vcmask 1041408   ;;  %s1655_s1 = inlined_call_operand.vmem [shape: bf16[1152,128], index: 1, kind: input, shape index: {}]   ;;  %s1656_s0 = inlined_call_operand.vmem [shape: bf16[24,1152], index: 0, kind: input, shape index: {}]   ;;  %s1657_s2 = inlined_call_operand.vmem [shape: f32[1,128], index: 2, kind: input, shape index: {}]   ;;  %s1658_s3 = inlined_call_operand.vmem [shape: bf16[24,128], index: 3, kind: output, shape index: {0}]   ;;  %s1659_s4 = inlined_call_operand.vmem [shape: f32[1,8,128], index: 4, kind: output, shape index: {1}]  }
   0x1   :  { %v1254_v0 = vld [vmem:[%s1655_s1 + $0x38] sm:$0xff]  ;;  %v1253_v4 = vld [vmem:[%s1655_s1 + $0x30] sm:$0xff]  ;;  %v1252_v8 = vld [vmem:[%s1655_s1 + $0x28] sm:$0xff] }
   0x2   :  { %v1262_v1 = vld [vmem:[%s1655_s1 + $0x78] sm:$0xff]  ;;  %695 = vmatpush.bf16.msra.mxu0 %v1254_v0  ;;  %v1261_v5 = vld [vmem:[%s1655_s1 + $0x70] sm:$0xff]  ;;  %v1260_v9 = vld [vmem:[%s1655_s1 + $0x68] sm:$0xff] }
   0x3   :  { %v1270_v2 = vld [vmem:[%s1655_s1 + $0xb8] sm:$0xff]  ;;  %713 = vmatpush.bf16.msra.mxu1 %v1262_v1  ;;  %v1269_v6 = vld [vmem:[%s1655_s1 + $0xb0] sm:$0xff]  ;;  %v1268_v10 = vld [vmem:[%s1655_s1 + $0xa8] sm:$0xff] }
   0x4   :  { %v1278_v3 = vld [vmem:[%s1655_s1 + $0xf8] sm:$0xff]  ;;  %731 = vmatpush.bf16.msra.mxu2 %v1270_v2  ;;  %v1277_v7 = vld [vmem:[%s1655_s1 + $0xf0] sm:$0xff]  ;;  %v1276_v11 = vld [vmem:[%s1655_s1 + $0xe8] sm:$0xff] }
   0x5   :  { %749 = vmatpush.bf16.msra.mxu3 %v1278_v3  ;;  %v1251_v12 = vld [vmem:[%s1655_s1 + $0x20] sm:$0xff]  ;;  %v1250_v16 = vld [vmem:[%s1655_s1 + $0x18] sm:$0xff]  ;;  %v1249_v20 = vld [vmem:[%s1655_s1 + $0x10] sm:$0xff] }
   0x6   :  { %696 = vmatpush.bf16.msra.mxu0 %v1253_v4  ;;  %v1259_v13 = vld [vmem:[%s1655_s1 + $0x60] sm:$0xff]  ;;  %v1258_v17 = vld [vmem:[%s1655_s1 + $0x58] sm:$0xff]  ;;  %v1257_v21 = vld [vmem:[%s1655_s1 + $0x50] sm:$0xff] }
   0x7   :  { %714 = vmatpush.bf16.msra.mxu1 %v1261_v5  ;;  %v1267_v14 = vld [vmem:[%s1655_s1 + $0xa0] sm:$0xff]  ;;  %v1266_v18 = vld [vmem:[%s1655_s1 + $0x98] sm:$0xff]  ;;  %v1265_v22 = vld [vmem:[%s1655_s1 + $0x90] sm:$0xff] }
   0x8   :  { %732 = vmatpush.bf16.msra.mxu2 %v1269_v6  ;;  %v1275_v15 = vld [vmem:[%s1655_s1 + $0xe0] sm:$0xff]  ;;  %v1274_v19 = vld [vmem:[%s1655_s1 + $0xd8] sm:$0xff]  ;;  %v1273_v23 = vld [vmem:[%s1655_s1 + $0xd0] sm:$0xff] }
   0x9   :  { %750 = vmatpush.bf16.msra.mxu3 %v1277_v7  ;;  %v1248_v24 = vld [vmem:[%s1655_s1 + $0x8] sm:$0xff]  ;;  %v1247_v28 = vld [vmem:[%s1655_s1] sm:$0xff]  ;;  %v926_v39 = vld [vmem:[%s1656_s0 + $0x2c] sm:$0xf0] }
   0xa   :  { %697 = vmatpush.bf16.msra.mxu0 %v1252_v8  ;;  %v1256_v25 = vld [vmem:[%s1655_s1 + $0x48] sm:$0xff]  ;;  %v1255_v29 = vld [vmem:[%s1655_s1 + $0x40] sm:$0xff]  ;;  %v1286_v40 = vld [vmem:[%s1655_s1 + $0x138] sm:$0xff] }
   0xb   :  { %715 = vmatpush.bf16.msra.mxu1 %v1260_v9  ;;  %v1264_v26 = vld [vmem:[%s1655_s1 + $0x88] sm:$0xff]  ;;  %v1263_v30 = vld [vmem:[%s1655_s1 + $0x80] sm:$0xff]  ;;  %v1294_v41 = vld [vmem:[%s1655_s1 + $0x178] sm:$0xff] }
   0xc   :  { %733 = vmatpush.bf16.msra.mxu2 %v1268_v10  ;;  %v1272_v27 = vld [vmem:[%s1655_s1 + $0xc8] sm:$0xff]  ;;  %v1271_v31 = vld [vmem:[%s1655_s1 + $0xc0] sm:$0xff]  ;;  %v1302_v46 = vld [vmem:[%s1655_s1 + $0x1b8] sm:$0xff] }
   0xd   :  { %751 = vmatpush.bf16.msra.mxu3 %v1276_v11  ;;  %v916_v32 = vld [vmem:[%s1656_s0] sm:$0xf]  ;;  %v1242_v33 = vld [vmem:[%s1656_s0 + $0x20] sm:$0xf0]  ;;  %v918_v35 = vld [vmem:[%s1656_s0 + $0x24] sm:$0xf0] }
   0xe   :  { %698 = vmatpush.bf16.msra.mxu0 %v1251_v12  ;;  %v1238_v34 = vld [vmem:[%s1656_s0 + $0x4] sm:$0xf]  ;;  %v924_v36 = vld [vmem:[%s1656_s0 + $0x8] sm:$0xf]  ;;  %v1243_v37 = vld [vmem:[%s1656_s0 + $0x28] sm:$0xf0]  ;;  %v917_v42 = vor.u32 %v1242_v33, %v916_v32 }
   0xf   :  { %716 = vmatpush.bf16.msra.mxu1 %v1259_v13  ;;  %v1239_v38 = vld [vmem:[%s1656_s0 + $0xc] sm:$0xf]  ;;  %v921_v43 = vor.u32 %v1238_v34, %v918_v35  ;;  %v925_v44 = vor.u32 %v1243_v37, %v924_v36  ;;  %v1310_v47 = vld [vmem:[%s1655_s1 + $0x1f8] sm:$0xff]  ;;  %v1285_v48 = vld [vmem:[%s1655_s1 + $0x130] sm:$0xff] }
  0x10   :  { %734 = vmatpush.bf16.msra.mxu2 %v1267_v14  ;;  %v929_v45 = vor.u32 %v1239_v38, %v926_v39  ;;  %v1293_v49 = vld [vmem:[%s1655_s1 + $0x170] sm:$0xff]  ;;  %v1284_v52 = vld [vmem:[%s1655_s1 + $0x128] sm:$0xff]  ;;  %v1283_v58 = vld [vmem:[%s1655_s1 + $0x120] sm:$0xff] }
  0x11   :  { %752 = vmatpush.bf16.msra.mxu3 %v1275_v15  ;;  %v1301_v50 = vld [vmem:[%s1655_s1 + $0x1b0] sm:$0xff]  ;;  %v1292_v53 = vld [vmem:[%s1655_s1 + $0x168] sm:$0xff]  ;;  %v1291_v59 = vld [vmem:[%s1655_s1 + $0x160] sm:$0xff] }
  0x12   :  { %699 = vmatpush.bf16.msra.mxu0 %v1250_v16  ;;  %v1309_v51 = vld [vmem:[%s1655_s1 + $0x1f0] sm:$0xff]  ;;  %v36_v54 = vld [vmem:[%s1656_s0 + $0x48] sm:$0xff]  ;;  %v1299_v0 = vld [vmem:[%s1655_s1 + $0x1a0] sm:$0xff] }
  0x13   :  { %717 = vmatpush.bf16.msra.mxu1 %v1258_v17  ;;  %v1300_v55 = vld [vmem:[%s1655_s1 + $0x1a8] sm:$0xff]  ;;  %v37_v57 = vld [vmem:[%s1656_s0 + $0x50] sm:$0xff]  ;;  %v218_v60 = vunpack.c.l.b16 %v36_v54  ;;  %v219_v61 = vunpack.c.h.b16 %v36_v54  ;;  %v1307_v1 = vld [vmem:[%s1655_s1 + $0x1e0] sm:$0xff] }
  0x14   :  { %735 = vmatpush.bf16.msra.mxu2 %v1266_v18  ;;  %v1308_v56 = vld [vmem:[%s1655_s1 + $0x1e8] sm:$0xff]  ;;  %v220_v62 = vunpack.c.l.b16 %v37_v57  ;;  %v221_v63 = vunpack.c.h.b16 %v37_v57  ;;  %v1282_v2 = vld [vmem:[%s1655_s1 + $0x118] sm:$0xff]  ;;  %v1281_v10 = vld [vmem:[%s1655_s1 + $0x110] sm:$0xff] }
  0x15   :  { %753 = vmatpush.bf16.msra.mxu3 %v1274_v19  ;;  %v1290_v3 = vld [vmem:[%s1655_s1 + $0x158] sm:$0xff]  ;;  %v236_v4 = vpack.c.b16 %v218_v60, %v218_v60  ;;  %v237_v5 = vpack.c.b16 %v219_v61, %v219_v61  ;;  %v1289_v11 = vld [vmem:[%s1655_s1 + $0x150] sm:$0xff]  ;;  %v1280_v14 = vld [vmem:[%s1655_s1 + $0x108] sm:$0xff] }
  0x16   :  { %700 = vmatpush.bf16.msra.mxu0 %v1249_v20  ;;  %v238_v6 = vpack.c.b16 %v220_v62, %v220_v62  ;;  %v239_v7 = vpack.c.b16 %v221_v63, %v221_v63  ;;  %v1298_v8 = vld [vmem:[%s1655_s1 + $0x198] sm:$0xff]  ;;  %v1297_v12 = vld [vmem:[%s1655_s1 + $0x190] sm:$0xff]  ;;  %v1288_v15 = vld [vmem:[%s1655_s1 + $0x148] sm:$0xff] }
  0x17   :  { %718 = vmatpush.bf16.msra.mxu1 %v1257_v21  ;;  %v1306_v9 = vld [vmem:[%s1655_s1 + $0x1d8] sm:$0xff]  ;;  %v1305_v13 = vld [vmem:[%s1655_s1 + $0x1d0] sm:$0xff]  ;;  %v1296_v16 = vld [vmem:[%s1655_s1 + $0x188] sm:$0xff] }
  0x18   :  { %736 = vmatpush.bf16.msra.mxu2 %v1265_v22  ;;  %v1304_v17 = vld [vmem:[%s1655_s1 + $0x1c8] sm:$0xff]  ;;  %v1279_v18 = vld [vmem:[%s1655_s1 + $0x100] sm:$0xff]  ;;  %v932_v22 = vld [vmem:[%s1656_s0 + $0x10] sm:$0xf] }
  0x19   :  { %754 = vmatpush.bf16.msra.mxu3 %v1273_v23  ;;  %v1287_v19 = vld [vmem:[%s1655_s1 + $0x140] sm:$0xff]  ;;  %v1244_v23 = vld [vmem:[%s1656_s0 + $0x30] sm:$0xf0]  ;;  %v1316_v36 = vld [vmem:[%s1655_s1 + $0x228] sm:$0xff] }
  0x1a   :  { %701 = vmatpush.bf16.msra.mxu0 %v1248_v24  ;;  %v1295_v20 = vld [vmem:[%s1655_s1 + $0x180] sm:$0xff]  ;;  %v1318_v24 = vld [vmem:[%s1655_s1 + $0x238] sm:$0xff]  ;;  %v1317_v35 = vld [vmem:[%s1655_s1 + $0x230] sm:$0xff] }
  0x1b   :  { %719 = vmatpush.bf16.msra.mxu1 %v1256_v25  ;;  %v1303_v21 = vld [vmem:[%s1655_s1 + $0x1c0] sm:$0xff]  ;;  %v1240_v25 = vld [vmem:[%s1656_s0 + $0x14] sm:$0xf]  ;;  %v38_v37 = vld [vmem:[%s1656_s0 + $0x58] sm:$0xff] }
  0x1c   :  { %737 = vmatpush.bf16.msra.mxu2 %v1264_v26  ;;  %v934_v26 = vld [vmem:[%s1656_s0 + $0x34] sm:$0xf0]  ;;  %v1315_v38 = vld [vmem:[%s1655_s1 + $0x220] sm:$0xff] }
  0x1d   :  { %755 = vmatpush.bf16.msra.mxu3 %v1272_v27  ;;  %v940_v27 = vld [vmem:[%s1656_s0 + $0x18] sm:$0xf]  ;;  %v937_v32 = vor.u32 %v1240_v25, %v934_v26  ;;  %v39_v39 = vld [vmem:[%s1656_s0 + $0x60] sm:$0xff] }
  0x1e   :  { %702 = vmatpush.bf16.msra.mxu0 %v1247_v28  ;;  %v1245_v28 = vld [vmem:[%s1656_s0 + $0x38] sm:$0xf0]  ;;  %v948_v54 = vld [vmem:[%s1656_s0 + $0x20] sm:$0xf] }
  0x1f   :  { %720 = vmatpush.bf16.msra.mxu1 %v1255_v29  ;;  %v1241_v29 = vld [vmem:[%s1656_s0 + $0x1c] sm:$0xf]  ;;  %v941_v33 = vor.u32 %v1245_v28, %v940_v27 }
  0x20   :  { %738 = vmatpush.bf16.msra.mxu2 %v1263_v30  ;;  %v942_v30 = vld [vmem:[%s1656_s0 + $0x3c] sm:$0xf0] }
  0x21   :  { %756 = vmatpush.bf16.msra.mxu3 %v1271_v31  ;;  %703 = vmatmul.bf16.vlgmr.msra.gmra.mxu0 %v917_v42  ;;  %v933_v31 = vor.u32 %v1244_v23, %v932_v22  ;;  %v945_v34 = vor.u32 %v1241_v29, %v942_v30  ;;  %v224_v42 = vunpack.c.l.b16 %v39_v39 }
  0x22   :  { %767 = vmatpush.bf16.msrb.mxu0 %v1286_v40  ;;  %721 = vmatmul.bf16.vlgmr.msra.gmra.mxu1 %v921_v43  ;;  %v222_v40 = vunpack.c.l.b16 %v38_v37  ;;  %v225_v43 = vunpack.c.h.b16 %v39_v39 }
  0x23   :  { %785 = vmatpush.bf16.msrb.mxu1 %v1294_v41  ;;  %739 = vmatmul.bf16.vlgmr.msra.gmra.mxu2 %v925_v44  ;;  %v223_v41 = vunpack.c.h.b16 %v38_v37  ;;  %v1314_v44 = vld [vmem:[%s1655_s1 + $0x218] sm:$0xff] }
  0x24   :  { %757 = vmatmul.bf16.vlgmr.msra.gmra.mxu3 %v929_v45  ;;  %803 = vmatpush.bf16.msrb.mxu2 %v1302_v46  ;;  %v240_v45 = vpack.c.b16 %v222_v40, %v222_v40  ;;  %v1332_v40 = vld [vmem:[%s1657_s2] ss:$0 sm:$0xff] }
  0x25   :  { %821 = vmatpush.bf16.msrb.mxu3 %v1310_v47  ;;  %v241_v46 = vpack.c.b16 %v223_v41, %v223_v41  ;;  %v242_v47 = vpack.c.b16 %v224_v42, %v224_v42 }
  0x26   :  { %768 = vmatpush.bf16.msrb.mxu0 %v1285_v48  ;;  %v243_v48 = vpack.c.b16 %v225_v43, %v225_v43 }
  0x27   :  { %786 = vmatpush.bf16.msrb.mxu1 %v1293_v49  ;;  %v1313_v49 = vld [vmem:[%s1655_s1 + $0x210] sm:$0xff] }
  0x28   :  { %804 = vmatpush.bf16.msrb.mxu2 %v1301_v50  ;;  %v1312_v50 = vld [vmem:[%s1655_s1 + $0x208] sm:$0xff] }
  0x29   :  { %822 = vmatpush.bf16.msrb.mxu3 %v1309_v51  ;;  %v40_v51 = vld [vmem:[%s1656_s0 + $0x68] sm:$0xf] }
  0x2a   :  { %769 = vmatpush.bf16.msrb.mxu0 %v1284_v52  ;;  %v1311_v52 = vld [vmem:[%s1655_s1 + $0x200] sm:$0xff] }
  0x2b   :  { %787 = vmatpush.bf16.msrb.mxu1 %v1292_v53  ;;  %v226_v53 = vunpack.c.l.b16 %v40_v51 }
  0x2c   :  { %805 = vmatpush.bf16.msrb.mxu2 %v1300_v55  ;;  %v1246_v55 = vld [vmem:[%s1656_s0 + $0x40] sm:$0xf0] }
  0x2d   :  { %823 = vmatpush.bf16.msrb.mxu3 %v1308_v56  ;;  %v949_v56 = vor.u32 %v1246_v55, %v948_v54  ;;  %v244_v57 = vpack.c.b16 %v226_v53, %v226_v53 }
  0x2e   :  { %770 = vmatpush.bf16.msrb.mxu0 %v1283_v58 }
  0x2f   :  { %788 = vmatpush.bf16.msrb.mxu1 %v1291_v59 }
  0x30   :  { %806 = vmatpush.bf16.msrb.mxu2 %v1299_v0 }
  0x31   :  { %824 = vmatpush.bf16.msrb.mxu3 %v1307_v1  ;;  %708 = vmatmul.bf16.gmra.mxu0 %v236_v4 }
  0x32   :  { %771 = vmatpush.bf16.msrb.mxu0 %v1282_v2  ;;  %726 = vmatmul.bf16.gmra.mxu1 %v237_v5 }
  0x33   :  { %789 = vmatpush.bf16.msrb.mxu1 %v1290_v3  ;;  %744 = vmatmul.bf16.gmra.mxu2 %v238_v6 }
  0x34   :  { %762 = vmatmul.bf16.gmra.mxu3 %v239_v7  ;;  %807 = vmatpush.bf16.msrb.mxu2 %v1298_v8 }
  0x35   :  { %825 = vmatpush.bf16.msrb.mxu3 %v1306_v9 }
  0x36   :  { %772 = vmatpush.bf16.msrb.mxu0 %v1281_v10 }
  0x37   :  { %790 = vmatpush.bf16.msrb.mxu1 %v1289_v11 }
  0x38   :  { %808 = vmatpush.bf16.msrb.mxu2 %v1297_v12 }
  0x39   :  { %826 = vmatpush.bf16.msrb.mxu3 %v1305_v13 }
  0x3a   :  { %773 = vmatpush.bf16.msrb.mxu0 %v1280_v14 }
  0x3b   :  { %791 = vmatpush.bf16.msrb.mxu1 %v1288_v15 }
  0x3c   :  { %809 = vmatpush.bf16.msrb.mxu2 %v1296_v16 }
  0x3d   :  { %827 = vmatpush.bf16.msrb.mxu3 %v1304_v17 }
  0x3e   :  { %774 = vmatpush.bf16.msrb.mxu0 %v1279_v18 }
  0x3f   :  { %792 = vmatpush.bf16.msrb.mxu1 %v1287_v19 }
  0x40   :  { %810 = vmatpush.bf16.msrb.mxu2 %v1295_v20 }
  0x41   :  { %828 = vmatpush.bf16.msrb.mxu3 %v1303_v21  ;;  %775 = vmatmul.bf16.vlgmr.msrb.gmra.mxu0 %v933_v31 }
  0x42   :  { %839 = vmatpush.bf16.msra.mxu0 %v1318_v24  ;;  %793 = vmatmul.bf16.vlgmr.msrb.gmra.mxu1 %v937_v32 }
  0x43   :  { %1324 = vmatpush.bf16.msra.mxu1 %v1318_v24  ;;  %811 = vmatmul.bf16.vlgmr.msrb.gmra.mxu2 %v941_v33 }
  0x44   :  { %829 = vmatmul.bf16.vlgmr.msrb.gmra.mxu3 %v945_v34 }
  0x46   :  { %840 = vmatpush.bf16.msra.mxu0 %v1317_v35 }
  0x47   :  { %1325 = vmatpush.bf16.msra.mxu1 %v1317_v35 }
  0x4a   :  { %841 = vmatpush.bf16.msra.mxu0 %v1316_v36 }
  0x4b   :  { %1326 = vmatpush.bf16.msra.mxu1 %v1316_v36 }
  0x4e   :  { %842 = vmatpush.bf16.msra.mxu0 %v1315_v38 }
  0x4f   :  { %1327 = vmatpush.bf16.msra.mxu1 %v1315_v38 }
  0x51   :  { %780 = vmatmul.bf16.gmra.mxu0 %v240_v45 }
  0x52   :  { %843 = vmatpush.bf16.msra.mxu0 %v1314_v44  ;;  %798 = vmatmul.bf16.gmra.mxu1 %v241_v46 }
  0x53   :  { %1328 = vmatpush.bf16.msra.mxu1 %v1314_v44  ;;  %816 = vmatmul.bf16.gmra.mxu2 %v242_v47 }
  0x54   :  { %834 = vmatmul.bf16.gmra.mxu3 %v243_v48 }
  0x56   :  { %844 = vmatpush.bf16.msra.mxu0 %v1313_v49 }
  0x57   :  { %1329 = vmatpush.bf16.msra.mxu1 %v1313_v49 }
  0x5a   :  { %845 = vmatpush.bf16.msra.mxu0 %v1312_v50 }
  0x5b   :  { %1330 = vmatpush.bf16.msra.mxu1 %v1312_v50 }
  0x5e   :  { %846 = vmatpush.bf16.msra.mxu0 %v1311_v52 }
  0x5f   :  { %1331 = vmatpush.bf16.msra.mxu1 %v1311_v52 }
  0x61   :  { %847 = vmatmul.bf16.vlgmr.msra.gmra.mxu0 %v949_v56 }
  0x62   :  { %852 = vmatmul.bf16.vlgmr.msra.gmra.mxu1 %v244_v57 }
  0x9e   :  { %v704_v58 = vpop.f32.mrf.mxu0 }
  0x9f   :  { %v722_v59 = vpop.f32.mrf.mxu1 }
  0xa0   :  { %v723_v22 = vadd.f32 %v722_v59, %v704_v58 }
  0xa6   :  { %v740_v60 = vpop.f32.mrf.mxu2  ;;  %v706_v62 = vpop.f32.mrf.mxu0 }
  0xa7   :  { %v758_v61 = vpop.f32.mrf.mxu3  ;;  %v724_v63 = vpop.f32.mrf.mxu1  ;;  %v741_v24 = vadd.f32 %v740_v60, %v723_v22 }
  0xa8   :  { %v725_v25 = vadd.f32 %v724_v63, %v706_v62 }
  0xa9   :  { %v759_v30 = vadd.f32 %v758_v61, %v741_v24 }
  0xae   :  { %v742_v0 = vpop.f32.mrf.mxu2  ;;  %v709_v2 = vpop.f32.mrf.mxu0 }
  0xaf   :  { %v760_v1 = vpop.f32.mrf.mxu3  ;;  %v727_v3 = vpop.f32.mrf.mxu1  ;;  %v743_v27 = vadd.f32 %v742_v0, %v725_v25 }
  0xb0   :  { %v728_v16 = vadd.f32 %v727_v3, %v709_v2 }
  0xb1   :  { %v761_v35 = vadd.f32 %v760_v1, %v743_v27 }
  0xb6   :  { %v745_v4 = vpop.f32.mrf.mxu2  ;;  %v711_v6 = vpop.f32.mrf.mxu0 }
  0xb7   :  { %v763_v5 = vpop.f32.mrf.mxu3  ;;  %v729_v7 = vpop.f32.mrf.mxu1  ;;  %v746_v17 = vadd.f32 %v745_v4, %v728_v16 }
  0xb9   :  { %v764_v23 = vadd.f32 %v763_v5, %v746_v17 }
  0xbe   :  { %v747_v8 = vpop.f32.mrf.mxu2  ;;  %v776_v10 = vpop.f32.mrf.mxu0 }
  0xbf   :  { %v765_v9 = vpop.f32.mrf.mxu3  ;;  %v794_v11 = vpop.f32.mrf.mxu1  ;;  %v777_v34 = vadd.f32 %v776_v10, %v759_v30 }
  0xc1   :  { %v795_v38 = vadd.f32 %v794_v11, %v777_v34 }
  0xc6   :  { %v812_v12 = vpop.f32.mrf.mxu2  ;;  %v778_v14 = vpop.f32.mrf.mxu0 }
  0xc7   :  { %v830_v13 = vpop.f32.mrf.mxu3  ;;  %v796_v15 = vpop.f32.mrf.mxu1  ;;  %v779_v37 = vadd.f32 %v778_v14, %v761_v35  ;;  %v813_v43 = vadd.f32 %v812_v12, %v795_v38 }
  0xc9   :  { %v797_v46 = vadd.f32 %v796_v15, %v779_v37  ;;  %v831_v50 = vadd.f32 %v830_v13, %v813_v43 }
  0xce   :  { %v814_v18 = vpop.f32.mrf.mxu2  ;;  %v781_v20 = vpop.f32.mrf.mxu0 }
  0xcf   :  { %v832_v19 = vpop.f32.mrf.mxu3  ;;  %v799_v21 = vpop.f32.mrf.mxu1  ;;  %v782_v26 = vadd.f32 %v781_v20, %v764_v23  ;;  %v815_v48 = vadd.f32 %v814_v18, %v797_v46 }
  0xd1   :  { %v800_v33 = vadd.f32 %v799_v21, %v782_v26  ;;  %v833_v53 = vadd.f32 %v832_v19, %v815_v48 }
  0xd6   :  { %v817_v28 = vpop.f32.mrf.mxu2  ;;  %v783_v31 = vpop.f32.mrf.mxu0 }
  0xd7   :  { %v835_v29 = vpop.f32.mrf.mxu3  ;;  %v801_v32 = vpop.f32.mrf.mxu1  ;;  %v818_v36 = vadd.f32 %v817_v28, %v800_v33 }
  0xd9   :  { %v836_v39 = vadd.f32 %v835_v29, %v818_v36 }
  0xde   :  { %v819_v41 = vpop.f32.mrf.mxu2  ;;  %v848_v44 = vpop.f32.mrf.mxu0 }
  0xdf   :  { %v837_v42 = vpop.f32.mrf.mxu3  ;;  %v853_v45 = vpop.f32.mrf.mxu1  ;;  %v849_v52 = vadd.f32 %v848_v44, %v831_v50 }
  0xe0   :  { %v854_v47 = vadd.f32 %v853_v45, %v836_v39 }
  0xe1   :  { %v873_v57 = vadd.f32 %v1332_v40, %v849_v52  ;;  %v890_v58 = vmul.f32 %v849_v52, %v849_v52 }
  0xe2   :  { %v875_v49 = vadd.f32 %v1332_v40, %v854_v47  ;;  %v892_v62 = vmul.f32 %v854_v47, %v854_v47 }
  0xe4   :  { %v878_v51 = vpack.c.bf16 %v875_v49, %v875_v49 }
  0xe6   :  { %881 = vst [vmem:[%s1658_s3 + $0x8] sm:$0xf] %v878_v51  ;;  %v850_v54 = vpop.f32.mrf.mxu0 }
  0xe7   :  { %v855_v55 = vpop.f32.mrf.mxu1  ;;  %v851_v56 = vadd.f32 %v850_v54, %v833_v53 }
  0xe9   :  { %v874_v59 = vadd.f32 %v1332_v40, %v851_v56  ;;  %v882_v60 = vadd.f32 %v851_v56, %v849_v52  ;;  %v891_v61 = vmul.f32 %v851_v56, %v851_v56 }
  0xeb   :  { %v1322_v63 = vpack.c.bf16 %v874_v59, %v873_v57  ;;  %v883_v0 = vadd.f32 %v882_v60, %v854_v47  ;;  %v893_v1 = vadd.f32 %v891_v61, %v890_v58 }
  0xed   :  { %1323 = vst [vmem:[%s1658_s3] sm:$0xff] %v1322_v63   ;;  %v884_v2 = vrot.slane %v883_v0, 4  ;;  %v894_v3 = vadd.f32 %v893_v1, %v892_v62 }
  0xef   :  { %v885_v4 = vadd.f32 %v884_v2, %v883_v0  ;;  %v895_v5 = vrot.slane %v894_v3, 4 }
  0xf1   :  { %v886_v6 = vrot.slane %v885_v4, 2  ;;  %v896_v7 = vadd.f32 %v895_v5, %v894_v3 }
  0xf3   :  { %v887_v8 = vadd.f32 %v886_v6, %v885_v4  ;;  %v897_v9 = vrot.slane %v896_v7, 2 }
  0xf5   :  { %v888_v10 = vrot.slane %v887_v8, 1  ;;  %v898_v11 = vadd.f32 %v897_v9, %v896_v7 }
  0xf7   :  { %v899_v12 = vrot.slane %v898_v11, 1  ;;  %v889_v13 = vadd.f32 %v888_v10, %v887_v8 }
  0xf9   :  { %v900_v14 = vadd.f32 %v899_v12, %v898_v11 }
  0xfb   :  { %v902_v15 = vsel %vm901_vm0, %v889_v13, %v900_v14 }
  0xfc   :  { %v904_v16 = vsel %vm903_vm1, %v902_v15, 0.0 }
  0xfd   :  { %905 = vst [vmem:[%s1659_s4] sm:$0xff] %v904_v16 }

// kernel: contextnet_apply.51
= control target key start
LH: loop header
LB: loop body
LE: loop exit
PB: predicated region body
PF: predicated region fallthrough
CT: control target
= control target key end

     0   :  { %vm165_vm0 = vcmask 1040384   ;;  %vm167_vm1 = vcmask 1041408   ;;  %s304_s1 = inlined_call_operand.vmem [shape: bf16[128,128], index: 1, kind: input, shape index: {}]   ;;  %s305_s2 = inlined_call_operand.vmem [shape: f32[1,128], index: 2, kind: input, shape index: {}]   ;;  %s306_s0 = inlined_call_operand.vmem [shape: bf16[24,128], index: 0, kind: input, shape index: {}]   ;;  %s307_s3 = inlined_call_operand.vmem [shape: bf16[24,128], index: 3, kind: output, shape index: {0}]   ;;  %s308_s4 = inlined_call_operand.vmem [shape: f32[1,8,128], index: 4, kind: output, shape index: {1}]  }
   0x1   :  { %v222_v0 = vld [vmem:[%s304_s1 + $0x38] sm:$0xff]  ;;  %v221_v1 = vld [vmem:[%s304_s1 + $0x30] sm:$0xff]  ;;  %v220_v2 = vld [vmem:[%s304_s1 + $0x28] sm:$0xff] }
   0x2   :  { %103 = vmatpush.bf16.msra.mxu0 %v222_v0  ;;  %228 = vmatpush.bf16.msra.mxu1 %v222_v0  ;;  %v219_v3 = vld [vmem:[%s304_s1 + $0x20] sm:$0xff]  ;;  %v218_v4 = vld [vmem:[%s304_s1 + $0x18] sm:$0xff]  ;;  %v217_v5 = vld [vmem:[%s304_s1 + $0x10] sm:$0xff] }
   0x3   :  { %v216_v6 = vld [vmem:[%s304_s1 + $0x8] sm:$0xff]  ;;  %v215_v9 = vld [vmem:[%s304_s1] sm:$0xff] }
   0x4   :  { %v28_v7 = vld [vmem:[%s306_s0 + $0x8] sm:$0xf]  ;;  %v214_v10 = vld [vmem:[%s306_s0] sm:$0xff] }
   0x5   :  { %v50_v8 = vunpack.c.l.b16 %v28_v7  ;;  %v236_v12 = vld [vmem:[%s305_s2] ss:$0 sm:$0xff] }
   0x6   :  { %104 = vmatpush.bf16.msra.mxu0 %v221_v1  ;;  %229 = vmatpush.bf16.msra.mxu1 %v221_v1 }
   0x7   :  { %v52_v11 = vpack.c.b16 %v50_v8, %v50_v8 }
   0xa   :  { %105 = vmatpush.bf16.msra.mxu0 %v220_v2  ;;  %230 = vmatpush.bf16.msra.mxu1 %v220_v2 }
   0xe   :  { %106 = vmatpush.bf16.msra.mxu0 %v219_v3  ;;  %231 = vmatpush.bf16.msra.mxu1 %v219_v3 }
  0x12   :  { %107 = vmatpush.bf16.msra.mxu0 %v218_v4  ;;  %232 = vmatpush.bf16.msra.mxu1 %v218_v4 }
  0x16   :  { %108 = vmatpush.bf16.msra.mxu0 %v217_v5  ;;  %233 = vmatpush.bf16.msra.mxu1 %v217_v5 }
  0x1a   :  { %109 = vmatpush.bf16.msra.mxu0 %v216_v6  ;;  %234 = vmatpush.bf16.msra.mxu1 %v216_v6 }
  0x1e   :  { %110 = vmatpush.bf16.msra.mxu0 %v215_v9  ;;  %235 = vmatpush.bf16.msra.mxu1 %v215_v9 }
  0x21   :  { %111 = vmatmul.bf16.vlgmr.msra.gmra.mxu0 %v214_v10  ;;  %116 = vmatmul.bf16.vlgmr.msra.gmra.mxu1 %v52_v11 }
  0x9e   :  { %v112_v13 = vpop.f32.mrf.mxu0  ;;  %v117_v14 = vpop.f32.mrf.mxu1 }
  0x9f   :  { %v139_v15 = vadd.f32 %v236_v12, %v117_v14  ;;  %v137_v17 = vadd.f32 %v236_v12, %v112_v13  ;;  %v154_v18 = vmul.f32 %v112_v13, %v112_v13  ;;  %v156_v21 = vmul.f32 %v117_v14, %v117_v14 }
  0xa1   :  { %v142_v16 = vpack.c.bf16 %v139_v15, %v139_v15 }
  0xa3   :  { %145 = vst [vmem:[%s307_s3 + $0x8] sm:$0xf] %v142_v16 }
  0xa6   :  { %v114_v19 = vpop.f32.mrf.mxu0  ;;  %v119_v20 = vpop.f32.mrf.mxu1 }
  0xa7   :  { %v138_v22 = vadd.f32 %v236_v12, %v114_v19  ;;  %v146_v23 = vadd.f32 %v114_v19, %v112_v13  ;;  %v155_v24 = vmul.f32 %v114_v19, %v114_v19 }
  0xa9   :  { %v226_v25 = vpack.c.bf16 %v138_v22, %v137_v17  ;;  %v147_v26 = vadd.f32 %v146_v23, %v117_v14  ;;  %v157_v27 = vadd.f32 %v155_v24, %v154_v18 }
  0xab   :  { %227 = vst [vmem:[%s307_s3] sm:$0xff] %v226_v25   ;;  %v148_v28 = vrot.slane %v147_v26, 4  ;;  %v158_v29 = vadd.f32 %v157_v27, %v156_v21 }
  0xad   :  { %v149_v30 = vadd.f32 %v148_v28, %v147_v26  ;;  %v159_v31 = vrot.slane %v158_v29, 4 }
  0xaf   :  { %v150_v32 = vrot.slane %v149_v30, 2  ;;  %v160_v33 = vadd.f32 %v159_v31, %v158_v29 }
  0xb1   :  { %v151_v34 = vadd.f32 %v150_v32, %v149_v30  ;;  %v161_v35 = vrot.slane %v160_v33, 2 }
  0xb3   :  { %v152_v36 = vrot.slane %v151_v34, 1  ;;  %v162_v37 = vadd.f32 %v161_v35, %v160_v33 }
  0xb5   :  { %v163_v38 = vrot.slane %v162_v37, 1  ;;  %v153_v39 = vadd.f32 %v152_v36, %v151_v34 }
  0xb7   :  { %v164_v40 = vadd.f32 %v163_v38, %v162_v37 }
  0xb9   :  { %v166_v41 = vsel %vm165_vm0, %v153_v39, %v164_v40 }
  0xba   :  { %v168_v42 = vsel %vm167_vm1, %v166_v41, 0.0 }
  0xbb   :  { %169 = vst [vmem:[%s308_s4] sm:$0xff] %v168_v42 }

// kernel: contextnet_apply.52
= control target key start
LH: loop header
LB: loop body
LE: loop exit
PB: predicated region body
PF: predicated region fallthrough
CT: control target
= control target key end

     0   :  { %s206_s1 = inlined_call_operand.vmem [shape: f32[1,8,128], index: 1, kind: input, shape index: {}]   ;;  %s207_s4 = inlined_call_operand.vmem [shape: f32[1,8,128], index: 4, kind: input, shape index: {}]   ;;  %s208_s2 = inlined_call_operand.vmem [shape: f32[1,128], index: 2, kind: input, shape index: {}]   ;;  %s209_s5 = inlined_call_operand.vmem [shape: f32[1,128], index: 5, kind: input, shape index: {}]   ;;  %s210_s0 = inlined_call_operand.vmem [shape: bf16[24,128], index: 0, kind: input, shape index: {}]   ;;  %s211_s3 = inlined_call_operand.vmem [shape: bf16[24,128], index: 3, kind: input, shape index: {}]   ;;  %s212_s6 = inlined_call_operand.vmem [shape: bf16[24,128], index: 6, kind: output, shape index: {}]  }
   0x1   :  { %v23_v0 = vld [vmem:[%s206_s1] sm:$0xff]  ;;  %v79_v29 = vld [vmem:[%s210_s0 + $0x8] sm:$0xf] }
   0x2   :  { %v50_v1 = vld [vmem:[%s207_s4] sm:$0xff]  ;;  %v25_v2 = vmul.f32 0.055555556, %v23_v0  ;;  %v96_v31 = vld [vmem:[%s211_s3 + $0x8] sm:$0xf]  ;;  %v82_v38 = vunpack.c.l.bf16 %v79_v29 }
   0x3   :  { %v52_v3 = vmul.f32 0.055555556, %v50_v1  ;;  %v43_v19 = vld [vmem:[%s208_s2] sm:$0x1]  ;;  %v99_v42 = vunpack.c.l.bf16 %v96_v31 }
   0x4   :  { %v26_v4 = vmul.f32 %v25_v2, %v25_v2  ;;  %v70_v21 = vld [vmem:[%s209_s5] sm:$0x1]  ;;  %v44_v23 = vadd.f32 %v43_v19, %v25_v2 }
   0x5   :  { %v53_v5 = vmul.f32 %v52_v3, %v52_v3  ;;  %v125_v25 = vld [vmem:[%s210_s0] sm:$0xff]   ;;  %v71_v27 = vadd.f32 %v70_v21, %v52_v3 }
   0x6   :  { %v28_v6 = vrot.slane %v26_v4, 7  ;;  %v129_v28 = vld [vmem:[%s211_s3] sm:$0xff]   ;;  %v126_v33 = vunpack.c.l.bf16 %v125_v25  ;;  %v127_v34 = vunpack.c.h.bf16 %v125_v25  ;;  %v45_v35 = vsub.f32 0.0, %v44_v23 }
   0x7   :  { %v55_v7 = vrot.slane %v53_v5, 7  ;;  %v130_v37 = vunpack.c.l.bf16 %v129_v28  ;;  %v72_v40 = vsub.f32 0.0, %v71_v27  ;;  %v131_v41 = vunpack.c.h.bf16 %v129_v28 }
   0x8   :  { %v30_v8 = vsub.f32 %v25_v2, %v28_v6 }
   0x9   :  { %v57_v9 = vsub.f32 %v52_v3, %v55_v7 }
   0xa   :  { %v31_v10 = vmax.f32 %v30_v8, 0.0 }
   0xb   :  { %v58_v11 = vmax.f32 %v57_v9, 0.0 }
   0xc   :  { %v32_v12 = vadd.f32 1e-05, %v31_v10 }
   0xd   :  { %v59_v13 = vadd.f32 1e-05, %v58_v11 }
   0xe   :  { %137 = vrsqrt.f32 %v32_v12  ;;  %vm39_vm0 = vweird.f32 %v32_v12 }
   0xf   :  { %139 = vrsqrt.f32 %v59_v13  ;;  %vm66_vm2 = vweird.f32 %v59_v13 }
  0x14   :  { %v138_v14 = vpop.eup %137 }
  0x15   :  { %v140_v15 = vpop.eup %139  ;;  %v34_v16 = vmul.f32 %v138_v14, %v32_v12  ;;  %vm40_vm1 = vweird.f32 %v138_v14 }
  0x16   :  { %v61_v17 = vmul.f32 %v140_v15, %v59_v13  ;;  %vm67_vm3 = vweird.f32 %v140_v15  ;;  %vm41_vm4 = vmor %vm39_vm0, %vm40_vm1 }
  0x17   :  { %v35_v18 = vmul.f32 %v138_v14, %v34_v16  ;;  %vm68_vm5 = vmor %vm66_vm2, %vm67_vm3 }
  0x18   :  { %v62_v20 = vmul.f32 %v140_v15, %v61_v17 }
  0x19   :  { %v36_v22 = vmul.f32 0.5, %v35_v18 }
  0x1a   :  { %v63_v24 = vmul.f32 0.5, %v62_v20 }
  0x1b   :  { %v37_v26 = vsub.f32 1.5, %v36_v22 }
  0x1c   :  { %v64_v30 = vsub.f32 1.5, %v63_v24 }
  0x1d   :  { %v38_v32 = vmul.f32 %v138_v14, %v37_v26 }
  0x1e   :  { %v65_v36 = vmul.f32 %v140_v15, %v64_v30 }
  0x1f   :  { %v42_v39 = vsel %vm41_vm4, %v138_v14, %v38_v32 }
  0x20   :  { %v47_v43 = vrot.slane %v42_v39, 1  ;;  %v69_v44 = vsel %vm68_vm5, %v140_v15, %v65_v36  ;;  %v83_v45 = vperm.slane %v42_v39, 1 }
  0x21   :  { %v74_v46 = vrot.slane %v69_v44, 1  ;;  %v100_v47 = vperm.slane %v69_v44, 1 }
  0x22   :  { %v49_v48 = vmul.f32 %v47_v43, %v45_v35  ;;  %v84_v49 = vmul.f32 %v126_v33, %v83_v45  ;;  %v85_v50 = vmul.f32 %v127_v34, %v83_v45  ;;  %v86_v51 = vmul.f32 %v83_v45, %v82_v38 }
  0x23   :  { %v76_v52 = vmul.f32 %v74_v46, %v72_v40  ;;  %v101_v53 = vmul.f32 %v130_v37, %v100_v47  ;;  %v102_v54 = vmul.f32 %v131_v41, %v100_v47  ;;  %v103_v55 = vmul.f32 %v100_v47, %v99_v42 }
  0x24   :  { %v87_v56 = vperm.slane %v49_v48, 0 }
  0x25   :  { %v104_v57 = vperm.slane %v76_v52, 0 }
  0x26   :  { %v88_v58 = vadd.f32 %v87_v56, %v84_v49  ;;  %v89_v59 = vadd.f32 %v87_v56, %v85_v50  ;;  %v90_v60 = vadd.f32 %v87_v56, %v86_v51 }
  0x27   :  { %v105_v61 = vadd.f32 %v104_v57, %v101_v53  ;;  %v106_v62 = vadd.f32 %v104_v57, %v102_v54  ;;  %v107_v63 = vadd.f32 %v104_v57, %v103_v55 }
  0x28   :  { %v91_v0 = vmax.f32 %v88_v58, 0.0  ;;  %v92_v1 = vmax.f32 %v89_v59, 0.0  ;;  %v93_v2 = vmax.f32 %v90_v60, 0.0 }
  0x2a   :  { %v108_v3 = vadd.f32 %v105_v61, %v91_v0  ;;  %v109_v4 = vadd.f32 %v106_v62, %v92_v1  ;;  %v110_v5 = vadd.f32 %v107_v63, %v93_v2 }
  0x2c   :  { %v111_v6 = vmax.f32 %v108_v3, 0.0  ;;  %v112_v7 = vmax.f32 %v109_v4, 0.0  ;;  %v113_v8 = vmax.f32 %v110_v5, 0.0 }
  0x2e   :  { %v135_v9 = vpack.c.bf16 %v112_v7, %v111_v6  ;;  %v116_v10 = vpack.c.bf16 %v113_v8, %v113_v8 }
  0x30   :  { %136 = vst [vmem:[%s212_s6] sm:$0xff] %v135_v9  }
  0x31   :  { %119 = vst [vmem:[%s212_s6 + $0x8] sm:$0xf] %v116_v10 }

// kernel: contextnet_apply.56
= control target key start
LH: loop header
LB: loop body
LE: loop exit
PB: predicated region body
PF: predicated region fallthrough
CT: control target
= control target key end

     0   :  { %s147_s1 = inlined_call_operand.vmem [shape: f32[1,8,128], index: 1, kind: input, shape index: {}]   ;;  %s148_s2 = inlined_call_operand.vmem [shape: f32[1,128], index: 2, kind: input, shape index: {}]   ;;  %s149_s0 = inlined_call_operand.vmem [shape: bf16[24,128], index: 0, kind: input, shape index: {}]   ;;  %s150_s3 = inlined_call_operand.vmem [shape: bf16[24,128], index: 3, kind: input, shape index: {}]   ;;  %s151_s4 = inlined_call_operand.vmem [shape: bf16[24,128], index: 4, kind: output, shape index: {}]  }
   0x1   :  { %v17_v0 = vld [vmem:[%s147_s1] sm:$0xff]  ;;  %v46_v15 = vld [vmem:[%s149_s0 + $0x8] sm:$0xf] }
   0x2   :  { %v19_v1 = vmul.f32 0.055555556, %v17_v0  ;;  %v37_v10 = vld [vmem:[%s148_s2] sm:$0x1]  ;;  %v49_v20 = vunpack.c.l.bf16 %v46_v15  ;;  %v63_v29 = vld [vmem:[%s150_s3 + $0x8] sm:$0xf] }
   0x3   :  { %v84_v14 = vld [vmem:[%s149_s0] sm:$0xff]   ;;  %v66_v36 = vunpack.c.l.bf16 %v63_v29 }
   0x4   :  { %v20_v2 = vmul.f32 %v19_v1, %v19_v1  ;;  %v38_v12 = vadd.f32 %v37_v10, %v19_v1  ;;  %v85_v18 = vunpack.c.l.bf16 %v84_v14  ;;  %v86_v19 = vunpack.c.h.bf16 %v84_v14  ;;  %v88_v27 = vld [vmem:[%s150_s3] sm:$0xff]  }
   0x5   :  { %v89_v31 = vunpack.c.l.bf16 %v88_v27  ;;  %v90_v32 = vunpack.c.h.bf16 %v88_v27 }
   0x6   :  { %v22_v3 = vrot.slane %v20_v2, 7  ;;  %v39_v17 = vsub.f32 0.0, %v38_v12 }
   0x8   :  { %v24_v4 = vsub.f32 %v19_v1, %v22_v3 }
   0xa   :  { %v25_v5 = vmax.f32 %v24_v4, 0.0 }
   0xc   :  { %v26_v6 = vadd.f32 1e-05, %v25_v5 }
   0xe   :  { %96 = vrsqrt.f32 %v26_v6  ;;  %vm33_vm0 = vweird.f32 %v26_v6 }
  0x14   :  { %v97_v7 = vpop.eup %96 }
  0x15   :  { %v28_v8 = vmul.f32 %v97_v7, %v26_v6  ;;  %vm34_vm1 = vweird.f32 %v97_v7 }
  0x16   :  { %vm35_vm2 = vmor %vm33_vm0, %vm34_vm1 }
  0x17   :  { %v29_v9 = vmul.f32 %v97_v7, %v28_v8 }
  0x19   :  { %v30_v11 = vmul.f32 0.5, %v29_v9 }
  0x1b   :  { %v31_v13 = vsub.f32 1.5, %v30_v11 }
  0x1d   :  { %v32_v16 = vmul.f32 %v97_v7, %v31_v13 }
  0x1f   :  { %v36_v21 = vsel %vm35_vm2, %v97_v7, %v32_v16 }
  0x20   :  { %v41_v22 = vrot.slane %v36_v21, 1  ;;  %v50_v23 = vperm.slane %v36_v21, 1 }
  0x22   :  { %v43_v24 = vmul.f32 %v41_v22, %v39_v17  ;;  %v51_v25 = vmul.f32 %v85_v18, %v50_v23  ;;  %v52_v26 = vmul.f32 %v86_v19, %v50_v23  ;;  %v53_v28 = vmul.f32 %v50_v23, %v49_v20 }
  0x24   :  { %v54_v30 = vperm.slane %v43_v24, 0 }
  0x26   :  { %v55_v33 = vadd.f32 %v54_v30, %v51_v25  ;;  %v56_v34 = vadd.f32 %v54_v30, %v52_v26  ;;  %v57_v35 = vadd.f32 %v54_v30, %v53_v28 }
  0x28   :  { %v58_v37 = vmax.f32 %v55_v33, 0.0  ;;  %v59_v38 = vmax.f32 %v56_v34, 0.0  ;;  %v60_v39 = vmax.f32 %v57_v35, 0.0 }
  0x2a   :  { %v67_v40 = vadd.f32 %v89_v31, %v58_v37  ;;  %v68_v41 = vadd.f32 %v90_v32, %v59_v38  ;;  %v69_v42 = vadd.f32 %v66_v36, %v60_v39 }
  0x2c   :  { %v70_v43 = vmax.f32 %v67_v40, 0.0  ;;  %v71_v44 = vmax.f32 %v68_v41, 0.0  ;;  %v72_v45 = vmax.f32 %v69_v42, 0.0 }
  0x2e   :  { %v94_v46 = vpack.c.bf16 %v71_v44, %v70_v43  ;;  %v75_v47 = vpack.c.bf16 %v72_v45, %v72_v45 }
  0x30   :  { %95 = vst [vmem:[%s151_s4] sm:$0xff] %v94_v46  }
  0x31   :  { %78 = vst [vmem:[%s151_s4 + $0x8] sm:$0xf] %v75_v47 }

// kernel: contextnet_apply.57
= control target key start
LH: loop header
LB: loop body
LE: loop exit
PB: predicated region body
PF: predicated region fallthrough
CT: control target
= control target key end

     0   :  { %s261_s1 = inlined_call_operand.vmem [shape: bf16[128,128], index: 1, kind: input, shape index: {}]   ;;  %s262_s2 = inlined_call_operand.vmem [shape: f32[1,128], index: 2, kind: input, shape index: {}]   ;;  %s263_s0 = inlined_call_operand.vmem [shape: bf16[24,128], index: 0, kind: input, shape index: {}]   ;;  %s264_s3 = inlined_call_operand.vmem [shape: f32[24,128], index: 3, kind: output, shape index: {}]  }
   0x1   :  { %v189_v0 = vld [vmem:[%s261_s1 + $0x38] sm:$0xff]  ;;  %v188_v1 = vld [vmem:[%s261_s1 + $0x30] sm:$0xff]  ;;  %v187_v2 = vld [vmem:[%s261_s1 + $0x28] sm:$0xff] }
   0x2   :  { %101 = vmatpush.bf16.msra.mxu0 %v189_v0  ;;  %190 = vmatpush.bf16.msra.mxu1 %v189_v0  ;;  %v186_v3 = vld [vmem:[%s261_s1 + $0x20] sm:$0xff]  ;;  %v185_v4 = vld [vmem:[%s261_s1 + $0x18] sm:$0xff]  ;;  %v184_v5 = vld [vmem:[%s261_s1 + $0x10] sm:$0xff] }
   0x3   :  { %v183_v6 = vld [vmem:[%s261_s1 + $0x8] sm:$0xff]  ;;  %v182_v9 = vld [vmem:[%s261_s1] sm:$0xff] }
   0x4   :  { %v26_v7 = vld [vmem:[%s263_s0 + $0x8] sm:$0xf]  ;;  %v181_v10 = vld [vmem:[%s263_s0] sm:$0xff] }
   0x5   :  { %v48_v8 = vunpack.c.l.b16 %v26_v7  ;;  %v198_v12 = vld [vmem:[%s262_s2] ss:$0 sm:$0xff] }
   0x6   :  { %102 = vmatpush.bf16.msra.mxu0 %v188_v1  ;;  %191 = vmatpush.bf16.msra.mxu1 %v188_v1 }
   0x7   :  { %v50_v11 = vpack.c.b16 %v48_v8, %v48_v8 }
   0xa   :  { %103 = vmatpush.bf16.msra.mxu0 %v187_v2  ;;  %192 = vmatpush.bf16.msra.mxu1 %v187_v2 }
   0xe   :  { %104 = vmatpush.bf16.msra.mxu0 %v186_v3  ;;  %193 = vmatpush.bf16.msra.mxu1 %v186_v3 }
  0x12   :  { %105 = vmatpush.bf16.msra.mxu0 %v185_v4  ;;  %194 = vmatpush.bf16.msra.mxu1 %v185_v4 }
  0x16   :  { %106 = vmatpush.bf16.msra.mxu0 %v184_v5  ;;  %195 = vmatpush.bf16.msra.mxu1 %v184_v5 }
  0x1a   :  { %107 = vmatpush.bf16.msra.mxu0 %v183_v6  ;;  %196 = vmatpush.bf16.msra.mxu1 %v183_v6 }
  0x1e   :  { %108 = vmatpush.bf16.msra.mxu0 %v182_v9  ;;  %197 = vmatpush.bf16.msra.mxu1 %v182_v9 }
  0x21   :  { %109 = vmatmul.bf16.vlgmr.msra.gmra.mxu0 %v181_v10  ;;  %114 = vmatmul.bf16.vlgmr.msra.gmra.mxu1 %v50_v11 }
  0x9e   :  { %v110_v13 = vpop.f32.mrf.mxu0  ;;  %v115_v14 = vpop.f32.mrf.mxu1 }
  0x9f   :  { %v135_v15 = vadd.f32 %v198_v12, %v110_v13  ;;  %v137_v16 = vadd.f32 %v198_v12, %v115_v14 }
  0xa1   :  { %138 = vst [vmem:[%s264_s3] sm:$0xff] %v135_v15 }
  0xa2   :  { %140 = vst [vmem:[%s264_s3 + $0x10] sm:$0xff] %v137_v16 }
  0xa6   :  { %v112_v17 = vpop.f32.mrf.mxu0  ;;  %v117_v18 = vpop.f32.mrf.mxu1 }
  0xa7   :  { %v136_v19 = vadd.f32 %v198_v12, %v112_v17 }
  0xa9   :  { %139 = vst [vmem:[%s264_s3 + $0x8] sm:$0xff] %v136_v19 }

</bundles_post_ra>
